<compile_context>
chip_gen: v6e
topology: v6e:2x2x1
jax: 0.10.0
libtpu: 0.0.40
codegen_flags: <defaults>
</compile_context>

<pallas_src>
import jax
import jax.numpy as jnp
from jax.experimental import pallas as pl
from jax.experimental.pallas import tpu as pltpu

# Matmul-input precision for the two conv matmuls (accumulation is always f32).
# float32 preserves the module's exact numerics within the 1e-3 check; switch to
# jnp.bfloat16 for ~2x MXU rate and half the matmul/VMEM bytes after re-validating
# the tolerance (per the perf-review correctness note).
MXU_DTYPE = jnp.float32

EPS = 1e-5


def _banded_weight(w, W):
    """Fold a (Cout, Cin, 3, 3, 3) conv weight into a (9*W*Cin, W*Cout) matrix.

    Row index = (kd, kh, w_in, cin), col index = (w_out, cout).  The three kw taps
    and the zero-padding of the width dimension are folded into the band:
      B[kd, kh, w_in, cin, w_out, cout] = w[cout, cin, kd, kh, kw]  iff  w_in == w_out + kw - 1.
    """
    Cout, Cin = w.shape[0], w.shape[1]
    w = w.astype(jnp.float32)
    B = jnp.zeros((3, 3, W, Cin, W, Cout), jnp.float32)
    for kw in range(3):
        blk = jnp.transpose(w[:, :, :, :, kw], (2, 3, 1, 0))        # (kd, kh, cin, cout)
        band = jnp.eye(W, W, k=1 - kw, dtype=jnp.float32)           # [w_in, w_out]
        B = B + blk[:, :, None, :, None, :] * band[None, None, :, None, :, None]
    return B.reshape(9 * W * Cin, W * Cout)


def _make_kernel(N, D, H, W, C):
    R = N * D * H                     # rows  = batch * depth * height
    WC = W * C                        # lanes = width * channel
    Dp, Hp = D + 2, H + 2
    inv_count = 1.0 / float(R * W)    # elements per channel for the BN statistics

    def conv(src_ref, w_ref, bias_row):
        # 9 (kd, kh) taps taken as ref-view slices, folded into one big-K matmul.
        taps = []
        for kd in range(3):
            for kh in range(3):
                t = src_ref[:, kd:kd + D, kh:kh + H, :]             # (N, D, H, WC)
                taps.append(t.reshape(R, WC).astype(MXU_DTYPE))
        im = jnp.concatenate(taps, axis=1)                          # (R, 9*WC)
        return jnp.dot(im, w_ref[...],
                       preferred_element_type=jnp.float32) + bias_row

    def batchnorm(acc, pool_ref, gamma_row, beta_row):
        # Training-mode BN, one-pass stats: var = E[x^2] - mean^2 (biased).
        s = jnp.sum(acc, axis=0, keepdims=True)                     # (1, WC)
        sq = jnp.sum(acc * acc, axis=0, keepdims=True)              # (1, WC)
        # Channel-pooling matmul: sums lanes belonging to the same channel and
        # broadcasts the per-channel result back to every (w, c) lane in one shot.
        mean = jnp.dot(s, pool_ref[...],
                       preferred_element_type=jnp.float32) * inv_count
        ex2 = jnp.dot(sq, pool_ref[...],
                      preferred_element_type=jnp.float32) * inv_count
        var = ex2 - mean * mean
        scale = jax.lax.rsqrt(var + EPS) * gamma_row
        return (acc - mean) * scale + beta_row

    def kernel(xp_ref, pool_ref,
               w1_ref, b1_ref, g1_ref, be1_ref,
               w2_ref, b2_ref, g2_ref, be2_ref,
               out_ref, pad_ref):
        # ---- conv1 + bias (single K-folded MXU matmul) ----
        acc1 = conv(xp_ref, w1_ref, b1_ref[...])
        # ---- bn1 + relu ----
        out1 = jnp.maximum(batchnorm(acc1, pool_ref, g1_ref[...], be1_ref[...]), 0.0)

        # ---- stage out1 into the d/h zero-padded scratch (halo-only zeroing) ----
        zeros_d = jnp.zeros((N, 1, Hp, WC), jnp.float32)
        zeros_h = jnp.zeros((N, Dp, 1, WC), jnp.float32)
        pad_ref[:, 0:1, :, :] = zeros_d
        pad_ref[:, D + 1:D + 2, :, :] = zeros_d
        pad_ref[:, :, 0:1, :] = zeros_h
        pad_ref[:, :, H + 1:H + 2, :] = zeros_h
        pad_ref[:, 1:D + 1, 1:H + 1, :] = out1.reshape(N, D, H, WC)

        # ---- conv2 + bias ----
        acc2 = conv(pad_ref, w2_ref, b2_ref[...])
        # ---- bn2 ----
        out2 = batchnorm(acc2, pool_ref, g2_ref[...], be2_ref[...])

        # ---- identity residual + relu (lane-dense, unmasked stores) ----
        resid = xp_ref[:, 1:D + 1, 1:H + 1, :].reshape(R, WC)
        out_ref[...] = jnp.maximum(out2 + resid, 0.0)

    return kernel


def basic_block_forward(x_ncdhw, params):
    """x_ncdhw: (N, C, D, H, W) float32 -> (N, C, D, H, W) float32."""
    w1, b1, g1, be1, w2, b2, g2, be2 = params
    N, C, D, H, W = x_ncdhw.shape
    R, WC = N * D * H, W * C

    # NCDHW -> (N, D, H, W*C): channels-last with (width, channel) folded onto the
    # lane axis.  Zero-pad depth/height only; the width boundary is handled by the
    # banded weights, so no lane padding is ever needed.
    x_l = jnp.transpose(x_ncdhw, (0, 2, 3, 4, 1)).astype(jnp.float32).reshape(N, D, H, WC)
    xp = jnp.pad(x_l, ((0, 0), (1, 1), (1, 1), (0, 0)))

    # Host-side parameter packing (tiny, one-time glue): banded conv weights,
    # per-lane-tiled bias/gamma/beta rows, channel-pooling matrix for BN.
    wb1 = _banded_weight(w1, W).astype(MXU_DTYPE)
    wb2 = _banded_weight(w2, W).astype(MXU_DTYPE)
    b1t = jnp.tile(b1.astype(jnp.float32), W).reshape(1, WC)
    b2t = jnp.tile(b2.astype(jnp.float32), W).reshape(1, WC)
    g1t = jnp.tile(g1.astype(jnp.float32), W).reshape(1, WC)
    g2t = jnp.tile(g2.astype(jnp.float32), W).reshape(1, WC)
    be1t = jnp.tile(be1.astype(jnp.float32), W).reshape(1, WC)
    be2t = jnp.tile(be2.astype(jnp.float32), W).reshape(1, WC)
    pool = jnp.tile(jnp.eye(C, dtype=jnp.float32), (W, W))          # (WC, WC)

    kernel = _make_kernel(N, D, H, W, C)
    # TODO(synk): for large N*D*H, split into row-tiled conv + partial-BN-stats
    # passes with a parallel grid (v7x dual TensorCore) and a separate normalize
    # pass; at these shapes the whole problem is VMEM-resident so one fused call wins.
    out_flat = pl.pallas_call(
        kernel,
        out_shape=jax.ShapeDtypeStruct((R, WC), jnp.float32),
        in_specs=[pl.BlockSpec(memory_space=pltpu.MemorySpace.VMEM)] * 10,
        out_specs=pl.BlockSpec(memory_space=pltpu.MemorySpace.VMEM),
        scratch_shapes=[pltpu.VMEM((N, D + 2, H + 2, WC), jnp.float32)],
        compiler_params=pltpu.CompilerParams(vmem_limit_bytes=48 * 1024 * 1024),
    )(xp, pool, wb1, b1t, g1t, be1t, wb2, b2t, g2t, be2t)

    out = out_flat.reshape(N, D, H, W, C)
    return jnp.transpose(out, (0, 4, 1, 2, 3))


def reference(x_ncdhw, params):
    """Pure-JAX reference (lax conv, training-mode BN) for the correctness check."""
    w1, b1, g1, be1, w2, b2, g2, be2 = params
    dn = ('NDHWC', 'DHWIO', 'NDHWC')
    xt = jnp.transpose(x_ncdhw, (0, 2, 3, 4, 1)).astype(jnp.float32)

    def conv(x, w, b):
        return jax.lax.conv_general_dilated(
            x, jnp.transpose(w, (2, 3, 4, 1, 0)), (1, 1, 1),
            ((1, 1), (1, 1), (1, 1)), dimension_numbers=dn) + b

    def bn(x, g, be):
        m = x.mean((0, 1, 2, 3))
        v = ((x - m) ** 2).mean((0, 1, 2, 3))
        return (x - m) * jax.lax.rsqrt(v + EPS) * g + be

    y = jnp.maximum(bn(conv(xt, w1, b1), g1, be1), 0.0)
    z = bn(conv(y, w2, b2), g2, be2)
    out = jnp.maximum(z + xt, 0.0)
    return jnp.transpose(out, (0, 4, 1, 2, 3))


if __name__ == "__main__":
    # BasicBlock(channel=8) on a (2, 8, 16, 16, 16) input: W*C = 128 makes the
    # lane axis of every activation / store exactly one full vreg lane tile.
    N, C, D, H, W = 2, 8, 16, 16, 16

    key = jax.random.PRNGKey(0)
    ks = jax.random.split(key, 9)
    w1 = jax.random.normal(ks[0], (C, C, 3, 3, 3), jnp.float32) * 0.1
    b1 = jax.random.normal(ks[1], (C,), jnp.float32) * 0.1
    w2 = jax.random.normal(ks[2], (C, C, 3, 3, 3), jnp.float32) * 0.1
    b2 = jax.random.normal(ks[3], (C,), jnp.float32) * 0.1
    g1 = 1.0 + 0.1 * jax.random.normal(ks[4], (C,), jnp.float32)
    be1 = 0.1 * jax.random.normal(ks[5], (C,), jnp.float32)
    g2 = 1.0 + 0.1 * jax.random.normal(ks[6], (C,), jnp.float32)
    be2 = 0.1 * jax.random.normal(ks[7], (C,), jnp.float32)
    params = (w1, b1, g1, be1, w2, b2, g2, be2)

    x = jax.random.normal(ks[8], (N, C, D, H, W), jnp.float32)

    out = jax.block_until_ready(basic_block_forward(x, params))
    ref = jax.block_until_ready(reference(x, params))

    max_diff = float(jnp.max(jnp.abs(out - ref)))
    if not bool(jnp.allclose(out, ref, atol=1e-3, rtol=1e-3)):
        raise RuntimeError("Pallas kernel output mismatch vs reference, "
                           "max abs diff = %e" % max_diff)
    print("KERNEL_OK")
</pallas_src>

<mosaic_0001>
module attributes {stable_mosaic.version = 11 : i64} {
  func.func @kernel(%arg0: memref<2x18x18x128xf32, #tpu.memory_space<vmem>>, %arg1: memref<128x128xf32, #tpu.memory_space<vmem>>, %arg2: memref<1152x128xf32, #tpu.memory_space<vmem>>, %arg3: memref<1x128xf32, #tpu.memory_space<vmem>>, %arg4: memref<1x128xf32, #tpu.memory_space<vmem>>, %arg5: memref<1x128xf32, #tpu.memory_space<vmem>>, %arg6: memref<1152x128xf32, #tpu.memory_space<vmem>>, %arg7: memref<1x128xf32, #tpu.memory_space<vmem>>, %arg8: memref<1x128xf32, #tpu.memory_space<vmem>>, %arg9: memref<1x128xf32, #tpu.memory_space<vmem>>, %arg10: memref<512x128xf32, #tpu.memory_space<vmem>>, %arg11: memref<2x18x18x128xf32, #tpu.memory_space<vmem>>) attributes {dimension_semantics = [], scalar_prefetch = 0 : i64, scratch_operands = 1 : i64, tpu.core_type = #tpu.core_type<tc>} {
    %c0 = arith.constant 0 : index
    %c0_0 = arith.constant 0 : index
    %0 = vector.load %arg3[%c0, %c0_0] : memref<1x128xf32, #tpu.memory_space<vmem>>, vector<1x128xf32>
    %c0_1 = arith.constant 0 : index
    %c0_2 = arith.constant 0 : index
    %c0_3 = arith.constant 0 : index
    %c0_4 = arith.constant 0 : index
    %1 = vector.load %arg0[%c0_1, %c0_2, %c0_3, %c0_4] : memref<2x18x18x128xf32, #tpu.memory_space<vmem>>, vector<2x16x16x128xf32>
    %2 = vector.shape_cast %1 : vector<2x16x16x128xf32> to vector<512x128xf32>
    %c0_5 = arith.constant 0 : index
    %c0_6 = arith.constant 0 : index
    %c1 = arith.constant 1 : index
    %c0_7 = arith.constant 0 : index
    %3 = vector.load %arg0[%c0_5, %c0_6, %c1, %c0_7] : memref<2x18x18x128xf32, #tpu.memory_space<vmem>>, vector<2x16x16x128xf32>
    %4 = vector.shape_cast %3 : vector<2x16x16x128xf32> to vector<512x128xf32>
    %c0_8 = arith.constant 0 : index
    %c0_9 = arith.constant 0 : index
    %c2 = arith.constant 2 : index
    %c0_10 = arith.constant 0 : index
    %5 = vector.load %arg0[%c0_8, %c0_9, %c2, %c0_10] : memref<2x18x18x128xf32, #tpu.memory_space<vmem>>, vector<2x16x16x128xf32>
    %6 = vector.shape_cast %5 : vector<2x16x16x128xf32> to vector<512x128xf32>
    %c0_11 = arith.constant 0 : index
    %c1_12 = arith.constant 1 : index
    %c0_13 = arith.constant 0 : index
    %c0_14 = arith.constant 0 : index
    %7 = vector.load %arg0[%c0_11, %c1_12, %c0_13, %c0_14] : memref<2x18x18x128xf32, #tpu.memory_space<vmem>>, vector<2x16x16x128xf32>
    %8 = vector.shape_cast %7 : vector<2x16x16x128xf32> to vector<512x128xf32>
    %c0_15 = arith.constant 0 : index
    %c1_16 = arith.constant 1 : index
    %c1_17 = arith.constant 1 : index
    %c0_18 = arith.constant 0 : index
    %9 = vector.load %arg0[%c0_15, %c1_16, %c1_17, %c0_18] : memref<2x18x18x128xf32, #tpu.memory_space<vmem>>, vector<2x16x16x128xf32>
    %10 = vector.shape_cast %9 : vector<2x16x16x128xf32> to vector<512x128xf32>
    %c0_19 = arith.constant 0 : index
    %c1_20 = arith.constant 1 : index
    %c2_21 = arith.constant 2 : index
    %c0_22 = arith.constant 0 : index
    %11 = vector.load %arg0[%c0_19, %c1_20, %c2_21, %c0_22] : memref<2x18x18x128xf32, #tpu.memory_space<vmem>>, vector<2x16x16x128xf32>
    %12 = vector.shape_cast %11 : vector<2x16x16x128xf32> to vector<512x128xf32>
    %c0_23 = arith.constant 0 : index
    %c2_24 = arith.constant 2 : index
    %c0_25 = arith.constant 0 : index
    %c0_26 = arith.constant 0 : index
    %13 = vector.load %arg0[%c0_23, %c2_24, %c0_25, %c0_26] : memref<2x18x18x128xf32, #tpu.memory_space<vmem>>, vector<2x16x16x128xf32>
    %14 = vector.shape_cast %13 : vector<2x16x16x128xf32> to vector<512x128xf32>
    %c0_27 = arith.constant 0 : index
    %c2_28 = arith.constant 2 : index
    %c1_29 = arith.constant 1 : index
    %c0_30 = arith.constant 0 : index
    %15 = vector.load %arg0[%c0_27, %c2_28, %c1_29, %c0_30] : memref<2x18x18x128xf32, #tpu.memory_space<vmem>>, vector<2x16x16x128xf32>
    %16 = vector.shape_cast %15 : vector<2x16x16x128xf32> to vector<512x128xf32>
    %c0_31 = arith.constant 0 : index
    %c2_32 = arith.constant 2 : index
    %c2_33 = arith.constant 2 : index
    %c0_34 = arith.constant 0 : index
    %17 = vector.load %arg0[%c0_31, %c2_32, %c2_33, %c0_34] : memref<2x18x18x128xf32, #tpu.memory_space<vmem>>, vector<2x16x16x128xf32>
    %18 = vector.shape_cast %17 : vector<2x16x16x128xf32> to vector<512x128xf32>
    %19 = tpu.concatenate %2, %4, %6, %8, %10, %12, %14, %16, %18 in 1 : vector<512x128xf32>, vector<512x128xf32>, vector<512x128xf32>, vector<512x128xf32>, vector<512x128xf32>, vector<512x128xf32>, vector<512x128xf32>, vector<512x128xf32>, vector<512x128xf32> -> vector<512x1152xf32>
    %c0_35 = arith.constant 0 : index
    %c0_36 = arith.constant 0 : index
    %20 = vector.load %arg2[%c0_35, %c0_36] : memref<1152x128xf32, #tpu.memory_space<vmem>>, vector<1152x128xf32>
    %cst = arith.constant dense<0.000000e+00> : vector<512x128xf32>
    %21 = tpu.matmul %19, %20, %cst {dimension_numbers = #tpu.dot_dimension_numbers<[1], [0], [0], [1], [0, 0, 1, 1], [], []>} : vector<512x1152xf32>, vector<1152x128xf32>, vector<512x128xf32> -> vector<512x128xf32>
    %22 = vector.broadcast %0 : vector<1x128xf32> to vector<512x128xf32>
    %23 = arith.addf %21, %22 : vector<512x128xf32>
    %c0_37 = arith.constant 0 : index
    %c0_38 = arith.constant 0 : index
    %24 = vector.load %arg4[%c0_37, %c0_38] : memref<1x128xf32, #tpu.memory_space<vmem>>, vector<1x128xf32>
    %c0_39 = arith.constant 0 : index
    %c0_40 = arith.constant 0 : index
    %25 = vector.load %arg5[%c0_39, %c0_40] : memref<1x128xf32, #tpu.memory_space<vmem>>, vector<1x128xf32>
    %cst_41 = arith.constant dense<0.000000e+00> : vector<128xf32>
    %26 = vector.multi_reduction <add>, %23, %cst_41 [0] : vector<512x128xf32> to vector<128xf32>
    %27 = vector.shape_cast %26 : vector<128xf32> to vector<1x128xf32>
    %28 = arith.mulf %23, %23 : vector<512x128xf32>
    %cst_42 = arith.constant dense<0.000000e+00> : vector<128xf32>
    %29 = vector.multi_reduction <add>, %28, %cst_42 [0] : vector<512x128xf32> to vector<128xf32>
    %30 = vector.shape_cast %29 : vector<128xf32> to vector<1x128xf32>
    %c0_43 = arith.constant 0 : index
    %c0_44 = arith.constant 0 : index
    %31 = vector.load %arg1[%c0_43, %c0_44] : memref<128x128xf32, #tpu.memory_space<vmem>>, vector<128x128xf32>
    %cst_45 = arith.constant dense<0.000000e+00> : vector<1x128xf32>
    %32 = tpu.matmul %27, %31, %cst_45 {dimension_numbers = #tpu.dot_dimension_numbers<[1], [0], [0], [1], [0, 0, 1, 1], [], []>} : vector<1x128xf32>, vector<128x128xf32>, vector<1x128xf32> -> vector<1x128xf32>
    %cst_46 = arith.constant 1.22070313E-4 : f32
    %33 = vector.broadcast %cst_46 : f32 to vector<1x128xf32>
    %34 = arith.mulf %32, %33 : vector<1x128xf32>
    %c0_47 = arith.constant 0 : index
    %c0_48 = arith.constant 0 : index
    %35 = vector.load %arg1[%c0_47, %c0_48] : memref<128x128xf32, #tpu.memory_space<vmem>>, vector<128x128xf32>
    %cst_49 = arith.constant dense<0.000000e+00> : vector<1x128xf32>
    %36 = tpu.matmul %30, %35, %cst_49 {dimension_numbers = #tpu.dot_dimension_numbers<[1], [0], [0], [1], [0, 0, 1, 1], [], []>} : vector<1x128xf32>, vector<128x128xf32>, vector<1x128xf32> -> vector<1x128xf32>
    %cst_50 = arith.constant 1.22070313E-4 : f32
    %37 = vector.broadcast %cst_50 : f32 to vector<1x128xf32>
    %38 = arith.mulf %36, %37 : vector<1x128xf32>
    %39 = arith.mulf %34, %34 : vector<1x128xf32>
    %40 = arith.subf %38, %39 : vector<1x128xf32>
    %cst_51 = arith.constant 9.99999974E-6 : f32
    %41 = vector.broadcast %cst_51 : f32 to vector<1x128xf32>
    %42 = arith.addf %40, %41 : vector<1x128xf32>
    %43 = math.rsqrt %42 : vector<1x128xf32>
    %44 = arith.mulf %43, %24 : vector<1x128xf32>
    %45 = vector.broadcast %34 : vector<1x128xf32> to vector<512x128xf32>
    %46 = arith.subf %23, %45 : vector<512x128xf32>
    %47 = vector.broadcast %44 : vector<1x128xf32> to vector<512x128xf32>
    %48 = arith.mulf %46, %47 : vector<512x128xf32>
    %49 = vector.broadcast %25 : vector<1x128xf32> to vector<512x128xf32>
    %50 = arith.addf %48, %49 : vector<512x128xf32>
    %cst_52 = arith.constant 0.000000e+00 : f32
    %51 = vector.broadcast %cst_52 : f32 to vector<512x128xf32>
    %52 = arith.maximumf %50, %51 : vector<512x128xf32>
    %cst_53 = arith.constant 0.000000e+00 : f32
    %53 = vector.broadcast %cst_53 : f32 to vector<2x1x18x128xf32>
    %cst_54 = arith.constant 0.000000e+00 : f32
    %54 = vector.broadcast %cst_54 : f32 to vector<2x18x1x128xf32>
    %c0_55 = arith.constant 0 : index
    %c0_56 = arith.constant 0 : index
    %c0_57 = arith.constant 0 : index
    %c0_58 = arith.constant 0 : index
    %55 = vector.load %arg11[%c0_55, %c0_56, %c0_57, %c0_58] : memref<2x18x18x128xf32, #tpu.memory_space<vmem>>, vector<2x1x18x128xf32>
    tpu.vector_store %arg11[%c0_55, %c0_56, %c0_57, %c0_58], %53 {strides = array<i32>} : memref<2x18x18x128xf32, #tpu.memory_space<vmem>>, vector<2x1x18x128xf32>,
    %c0_59 = arith.constant 0 : index
    %c17 = arith.constant 17 : index
    %c0_60 = arith.constant 0 : index
    %c0_61 = arith.constant 0 : index
    %56 = vector.load %arg11[%c0_59, %c17, %c0_60, %c0_61] : memref<2x18x18x128xf32, #tpu.memory_space<vmem>>, vector<2x1x18x128xf32>
    tpu.vector_store %arg11[%c0_59, %c17, %c0_60, %c0_61], %53 {strides = array<i32>} : memref<2x18x18x128xf32, #tpu.memory_space<vmem>>, vector<2x1x18x128xf32>,
    %c0_62 = arith.constant 0 : index
    %c0_63 = arith.constant 0 : index
    %c0_64 = arith.constant 0 : index
    %c0_65 = arith.constant 0 : index
    %57 = vector.load %arg11[%c0_62, %c0_63, %c0_64, %c0_65] : memref<2x18x18x128xf32, #tpu.memory_space<vmem>>, vector<2x18x1x128xf32>
    tpu.vector_store %arg11[%c0_62, %c0_63, %c0_64, %c0_65], %54 {strides = array<i32>} : memref<2x18x18x128xf32, #tpu.memory_space<vmem>>, vector<2x18x1x128xf32>,
    %c0_66 = arith.constant 0 : index
    %c0_67 = arith.constant 0 : index
    %c17_68 = arith.constant 17 : index
    %c0_69 = arith.constant 0 : index
    %58 = vector.load %arg11[%c0_66, %c0_67, %c17_68, %c0_69] : memref<2x18x18x128xf32, #tpu.memory_space<vmem>>, vector<2x18x1x128xf32>
    tpu.vector_store %arg11[%c0_66, %c0_67, %c17_68, %c0_69], %54 {strides = array<i32>} : memref<2x18x18x128xf32, #tpu.memory_space<vmem>>, vector<2x18x1x128xf32>,
    %59 = vector.shape_cast %52 : vector<512x128xf32> to vector<2x16x16x128xf32>
    %c0_70 = arith.constant 0 : index
    %c1_71 = arith.constant 1 : index
    %c1_72 = arith.constant 1 : index
    %c0_73 = arith.constant 0 : index
    %60 = vector.load %arg11[%c0_70, %c1_71, %c1_72, %c0_73] : memref<2x18x18x128xf32, #tpu.memory_space<vmem>>, vector<2x16x16x128xf32>
    tpu.vector_store %arg11[%c0_70, %c1_71, %c1_72, %c0_73], %59 {strides = array<i32>} : memref<2x18x18x128xf32, #tpu.memory_space<vmem>>, vector<2x16x16x128xf32>,
    %c0_74 = arith.constant 0 : index
    %c0_75 = arith.constant 0 : index
    %61 = vector.load %arg7[%c0_74, %c0_75] : memref<1x128xf32, #tpu.memory_space<vmem>>, vector<1x128xf32>
    %c0_76 = arith.constant 0 : index
    %c0_77 = arith.constant 0 : index
    %c0_78 = arith.constant 0 : index
    %c0_79 = arith.constant 0 : index
    %62 = vector.load %arg11[%c0_76, %c0_77, %c0_78, %c0_79] : memref<2x18x18x128xf32, #tpu.memory_space<vmem>>, vector<2x16x16x128xf32>
    %63 = vector.shape_cast %62 : vector<2x16x16x128xf32> to vector<512x128xf32>
    %c0_80 = arith.constant 0 : index
    %c0_81 = arith.constant 0 : index
    %c1_82 = arith.constant 1 : index
    %c0_83 = arith.constant 0 : index
    %64 = vector.load %arg11[%c0_80, %c0_81, %c1_82, %c0_83] : memref<2x18x18x128xf32, #tpu.memory_space<vmem>>, vector<2x16x16x128xf32>
    %65 = vector.shape_cast %64 : vector<2x16x16x128xf32> to vector<512x128xf32>
    %c0_84 = arith.constant 0 : index
    %c0_85 = arith.constant 0 : index
    %c2_86 = arith.constant 2 : index
    %c0_87 = arith.constant 0 : index
    %66 = vector.load %arg11[%c0_84, %c0_85, %c2_86, %c0_87] : memref<2x18x18x128xf32, #tpu.memory_space<vmem>>, vector<2x16x16x128xf32>
    %67 = vector.shape_cast %66 : vector<2x16x16x128xf32> to vector<512x128xf32>
    %c0_88 = arith.constant 0 : index
    %c1_89 = arith.constant 1 : index
    %c0_90 = arith.constant 0 : index
    %c0_91 = arith.constant 0 : index
    %68 = vector.load %arg11[%c0_88, %c1_89, %c0_90, %c0_91] : memref<2x18x18x128xf32, #tpu.memory_space<vmem>>, vector<2x16x16x128xf32>
    %69 = vector.shape_cast %68 : vector<2x16x16x128xf32> to vector<512x128xf32>
    %c0_92 = arith.constant 0 : index
    %c1_93 = arith.constant 1 : index
    %c1_94 = arith.constant 1 : index
    %c0_95 = arith.constant 0 : index
    %70 = vector.load %arg11[%c0_92, %c1_93, %c1_94, %c0_95] : memref<2x18x18x128xf32, #tpu.memory_space<vmem>>, vector<2x16x16x128xf32>
    %71 = vector.shape_cast %70 : vector<2x16x16x128xf32> to vector<512x128xf32>
    %c0_96 = arith.constant 0 : index
    %c1_97 = arith.constant 1 : index
    %c2_98 = arith.constant 2 : index
    %c0_99 = arith.constant 0 : index
    %72 = vector.load %arg11[%c0_96, %c1_97, %c2_98, %c0_99] : memref<2x18x18x128xf32, #tpu.memory_space<vmem>>, vector<2x16x16x128xf32>
    %73 = vector.shape_cast %72 : vector<2x16x16x128xf32> to vector<512x128xf32>
    %c0_100 = arith.constant 0 : index
    %c2_101 = arith.constant 2 : index
    %c0_102 = arith.constant 0 : index
    %c0_103 = arith.constant 0 : index
    %74 = vector.load %arg11[%c0_100, %c2_101, %c0_102, %c0_103] : memref<2x18x18x128xf32, #tpu.memory_space<vmem>>, vector<2x16x16x128xf32>
    %75 = vector.shape_cast %74 : vector<2x16x16x128xf32> to vector<512x128xf32>
    %c0_104 = arith.constant 0 : index
    %c2_105 = arith.constant 2 : index
    %c1_106 = arith.constant 1 : index
    %c0_107 = arith.constant 0 : index
    %76 = vector.load %arg11[%c0_104, %c2_105, %c1_106, %c0_107] : memref<2x18x18x128xf32, #tpu.memory_space<vmem>>, vector<2x16x16x128xf32>
    %77 = vector.shape_cast %76 : vector<2x16x16x128xf32> to vector<512x128xf32>
    %c0_108 = arith.constant 0 : index
    %c2_109 = arith.constant 2 : index
    %c2_110 = arith.constant 2 : index
    %c0_111 = arith.constant 0 : index
    %78 = vector.load %arg11[%c0_108, %c2_109, %c2_110, %c0_111] : memref<2x18x18x128xf32, #tpu.memory_space<vmem>>, vector<2x16x16x128xf32>
    %79 = vector.shape_cast %78 : vector<2x16x16x128xf32> to vector<512x128xf32>
    %80 = tpu.concatenate %63, %65, %67, %69, %71, %73, %75, %77, %79 in 1 : vector<512x128xf32>, vector<512x128xf32>, vector<512x128xf32>, vector<512x128xf32>, vector<512x128xf32>, vector<512x128xf32>, vector<512x128xf32>, vector<512x128xf32>, vector<512x128xf32> -> vector<512x1152xf32>
    %c0_112 = arith.constant 0 : index
    %c0_113 = arith.constant 0 : index
    %81 = vector.load %arg6[%c0_112, %c0_113] : memref<1152x128xf32, #tpu.memory_space<vmem>>, vector<1152x128xf32>
    %cst_114 = arith.constant dense<0.000000e+00> : vector<512x128xf32>
    %82 = tpu.matmul %80, %81, %cst_114 {dimension_numbers = #tpu.dot_dimension_numbers<[1], [0], [0], [1], [0, 0, 1, 1], [], []>} : vector<512x1152xf32>, vector<1152x128xf32>, vector<512x128xf32> -> vector<512x128xf32>
    %83 = vector.broadcast %61 : vector<1x128xf32> to vector<512x128xf32>
    %84 = arith.addf %82, %83 : vector<512x128xf32>
    %c0_115 = arith.constant 0 : index
    %c0_116 = arith.constant 0 : index
    %85 = vector.load %arg8[%c0_115, %c0_116] : memref<1x128xf32, #tpu.memory_space<vmem>>, vector<1x128xf32>
    %c0_117 = arith.constant 0 : index
    %c0_118 = arith.constant 0 : index
    %86 = vector.load %arg9[%c0_117, %c0_118] : memref<1x128xf32, #tpu.memory_space<vmem>>, vector<1x128xf32>
    %cst_119 = arith.constant dense<0.000000e+00> : vector<128xf32>
    %87 = vector.multi_reduction <add>, %84, %cst_119 [0] : vector<512x128xf32> to vector<128xf32>
    %88 = vector.shape_cast %87 : vector<128xf32> to vector<1x128xf32>
    %89 = arith.mulf %84, %84 : vector<512x128xf32>
    %cst_120 = arith.constant dense<0.000000e+00> : vector<128xf32>
    %90 = vector.multi_reduction <add>, %89, %cst_120 [0] : vector<512x128xf32> to vector<128xf32>
    %91 = vector.shape_cast %90 : vector<128xf32> to vector<1x128xf32>
    %c0_121 = arith.constant 0 : index
    %c0_122 = arith.constant 0 : index
    %92 = vector.load %arg1[%c0_121, %c0_122] : memref<128x128xf32, #tpu.memory_space<vmem>>, vector<128x128xf32>
    %cst_123 = arith.constant dense<0.000000e+00> : vector<1x128xf32>
    %93 = tpu.matmul %88, %92, %cst_123 {dimension_numbers = #tpu.dot_dimension_numbers<[1], [0], [0], [1], [0, 0, 1, 1], [], []>} : vector<1x128xf32>, vector<128x128xf32>, vector<1x128xf32> -> vector<1x128xf32>
    %cst_124 = arith.constant 1.22070313E-4 : f32
    %94 = vector.broadcast %cst_124 : f32 to vector<1x128xf32>
    %95 = arith.mulf %93, %94 : vector<1x128xf32>
    %c0_125 = arith.constant 0 : index
    %c0_126 = arith.constant 0 : index
    %96 = vector.load %arg1[%c0_125, %c0_126] : memref<128x128xf32, #tpu.memory_space<vmem>>, vector<128x128xf32>
    %cst_127 = arith.constant dense<0.000000e+00> : vector<1x128xf32>
    %97 = tpu.matmul %91, %96, %cst_127 {dimension_numbers = #tpu.dot_dimension_numbers<[1], [0], [0], [1], [0, 0, 1, 1], [], []>} : vector<1x128xf32>, vector<128x128xf32>, vector<1x128xf32> -> vector<1x128xf32>
    %cst_128 = arith.constant 1.22070313E-4 : f32
    %98 = vector.broadcast %cst_128 : f32 to vector<1x128xf32>
    %99 = arith.mulf %97, %98 : vector<1x128xf32>
    %100 = arith.mulf %95, %95 : vector<1x128xf32>
    %101 = arith.subf %99, %100 : vector<1x128xf32>
    %cst_129 = arith.constant 9.99999974E-6 : f32
    %102 = vector.broadcast %cst_129 : f32 to vector<1x128xf32>
    %103 = arith.addf %101, %102 : vector<1x128xf32>
    %104 = math.rsqrt %103 : vector<1x128xf32>
    %105 = arith.mulf %104, %85 : vector<1x128xf32>
    %106 = vector.broadcast %95 : vector<1x128xf32> to vector<512x128xf32>
    %107 = arith.subf %84, %106 : vector<512x128xf32>
    %108 = vector.broadcast %105 : vector<1x128xf32> to vector<512x128xf32>
    %109 = arith.mulf %107, %108 : vector<512x128xf32>
    %110 = vector.broadcast %86 : vector<1x128xf32> to vector<512x128xf32>
    %111 = arith.addf %109, %110 : vector<512x128xf32>
    %c0_130 = arith.constant 0 : index
    %c1_131 = arith.constant 1 : index
    %c1_132 = arith.constant 1 : index
    %c0_133 = arith.constant 0 : index
    %112 = vector.load %arg0[%c0_130, %c1_131, %c1_132, %c0_133] : memref<2x18x18x128xf32, #tpu.memory_space<vmem>>, vector<2x16x16x128xf32>
    %113 = vector.shape_cast %112 : vector<2x16x16x128xf32> to vector<512x128xf32>
    %114 = arith.addf %111, %113 : vector<512x128xf32>
    %cst_134 = arith.constant 0.000000e+00 : f32
    %115 = vector.broadcast %cst_134 : f32 to vector<512x128xf32>
    %116 = arith.maximumf %114, %115 : vector<512x128xf32>
    %c0_135 = arith.constant 0 : index
    %c0_136 = arith.constant 0 : index
    %117 = vector.load %arg10[%c0_135, %c0_136] : memref<512x128xf32, #tpu.memory_space<vmem>>, vector<512x128xf32>
    tpu.vector_store %arg10[%c0_135, %c0_136], %116 {strides = array<i32>} : memref<512x128xf32, #tpu.memory_space<vmem>>, vector<512x128xf32>,
    return
  }
}

</mosaic_0001>

<bundles_post_ra>
// kernel: tpu_custom_call.1
= control target key start
LH: loop header
LB: loop body
LE: loop exit
PB: predicated region body
PF: predicated region fallthrough
CT: control target
= control target key end

     0   :  { %15 = vsyncpa [#allocation4], 0  ;;  %s14525_s0 = inlined_call_operand.vmem [shape: f32[2,18,18,128], index: 0, kind: input, shape index: {}]   ;;  %s14526_s1 = inlined_call_operand.vmem [shape: f32[128,128], index: 1, kind: input, shape index: {}]   ;;  %s14527_s2 = inlined_call_operand.vmem [shape: f32[1152,128], index: 2, kind: input, shape index: {}]   ;;  %s14528_s3 = inlined_call_operand.vmem [shape: f32[1,128], index: 3, kind: input, shape index: {}]   ;;  %s14529_s4 = inlined_call_operand.vmem [shape: f32[1,128], index: 4, kind: input, shape index: {}]   ;;  %s14530_s5 = inlined_call_operand.vmem [shape: f32[1,128], index: 5, kind: input, shape index: {}]   ;;  %s14531_s6 = inlined_call_operand.hbm [shape: f32[1152,128], index: 6, kind: input, shape index: {}]   ;;  %s14532_s7 = inlined_call_operand.vmem [shape: f32[1,128], index: 7, kind: input, shape index: {}]   ;;  %s14533_s8 = inlined_call_operand.vmem [shape: f32[1,128], index: 8, kind: input, shape index: {}]   ;;  %s14534_s9 = inlined_call_operand.vmem [shape: f32[1,128], index: 9, kind: input, shape index: {}]   ;;  %s14535_s10 = inlined_call_operand.hbm [shape: f32[512,128], index: 10, kind: output, shape index: {}]  }
   0x1   :  { %16 = vsyncpa [#allocation5], 0  ;;  %s8150_s13 = smov [#allocation3]  }
   0x2   :  { %s34_s14 = sshll.u32 %s8150_s13, 4  ;;  %s35_s14 = int_to_ptr.vmem [resolvable:$true] %s34_s14 }
   0x3   :  { %s8114_s15 = scalar_lea.vmem %s35_s14, 18432  ;;  %p8119_p1 = scmp.lt.s32.totalorder %s35_s14, %s35_s14 }
   0x4   :  { %p8115_p0 = scmp.ne.s32.totalorder %s35_s14, %s8114_s15  ;;  %p8120_p2 = scmp.lt.s32.totalorder %s8114_s15, %s8114_s15 }
   0x6   :  { %p8121_p3 = por %p8120_p2, %p8119_p1 }
   0x8   :  { %p8122_p4 = pnand %p8121_p3, %p8115_p0 }
   0xa   :  { %8125 = shalt.err (!%p8122_p4)
}
   0xb   :  { %s8151_s16 = smov 128   ;;  %s8152_s17 = smov 8  }
   0xc   :  { %40 = dma.hbm_to_vmem [thread:$0]  %s14531_s6, 18432, %s35_s14, [#allocation4], %s8151_s16, %s8151_s16, %s8152_s17  }
   0xd   :  { %8146 = dma.done.wait [#allocation4], 18432  }
   0xe   :  { %8147 = vsyncadd [#allocation4], 4294948864  ;;  %v8153_v0 = vmov 0.0   ;;  %v644_v1 = vld [vmem:[%s14527_s2 + $0x78] sm:$0xff]  ;;  %v643_v2 = vld [vmem:[%s14527_s2 + $0x70] sm:$0xff]  ;;  %vm8154_vm0 = vmmov 0  }
   0xf   :  { %779 = vmatprep.subr.mxu0 %v8153_v0  ;;  %3341 = vst [vmem:[#allocation2] sm:$0xff] %v8153_v0  ;;  %3342 = vst [vmem:[#allocation2 + $0x8] sm:$0xff] %v8153_v0  ;;  %1164 = vmatprep.subr.mxu1 %v8153_v0  ;;  %v676_v3 = vld [vmem:[%s14527_s2 + $0x178] sm:$0xff]  ;;  %v675_v4 = vld [vmem:[%s14527_s2 + $0x170] sm:$0xff] }
  0x10   :  { %3343 = vst [vmem:[#allocation2 + $0x10] sm:$0x3] %v8153_v0  ;;  %3344 = vst [vmem:[#allocation2 + $0x1b0] sm:$0xff] %v8153_v0  ;;  %780 = vmatpush1.msra.mxu0 %v644_v1  ;;  %1165 = vmatpush1.msra.mxu1 %v676_v3  ;;  %v642_v5 = vld [vmem:[%s14527_s2 + $0x68] sm:$0xff]  ;;  %v641_v7 = vld [vmem:[%s14527_s2 + $0x60] sm:$0xff] }
  0x11   :  { %3345 = vst [vmem:[#allocation2 + $0x1b8] sm:$0xff] %v8153_v0  ;;  %3346 = vst [vmem:[#allocation2 + $0x1c0] sm:$0x3] %v8153_v0  ;;  %781 = vmatprep.subr.mxu0 %v8153_v0  ;;  %1166 = vmatprep.subr.mxu1 %v8153_v0  ;;  %v674_v6 = vld [vmem:[%s14527_s2 + $0x168] sm:$0xff]  ;;  %v673_v8 = vld [vmem:[%s14527_s2 + $0x160] sm:$0xff] }
  0x12   :  { %3348 = vst [vmem:[#allocation2 + $0x198] sm:$0xff] %v8153_v0  ;;  %3349 = vst [vmem:[#allocation2 + $0x1a0] sm:$0xff] %v8153_v0  ;;  %782 = vmatpush1.msra.mxu0 %v643_v2  ;;  %1167 = vmatpush1.msra.mxu1 %v675_v4  ;;  %v640_v9 = vld [vmem:[%s14527_s2 + $0x58] sm:$0xff]  ;;  %v639_v11 = vld [vmem:[%s14527_s2 + $0x50] sm:$0xff] }
  0x13   :  { %3350 = vst [vmem:[#allocation2 + $0x1a8] sm:$0x3] %v8153_v0  ;;  %3351 = vst [vmem:[#allocation2 + $0x348] sm:$0xff] %v8153_v0  ;;  %783 = vmatprep.subr.mxu0 %v8153_v0  ;;  %1168 = vmatprep.subr.mxu1 %v8153_v0  ;;  %v672_v10 = vld [vmem:[%s14527_s2 + $0x158] sm:$0xff]  ;;  %v671_v12 = vld [vmem:[%s14527_s2 + $0x150] sm:$0xff] }
  0x14   :  { %3352 = vst [vmem:[#allocation2 + $0x350] sm:$0xff] %v8153_v0  ;;  %3353 = vst [vmem:[#allocation2 + $0x358] sm:$0x3] %v8153_v0  ;;  %784 = vmatpush1.msra.mxu0 %v642_v5  ;;  %1169 = vmatpush1.msra.mxu1 %v674_v6  ;;  %v638_v13 = vld [vmem:[%s14527_s2 + $0x48] sm:$0xff]  ;;  %v637_v15 = vld [vmem:[%s14527_s2 + $0x40] sm:$0xff] }
  0x15   :  { %3355 = vst [vmem:[#allocation2 + $0x18] sm:$0x1] %v8153_v0  ;;  %3356 = vst [vmem:[#allocation2 + $0x30] sm:$0x1] %v8153_v0  ;;  %785 = vmatprep.subr.mxu0 %v8153_v0  ;;  %1170 = vmatprep.subr.mxu1 %v8153_v0  ;;  %v670_v14 = vld [vmem:[%s14527_s2 + $0x148] sm:$0xff]  ;;  %v669_v16 = vld [vmem:[%s14527_s2 + $0x140] sm:$0xff] }
  0x16   :  { %3357 = vst [vmem:[#allocation2 + $0x48] sm:$0x1] %v8153_v0  ;;  %3358 = vst [vmem:[#allocation2 + $0x60] sm:$0x1] %v8153_v0  ;;  %786 = vmatpush1.msra.mxu0 %v641_v7  ;;  %1171 = vmatpush1.msra.mxu1 %v673_v8  ;;  %v636_v17 = vld [vmem:[%s14527_s2 + $0x38] sm:$0xff]  ;;  %v635_v19 = vld [vmem:[%s14527_s2 + $0x30] sm:$0xff] }
  0x17   :  { %3359 = vst [vmem:[#allocation2 + $0x78] sm:$0x1] %v8153_v0  ;;  %3360 = vst [vmem:[#allocation2 + $0x90] sm:$0x1] %v8153_v0  ;;  %787 = vmatprep.subr.mxu0 %v8153_v0  ;;  %1172 = vmatprep.subr.mxu1 %v8153_v0  ;;  %v668_v18 = vld [vmem:[%s14527_s2 + $0x138] sm:$0xff]  ;;  %v667_v20 = vld [vmem:[%s14527_s2 + $0x130] sm:$0xff] }
  0x18   :  { %3361 = vst [vmem:[#allocation2 + $0xa8] sm:$0x1] %v8153_v0  ;;  %3362 = vst [vmem:[#allocation2 + $0xc0] sm:$0x1] %v8153_v0  ;;  %788 = vmatpush1.msra.mxu0 %v640_v9  ;;  %1173 = vmatpush1.msra.mxu1 %v672_v10  ;;  %v634_v21 = vld [vmem:[%s14527_s2 + $0x28] sm:$0xff]  ;;  %v633_v23 = vld [vmem:[%s14527_s2 + $0x20] sm:$0xff] }
  0x19   :  { %3363 = vst [vmem:[#allocation2 + $0xd8] sm:$0x1] %v8153_v0  ;;  %3364 = vst [vmem:[#allocation2 + $0xf0] sm:$0x1] %v8153_v0  ;;  %789 = vmatprep.subr.mxu0 %v8153_v0  ;;  %1174 = vmatprep.subr.mxu1 %v8153_v0  ;;  %v666_v22 = vld [vmem:[%s14527_s2 + $0x128] sm:$0xff]  ;;  %v665_v24 = vld [vmem:[%s14527_s2 + $0x120] sm:$0xff] }
  0x1a   :  { %3365 = vst [vmem:[#allocation2 + $0x108] sm:$0x1] %v8153_v0  ;;  %3366 = vst [vmem:[#allocation2 + $0x120] sm:$0x1] %v8153_v0  ;;  %790 = vmatpush1.msra.mxu0 %v639_v11  ;;  %1175 = vmatpush1.msra.mxu1 %v671_v12  ;;  %v632_v25 = vld [vmem:[%s14527_s2 + $0x18] sm:$0xff]  ;;  %v631_v27 = vld [vmem:[%s14527_s2 + $0x10] sm:$0xff] }
  0x1b   :  { %3367 = vst [vmem:[#allocation2 + $0x138] sm:$0x1] %v8153_v0  ;;  %3368 = vst [vmem:[#allocation2 + $0x150] sm:$0x1] %v8153_v0  ;;  %791 = vmatprep.subr.mxu0 %v8153_v0  ;;  %1176 = vmatprep.subr.mxu1 %v8153_v0  ;;  %v664_v26 = vld [vmem:[%s14527_s2 + $0x118] sm:$0xff]  ;;  %v663_v28 = vld [vmem:[%s14527_s2 + $0x110] sm:$0xff] }
  0x1c   :  { %3369 = vst [vmem:[#allocation2 + $0x168] sm:$0x1] %v8153_v0  ;;  %3370 = vst [vmem:[#allocation2 + $0x180] sm:$0x1] %v8153_v0  ;;  %792 = vmatpush1.msra.mxu0 %v638_v13  ;;  %1177 = vmatpush1.msra.mxu1 %v670_v14  ;;  %v630_v29 = vld [vmem:[%s14527_s2 + $0x8] sm:$0xff]  ;;  %v629_v31 = vld [vmem:[%s14527_s2] sm:$0xff] }
  0x1d   :  { %3373 = vst [vmem:[#allocation2 + $0x1c8] sm:$0x1] %v8153_v0  ;;  %3374 = vst [vmem:[#allocation2 + $0x1e0] sm:$0x1] %v8153_v0  ;;  %793 = vmatprep.subr.mxu0 %v8153_v0  ;;  %1178 = vmatprep.subr.mxu1 %v8153_v0  ;;  %v662_v30 = vld [vmem:[%s14527_s2 + $0x108] sm:$0xff]  ;;  %v661_v32 = vld [vmem:[%s14527_s2 + $0x100] sm:$0xff] }
  0x1e   :  { %3375 = vst [vmem:[#allocation2 + $0x1f8] sm:$0x1] %v8153_v0  ;;  %3376 = vst [vmem:[#allocation2 + $0x210] sm:$0x1] %v8153_v0  ;;  %794 = vmatpush1.msra.mxu0 %v637_v15  ;;  %1179 = vmatpush1.msra.mxu1 %v669_v16  ;;  %v660_v33 = vld [vmem:[%s14527_s2 + $0xf8] sm:$0xff]  ;;  %v659_v35 = vld [vmem:[%s14527_s2 + $0xf0] sm:$0xff] }
  0x1f   :  { %3377 = vst [vmem:[#allocation2 + $0x228] sm:$0x1] %v8153_v0  ;;  %3378 = vst [vmem:[#allocation2 + $0x240] sm:$0x1] %v8153_v0  ;;  %795 = vmatprep.subr.mxu0 %v8153_v0  ;;  %1180 = vmatprep.subr.mxu1 %v8153_v0  ;;  %v692_v34 = vld [vmem:[%s14527_s2 + $0x1f8] sm:$0xff]  ;;  %v691_v36 = vld [vmem:[%s14527_s2 + $0x1f0] sm:$0xff] }
  0x20   :  { %3379 = vst [vmem:[#allocation2 + $0x258] sm:$0x1] %v8153_v0  ;;  %3380 = vst [vmem:[#allocation2 + $0x270] sm:$0x1] %v8153_v0  ;;  %796 = vmatpush1.msra.mxu0 %v636_v17  ;;  %1181 = vmatpush1.msra.mxu1 %v668_v18  ;;  %v658_v37 = vld [vmem:[%s14527_s2 + $0xe8] sm:$0xff]  ;;  %v657_v39 = vld [vmem:[%s14527_s2 + $0xe0] sm:$0xff] }
  0x21   :  { %3381 = vst [vmem:[#allocation2 + $0x288] sm:$0x1] %v8153_v0  ;;  %3382 = vst [vmem:[#allocation2 + $0x2a0] sm:$0x1] %v8153_v0  ;;  %797 = vmatprep.subr.mxu0 %v8153_v0  ;;  %1182 = vmatprep.subr.mxu1 %v8153_v0  ;;  %v690_v38 = vld [vmem:[%s14527_s2 + $0x1e8] sm:$0xff]  ;;  %v689_v40 = vld [vmem:[%s14527_s2 + $0x1e0] sm:$0xff] }
  0x22   :  { %3383 = vst [vmem:[#allocation2 + $0x2b8] sm:$0x1] %v8153_v0  ;;  %3384 = vst [vmem:[#allocation2 + $0x2d0] sm:$0x1] %v8153_v0  ;;  %798 = vmatpush1.msra.mxu0 %v635_v19  ;;  %1183 = vmatpush1.msra.mxu1 %v667_v20  ;;  %v656_v41 = vld [vmem:[%s14527_s2 + $0xd8] sm:$0xff]  ;;  %v655_v43 = vld [vmem:[%s14527_s2 + $0xd0] sm:$0xff] }
  0x23   :  { %3385 = vst [vmem:[#allocation2 + $0x2e8] sm:$0x1] %v8153_v0  ;;  %3386 = vst [vmem:[#allocation2 + $0x300] sm:$0x1] %v8153_v0  ;;  %799 = vmatprep.subr.mxu0 %v8153_v0  ;;  %1184 = vmatprep.subr.mxu1 %v8153_v0  ;;  %v688_v42 = vld [vmem:[%s14527_s2 + $0x1d8] sm:$0xff]  ;;  %v687_v44 = vld [vmem:[%s14527_s2 + $0x1d0] sm:$0xff] }
  0x24   :  { %3387 = vst [vmem:[#allocation2 + $0x318] sm:$0x1] %v8153_v0  ;;  %3388 = vst [vmem:[#allocation2 + $0x330] sm:$0x1] %v8153_v0  ;;  %800 = vmatpush1.msra.mxu0 %v634_v21  ;;  %1185 = vmatpush1.msra.mxu1 %v666_v22  ;;  %v654_v45 = vld [vmem:[%s14527_s2 + $0xc8] sm:$0xff]  ;;  %v653_v47 = vld [vmem:[%s14527_s2 + $0xc0] sm:$0xff] }
  0x25   :  { %3391 = vst [vmem:[#allocation2 + $0x29] sm:$0x1] %v8153_v0  ;;  %3392 = vst [vmem:[#allocation2 + $0x41] sm:$0x1] %v8153_v0  ;;  %801 = vmatprep.subr.mxu0 %v8153_v0  ;;  %1186 = vmatprep.subr.mxu1 %v8153_v0  ;;  %v686_v46 = vld [vmem:[%s14527_s2 + $0x1c8] sm:$0xff]  ;;  %v685_v48 = vld [vmem:[%s14527_s2 + $0x1c0] sm:$0xff] }
  0x26   :  { %3393 = vst [vmem:[#allocation2 + $0x59] sm:$0x1] %v8153_v0  ;;  %3394 = vst [vmem:[#allocation2 + $0x71] sm:$0x1] %v8153_v0  ;;  %802 = vmatpush1.msra.mxu0 %v633_v23  ;;  %1187 = vmatpush1.msra.mxu1 %v665_v24  ;;  %v652_v49 = vld [vmem:[%s14527_s2 + $0xb8] sm:$0xff]  ;;  %v651_v51 = vld [vmem:[%s14527_s2 + $0xb0] sm:$0xff] }
  0x27   :  { %3395 = vst [vmem:[#allocation2 + $0x89] sm:$0x1] %v8153_v0  ;;  %3396 = vst [vmem:[#allocation2 + $0xa1] sm:$0x1] %v8153_v0  ;;  %803 = vmatprep.subr.mxu0 %v8153_v0  ;;  %1188 = vmatprep.subr.mxu1 %v8153_v0  ;;  %v684_v50 = vld [vmem:[%s14527_s2 + $0x1b8] sm:$0xff]  ;;  %v683_v52 = vld [vmem:[%s14527_s2 + $0x1b0] sm:$0xff] }
  0x28   :  { %3397 = vst [vmem:[#allocation2 + $0xb9] sm:$0x1] %v8153_v0  ;;  %3398 = vst [vmem:[#allocation2 + $0xd1] sm:$0x1] %v8153_v0  ;;  %804 = vmatpush1.msra.mxu0 %v632_v25  ;;  %1189 = vmatpush1.msra.mxu1 %v664_v26  ;;  %v650_v53 = vld [vmem:[%s14527_s2 + $0xa8] sm:$0xff]  ;;  %v649_v55 = vld [vmem:[%s14527_s2 + $0xa0] sm:$0xff] }
  0x29   :  { %3399 = vst [vmem:[#allocation2 + $0xe9] sm:$0x1] %v8153_v0  ;;  %3400 = vst [vmem:[#allocation2 + $0x101] sm:$0x1] %v8153_v0  ;;  %805 = vmatprep.subr.mxu0 %v8153_v0  ;;  %1190 = vmatprep.subr.mxu1 %v8153_v0  ;;  %v682_v54 = vld [vmem:[%s14527_s2 + $0x1a8] sm:$0xff]  ;;  %v681_v56 = vld [vmem:[%s14527_s2 + $0x1a0] sm:$0xff] }
  0x2a   :  { %3401 = vst [vmem:[#allocation2 + $0x119] sm:$0x1] %v8153_v0  ;;  %3402 = vst [vmem:[#allocation2 + $0x131] sm:$0x1] %v8153_v0  ;;  %806 = vmatpush1.msra.mxu0 %v631_v27  ;;  %1191 = vmatpush1.msra.mxu1 %v663_v28  ;;  %v648_v57 = vld [vmem:[%s14527_s2 + $0x98] sm:$0xff]  ;;  %v647_v59 = vld [vmem:[%s14527_s2 + $0x90] sm:$0xff] }
  0x2b   :  { %3403 = vst [vmem:[#allocation2 + $0x149] sm:$0x1] %v8153_v0  ;;  %3404 = vst [vmem:[#allocation2 + $0x161] sm:$0x1] %v8153_v0  ;;  %807 = vmatprep.subr.mxu0 %v8153_v0  ;;  %1192 = vmatprep.subr.mxu1 %v8153_v0  ;;  %v680_v58 = vld [vmem:[%s14527_s2 + $0x198] sm:$0xff]  ;;  %v679_v60 = vld [vmem:[%s14527_s2 + $0x190] sm:$0xff] }
  0x2c   :  { %3405 = vst [vmem:[#allocation2 + $0x179] sm:$0x1] %v8153_v0  ;;  %3406 = vst [vmem:[#allocation2 + $0x191] sm:$0x1] %v8153_v0  ;;  %808 = vmatpush1.msra.mxu0 %v630_v29  ;;  %1193 = vmatpush1.msra.mxu1 %v662_v30  ;;  %v646_v61 = vld [vmem:[%s14527_s2 + $0x88] sm:$0xff]  ;;  %v645_v1 = vld [vmem:[%s14527_s2 + $0x80] sm:$0xff] }
  0x2d   :  { %3409 = vst [vmem:[#allocation2 + $0x1d9] sm:$0x1] %v8153_v0  ;;  %3410 = vst [vmem:[#allocation2 + $0x1f1] sm:$0x1] %v8153_v0  ;;  %809 = vmatprep.subr.mxu0 %v8153_v0  ;;  %1194 = vmatprep.subr.mxu1 %v8153_v0  ;;  %v115_v62 = vld [vmem:[%s14525_s0 + $0x1] sm:$0xff]  ;;  %v6990_v4 = vld [vmem:[%s14525_s0 + $0x18] sm:$0xff] }
  0x2e   :  { %3411 = vst [vmem:[#allocation2 + $0x209] sm:$0x1] %v8153_v0  ;;  %3412 = vst [vmem:[#allocation2 + $0x221] sm:$0x1] %v8153_v0  ;;  %810 = vmatpush1.msra.mxu0 %v629_v31  ;;  %1195 = vmatpush1.msra.mxu1 %v661_v32  ;;  %v678_v63 = vld [vmem:[%s14527_s2 + $0x188] sm:$0xff]  ;;  %v51_v2 = vld [vmem:[%s14525_s0] sm:$0xff] }
  0x2f   :  { %3413 = vst [vmem:[#allocation2 + $0x239] sm:$0x1] %v8153_v0  ;;  %3414 = vst [vmem:[#allocation2 + $0x251] sm:$0x1] %v8153_v0  ;;  %811 = vmatprep.subr.mxu0 %v8153_v0  ;;  %1196 = vmatprep.subr.mxu1 %v8153_v0  ;;  %v677_v3 = vld [vmem:[%s14527_s2 + $0x180] sm:$0xff]  ;;  %v708_v5 = vld [vmem:[%s14527_s2 + $0x278] sm:$0xff] }
  0x30   :  { %3415 = vst [vmem:[#allocation2 + $0x269] sm:$0x1] %v8153_v0  ;;  %3416 = vst [vmem:[#allocation2 + $0x281] sm:$0x1] %v8153_v0  ;;  %812 = vmatpush2.msra.mxu0 %v660_v33  ;;  %1197 = vmatpush2.msra.mxu1 %v692_v34  ;;  %v179_v6 = vld [vmem:[%s14525_s0 + $0x2] sm:$0xff]  ;;  %v117_v10 = vld [vmem:[%s14525_s0 + $0x19] sm:$0xff] }
  0x31   :  { %3417 = vst [vmem:[#allocation2 + $0x299] sm:$0x1] %v8153_v0  ;;  %3418 = vst [vmem:[#allocation2 + $0x2b1] sm:$0x1] %v8153_v0  ;;  %813 = vmatprep.subr.mxu0 %v8153_v0  ;;  %1198 = vmatprep.subr.mxu1 %v8153_v0  ;;  %v116_v7 = vld [vmem:[%s14525_s0 + $0x9] sm:$0xff]  ;;  %v6991_v8 = vld [vmem:[%s14525_s0 + $0x20] sm:$0xff] }
  0x32   :  { %3419 = vst [vmem:[#allocation2 + $0x2c9] sm:$0x1] %v8153_v0  ;;  %3420 = vst [vmem:[#allocation2 + $0x2e1] sm:$0x1] %v8153_v0  ;;  %814 = vmatpush2.msra.mxu0 %v659_v35  ;;  %1199 = vmatpush2.msra.mxu1 %v691_v36  ;;  %v52_v9 = vld [vmem:[%s14525_s0 + $0x8] sm:$0xff]  ;;  %v707_v11 = vld [vmem:[%s14527_s2 + $0x270] sm:$0xff] }
  0x33   :  { %3421 = vst [vmem:[#allocation2 + $0x2f9] sm:$0x1] %v8153_v0  ;;  %3422 = vst [vmem:[#allocation2 + $0x311] sm:$0x1] %v8153_v0  ;;  %815 = vmatprep.subr.mxu0 %v8153_v0  ;;  %1200 = vmatprep.subr.mxu1 %v8153_v0  ;;  %v180_v12 = vld [vmem:[%s14525_s0 + $0xa] sm:$0xff]  ;;  %v118_v15 = vld [vmem:[%s14525_s0 + $0x21] sm:$0xff] }
  0x34   :  { %3423 = vst [vmem:[#allocation2 + $0x329] sm:$0x1] %v8153_v0  ;;  %3424 = vst [vmem:[#allocation2 + $0x341] sm:$0x1] %v8153_v0  ;;  %816 = vmatpush2.msra.mxu0 %v658_v37  ;;  %1201 = vmatpush2.msra.mxu1 %v690_v38  ;;  %v6992_v13 = vld [vmem:[%s14525_s0 + $0x30] sm:$0xff]  ;;  %v706_v14 = vld [vmem:[%s14527_s2 + $0x268] sm:$0xff] }
  0x35   :  { %3354 = vst [vmem:[#allocation2] sm:$0x1] %v8153_v0  ;;  %3371 = vst [vmem:[#allocation2 + $0x198] sm:$0x1] %v8153_v0  ;;  %817 = vmatprep.subr.mxu0 %v8153_v0  ;;  %1202 = vmatprep.subr.mxu1 %v8153_v0  ;;  %v705_v16 = vld [vmem:[%s14527_s2 + $0x260] sm:$0xff]  ;;  %v6993_v18 = vld [vmem:[%s14525_s0 + $0x38] sm:$0xff] }
  0x36   :  { %3372 = vst [vmem:[#allocation2 + $0x1b0] sm:$0x1] %v8153_v0  ;;  %3389 = vst [vmem:[#allocation2 + $0x348] sm:$0x1] %v8153_v0  ;;  %818 = vmatpush2.msra.mxu0 %v657_v39  ;;  %1203 = vmatpush2.msra.mxu1 %v689_v40  ;;  %v181_v17 = vld [vmem:[%s14525_s0 + $0x1a] sm:$0xff]  ;;  %v119_v20 = vld [vmem:[%s14525_s0 + $0x31] sm:$0xff] }
  0x37   :  { %3390 = vst [vmem:[#allocation2 + $0x11] sm:$0x1] %v8153_v0  ;;  %3407 = vst [vmem:[#allocation2 + $0x1a9] sm:$0x1] %v8153_v0  ;;  %819 = vmatprep.subr.mxu0 %v8153_v0  ;;  %1204 = vmatprep.subr.mxu1 %v8153_v0  ;;  %v704_v19 = vld [vmem:[%s14527_s2 + $0x258] sm:$0xff]  ;;  %v703_v21 = vld [vmem:[%s14527_s2 + $0x250] sm:$0xff] }
  0x38   :  { %3408 = vst [vmem:[#allocation2 + $0x1c1] sm:$0x1] %v8153_v0  ;;  %3425 = vst [vmem:[#allocation2 + $0x359] sm:$0x1] %v8153_v0  ;;  %820 = vmatpush2.msra.mxu0 %v656_v41  ;;  %1205 = vmatpush2.msra.mxu1 %v688_v42  ;;  %v182_v22 = vld [vmem:[%s14525_s0 + $0x22] sm:$0xff]  ;;  %v120_v25 = vld [vmem:[%s14525_s0 + $0x39] sm:$0xff] }
  0x39   :  { %821 = vmatprep.subr.mxu0 %v8153_v0  ;;  %1206 = vmatprep.subr.mxu1 %v8153_v0  ;;  %v6994_v23 = vld [vmem:[%s14525_s0 + $0x48] sm:$0xff]  ;;  %v701_v26 = vld [vmem:[%s14527_s2 + $0x240] sm:$0xff]  ;;  %v183_v27 = vld [vmem:[%s14525_s0 + $0x32] sm:$0xff] }
  0x3a   :  { %822 = vmatpush2.msra.mxu0 %v655_v43  ;;  %1207 = vmatpush2.msra.mxu1 %v687_v44  ;;  %v702_v24 = vld [vmem:[%s14527_s2 + $0x248] sm:$0xff]  ;;  %v6995_v28 = vld [vmem:[%s14525_s0 + $0x50] sm:$0xff]  ;;  %v700_v29 = vld [vmem:[%s14527_s2 + $0x238] sm:$0xff] }
  0x3b   :  { %823 = vmatprep.subr.mxu0 %v8153_v0  ;;  %1208 = vmatprep.subr.mxu1 %v8153_v0  ;;  %v121_v30 = vld [vmem:[%s14525_s0 + $0x49] sm:$0xff]  ;;  %v184_v32 = vld [vmem:[%s14525_s0 + $0x3a] sm:$0xff]  ;;  %v122_v35 = vld [vmem:[%s14525_s0 + $0x51] sm:$0xff] }
  0x3c   :  { %824 = vmatpush2.msra.mxu0 %v654_v45  ;;  %1209 = vmatpush2.msra.mxu1 %v686_v46  ;;  %v699_v31 = vld [vmem:[%s14527_s2 + $0x230] sm:$0xff]  ;;  %v6996_v33 = vld [vmem:[%s14525_s0 + $0x60] sm:$0xff]  ;;  %v698_v34 = vld [vmem:[%s14527_s2 + $0x228] sm:$0xff] }
  0x3d   :  { %825 = vmatprep.subr.mxu0 %v8153_v0  ;;  %1210 = vmatprep.subr.mxu1 %v8153_v0  ;;  %v697_v36 = vld [vmem:[%s14527_s2 + $0x220] sm:$0xff]  ;;  %v185_v37 = vld [vmem:[%s14525_s0 + $0x4a] sm:$0xff]  ;;  %v696_v39 = vld [vmem:[%s14527_s2 + $0x218] sm:$0xff] }
  0x3e   :  { %826 = vmatpush2.msra.mxu0 %v653_v47  ;;  %1211 = vmatpush2.msra.mxu1 %v685_v48  ;;  %v6997_v38 = vld [vmem:[%s14525_s0 + $0x68] sm:$0xff]  ;;  %v695_v41 = vld [vmem:[%s14527_s2 + $0x210] sm:$0xff]  ;;  %v6998_v43 = vld [vmem:[%s14525_s0 + $0x78] sm:$0xff] }
  0x3f   :  { %827 = vmatprep.subr.mxu0 %v8153_v0  ;;  %1212 = vmatprep.subr.mxu1 %v8153_v0  ;;  %v123_v40 = vld [vmem:[%s14525_s0 + $0x61] sm:$0xff]  ;;  %v186_v42 = vld [vmem:[%s14525_s0 + $0x52] sm:$0xff]  ;;  %v124_v45 = vld [vmem:[%s14525_s0 + $0x69] sm:$0xff] }
  0x40   :  { %828 = vmatpush2.msra.mxu0 %v652_v49  ;;  %1213 = vmatpush2.msra.mxu1 %v684_v50  ;;  %v694_v44 = vld [vmem:[%s14527_s2 + $0x208] sm:$0xff]  ;;  %v693_v46 = vld [vmem:[%s14527_s2 + $0x200] sm:$0xff]  ;;  %v724_v49 = vld [vmem:[%s14527_s2 + $0x2f8] sm:$0xff] }
  0x41   :  { %829 = vmatprep.subr.mxu0 %v8153_v0  ;;  %1214 = vmatprep.subr.mxu1 %v8153_v0  ;;  %v187_v47 = vld [vmem:[%s14525_s0 + $0x62] sm:$0xff]  ;;  %v125_v50 = vld [vmem:[%s14525_s0 + $0x79] sm:$0xff] }
  0x42   :  { %830 = vmatpush2.msra.mxu0 %v651_v51  ;;  %1215 = vmatpush2.msra.mxu1 %v683_v52  ;;  %v6999_v48 = vld [vmem:[%s14525_s0 + $0x80] sm:$0xff]  ;;  %v740_v51 = vld [vmem:[%s14527_s2 + $0x378] sm:$0xff]  ;;  %v188_v52 = vld [vmem:[%s14525_s0 + $0x6a] sm:$0xff] }
  0x43   :  { %831 = vmatprep.subr.mxu0 %v8153_v0  ;;  %1216 = vmatprep.subr.mxu1 %v8153_v0 }
  0x44   :  { %832 = vmatpush2.msra.mxu0 %v650_v53  ;;  %1217 = vmatpush2.msra.mxu1 %v682_v54  ;;  %v7000_v53 = vld [vmem:[%s14525_s0 + $0x90] sm:$0xff] }
  0x45   :  { %833 = vmatprep.subr.mxu0 %v8153_v0  ;;  %1218 = vmatprep.subr.mxu1 %v8153_v0  ;;  %v723_v54 = vld [vmem:[%s14527_s2 + $0x2f0] sm:$0xff] }
  0x46   :  { %834 = vmatpush2.msra.mxu0 %v649_v55  ;;  %1219 = vmatpush2.msra.mxu1 %v681_v56  ;;  %v126_v55 = vld [vmem:[%s14525_s0 + $0x81] sm:$0xff]  ;;  %v739_v56 = vld [vmem:[%s14527_s2 + $0x370] sm:$0xff] }
  0x47   :  { %835 = vmatprep.subr.mxu0 %v8153_v0  ;;  %1220 = vmatprep.subr.mxu1 %v8153_v0 }
  0x48   :  { %836 = vmatpush2.msra.mxu0 %v648_v57  ;;  %1221 = vmatpush2.msra.mxu1 %v680_v58  ;;  %v189_v57 = vld [vmem:[%s14525_s0 + $0x7a] sm:$0xff] }
  0x49   :  { %837 = vmatprep.subr.mxu0 %v8153_v0  ;;  %1222 = vmatprep.subr.mxu1 %v8153_v0  ;;  %v7001_v58 = vld [vmem:[%s14525_s0 + $0x98] sm:$0xff] }
  0x4a   :  { %838 = vmatpush2.msra.mxu0 %v647_v59  ;;  %1223 = vmatpush2.msra.mxu1 %v679_v60  ;;  %v722_v59 = vld [vmem:[%s14527_s2 + $0x2e8] sm:$0xff]  ;;  %v127_v60 = vld [vmem:[%s14525_s0 + $0x91] sm:$0xff] }
  0x4b   :  { %839 = vmatprep.subr.mxu0 %v8153_v0  ;;  %1224 = vmatprep.subr.mxu1 %v8153_v0 }
  0x4c   :  { %840 = vmatpush2.msra.mxu0 %v646_v61  ;;  %843 = vmatprep.mubr.f32.mxu0 %v115_v62  ;;  %v738_v61 = vld [vmem:[%s14527_s2 + $0x368] sm:$0xff] }
  0x4d   :  { %841 = vmatprep.subr.mxu0 %v8153_v0  ;;  %1225 = vmatpush2.msra.mxu1 %v678_v63  ;;  %v190_v62 = vld [vmem:[%s14525_s0 + $0x82] sm:$0xff] }
  0x4e   :  { %842 = vmatpush2.msra.mxu0 %v645_v1  ;;  %1226 = vmatprep.subr.mxu1 %v8153_v0  ;;  %v7002_v63 = vld [vmem:[%s14525_s0 + $0xa8] sm:$0xff]  ;;  %v721_v1 = vld [vmem:[%s14527_s2 + $0x2e0] sm:$0xff] }
  0x4f   :  { %844 = vmatmul.mubr.f32.vlgmr.msra.gmra.mxu0 %v51_v2  ;;  %1549 = vmatprep.subr.mxu0 %v8153_v0  ;;  %v128_v2 = vld [vmem:[%s14525_s0 + $0x99] sm:$0xff] }
  0x50   :  { %1227 = vmatpush2.msra.mxu1 %v677_v3  ;;  %1228 = vmatprep.mubr.f32.mxu1 %v6990_v4  ;;  %v737_v3 = vld [vmem:[%s14527_s2 + $0x360] sm:$0xff] }
  0x51   :  { %1550 = vmatpush1.msra.mxu0 %v708_v5  ;;  %1229 = vmatmul.mubr.f32.vlgmr.msra.gmra.mxu1 %v179_v6  ;;  %v7003_v5 = vld [vmem:[%s14525_s0 + $0xb0] sm:$0xff]  ;;  %v720_v6 = vld [vmem:[%s14527_s2 + $0x2d8] sm:$0xff] }
  0x52   :  { %848 = vmatprep.mubr.f32.mxu0 %v116_v7  ;;  %1233 = vmatprep.mubr.f32.mxu1 %v6991_v8  ;;  %v129_v7 = vld [vmem:[%s14525_s0 + $0xa9] sm:$0xff] }
  0x53   :  { %849 = vmatmul.mubr.f32.gmra.mxu0 %v52_v9  ;;  %1551 = vmatprep.subr.mxu0 %v8153_v0  ;;  %v192_v9 = vld [vmem:[%s14525_s0 + $0x9a] sm:$0xff] }
  0x54   :  { %853 = vmatprep.mubr.f32.mxu0 %v117_v10  ;;  %1552 = vmatpush1.msra.mxu0 %v707_v11  ;;  %v7004_v10 = vld [vmem:[%s14525_s0 + $0xc0] sm:$0xff]  ;;  %v719_v11 = vld [vmem:[%s14527_s2 + $0x2d0] sm:$0xff] }
  0x55   :  { %1234 = vmatmul.mubr.f32.gmra.mxu1 %v180_v12  ;;  %1553 = vmatprep.subr.mxu0 %v8153_v0  ;;  %v130_v12 = vld [vmem:[%s14525_s0 + $0xb1] sm:$0xff] }
  0x56   :  { %1238 = vmatprep.mubr.f32.mxu1 %v6992_v13  ;;  %1554 = vmatpush1.msra.mxu0 %v706_v14  ;;  %v193_v14 = vld [vmem:[%s14525_s0 + $0xaa] sm:$0xff] }
  0x57   :  { %854 = vmatmul.mubr.f32.gmra.mxu0 %v6990_v4  ;;  %1555 = vmatprep.subr.mxu0 %v8153_v0  ;;  %v191_v4 = vld [vmem:[%s14525_s0 + $0x92] sm:$0xff] }
  0x58   :  { %858 = vmatprep.mubr.f32.mxu0 %v118_v15  ;;  %1556 = vmatpush1.msra.mxu0 %v705_v16  ;;  %v7005_v15 = vld [vmem:[%s14525_s0 + $0xc8] sm:$0xff] }
  0x59   :  { %1239 = vmatmul.mubr.f32.gmra.mxu1 %v181_v17  ;;  %1557 = vmatprep.subr.mxu0 %v8153_v0  ;;  %v718_v16 = vld [vmem:[%s14527_s2 + $0x2c8] sm:$0xff] }
  0x5a   :  { %1243 = vmatprep.mubr.f32.mxu1 %v6993_v18  ;;  %1558 = vmatpush1.msra.mxu0 %v704_v19  ;;  %v131_v17 = vld [vmem:[%s14525_s0 + $0xc1] sm:$0xff]  ;;  %v194_v19 = vld [vmem:[%s14525_s0 + $0xb2] sm:$0xff] }
  0x5b   :  { %859 = vmatmul.mubr.f32.gmra.mxu0 %v6991_v8  ;;  %1559 = vmatprep.subr.mxu0 %v8153_v0  ;;  %v736_v8 = vld [vmem:[%s14527_s2 + $0x358] sm:$0xff] }
  0x5c   :  { %863 = vmatprep.mubr.f32.mxu0 %v119_v20  ;;  %1560 = vmatpush1.msra.mxu0 %v703_v21  ;;  %v7006_v20 = vld [vmem:[%s14525_s0 + $0xd8] sm:$0xff]  ;;  %v717_v21 = vld [vmem:[%s14527_s2 + $0x2c0] sm:$0xff] }
  0x5d   :  { %1244 = vmatmul.mubr.f32.gmra.mxu1 %v182_v22  ;;  %1561 = vmatprep.subr.mxu0 %v8153_v0  ;;  %v132_v22 = vld [vmem:[%s14525_s0 + $0xc9] sm:$0xff] }
  0x5e   :  { %1248 = vmatprep.mubr.f32.mxu1 %v6994_v23  ;;  %1562 = vmatpush1.msra.mxu0 %v702_v24  ;;  %v195_v24 = vld [vmem:[%s14525_s0 + $0xc2] sm:$0xff] }
  0x5f   :  { %864 = vmatmul.mubr.f32.gmra.mxu0 %v6992_v13  ;;  %1563 = vmatprep.subr.mxu0 %v8153_v0  ;;  %v735_v13 = vld [vmem:[%s14527_s2 + $0x350] sm:$0xff] }
  0x60   :  { %868 = vmatprep.mubr.f32.mxu0 %v120_v25  ;;  %1564 = vmatpush1.msra.mxu0 %v701_v26  ;;  %v7007_v25 = vld [vmem:[%s14525_s0 + $0xe0] sm:$0xff]  ;;  %v716_v26 = vld [vmem:[%s14527_s2 + $0x2b8] sm:$0xff] }
  0x61   :  { %1249 = vmatmul.mubr.f32.gmra.mxu1 %v183_v27  ;;  %1565 = vmatprep.subr.mxu0 %v8153_v0  ;;  %v133_v27 = vld [vmem:[%s14525_s0 + $0xd9] sm:$0xff] }
  0x62   :  { %1253 = vmatprep.mubr.f32.mxu1 %v6995_v28  ;;  %1566 = vmatpush1.msra.mxu0 %v700_v29  ;;  %v732_v29 = vld [vmem:[%s14527_s2 + $0x338] sm:$0xff] }
  0x63   :  { %869 = vmatmul.mubr.f32.gmra.mxu0 %v6993_v18  ;;  %1567 = vmatprep.subr.mxu0 %v8153_v0  ;;  %v734_v18 = vld [vmem:[%s14527_s2 + $0x348] sm:$0xff] }
  0x64   :  { %873 = vmatprep.mubr.f32.mxu0 %v121_v30  ;;  %1568 = vmatpush1.msra.mxu0 %v699_v31  ;;  %v7008_v30 = vld [vmem:[%s14525_s0 + $0xf0] sm:$0xff]  ;;  %v134_v31 = vld [vmem:[%s14525_s0 + $0xe1] sm:$0xff] }
  0x65   :  { %1254 = vmatmul.mubr.f32.gmra.mxu1 %v184_v32  ;;  %1569 = vmatprep.subr.mxu0 %v8153_v0  ;;  %v197_v32 = vld [vmem:[%s14525_s0 + $0xda] sm:$0xff] }
  0x66   :  { %1258 = vmatprep.mubr.f32.mxu1 %v6996_v33  ;;  %1570 = vmatpush1.msra.mxu0 %v698_v34  ;;  %v715_v34 = vld [vmem:[%s14527_s2 + $0x2b0] sm:$0xff] }
  0x67   :  { %874 = vmatmul.mubr.f32.gmra.mxu0 %v6994_v23  ;;  %1571 = vmatprep.subr.mxu0 %v8153_v0  ;;  %v733_v23 = vld [vmem:[%s14527_s2 + $0x340] sm:$0xff] }
  0x68   :  { %878 = vmatprep.mubr.f32.mxu0 %v122_v35  ;;  %1572 = vmatpush1.msra.mxu0 %v697_v36  ;;  %v135_v35 = vld [vmem:[%s14525_s0 + $0xf1] sm:$0xff] }
  0x69   :  { %1259 = vmatmul.mubr.f32.gmra.mxu1 %v185_v37  ;;  %1573 = vmatprep.subr.mxu0 %v8153_v0  ;;  %v731_v36 = vld [vmem:[%s14527_s2 + $0x330] sm:$0xff]  ;;  %v8890_v37 = vld [vmem:[#allocation2 + $0x8] sm:$0xff] }
  0x6a   :  { %1263 = vmatprep.mubr.f32.mxu1 %v6997_v38  ;;  %1574 = vmatpush1.msra.mxu0 %v696_v39  ;;  %v136_v39 = vld [vmem:[%s14525_s0 + $0xf9] sm:$0xff] }
  0x6b   :  { %879 = vmatmul.mubr.f32.gmra.mxu0 %v6995_v28  ;;  %1575 = vmatprep.subr.mxu0 %v8153_v0  ;;  %v196_v28 = vld [vmem:[%s14525_s0 + $0xca] sm:$0xff] }
  0x6c   :  { %883 = vmatprep.mubr.f32.mxu0 %v123_v40  ;;  %1576 = vmatpush1.msra.mxu0 %v695_v41  ;;  %v199_v40 = vld [vmem:[%s14525_s0 + $0xf2] sm:$0xff] }
  0x6d   :  { %1264 = vmatmul.mubr.f32.gmra.mxu1 %v186_v42  ;;  %1577 = vmatprep.subr.mxu0 %v8153_v0  ;;  %v7011_v41 = vld [vmem:[%s14525_s0 + $0x110] sm:$0xff]  ;;  %v714_v42 = vld [vmem:[%s14527_s2 + $0x2a8] sm:$0xff] }
  0x6e   :  { %1268 = vmatprep.mubr.f32.mxu1 %v6998_v43  ;;  %1578 = vmatpush1.msra.mxu0 %v694_v44  ;;  %v200_v44 = vld [vmem:[%s14525_s0 + $0xfa] sm:$0xff] }
  0x6f   :  { %884 = vmatmul.mubr.f32.gmra.mxu0 %v6996_v33  ;;  %1579 = vmatprep.subr.mxu0 %v8153_v0  ;;  %v7009_v33 = vld [vmem:[%s14525_s0 + $0xf8] sm:$0xff] }
  0x70   :  { %888 = vmatprep.mubr.f32.mxu0 %v124_v45  ;;  %1580 = vmatpush1.msra.mxu0 %v693_v46  ;;  %v730_v45 = vld [vmem:[%s14527_s2 + $0x328] sm:$0xff]  ;;  %v7012_v46 = vld [vmem:[%s14525_s0 + $0x120] sm:$0xff] }
  0x71   :  { %1269 = vmatmul.mubr.f32.gmra.mxu1 %v187_v47  ;;  %1581 = vmatprep.subr.mxu0 %v8153_v0  ;;  %v138_v47 = vld [vmem:[%s14525_s0 + $0x111] sm:$0xff] }
  0x72   :  { %1273 = vmatprep.mubr.f32.mxu1 %v6999_v48  ;;  %1582 = vmatpush2.msra.mxu0 %v724_v49  ;;  %v7013_v49 = vld [vmem:[%s14525_s0 + $0x128] sm:$0xff] }
  0x73   :  { %889 = vmatmul.mubr.f32.gmra.mxu0 %v6997_v38  ;;  %1934 = vmatprep.subr.mxu1 %v8153_v0  ;;  %v7010_v38 = vld [vmem:[%s14525_s0 + $0x108] sm:$0xff] }
  0x74   :  { %893 = vmatprep.mubr.f32.mxu0 %v125_v50  ;;  %1935 = vmatpush1.msra.mxu1 %v740_v51  ;;  %v729_v50 = vld [vmem:[%s14527_s2 + $0x320] sm:$0xff] }
  0x75   :  { %1274 = vmatmul.mubr.f32.gmra.mxu1 %v188_v52  ;;  %1583 = vmatprep.subr.mxu0 %v8153_v0  ;;  %v713_v51 = vld [vmem:[%s14527_s2 + $0x2a0] sm:$0xff] }
  0x76   :  { %1278 = vmatprep.mubr.f32.mxu1 %v7000_v53  ;;  %1584 = vmatpush2.msra.mxu0 %v723_v54  ;;  %v139_v52 = vld [vmem:[%s14525_s0 + $0x121] sm:$0xff]  ;;  %v202_v54 = vld [vmem:[%s14525_s0 + $0x112] sm:$0xff] }
  0x77   :  { %894 = vmatmul.mubr.f32.gmra.mxu0 %v6998_v43  ;;  %1936 = vmatprep.subr.mxu1 %v8153_v0  ;;  %v137_v43 = vld [vmem:[%s14525_s0 + $0x109] sm:$0xff] }
  0x78   :  { %898 = vmatprep.mubr.f32.mxu0 %v126_v55  ;;  %1937 = vmatpush1.msra.mxu1 %v739_v56  ;;  %v7014_v55 = vld [vmem:[%s14525_s0 + $0x138] sm:$0xff]  ;;  %v727_v56 = vld [vmem:[%s14527_s2 + $0x310] sm:$0xff] }
  0x79   :  { %1279 = vmatmul.mubr.f32.gmra.mxu1 %v189_v57  ;;  %1585 = vmatprep.subr.mxu0 %v8153_v0  ;;  %v140_v57 = vld [vmem:[%s14525_s0 + $0x129] sm:$0xff] }
  0x7a   :  { %1283 = vmatprep.mubr.f32.mxu1 %v7001_v58  ;;  %1586 = vmatpush2.msra.mxu0 %v722_v59  ;;  %v203_v59 = vld [vmem:[%s14525_s0 + $0x122] sm:$0xff] }
  0x7b   :  { %899 = vmatmul.mubr.f32.gmra.mxu0 %v6999_v48  ;;  %1938 = vmatprep.subr.mxu1 %v8153_v0  ;;  %v201_v48 = vld [vmem:[%s14525_s0 + $0x10a] sm:$0xff] }
  0x7c   :  { %903 = vmatprep.mubr.f32.mxu0 %v127_v60  ;;  %1939 = vmatpush1.msra.mxu1 %v738_v61  ;;  %v7015_v60 = vld [vmem:[%s14525_s0 + $0x140] sm:$0xff]  ;;  %v712_v61 = vld [vmem:[%s14527_s2 + $0x298] sm:$0xff] }
  0x7d   :  { %1284 = vmatmul.mubr.f32.gmra.mxu1 %v190_v62  ;;  %1587 = vmatprep.subr.mxu0 %v8153_v0  ;;  %v725_v62 = vld [vmem:[%s14527_s2 + $0x300] sm:$0xff] }
  0x7e   :  { %1288 = vmatprep.mubr.f32.mxu1 %v7002_v63  ;;  %1588 = vmatpush2.msra.mxu0 %v721_v1  ;;  %v204_v1 = vld [vmem:[%s14525_s0 + $0x12a] sm:$0xff] }
  0x7f   :  { %904 = vmatmul.mubr.f32.gmra.mxu0 %v7000_v53  ;;  %1940 = vmatprep.subr.mxu1 %v8153_v0  ;;  %v728_v53 = vld [vmem:[%s14527_s2 + $0x318] sm:$0xff] }
  0x80   :  { %908 = vmatprep.mubr.f32.mxu0 %v128_v2  ;;  %1941 = vmatpush1.msra.mxu1 %v737_v3  ;;  %v7016_v2 = vld [vmem:[%s14525_s0 + $0x150] sm:$0xff]  ;;  %v756_v3 = vld [vmem:[%s14527_s2 + $0x3f8] sm:$0xff] }
  0x81   :  { %1289 = vmatmul.mubr.f32.gmra.mxu1 %v191_v4  ;;  %1589 = vmatprep.subr.mxu0 %v8153_v0  ;;  %v142_v4 = vld [vmem:[%s14525_s0 + $0x141] sm:$0xff] }
  0x82   :  { %1293 = vmatprep.mubr.f32.mxu1 %v7003_v5  ;;  %1590 = vmatpush2.msra.mxu0 %v720_v6  ;;  %v205_v6 = vld [vmem:[%s14525_s0 + $0x13a] sm:$0xff] }
  0x83   :  { %909 = vmatmul.mubr.f32.gmra.mxu0 %v7001_v58  ;;  %1942 = vmatprep.subr.mxu1 %v8153_v0  ;;  %v726_v58 = vld [vmem:[%s14527_s2 + $0x308] sm:$0xff] }
  0x84   :  { %913 = vmatprep.mubr.f32.mxu0 %v129_v7  ;;  %1943 = vmatpush1.msra.mxu1 %v736_v8  ;;  %v7017_v7 = vld [vmem:[%s14525_s0 + $0x158] sm:$0xff]  ;;  %v754_v8 = vld [vmem:[%s14527_s2 + $0x3e8] sm:$0xff] }
  0x85   :  { %1294 = vmatmul.mubr.f32.gmra.mxu1 %v192_v9  ;;  %1591 = vmatprep.subr.mxu0 %v8153_v0  ;;  %v143_v9 = vld [vmem:[%s14525_s0 + $0x151] sm:$0xff] }
  0x86   :  { %1298 = vmatprep.mubr.f32.mxu1 %v7004_v10  ;;  %1592 = vmatpush2.msra.mxu0 %v719_v11  ;;  %v206_v11 = vld [vmem:[%s14525_s0 + $0x142] sm:$0xff] }
  0x87   :  { %914 = vmatmul.mubr.f32.gmra.mxu0 %v7002_v63  ;;  %1944 = vmatprep.subr.mxu1 %v8153_v0  ;;  %v141_v63 = vld [vmem:[%s14525_s0 + $0x139] sm:$0xff] }
  0x88   :  { %918 = vmatprep.mubr.f32.mxu0 %v130_v12  ;;  %1945 = vmatpush1.msra.mxu1 %v735_v13  ;;  %v7018_v12 = vld [vmem:[%s14525_s0 + $0x168] sm:$0xff]  ;;  %v753_v13 = vld [vmem:[%s14527_s2 + $0x3e0] sm:$0xff] }
  0x89   :  { %1299 = vmatmul.mubr.f32.gmra.mxu1 %v193_v14  ;;  %1593 = vmatprep.subr.mxu0 %v8153_v0  ;;  %v144_v14 = vld [vmem:[%s14525_s0 + $0x159] sm:$0xff] }
  0x8a   :  { %1303 = vmatprep.mubr.f32.mxu1 %v7005_v15  ;;  %1594 = vmatpush2.msra.mxu0 %v718_v16  ;;  %v207_v16 = vld [vmem:[%s14525_s0 + $0x152] sm:$0xff] }
  0x8b   :  { %919 = vmatmul.mubr.f32.gmra.mxu0 %v7003_v5  ;;  %1946 = vmatprep.subr.mxu1 %v8153_v0  ;;  %v755_v5 = vld [vmem:[%s14527_s2 + $0x3f0] sm:$0xff] }
  0x8c   :  { %923 = vmatprep.mubr.f32.mxu0 %v131_v17  ;;  %1947 = vmatpush1.msra.mxu1 %v734_v18  ;;  %v7019_v17 = vld [vmem:[%s14525_s0 + $0x170] sm:$0xff] }
  0x8d   :  { %1304 = vmatmul.mubr.f32.gmra.mxu1 %v194_v19  ;;  %1595 = vmatprep.subr.mxu0 %v8153_v0  ;;  %v751_v18 = vld [vmem:[%s14527_s2 + $0x3d0] sm:$0xff] }
  0x8e   :  { %1308 = vmatprep.mubr.f32.mxu1 %v7006_v20  ;;  %1596 = vmatpush2.msra.mxu0 %v717_v21  ;;  %v145_v19 = vld [vmem:[%s14525_s0 + $0x169] sm:$0xff]  ;;  %v208_v21 = vld [vmem:[%s14525_s0 + $0x15a] sm:$0xff] }
  0x8f   :  { %924 = vmatmul.mubr.f32.gmra.mxu0 %v7004_v10  ;;  %1948 = vmatprep.subr.mxu1 %v8153_v0  ;;  %v711_v10 = vld [vmem:[%s14527_s2 + $0x290] sm:$0xff] }
  0x90   :  { %928 = vmatprep.mubr.f32.mxu0 %v132_v22  ;;  %1949 = vmatpush1.msra.mxu1 %v733_v23  ;;  %v7020_v22 = vld [vmem:[%s14525_s0 + $0x180] sm:$0xff]  ;;  %v710_v23 = vld [vmem:[%s14527_s2 + $0x288] sm:$0xff] }
  0x91   :  { %1309 = vmatmul.mubr.f32.gmra.mxu1 %v195_v24  ;;  %1597 = vmatprep.subr.mxu0 %v8153_v0  ;;  %v749_v24 = vld [vmem:[%s14527_s2 + $0x3c0] sm:$0xff] }
  0x92   :  { %1313 = vmatprep.mubr.f32.mxu1 %v7007_v25  ;;  %1598 = vmatpush2.msra.mxu0 %v716_v26  ;;  %v209_v26 = vld [vmem:[%s14525_s0 + $0x16a] sm:$0xff] }
  0x93   :  { %929 = vmatmul.mubr.f32.gmra.mxu0 %v7005_v15  ;;  %1950 = vmatprep.subr.mxu1 %v8153_v0  ;;  %v752_v15 = vld [vmem:[%s14527_s2 + $0x3d8] sm:$0xff] }
  0x94   :  { %933 = vmatprep.mubr.f32.mxu0 %v133_v27  ;;  %1951 = vmatpush1.msra.mxu1 %v732_v29  ;;  %v7021_v27 = vld [vmem:[%s14525_s0 + $0x188] sm:$0xff]  ;;  %v147_v29 = vld [vmem:[%s14525_s0 + $0x1b1] sm:$0xff] }
  0x95   :  { %1314 = vmatmul.mubr.f32.gmra.mxu1 %v196_v28  ;;  %1599 = vmatprep.subr.mxu0 %v8153_v0  ;;  %v748_v28 = vld [vmem:[%s14527_s2 + $0x3b8] sm:$0xff] }
  0x96   :  { %1318 = vmatprep.mubr.f32.mxu1 %v7008_v30  ;;  %1952 = vmatprep.subr.mxu1 %v8153_v0  ;;  %v198_v0 = vld [vmem:[%s14525_s0 + $0xe2] sm:$0xff] }
  0x97   :  { %934 = vmatmul.mubr.f32.gmra.mxu0 %v7006_v20  ;;  %1953 = vmatpush1.msra.mxu1 %v731_v36  ;;  %v750_v20 = vld [vmem:[%s14527_s2 + $0x3c8] sm:$0xff]  ;;  %v211_v36 = vld [vmem:[%s14525_s0 + $0x1b2] sm:$0xff] }
  0x98   :  { %938 = vmatprep.mubr.f32.mxu0 %v134_v31  ;;  %1600 = vmatpush2.msra.mxu0 %v715_v34  ;;  %v210_v31 = vld [vmem:[%s14525_s0 + $0x172] sm:$0xff] }
  0x99   :  { %1319 = vmatmul.mubr.f32.gmra.mxu1 %v197_v32  ;;  %1601 = vmatprep.subr.mxu0 %v8890_v37  ;;  %v7022_v32 = vld [vmem:[%s14525_s0 + $0x1c8] sm:$0xff]  ;;  %v83_v34 = vld [vmem:[%s14525_s0 + $0x1b0] sm:$0xff] }
  0x9a   :  { %1323 = vmatprep.mubr.f32.mxu1 %v7009_v33  ;;  %1954 = vmatprep.subr.mxu1 %v8890_v37 }
  0x9b   :  { %939 = vmatmul.mubr.f32.gmra.mxu0 %v7007_v25  ;;  %1955 = vmatpush1.msra.mxu1 %v730_v45  ;;  %v146_v25 = vld [vmem:[%s14525_s0 + $0x171] sm:$0xff]  ;;  %v7024_v45 = vld [vmem:[%s14525_s0 + $0x1e0] sm:$0xff] }
  0x9c   :  { %943 = vmatprep.mubr.f32.mxu0 %v135_v35  ;;  %1602 = vmatpush2.msra.mxu0 %v714_v42  ;;  %v148_v35 = vld [vmem:[%s14525_s0 + $0x1b9] sm:$0xff]  ;;  %v149_v42 = vld [vmem:[%s14525_s0 + $0x1c9] sm:$0xff] }
  0x9d   :  { %1324 = vmatmul.mubr.f32.gmra.mxu1 %v198_v0  ;;  %1603 = vmatprep.subr.mxu0 %v8890_v37  ;;  %v709_v0 = vld [vmem:[%s14527_s2 + $0x280] sm:$0xff] }
  0x9e   :  { %1328 = vmatprep.mubr.f32.mxu1 %v7010_v38  ;;  %1956 = vmatprep.subr.mxu1 %v8890_v37 }
  0x9f   :  { %944 = vmatmul.mubr.f32.gmra.mxu0 %v7008_v30  ;;  %1957 = vmatpush1.msra.mxu1 %v729_v50  ;;  %v747_v30 = vld [vmem:[%s14527_s2 + $0x3b0] sm:$0xff]  ;;  %v7025_v50 = vld [vmem:[%s14525_s0 + $0x1e8] sm:$0xff] }
  0xa0   :  { %948 = vmatprep.mubr.f32.mxu0 %v136_v39  ;;  %1604 = vmatpush2.msra.mxu0 %v713_v51  ;;  %v745_v39 = vld [vmem:[%s14527_s2 + $0x3a0] sm:$0xff] }
  0xa1   :  { %1329 = vmatmul.mubr.f32.gmra.mxu1 %v199_v40  ;;  %1958 = vmatprep.subr.mxu1 %v8890_v37  ;;  %v84_v40 = vld [vmem:[%s14525_s0 + $0x1b8] sm:$0xff]  ;;  %v741_v51 = vld [vmem:[%s14527_s2 + $0x380] sm:$0xff] }
  0xa2   :  { %1333 = vmatprep.mubr.f32.mxu1 %v7011_v41  ;;  %1959 = vmatpush1.msra.mxu1 %v728_v53  ;;  %v214_v53 = vld [vmem:[%s14525_s0 + $0x1d2] sm:$0xff] }
  0xa3   :  { %949 = vmatmul.mubr.f32.gmra.mxu0 %v7009_v33  ;;  %1960 = vmatprep.subr.mxu1 %v8890_v37  ;;  %v746_v33 = vld [vmem:[%s14527_s2 + $0x3a8] sm:$0xff] }
  0xa4   :  { %953 = vmatprep.mubr.f32.mxu0 %v137_v43  ;;  %1605 = vmatprep.subr.mxu0 %v8890_v37  ;;  %v744_v43 = vld [vmem:[%s14527_s2 + $0x398] sm:$0xff] }
  0xa5   :  { %1334 = vmatmul.mubr.f32.gmra.mxu1 %v200_v44  ;;  %1606 = vmatpush2.msra.mxu0 %v712_v61  ;;  %v212_v44 = vld [vmem:[%s14525_s0 + $0x1ba] sm:$0xff] }
  0xa6   :  { %1338 = vmatprep.mubr.f32.mxu1 %v7012_v46  ;;  %1961 = vmatpush1.msra.mxu1 %v727_v56  ;;  %v215_v56 = vld [vmem:[%s14525_s0 + $0x1e2] sm:$0xff]  ;;  %v217_v61 = vld [vmem:[%s14525_s0 + $0x1fa] sm:$0xff] }
  0xa7   :  { %954 = vmatmul.mubr.f32.gmra.mxu0 %v7010_v38  ;;  %1962 = vmatprep.subr.mxu1 %v8890_v37  ;;  %v7023_v38 = vld [vmem:[%s14525_s0 + $0x1d0] sm:$0xff] }
  0xa8   :  { %958 = vmatprep.mubr.f32.mxu0 %v138_v47  ;;  %1963 = vmatpush1.msra.mxu1 %v726_v58  ;;  %v150_v47 = vld [vmem:[%s14525_s0 + $0x1d1] sm:$0xff] }
  0xa9   :  { %1339 = vmatmul.mubr.f32.gmra.mxu1 %v201_v48  ;;  %1964 = vmatprep.subr.mxu1 %v8890_v37  ;;  %v742_v48 = vld [vmem:[%s14527_s2 + $0x388] sm:$0xff] }
  0xaa   :  { %1343 = vmatprep.mubr.f32.mxu1 %v7013_v49  ;;  %1965 = vmatpush1.msra.mxu1 %v725_v62  ;;  %v216_v58 = vld [vmem:[%s14525_s0 + $0x1ea] sm:$0xff]  ;;  %v7029_v62 = vld [vmem:[%s14525_s0 + $0x218] sm:$0xff] }
  0xab   :  { %959 = vmatmul.mubr.f32.gmra.mxu0 %v7011_v41  ;;  %1966 = vmatprep.subr.mxu1 %v8890_v37  ;;  %v9117_v41 = vld [vmem:[%s14527_s2 + $0x478] sm:$0xff] }
  0xac   :  { %963 = vmatprep.mubr.f32.mxu0 %v139_v52  ;;  %1607 = vmatprep.subr.mxu0 %v8890_v37  ;;  %v151_v52 = vld [vmem:[%s14525_s0 + $0x1e1] sm:$0xff] }
  0xad   :  { %1344 = vmatmul.mubr.f32.gmra.mxu1 %v202_v54  ;;  %1608 = vmatpush2.msra.mxu0 %v711_v10  ;;  %v7026_v54 = vld [vmem:[%s14525_s0 + $0x1f8] sm:$0xff]  ;;  %v221_v10 = vld [vmem:[%s14525_s0 + $0x22a] sm:$0xff] }
  0xae   :  { %1348 = vmatprep.mubr.f32.mxu1 %v7014_v55  ;;  %1967 = vmatpush2.msra.mxu1 %v756_v3  ;;  %v156_v3 = vld [vmem:[%s14525_s0 + $0x219] sm:$0xff] }
  0xaf   :  { %964 = vmatmul.mubr.f32.gmra.mxu0 %v7012_v46  ;;  %1968 = vmatprep.subr.mxu1 %v8890_v37  ;;  %v743_v46 = vld [vmem:[%s14527_s2 + $0x390] sm:$0xff] }
  0xb0   :  { %968 = vmatprep.mubr.f32.mxu0 %v140_v57  ;;  %1969 = vmatpush2.msra.mxu1 %v755_v5  ;;  %v7027_v57 = vld [vmem:[%s14525_s0 + $0x200] sm:$0xff]  ;;  %v7031_v5 = vld [vmem:[%s14525_s0 + $0x230] sm:$0xff] }
  0xb1   :  { %1349 = vmatmul.mubr.f32.gmra.mxu1 %v203_v59  ;;  %1970 = vmatprep.subr.mxu1 %v8890_v37  ;;  %v7028_v59 = vld [vmem:[%s14525_s0 + $0x210] sm:$0xff] }
  0xb2   :  { %1353 = vmatprep.mubr.f32.mxu1 %v7015_v60  ;;  %1971 = vmatpush2.msra.mxu1 %v754_v8  ;;  %v7032_v8 = vld [vmem:[%s14525_s0 + $0x240] sm:$0xff] }
  0xb3   :  { %969 = vmatmul.mubr.f32.gmra.mxu0 %v7013_v49  ;;  %1972 = vmatprep.subr.mxu1 %v8890_v37  ;;  %v213_v49 = vld [vmem:[%s14525_s0 + $0x1ca] sm:$0xff] }
  0xb4   :  { %973 = vmatprep.mubr.f32.mxu0 %v141_v63  ;;  %1609 = vmatprep.subr.mxu0 %v8890_v37  ;;  %v155_v63 = vld [vmem:[%s14525_s0 + $0x211] sm:$0xff] }
  0xb5   :  { %1354 = vmatmul.mubr.f32.gmra.mxu1 %v204_v1  ;;  %1610 = vmatpush2.msra.mxu0 %v710_v23  ;;  %v218_v1 = vld [vmem:[%s14525_s0 + $0x202] sm:$0xff]  ;;  %v7037_v23 = vld [vmem:[%s14525_s0 + $0x278] sm:$0xff] }
  0xb6   :  { %1358 = vmatprep.mubr.f32.mxu1 %v7016_v2  ;;  %1973 = vmatpush2.msra.mxu1 %v753_v13  ;;  %v222_v13 = vld [vmem:[%s14525_s0 + $0x232] sm:$0xff] }
  0xb7   :  { %974 = vmatmul.mubr.f32.gmra.mxu0 %v7014_v55  ;;  %1974 = vmatprep.subr.mxu1 %v8890_v37  ;;  %v152_v55 = vld [vmem:[%s14525_s0 + $0x1e9] sm:$0xff] }
  0xb8   :  { %978 = vmatprep.mubr.f32.mxu0 %v142_v4  ;;  %1975 = vmatpush2.msra.mxu1 %v752_v15  ;;  %v219_v4 = vld [vmem:[%s14525_s0 + $0x212] sm:$0xff]  ;;  %v160_v15 = vld [vmem:[%s14525_s0 + $0x249] sm:$0xff] }
  0xb9   :  { %1359 = vmatmul.mubr.f32.gmra.mxu1 %v205_v6  ;;  %1976 = vmatprep.subr.mxu1 %v8890_v37  ;;  %v157_v6 = vld [vmem:[%s14525_s0 + $0x229] sm:$0xff] }
  0xba   :  { %1363 = vmatprep.mubr.f32.mxu1 %v7017_v7  ;;  %1977 = vmatpush2.msra.mxu1 %v751_v18  ;;  %v161_v18 = vld [vmem:[%s14525_s0 + $0x259] sm:$0xff] }
  0xbb   :  { %979 = vmatmul.mubr.f32.gmra.mxu0 %v7015_v60  ;;  %1978 = vmatprep.subr.mxu1 %v8890_v37  ;;  %v154_v60 = vld [vmem:[%s14525_s0 + $0x201] sm:$0xff] }
  0xbc   :  { %983 = vmatprep.mubr.f32.mxu0 %v143_v9  ;;  %1979 = vmatpush2.msra.mxu1 %v750_v20  ;;  %v158_v9 = vld [vmem:[%s14525_s0 + $0x231] sm:$0xff] }
  0xbd   :  { %1364 = vmatmul.mubr.f32.gmra.mxu1 %v206_v11  ;;  %1980 = vmatprep.subr.mxu1 %v8890_v37  ;;  %v7033_v11 = vld [vmem:[%s14525_s0 + $0x248] sm:$0xff]  ;;  %v7036_v20 = vld [vmem:[%s14525_s0 + $0x270] sm:$0xff] }
  0xbe   :  { %1368 = vmatprep.mubr.f32.mxu1 %v7018_v12  ;;  %1981 = vmatpush2.msra.mxu1 %v749_v24  ;;  %v163_v24 = vld [vmem:[%s14525_s0 + $0x271] sm:$0xff] }
  0xbf   :  { %984 = vmatmul.mubr.f32.gmra.mxu0 %v7016_v2  ;;  %1982 = vmatprep.subr.mxu1 %v8890_v37  ;;  %v7030_v2 = vld [vmem:[%s14525_s0 + $0x228] sm:$0xff] }
  0xc0   :  { %988 = vmatprep.mubr.f32.mxu0 %v144_v14  ;;  %1611 = vmatprep.subr.mxu0 %v8890_v37  ;;  %v7034_v14 = vld [vmem:[%s14525_s0 + $0x258] sm:$0xff] }
  0xc1   :  { %1369 = vmatmul.mubr.f32.gmra.mxu1 %v207_v16  ;;  %1612 = vmatpush2.msra.mxu0 %v709_v0  ;;  %v223_v16 = vld [vmem:[%s14525_s0 + $0x242] sm:$0xff] }
  0xc2   :  { %1373 = vmatprep.mubr.f32.mxu1 %v7019_v17  ;;  %1983 = vmatpush2.msra.mxu1 %v748_v28  ;;  %v164_v28 = vld [vmem:[%s14525_s0 + $0x279] sm:$0xff] }
  0xc3   :  { %989 = vmatmul.mubr.f32.gmra.mxu0 %v7017_v7  ;;  %1984 = vmatprep.subr.mxu1 %v8890_v37  ;;  %v220_v7 = vld [vmem:[%s14525_s0 + $0x21a] sm:$0xff] }
  0xc4   :  { %993 = vmatprep.mubr.f32.mxu0 %v145_v19  ;;  %1985 = vmatpush2.msra.mxu1 %v747_v30  ;;  %v224_v19 = vld [vmem:[%s14525_s0 + $0x24a] sm:$0xff] }
  0xc5   :  { %1374 = vmatmul.mubr.f32.gmra.mxu1 %v208_v21  ;;  %1986 = vmatprep.subr.mxu1 %v8890_v37  ;;  %v162_v21 = vld [vmem:[%s14525_s0 + $0x261] sm:$0xff] }
  0xc6   :  { %1378 = vmatprep.mubr.f32.mxu1 %v7020_v22  ;;  %1987 = vmatpush2.msra.mxu1 %v746_v33  ;;  %v225_v22 = vld [vmem:[%s14525_s0 + $0x25a] sm:$0xff] }
  0xc7   :  { %994 = vmatmul.mubr.f32.gmra.mxu0 %v7018_v12  ;;  %1988 = vmatprep.subr.mxu1 %v8890_v37  ;;  %v159_v12 = vld [vmem:[%s14525_s0 + $0x241] sm:$0xff] }
  0xc8   :  { %998 = vmatprep.mubr.f32.mxu0 %v146_v25  ;;  %7670 = vmatprep.subr.mxu0 %v9117_v41  ;;  %v226_v25 = vld [vmem:[%s14525_s0 + $0x262] sm:$0xff] }
  0xc9   :  { %1379 = vmatmul.mubr.f32.gmra.mxu1 %v209_v26  ;;  %v7038_v26 = vld [vmem:[%s14525_s0 + $0x288] sm:$0xff] }
  0xca   :  { %1383 = vmatprep.mubr.f32.mxu1 %v7021_v27  ;;  %1989 = vmatpush2.msra.mxu1 %v745_v39  ;;  %v9275_v27 = vld [vmem:[%s14528_s3] ss:$0 sm:$0xff] }
  0xcb   :  { %999 = vmatmul.mubr.f32.gmra.mxu0 %v7019_v17  ;;  %1990 = vmatprep.subr.mxu1 %v8890_v37  ;;  %v7035_v17 = vld [vmem:[%s14525_s0 + $0x260] sm:$0xff] }
  0xcc   :  { %1003 = vmatprep.mubr.f32.mxu0 %v147_v29  ;;  %1991 = vmatpush2.msra.mxu1 %v744_v43  ;;  %v227_v29 = vld [vmem:[%s14525_s0 + $0x272] sm:$0xff] }
  0xcd   :  { %1384 = vmatmul.mubr.f32.gmra.mxu1 %v210_v31  ;;  %1992 = vmatprep.subr.mxu1 %v8890_v37  ;;  %v7039_v31 = vld [vmem:[%s14525_s0 + $0x290] sm:$0xff] }
  0xce   :  { %1388 = vmatprep.mubr.f32.mxu1 %v7022_v32  ;;  %1993 = vmatpush2.msra.mxu1 %v743_v46 }
  0xcf   :  { %1004 = vmatmul.mubr.f32.gmra.mxu0 %v83_v34  ;;  %1994 = vmatprep.subr.mxu1 %v8890_v37 }
  0xd0   :  { %1008 = vmatprep.mubr.f32.mxu0 %v148_v35  ;;  %1995 = vmatpush2.msra.mxu1 %v742_v48  ;;  %v165_v35 = vld [vmem:[%s14525_s0 + $0x289] sm:$0xff] }
  0xd1   :  { %1389 = vmatmul.mubr.f32.gmra.mxu1 %v211_v36  ;;  %1996 = vmatprep.subr.mxu1 %v8890_v37  ;;  %v228_v36 = vld [vmem:[%s14525_s0 + $0x27a] sm:$0xff] }
  0xd2   :  { %1393 = vmatprep.mubr.f32.mxu1 %v7023_v38  ;;  %1997 = vmatpush2.msra.mxu1 %v741_v51 }
  0xd3   :  { %1009 = vmatmul.mubr.f32.gmra.mxu0 %v84_v40  ;;  %7798 = vmatprep.subr.mxu1 %v8890_v37  ;;  %v153_v37 = vld [vmem:[%s14525_s0 + $0x1f9] sm:$0xff] }
  0xd4   :  { %1013 = vmatprep.mubr.f32.mxu0 %v149_v42  ;;  %v7040_v40 = vld [vmem:[%s14525_s0 + $0x2a0] sm:$0xff] }
  0xd5   :  { %1394 = vmatmul.mubr.f32.gmra.mxu1 %v212_v44 }
  0xd6   :  { %1398 = vmatprep.mubr.f32.mxu1 %v7024_v45 }
  0xd7   :  { %1014 = vmatmul.mubr.f32.gmra.mxu0 %v7022_v32 }
  0xd8   :  { %1018 = vmatprep.mubr.f32.mxu0 %v150_v47  ;;  %v229_v47 = vld [vmem:[%s14525_s0 + $0x28a] sm:$0xff] }
  0xd9   :  { %1399 = vmatmul.mubr.f32.gmra.mxu1 %v213_v49 }
  0xda   :  { %1403 = vmatprep.mubr.f32.mxu1 %v7025_v50 }
  0xdb   :  { %1019 = vmatmul.mubr.f32.gmra.mxu0 %v7023_v38 }
  0xdc   :  { %1023 = vmatprep.mubr.f32.mxu0 %v151_v52 }
  0xdd   :  { %1404 = vmatmul.mubr.f32.gmra.mxu1 %v214_v53 }
  0xde   :  { %1408 = vmatprep.mubr.f32.mxu1 %v7026_v54 }
  0xdf   :  { %1024 = vmatmul.mubr.f32.gmra.mxu0 %v7024_v45  ;;  %v166_v45 = vld [vmem:[%s14525_s0 + $0x291] sm:$0xff] }
  0xe0   :  { %1028 = vmatprep.mubr.f32.mxu0 %v152_v55 }
  0xe1   :  { %1409 = vmatmul.mubr.f32.gmra.mxu1 %v215_v56  ;;  %v230_v56 = vld [vmem:[%s14525_s0 + $0x292] sm:$0xff] }
  0xe2   :  { %1413 = vmatprep.mubr.f32.mxu1 %v7027_v57 }
  0xe3   :  { %1029 = vmatmul.mubr.f32.gmra.mxu0 %v7025_v50  ;;  %v7041_v50 = vld [vmem:[%s14525_s0 + $0x2a8] sm:$0xff] }
  0xe4   :  { %1033 = vmatprep.mubr.f32.mxu0 %v153_v37 }
  0xe5   :  { %1414 = vmatmul.mubr.f32.gmra.mxu1 %v216_v58  ;;  %v7042_v58 = vld [vmem:[%s14525_s0 + $0x2b8] sm:$0xff] }
  0xe6   :  { %1418 = vmatprep.mubr.f32.mxu1 %v7028_v59 }
  0xe7   :  { %1034 = vmatmul.mubr.f32.gmra.mxu0 %v7026_v54  ;;  %v167_v54 = vld [vmem:[%s14525_s0 + $0x2a1] sm:$0xff] }
  0xe8   :  { %1038 = vmatprep.mubr.f32.mxu0 %v154_v60 }
  0xe9   :  { %1419 = vmatmul.mubr.f32.gmra.mxu1 %v217_v61 }
  0xea   :  { %1423 = vmatprep.mubr.f32.mxu1 %v7029_v62 }
  0xeb   :  { %1039 = vmatmul.mubr.f32.gmra.mxu0 %v7027_v57 }
  0xec   :  { %1043 = vmatprep.mubr.f32.mxu0 %v155_v63 }
  0xed   :  { %1424 = vmatmul.mubr.f32.gmra.mxu1 %v218_v1  ;;  %v231_v1 = vld [vmem:[%s14525_s0 + $0x2a2] sm:$0xff] }
  0xee   :  { %1428 = vmatprep.mubr.f32.mxu1 %v7030_v2 }
  0xef   :  { %1044 = vmatmul.mubr.f32.gmra.mxu0 %v7028_v59 }
  0xf0   :  { %1048 = vmatprep.mubr.f32.mxu0 %v156_v3 }
  0xf1   :  { %1429 = vmatmul.mubr.f32.gmra.mxu1 %v219_v4  ;;  %v7043_v4 = vld [vmem:[%s14525_s0 + $0x2c0] sm:$0xff] }
  0xf2   :  { %1433 = vmatprep.mubr.f32.mxu1 %v7031_v5 }
  0xf3   :  { %1049 = vmatmul.mubr.f32.gmra.mxu0 %v7029_v62  ;;  %v168_v62 = vld [vmem:[%s14525_s0 + $0x2a9] sm:$0xff] }
  0xf4   :  { %1053 = vmatprep.mubr.f32.mxu0 %v157_v6 }
  0xf5   :  { %1434 = vmatmul.mubr.f32.gmra.mxu1 %v220_v7 }
  0xf6   :  { %1438 = vmatprep.mubr.f32.mxu1 %v7032_v8 }
  0xf7   :  { %1054 = vmatmul.mubr.f32.gmra.mxu0 %v7030_v2 }
  0xf8   :  { %1058 = vmatprep.mubr.f32.mxu0 %v158_v9 }
  0xf9   :  { %1439 = vmatmul.mubr.f32.gmra.mxu1 %v221_v10  ;;  %v232_v10 = vld [vmem:[%s14525_s0 + $0x2aa] sm:$0xff] }
  0xfa   :  { %1443 = vmatprep.mubr.f32.mxu1 %v7033_v11 }
  0xfb   :  { %1059 = vmatmul.mubr.f32.gmra.mxu0 %v7031_v5 }
  0xfc   :  { %1063 = vmatprep.mubr.f32.mxu0 %v159_v12 }
  0xfd   :  { %1444 = vmatmul.mubr.f32.gmra.mxu1 %v222_v13  ;;  %v7044_v13 = vld [vmem:[%s14525_s0 + $0x2d0] sm:$0xff] }
  0xfe   :  { %1448 = vmatprep.mubr.f32.mxu1 %v7034_v14 }
  0xff   :  { %1064 = vmatmul.mubr.f32.gmra.mxu0 %v7032_v8  ;;  %v169_v8 = vld [vmem:[%s14525_s0 + $0x2b9] sm:$0xff] }
 0x100   :  { %1068 = vmatprep.mubr.f32.mxu0 %v160_v15 }
 0x101   :  { %1449 = vmatmul.mubr.f32.gmra.mxu1 %v223_v16 }
 0x102   :  { %1453 = vmatprep.mubr.f32.mxu1 %v7035_v17 }
 0x103   :  { %1069 = vmatmul.mubr.f32.gmra.mxu0 %v7033_v11 }
 0x104   :  { %1073 = vmatprep.mubr.f32.mxu0 %v161_v18 }
 0x105   :  { %1454 = vmatmul.mubr.f32.gmra.mxu1 %v224_v19  ;;  %v233_v19 = vld [vmem:[%s14525_s0 + $0x2ba] sm:$0xff] }
 0x106   :  { %1458 = vmatprep.mubr.f32.mxu1 %v7036_v20 }
 0x107   :  { %1074 = vmatmul.mubr.f32.gmra.mxu0 %v7034_v14 }
 0x108   :  { %1078 = vmatprep.mubr.f32.mxu0 %v162_v21 }
 0x109   :  { %1459 = vmatmul.mubr.f32.gmra.mxu1 %v225_v22  ;;  %v7045_v22 = vld [vmem:[%s14525_s0 + $0x2d8] sm:$0xff] }
 0x10a   :  { %1463 = vmatprep.mubr.f32.mxu1 %v7037_v23 }
 0x10b   :  { %1079 = vmatmul.mubr.f32.gmra.mxu0 %v7035_v17  ;;  %v170_v17 = vld [vmem:[%s14525_s0 + $0x2c1] sm:$0xff] }
 0x10c   :  { %1083 = vmatprep.mubr.f32.mxu0 %v163_v24 }
 0x10d   :  { %1464 = vmatmul.mubr.f32.gmra.mxu1 %v226_v25 }
 0x10e   :  { %1468 = vmatprep.mubr.f32.mxu1 %v7038_v26 }
 0x10f   :  { %v845_v30 = vpop.f32.mrf.mxu0  ;;  %1084 = vmatmul.mubr.f32.gmra.mxu0 %v7036_v20 }
 0x110   :  { %v846_v32 = vadd.f32 %v9275_v27, %v845_v30  ;;  %1088 = vmatprep.mubr.f32.mxu0 %v164_v28 }
 0x111   :  { %v847_v33 = vpop.f32.mrf.mxu0  ;;  %v1230_v34 = vpop.f32.mrf.mxu1  ;;  %1469 = vmatmul.mubr.f32.gmra.mxu1 %v227_v29  ;;  %v234_v29 = vld [vmem:[%s14525_s0 + $0x2c2] sm:$0xff] }
 0x112   :  { %v9290_v0 = vadd.f32 %v1230_v34, %v846_v32  ;;  %1473 = vmatprep.mubr.f32.mxu1 %v7039_v31  ;;  %v7046_v32 = vld [vmem:[%s14525_s0 + $0x2e8] sm:$0xff] }
 0x113   :  { %v850_v38 = vpop.f32.mrf.mxu0  ;;  %1089 = vmatmul.mubr.f32.gmra.mxu0 %v7037_v23  ;;  %v1232_v39 = vpop.f32.mrf.mxu1 }
 0x114   :  { %v851_v42 = vadd.f32 %v9275_v27, %v850_v38  ;;  %1093 = vmatprep.mubr.f32.mxu0 %v165_v35  ;;  %v235_v39 = vld [vmem:[%s14525_s0 + $0x2d2] sm:$0xff] }
 0x115   :  { %v852_v43 = vpop.f32.mrf.mxu0  ;;  %v1235_v44 = vpop.f32.mrf.mxu1  ;;  %1474 = vmatmul.mubr.f32.gmra.mxu1 %v228_v36  ;;  %v172_v36 = vld [vmem:[%s14525_s0 + $0x2d9] sm:$0xff] }
 0x116   :  { %v9302_v46 = vadd.f32 %v1235_v44, %v851_v42  ;;  %1478 = vmatprep.mubr.f32.mxu1 %v7040_v40  ;;  %v7047_v43 = vld [vmem:[%s14525_s0 + $0x2f0] sm:$0xff] }
 0x117   :  { %v855_v48 = vpop.f32.mrf.mxu0  ;;  %1094 = vmatmul.mubr.f32.gmra.mxu0 %v7038_v26  ;;  %v1237_v49 = vpop.f32.mrf.mxu1  ;;  %v171_v26 = vld [vmem:[%s14525_s0 + $0x2d1] sm:$0xff] }
 0x118   :  { %v856_v51 = vadd.f32 %v9275_v27, %v855_v48  ;;  %1098 = vmatprep.mubr.f32.mxu0 %v166_v45  ;;  %v173_v48 = vld [vmem:[%s14525_s0 + $0x2e9] sm:$0xff] }
 0x119   :  { %v857_v52 = vpop.f32.mrf.mxu0  ;;  %v1240_v53 = vpop.f32.mrf.mxu1  ;;  %1479 = vmatmul.mubr.f32.gmra.mxu1 %v229_v47 }
 0x11a   :  { %v9314_v55 = vadd.f32 %v1240_v53, %v856_v51  ;;  %1483 = vmatprep.mubr.f32.mxu1 %v7041_v50  ;;  %v7048_v53 = vld [vmem:[%s14525_s0 + $0x300] sm:$0xff] }
 0x11b   :  { %v860_v57 = vpop.f32.mrf.mxu0  ;;  %1099 = vmatmul.mubr.f32.gmra.mxu0 %v7039_v31  ;;  %v1242_v37 = vpop.f32.mrf.mxu1 }
 0x11c   :  { %v861_v59 = vadd.f32 %v9275_v27, %v860_v57  ;;  %1103 = vmatprep.mubr.f32.mxu0 %v167_v54  ;;  %v174_v37 = vld [vmem:[%s14525_s0 + $0x2f1] sm:$0xff] }
 0x11d   :  { %v862_v60 = vpop.f32.mrf.mxu0  ;;  %v1245_v61 = vpop.f32.mrf.mxu1  ;;  %1484 = vmatmul.mubr.f32.gmra.mxu1 %v230_v56 }
 0x11e   :  { %v9326_v63 = vadd.f32 %v1245_v61, %v861_v59  ;;  %1488 = vmatprep.mubr.f32.mxu1 %v7042_v58  ;;  %v237_v59 = vld [vmem:[%s14525_s0 + $0x2ea] sm:$0xff] }
 0x11f   :  { %v865_v2 = vpop.f32.mrf.mxu0  ;;  %1104 = vmatmul.mubr.f32.gmra.mxu0 %v7040_v40  ;;  %v1247_v3 = vpop.f32.mrf.mxu1 }
 0x120   :  { %v866_v5 = vadd.f32 %v9275_v27, %v865_v2  ;;  %1108 = vmatprep.mubr.f32.mxu0 %v168_v62  ;;  %v7049_v62 = vld [vmem:[%s14525_s0 + $0x308] sm:$0xff] }
 0x121   :  { %v867_v6 = vpop.f32.mrf.mxu0  ;;  %v1250_v7 = vpop.f32.mrf.mxu1  ;;  %1489 = vmatmul.mubr.f32.gmra.mxu1 %v231_v1 }
 0x122   :  { %v9338_v9 = vadd.f32 %v1250_v7, %v866_v5  ;;  %1493 = vmatprep.mubr.f32.mxu1 %v7043_v4  ;;  %v238_v6 = vld [vmem:[%s14525_s0 + $0x2f2] sm:$0xff] }
 0x123   :  { %v870_v11 = vpop.f32.mrf.mxu0  ;;  %1109 = vmatmul.mubr.f32.gmra.mxu0 %v7041_v50  ;;  %v1252_v12 = vpop.f32.mrf.mxu1  ;;  %v236_v50 = vld [vmem:[%s14525_s0 + $0x2da] sm:$0xff] }
 0x124   :  { %v871_v14 = vadd.f32 %v9275_v27, %v870_v11  ;;  %1113 = vmatprep.mubr.f32.mxu0 %v169_v8 }
 0x125   :  { %v872_v15 = vpop.f32.mrf.mxu0  ;;  %v1255_v16 = vpop.f32.mrf.mxu1  ;;  %1494 = vmatmul.mubr.f32.gmra.mxu1 %v232_v10  ;;  %v7050_v10 = vld [vmem:[%s14525_s0 + $0x318] sm:$0xff] }
 0x126   :  { %v9350_v18 = vadd.f32 %v1255_v16, %v871_v14  ;;  %1498 = vmatprep.mubr.f32.mxu1 %v7044_v13  ;;  %v176_v14 = vld [vmem:[%s14525_s0 + $0x309] sm:$0xff] }
 0x127   :  { %v875_v20 = vpop.f32.mrf.mxu0  ;;  %1114 = vmatmul.mubr.f32.gmra.mxu0 %v7042_v58  ;;  %v1257_v21 = vpop.f32.mrf.mxu1  ;;  %v239_v16 = vld [vmem:[%s14525_s0 + $0x302] sm:$0xff] }
 0x128   :  { %v876_v23 = vadd.f32 %v9275_v27, %v875_v20  ;;  %1118 = vmatprep.mubr.f32.mxu0 %v170_v17  ;;  %v7051_v20 = vld [vmem:[%s14525_s0 + $0x320] sm:$0xff] }
 0x129   :  { %v877_v24 = vpop.f32.mrf.mxu0  ;;  %v1260_v25 = vpop.f32.mrf.mxu1  ;;  %1499 = vmatmul.mubr.f32.gmra.mxu1 %v233_v19 }
 0x12a   :  { %v9362_v28 = vadd.f32 %v1260_v25, %v876_v23  ;;  %1503 = vmatprep.mubr.f32.mxu1 %v7045_v22  ;;  %v177_v24 = vld [vmem:[%s14525_s0 + $0x319] sm:$0xff] }
 0x12b   :  { %v880_v30 = vpop.f32.mrf.mxu0  ;;  %1119 = vmatmul.mubr.f32.gmra.mxu0 %v7043_v4  ;;  %v1262_v31 = vpop.f32.mrf.mxu1  ;;  %v175_v4 = vld [vmem:[%s14525_s0 + $0x301] sm:$0xff] }
 0x12c   :  { %v881_v33 = vadd.f32 %v9275_v27, %v880_v30  ;;  %1123 = vmatprep.mubr.f32.mxu0 %v171_v26  ;;  %v240_v26 = vld [vmem:[%s14525_s0 + $0x30a] sm:$0xff] }
 0x12d   :  { %v882_v34 = vpop.f32.mrf.mxu0  ;;  %v1265_v35 = vpop.f32.mrf.mxu1  ;;  %1504 = vmatmul.mubr.f32.gmra.mxu1 %v234_v29  ;;  %v7052_v31 = vld [vmem:[%s14525_s0 + $0x330] sm:$0xff] }
 0x12e   :  { %v9374_v38 = vadd.f32 %v1265_v35, %v881_v33  ;;  %1508 = vmatprep.mubr.f32.mxu1 %v7046_v32  ;;  %v178_v35 = vld [vmem:[%s14525_s0 + $0x321] sm:$0xff] }
 0x12f   :  { %v885_v40 = vpop.f32.mrf.mxu0  ;;  %1124 = vmatmul.mubr.f32.gmra.mxu0 %v7044_v13  ;;  %v1267_v42 = vpop.f32.mrf.mxu1 }
 0x130   :  { %v886_v44 = vadd.f32 %v9275_v27, %v885_v40  ;;  %1128 = vmatprep.mubr.f32.mxu0 %v172_v36 }
 0x131   :  { %v887_v45 = vpop.f32.mrf.mxu0  ;;  %v1270_v47 = vpop.f32.mrf.mxu1  ;;  %1509 = vmatmul.mubr.f32.gmra.mxu1 %v235_v39  ;;  %v241_v39 = vld [vmem:[%s14525_s0 + $0x31a] sm:$0xff] }
 0x132   :  { %v9386_v49 = vadd.f32 %v1270_v47, %v886_v44  ;;  %1513 = vmatprep.mubr.f32.mxu1 %v7047_v43 }
 0x133   :  { %v890_v51 = vpop.f32.mrf.mxu0  ;;  %1129 = vmatmul.mubr.f32.gmra.mxu0 %v7045_v22  ;;  %v1272_v52 = vpop.f32.mrf.mxu1 }
 0x134   :  { %v891_v54 = vadd.f32 %v9275_v27, %v890_v51  ;;  %1133 = vmatprep.mubr.f32.mxu0 %v173_v48  ;;  %v7118_v48 = vld [vmem:[%s14525_s0 + $0x1a] sm:$0xff]  ;;  %v242_v51 = vld [vmem:[%s14525_s0 + $0x322] sm:$0xff] }
 0x135   :  { %v892_v56 = vpop.f32.mrf.mxu0  ;;  %v1275_v57 = vpop.f32.mrf.mxu1  ;;  %1514 = vmatmul.mubr.f32.gmra.mxu1 %v236_v50 }
 0x136   :  { %v9398_v58 = vadd.f32 %v1275_v57, %v891_v54  ;;  %1518 = vmatprep.mubr.f32.mxu1 %v7048_v53  ;;  %v7246_v54 = vld [vmem:[%s14525_s0 + $0x31] sm:$0xff]  ;;  %v7054_v57 = vld [vmem:[%s14525_s0 + $0x19] sm:$0xff] }
 0x137   :  { %v895_v60 = vpop.f32.mrf.mxu0  ;;  %1134 = vmatmul.mubr.f32.gmra.mxu0 %v7046_v32  ;;  %v1277_v61 = vpop.f32.mrf.mxu1 }
 0x138   :  { %v896_v1 = vadd.f32 %v9275_v27, %v895_v60  ;;  %1138 = vmatprep.mubr.f32.mxu0 %v174_v37  ;;  %v7119_v60 = vld [vmem:[%s14525_s0 + $0x22] sm:$0xff] }
 0x139   :  { %v897_v2 = vpop.f32.mrf.mxu0  ;;  %v1280_v3 = vpop.f32.mrf.mxu1  ;;  %1519 = vmatmul.mubr.f32.gmra.mxu1 %v237_v59 }
 0x13a   :  { %v9410_v5 = vadd.f32 %v1280_v3, %v896_v1  ;;  %1523 = vmatprep.mubr.f32.mxu1 %v7049_v62  ;;  %v771_v1 = vld [vmem:[%s14527_s2 + $0x470] sm:$0xff] }
 0x13b   :  { %v900_v7 = vpop.f32.mrf.mxu0  ;;  %1139 = vmatmul.mubr.f32.gmra.mxu0 %v7047_v43  ;;  %v1282_v8 = vpop.f32.mrf.mxu1  ;;  %v7053_v43 = vld [vmem:[%s14525_s0 + $0x338] sm:$0xff] }
 0x13c   :  { %v901_v11 = vadd.f32 %v9275_v27, %v900_v7  ;;  %1143 = vmatprep.mubr.f32.mxu0 %v175_v4  ;;  %v7247_v4 = vld [vmem:[%s14525_s0 + $0x39] sm:$0xff]  ;;  %v7055_v7 = vld [vmem:[%s14525_s0 + $0x21] sm:$0xff] }
 0x13d   :  { %v902_v12 = vpop.f32.mrf.mxu0  ;;  %v1285_v13 = vpop.f32.mrf.mxu1  ;;  %1524 = vmatmul.mubr.f32.gmra.mxu1 %v238_v6  ;;  %v770_v8 = vld [vmem:[%s14527_s2 + $0x468] sm:$0xff] }
 0x13e   :  { %v9422_v15 = vadd.f32 %v1285_v13, %v901_v11  ;;  %1528 = vmatprep.mubr.f32.mxu1 %v7050_v10  ;;  %v7120_v12 = vld [vmem:[%s14525_s0 + $0x32] sm:$0xff] }
 0x13f   :  { %v905_v17 = vpop.f32.mrf.mxu0  ;;  %1144 = vmatmul.mubr.f32.gmra.mxu0 %v7048_v53  ;;  %v1287_v19 = vpop.f32.mrf.mxu1 }
 0x140   :  { %v906_v21 = vadd.f32 %v9275_v27, %v905_v17  ;;  %1148 = vmatprep.mubr.f32.mxu0 %v176_v14  ;;  %v769_v14 = vld [vmem:[%s14527_s2 + $0x460] sm:$0xff]  ;;  %v7248_v19 = vld [vmem:[%s14525_s0 + $0x49] sm:$0xff] }
 0x141   :  { %v907_v22 = vpop.f32.mrf.mxu0  ;;  %v1290_v23 = vpop.f32.mrf.mxu1  ;;  %1529 = vmatmul.mubr.f32.gmra.mxu1 %v239_v16 }
 0x142   :  { %v9434_v25 = vadd.f32 %v1290_v23, %v906_v21  ;;  %1533 = vmatprep.mubr.f32.mxu1 %v7051_v20  ;;  %v768_v21 = vld [vmem:[%s14527_s2 + $0x458] sm:$0xff] }
 0x143   :  { %v910_v29 = vpop.f32.mrf.mxu0  ;;  %1149 = vmatmul.mubr.f32.gmra.mxu0 %v7049_v62  ;;  %v1292_v30 = vpop.f32.mrf.mxu1  ;;  %v7182_v62 = vld [vmem:[%s14525_s0 + $0x30] sm:$0xff] }
 0x144   :  { %v911_v32 = vadd.f32 %v9275_v27, %v910_v29  ;;  %1153 = vmatprep.mubr.f32.mxu0 %v177_v24  ;;  %v7121_v24 = vld [vmem:[%s14525_s0 + $0x3a] sm:$0xff]  ;;  %v7184_v29 = vld [vmem:[%s14525_s0 + $0x48] sm:$0xff]  ;;  %v767_v30 = vld [vmem:[%s14527_s2 + $0x450] sm:$0xff] }
 0x145   :  { %v912_v33 = vpop.f32.mrf.mxu0  ;;  %v1295_v34 = vpop.f32.mrf.mxu1  ;;  %1534 = vmatmul.mubr.f32.gmra.mxu1 %v240_v26 }
 0x146   :  { %v9446_v36 = vadd.f32 %v1295_v34, %v911_v32  ;;  %1538 = vmatprep.mubr.f32.mxu1 %v7052_v31  ;;  %v7249_v33 = vld [vmem:[%s14525_s0 + $0x51] sm:$0xff] }
 0x147   :  { %v915_v40 = vpop.f32.mrf.mxu0  ;;  %1154 = vmatmul.mubr.f32.gmra.mxu0 %v7050_v10  ;;  %v1297_v42 = vpop.f32.mrf.mxu1 }
 0x148   :  { %v916_v44 = vadd.f32 %v9275_v27, %v915_v40  ;;  %1158 = vmatprep.mubr.f32.mxu0 %v178_v35  ;;  %v766_v35 = vld [vmem:[%s14527_s2 + $0x448] sm:$0xff] }
 0x149   :  { %v917_v45 = vpop.f32.mrf.mxu0  ;;  %v1300_v47 = vpop.f32.mrf.mxu1  ;;  %1539 = vmatmul.mubr.f32.gmra.mxu1 %v241_v39  ;;  %v7122_v42 = vld [vmem:[%s14525_s0 + $0x4a] sm:$0xff] }
 0x14a   :  { %v9458_v50 = vadd.f32 %v1300_v47, %v916_v44  ;;  %1543 = vmatprep.mubr.f32.mxu1 %v7053_v43  ;;  %v7185_v44 = vld [vmem:[%s14525_s0 + $0x50] sm:$0xff]  ;;  %v765_v45 = vld [vmem:[%s14527_s2 + $0x440] sm:$0xff] }
 0x14b   :  { %v920_v52 = vpop.f32.mrf.mxu0  ;;  %1159 = vmatmul.mubr.f32.gmra.mxu0 %v7051_v20  ;;  %v1302_v53 = vpop.f32.mrf.mxu1 }
 0x14c   :  { %v921_v56 = vadd.f32 %v9275_v27, %v920_v52  ;;  %1613 = vmatprep.mubr.f32.mxu0 %v7118_v48  ;;  %v764_v53 = vld [vmem:[%s14527_s2 + $0x438] sm:$0xff] }
 0x14d   :  { %v922_v37 = vpop.f32.mrf.mxu0  ;;  %v1305_v59 = vpop.f32.mrf.mxu1  ;;  %1544 = vmatmul.mubr.f32.gmra.mxu1 %v242_v51  ;;  %v7250_v51 = vld [vmem:[%s14525_s0 + $0x61] sm:$0xff] }
 0x14e   :  { %v9473_v61 = vadd.f32 %v1305_v59, %v921_v56  ;;  %1998 = vmatprep.mubr.f32.mxu1 %v7246_v54  ;;  %v7186_v59 = vld [vmem:[%s14525_s0 + $0x60] sm:$0xff] }
 0x14f   :  { %v925_v2 = vpop.f32.mrf.mxu0  ;;  %v1307_v3 = vpop.f32.mrf.mxu1  ;;  %1614 = vmatmul.mubr.f32.vlgmr.msra.gmra.mxu0 %v7054_v57  ;;  %v7123_v57 = vld [vmem:[%s14525_s0 + $0x52] sm:$0xff] }
 0x150   :  { %v926_v6 = vadd.f32 %v9275_v27, %v925_v2  ;;  %7671 = vmatpush3.msra.mxu0 %v9117_v41  ;;  %1618 = vmatprep.mubr.f32.mxu0 %v7119_v60  ;;  %v7183_v41 = vld [vmem:[%s14525_s0 + $0x38] sm:$0xff]  ;;  %v763_v3 = vld [vmem:[%s14527_s2 + $0x430] sm:$0xff] }
 0x151   :  { %v927_v10 = vpop.f32.mrf.mxu0  ;;  %v1310_v11 = vpop.f32.mrf.mxu1  ;;  %1999 = vmatmul.mubr.f32.vlgmr.msra.gmra.mxu1 %v7182_v62  ;;  %7672 = vmatprep.subr.mxu0 %v771_v1 }
 0x152   :  { %v9495_v13 = vadd.f32 %v1310_v11, %v926_v6  ;;  %2003 = vmatprep.mubr.f32.mxu1 %v7247_v4  ;;  %7673 = vmatpush3.msra.mxu0 %v771_v1  ;;  %v7251_v1 = vld [vmem:[%s14525_s0 + $0x69] sm:$0xff] }
 0x153   :  { %v930_v16 = vpop.f32.mrf.mxu0  ;;  %v1312_v17 = vpop.f32.mrf.mxu1  ;;  %1619 = vmatmul.mubr.f32.gmra.mxu0 %v7055_v7  ;;  %7674 = vmatprep.subr.mxu0 %v770_v8  ;;  %v7124_v7 = vld [vmem:[%s14525_s0 + $0x62] sm:$0xff] }
 0x154   :  { %v931_v20 = vadd.f32 %v9275_v27, %v930_v16  ;;  %1623 = vmatprep.mubr.f32.mxu0 %v7120_v12  ;;  %7675 = vmatpush3.msra.mxu0 %v770_v8  ;;  %v7187_v10 = vld [vmem:[%s14525_s0 + $0x68] sm:$0xff] }
 0x155   :  { %v932_v22 = vpop.f32.mrf.mxu0  ;;  %v1315_v23 = vpop.f32.mrf.mxu1  ;;  %2004 = vmatmul.mubr.f32.gmra.mxu1 %v7183_v41  ;;  %7676 = vmatprep.subr.mxu0 %v769_v14  ;;  %v7252_v41 = vld [vmem:[%s14525_s0 + $0x79] sm:$0xff] }
 0x156   :  { %v9513_v26 = vadd.f32 %v1315_v23, %v931_v20  ;;  %2008 = vmatprep.mubr.f32.mxu1 %v7248_v19  ;;  %7677 = vmatpush3.msra.mxu0 %v769_v14 }
 0x157   :  { %v935_v31 = vpop.f32.mrf.mxu0  ;;  %v1317_v32 = vpop.f32.mrf.mxu1  ;;  %1624 = vmatmul.mubr.f32.gmra.mxu0 %v7246_v54  ;;  %7678 = vmatprep.subr.mxu0 %v768_v21 }
 0x158   :  { %v936_v34 = vadd.f32 %v9275_v27, %v935_v31  ;;  %1628 = vmatprep.mubr.f32.mxu0 %v7121_v24  ;;  %7679 = vmatpush3.msra.mxu0 %v768_v21  ;;  %v7188_v21 = vld [vmem:[%s14525_s0 + $0x78] sm:$0xff]  ;;  %v7253_v24 = vld [vmem:[%s14525_s0 + $0x81] sm:$0xff] }
 0x159   :  { %v937_v39 = vpop.f32.mrf.mxu0  ;;  %v1320_v40 = vpop.f32.mrf.mxu1  ;;  %2009 = vmatmul.mubr.f32.gmra.mxu1 %v7184_v29  ;;  %7680 = vmatprep.subr.mxu0 %v767_v30  ;;  %v7126_v32 = vld [vmem:[%s14525_s0 + $0x7a] sm:$0xff] }
 0x15a   :  { %v9531_v43 = vadd.f32 %v1320_v40, %v936_v34  ;;  %2013 = vmatprep.mubr.f32.mxu1 %v7249_v33  ;;  %7681 = vmatpush3.msra.mxu0 %v767_v30  ;;  %v7189_v34 = vld [vmem:[%s14525_s0 + $0x80] sm:$0xff]  ;;  %v7254_v40 = vld [vmem:[%s14525_s0 + $0x91] sm:$0xff] }
 0x15b   :  { %v940_v47 = vpop.f32.mrf.mxu0  ;;  %v1322_v48 = vpop.f32.mrf.mxu1  ;;  %1629 = vmatmul.mubr.f32.gmra.mxu0 %v7247_v4  ;;  %7682 = vmatprep.subr.mxu0 %v766_v35 }
 0x15c   :  { %v941_v52 = vadd.f32 %v9275_v27, %v940_v47  ;;  %1633 = vmatprep.mubr.f32.mxu0 %v7122_v42  ;;  %7683 = vmatpush3.msra.mxu0 %v766_v35  ;;  %v7127_v47 = vld [vmem:[%s14525_s0 + $0x82] sm:$0xff] }
 0x15d   :  { %v942_v54 = vpop.f32.mrf.mxu0  ;;  %v1325_v56 = vpop.f32.mrf.mxu1  ;;  %2014 = vmatmul.mubr.f32.gmra.mxu1 %v7185_v44  ;;  %7684 = vmatprep.subr.mxu0 %v765_v45 }
 0x15e   :  { %v9549_v37 = vadd.f32 %v1325_v56, %v941_v52  ;;  %2018 = vmatprep.mubr.f32.mxu1 %v7250_v51  ;;  %7685 = vmatpush3.msra.mxu0 %v765_v45  ;;  %v7255_v54 = vld [vmem:[%s14525_s0 + $0x99] sm:$0xff] }
 0x15f   :  { %v945_v60 = vpop.f32.mrf.mxu0  ;;  %v1327_v62 = vpop.f32.mrf.mxu1  ;;  %1634 = vmatmul.mubr.f32.gmra.mxu0 %v7248_v19  ;;  %7686 = vmatprep.subr.mxu0 %v764_v53  ;;  %v7125_v19 = vld [vmem:[%s14525_s0 + $0x6a] sm:$0xff] }
 0x160   :  { %v946_v2 = vadd.f32 %v9275_v27, %v945_v60  ;;  %1638 = vmatprep.mubr.f32.mxu0 %v7123_v57  ;;  %7687 = vmatpush3.msra.mxu0 %v764_v53  ;;  %v762_v57 = vld [vmem:[%s14527_s2 + $0x428] sm:$0xff]  ;;  %v7128_v62 = vld [vmem:[%s14525_s0 + $0x92] sm:$0xff] }
 0x161   :  { %v947_v4 = vpop.f32.mrf.mxu0  ;;  %v1330_v6 = vpop.f32.mrf.mxu1  ;;  %2019 = vmatmul.mubr.f32.gmra.mxu1 %v7186_v59  ;;  %7688 = vmatprep.subr.mxu0 %v763_v3 }
 0x162   :  { %v9564_v8 = vadd.f32 %v1330_v6, %v946_v2  ;;  %2023 = vmatprep.mubr.f32.mxu1 %v7251_v1  ;;  %7689 = vmatpush3.msra.mxu0 %v763_v3  ;;  %v7191_v2 = vld [vmem:[%s14525_s0 + $0x98] sm:$0xff]  ;;  %v7256_v6 = vld [vmem:[%s14525_s0 + $0xa9] sm:$0xff] }
 0x163   :  { %v950_v11 = vpop.f32.mrf.mxu0  ;;  %v1332_v12 = vpop.f32.mrf.mxu1  ;;  %1639 = vmatmul.mubr.f32.gmra.mxu0 %v7249_v33  ;;  %7690 = vmatprep.subr.mxu0 %v762_v57 }
 0x164   :  { %v951_v14 = vadd.f32 %v9275_v27, %v950_v11  ;;  %1643 = vmatprep.mubr.f32.mxu0 %v7124_v7  ;;  %7691 = vmatpush3.msra.mxu0 %v762_v57  ;;  %v7129_v12 = vld [vmem:[%s14525_s0 + $0x9a] sm:$0xff] }
 0x165   :  { %v952_v16 = vpop.f32.mrf.mxu0  ;;  %v1335_v17 = vpop.f32.mrf.mxu1  ;;  %2024 = vmatmul.mubr.f32.gmra.mxu1 %v7187_v10 }
 0x166   :  { %v9576_v20 = vadd.f32 %v1335_v17, %v951_v14  ;;  %2028 = vmatprep.mubr.f32.mxu1 %v7252_v41  ;;  %v7192_v14 = vld [vmem:[%s14525_s0 + $0xa8] sm:$0xff] }
 0x167   :  { %v955_v22 = vpop.f32.mrf.mxu0  ;;  %v1337_v23 = vpop.f32.mrf.mxu1  ;;  %1644 = vmatmul.mubr.f32.gmra.mxu0 %v7250_v51  ;;  %v7190_v51 = vld [vmem:[%s14525_s0 + $0x90] sm:$0xff] }
 0x168   :  { %v956_v29 = vadd.f32 %v9275_v27, %v955_v22  ;;  %1648 = vmatprep.mubr.f32.mxu0 %v7125_v19  ;;  %v7257_v19 = vld [vmem:[%s14525_s0 + $0xb1] sm:$0xff] }
 0x169   :  { %v957_v30 = vpop.f32.mrf.mxu0  ;;  %v1340_v31 = vpop.f32.mrf.mxu1  ;;  %2029 = vmatmul.mubr.f32.gmra.mxu1 %v7188_v21 }
 0x16a   :  { %v9588_v33 = vadd.f32 %v1340_v31, %v956_v29  ;;  %2033 = vmatprep.mubr.f32.mxu1 %v7253_v24  ;;  %v7193_v30 = vld [vmem:[%s14525_s0 + $0xb0] sm:$0xff] }
 0x16b   :  { %v960_v35 = vpop.f32.mrf.mxu0  ;;  %v1342_v39 = vpop.f32.mrf.mxu1  ;;  %1649 = vmatmul.mubr.f32.gmra.mxu0 %v7251_v1 }
 0x16c   :  { %v961_v42 = vadd.f32 %v9275_v27, %v960_v35  ;;  %1653 = vmatprep.mubr.f32.mxu0 %v7126_v32 }
 0x16d   :  { %v962_v44 = vpop.f32.mrf.mxu0  ;;  %v1345_v45 = vpop.f32.mrf.mxu1  ;;  %2034 = vmatmul.mubr.f32.gmra.mxu1 %v7189_v34  ;;  %v7258_v34 = vld [vmem:[%s14525_s0 + $0xc1] sm:$0xff] }
 0x16e   :  { %v9600_v48 = vadd.f32 %v1345_v45, %v961_v42  ;;  %2038 = vmatprep.mubr.f32.mxu1 %v7254_v40  ;;  %v7131_v42 = vld [vmem:[%s14525_s0 + $0xb2] sm:$0xff]  ;;  %v7194_v45 = vld [vmem:[%s14525_s0 + $0xc0] sm:$0xff] }
 0x16f   :  { %v965_v52 = vpop.f32.mrf.mxu0  ;;  %v1347_v53 = vpop.f32.mrf.mxu1  ;;  %1654 = vmatmul.mubr.f32.gmra.mxu0 %v7252_v41 }
 0x170   :  { %v966_v56 = vadd.f32 %v9275_v27, %v965_v52  ;;  %1658 = vmatprep.mubr.f32.mxu0 %v7127_v47  ;;  %v7259_v52 = vld [vmem:[%s14525_s0 + $0xc9] sm:$0xff] }
 0x171   :  { %v967_v59 = vpop.f32.mrf.mxu0  ;;  %v1350_v60 = vpop.f32.mrf.mxu1  ;;  %2039 = vmatmul.mubr.f32.gmra.mxu1 %v7190_v51 }
 0x172   :  { %v9615_v1 = vadd.f32 %v1350_v60, %v966_v56  ;;  %2043 = vmatprep.mubr.f32.mxu1 %v7255_v54  ;;  %v7132_v59 = vld [vmem:[%s14525_s0 + $0xc2] sm:$0xff] }
 0x173   :  { %v970_v3 = vpop.f32.mrf.mxu0  ;;  %v1352_v4 = vpop.f32.mrf.mxu1  ;;  %1659 = vmatmul.mubr.f32.gmra.mxu0 %v7253_v24  ;;  %v7130_v24 = vld [vmem:[%s14525_s0 + $0xaa] sm:$0xff] }
 0x174   :  { %v971_v7 = vadd.f32 %v9275_v27, %v970_v3  ;;  %1663 = vmatprep.mubr.f32.mxu0 %v7128_v62  ;;  %v7195_v62 = vld [vmem:[%s14525_s0 + $0xc8] sm:$0xff]  ;;  %v7260_v4 = vld [vmem:[%s14525_s0 + $0xd9] sm:$0xff] }
 0x175   :  { %v972_v10 = vpop.f32.mrf.mxu0  ;;  %v1355_v11 = vpop.f32.mrf.mxu1  ;;  %2044 = vmatmul.mubr.f32.gmra.mxu1 %v7191_v2 }
 0x176   :  { %v9627_v41 = vadd.f32 %v1355_v11, %v971_v7  ;;  %2048 = vmatprep.mubr.f32.mxu1 %v7256_v6  ;;  %v7133_v11 = vld [vmem:[%s14525_s0 + $0xca] sm:$0xff] }
 0x177   :  { %v975_v16 = vpop.f32.mrf.mxu0  ;;  %v1357_v17 = vpop.f32.mrf.mxu1  ;;  %1664 = vmatmul.mubr.f32.gmra.mxu0 %v7254_v40 }
 0x178   :  { %v976_v21 = vadd.f32 %v9275_v27, %v975_v16  ;;  %1668 = vmatprep.mubr.f32.mxu0 %v7129_v12 }
 0x179   :  { %v977_v22 = vpop.f32.mrf.mxu0  ;;  %v1360_v23 = vpop.f32.mrf.mxu1  ;;  %2049 = vmatmul.mubr.f32.gmra.mxu1 %v7192_v14  ;;  %v7196_v14 = vld [vmem:[%s14525_s0 + $0xd8] sm:$0xff] }
 0x17a   :  { %v9639_v29 = vadd.f32 %v1360_v23, %v976_v21  ;;  %2053 = vmatprep.mubr.f32.mxu1 %v7257_v19 }
 0x17b   :  { %v980_v31 = vpop.f32.mrf.mxu0  ;;  %v1362_v32 = vpop.f32.mrf.mxu1  ;;  %1669 = vmatmul.mubr.f32.gmra.mxu0 %v7255_v54  ;;  %v761_v54 = vld [vmem:[%s14527_s2 + $0x420] sm:$0xff] }
 0x17c   :  { %v981_v35 = vadd.f32 %v9275_v27, %v980_v31  ;;  %1673 = vmatprep.mubr.f32.mxu0 %v7130_v24  ;;  %7692 = vmatprep.subr.mxu0 %v761_v54  ;;  %v7134_v24 = vld [vmem:[%s14525_s0 + $0xda] sm:$0xff] }
 0x17d   :  { %v982_v39 = vpop.f32.mrf.mxu0  ;;  %v1365_v40 = vpop.f32.mrf.mxu1  ;;  %2054 = vmatmul.mubr.f32.gmra.mxu1 %v7193_v30  ;;  %7693 = vmatpush3.msra.mxu0 %v761_v54  ;;  %v7197_v31 = vld [vmem:[%s14525_s0 + $0xe0] sm:$0xff] }
 0x17e   :  { %v9651_v44 = vadd.f32 %v1365_v40, %v981_v35  ;;  %2058 = vmatprep.mubr.f32.mxu1 %v7258_v34  ;;  %v7262_v35 = vld [vmem:[%s14525_s0 + $0xf1] sm:$0xff]  ;;  %v7263_v54 = vld [vmem:[%s14525_s0 + $0xf9] sm:$0xff] }
 0x17f   :  { %v985_v47 = vpop.f32.mrf.mxu0  ;;  %v1367_v51 = vpop.f32.mrf.mxu1  ;;  %1674 = vmatmul.mubr.f32.gmra.mxu0 %v7256_v6 }
 0x180   :  { %v986_v53 = vadd.f32 %v9275_v27, %v985_v47  ;;  %1678 = vmatprep.mubr.f32.mxu0 %v7131_v42  ;;  %v7198_v51 = vld [vmem:[%s14525_s0 + $0xf0] sm:$0xff] }
 0x181   :  { %v987_v56 = vpop.f32.mrf.mxu0  ;;  %v1370_v57 = vpop.f32.mrf.mxu1  ;;  %2059 = vmatmul.mubr.f32.gmra.mxu1 %v7194_v45  ;;  %v7135_v45 = vld [vmem:[%s14525_s0 + $0xe2] sm:$0xff] }
 0x182   :  { %v9666_v60 = vadd.f32 %v1370_v57, %v986_v53  ;;  %2063 = vmatprep.mubr.f32.mxu1 %v7259_v52  ;;  %v760_v57 = vld [vmem:[%s14527_s2 + $0x418] sm:$0xff] }
 0x183   :  { %v990_v2 = vpop.f32.mrf.mxu0  ;;  %v1372_v3 = vpop.f32.mrf.mxu1  ;;  %1679 = vmatmul.mubr.f32.gmra.mxu0 %v7257_v19  ;;  %v7261_v19 = vld [vmem:[%s14525_s0 + $0xe1] sm:$0xff]  ;;  %7694 = vmatprep.subr.mxu0 %v760_v57 }
 0x184   :  { %v991_v6 = vadd.f32 %v9275_v27, %v990_v2  ;;  %1683 = vmatprep.mubr.f32.mxu0 %v7132_v59  ;;  %v7136_v2 = vld [vmem:[%s14525_s0 + $0xf2] sm:$0xff]  ;;  %7695 = vmatpush3.msra.mxu0 %v760_v57 }
 0x185   :  { %v992_v7 = vpop.f32.mrf.mxu0  ;;  %v1375_v10 = vpop.f32.mrf.mxu1  ;;  %2064 = vmatmul.mubr.f32.gmra.mxu1 %v7195_v62  ;;  %v7139_v57 = vld [vmem:[%s14525_s0 + $0x112] sm:$0xff] }
 0x186   :  { %v9678_v12 = vadd.f32 %v1375_v10, %v991_v6  ;;  %2068 = vmatprep.mubr.f32.mxu1 %v7260_v4  ;;  %v7264_v10 = vld [vmem:[%s14525_s0 + $0x109] sm:$0xff] }
 0x187   :  { %v995_v16 = vpop.f32.mrf.mxu0  ;;  %v1377_v17 = vpop.f32.mrf.mxu1  ;;  %1684 = vmatmul.mubr.f32.gmra.mxu0 %v7258_v34 }
 0x188   :  { %v996_v21 = vadd.f32 %v9275_v27, %v995_v16  ;;  %1688 = vmatprep.mubr.f32.mxu0 %v7133_v11  ;;  %v7137_v17 = vld [vmem:[%s14525_s0 + $0xfa] sm:$0xff] }
 0x189   :  { %v997_v22 = vpop.f32.mrf.mxu0  ;;  %v1380_v23 = vpop.f32.mrf.mxu1  ;;  %2069 = vmatmul.mubr.f32.gmra.mxu1 %v7196_v14 }
 0x18a   :  { %v9690_v30 = vadd.f32 %v1380_v23, %v996_v21  ;;  %2073 = vmatprep.mubr.f32.mxu1 %v7261_v19 }
 0x18b   :  { %v1000_v32 = vpop.f32.mrf.mxu0  ;;  %v1382_v34 = vpop.f32.mrf.mxu1  ;;  %1689 = vmatmul.mubr.f32.gmra.mxu0 %v7259_v52 }
 0x18c   :  { %v1001_v39 = vadd.f32 %v9275_v27, %v1000_v32  ;;  %1693 = vmatprep.mubr.f32.mxu0 %v7134_v24  ;;  %v7265_v24 = vld [vmem:[%s14525_s0 + $0x111] sm:$0xff] }
 0x18d   :  { %v1002_v40 = vpop.f32.mrf.mxu0  ;;  %v1385_v42 = vpop.f32.mrf.mxu1  ;;  %2074 = vmatmul.mubr.f32.gmra.mxu1 %v7197_v31 }
 0x18e   :  { %v9702_v47 = vadd.f32 %v1385_v42, %v1001_v39  ;;  %2078 = vmatprep.mubr.f32.mxu1 %v7262_v35  ;;  %v7138_v39 = vld [vmem:[%s14525_s0 + $0x10a] sm:$0xff] }
 0x18f   :  { %v1005_v52 = vpop.f32.mrf.mxu0  ;;  %v1387_v53 = vpop.f32.mrf.mxu1  ;;  %1694 = vmatmul.mubr.f32.gmra.mxu0 %v7260_v4  ;;  %v7199_v4 = vld [vmem:[%s14525_s0 + $0xf8] sm:$0xff] }
 0x190   :  { %v1006_v56 = vadd.f32 %v9275_v27, %v1005_v52  ;;  %1698 = vmatprep.mubr.f32.mxu0 %v7135_v45 }
 0x191   :  { %v1007_v59 = vpop.f32.mrf.mxu0  ;;  %v1390_v62 = vpop.f32.mrf.mxu1  ;;  %2079 = vmatmul.mubr.f32.gmra.mxu1 %v7198_v51  ;;  %v7266_v51 = vld [vmem:[%s14525_s0 + $0x121] sm:$0xff] }
 0x192   :  { %v9717_v3 = vadd.f32 %v1390_v62, %v1006_v56  ;;  %2083 = vmatprep.mubr.f32.mxu1 %v7263_v54 }
 0x193   :  { %v1010_v6 = vpop.f32.mrf.mxu0  ;;  %v1392_v7 = vpop.f32.mrf.mxu1  ;;  %1699 = vmatmul.mubr.f32.gmra.mxu0 %v7261_v19  ;;  %v7200_v19 = vld [vmem:[%s14525_s0 + $0x108] sm:$0xff] }
 0x194   :  { %v1011_v11 = vadd.f32 %v9275_v27, %v1010_v6  ;;  %1703 = vmatprep.mubr.f32.mxu0 %v7136_v2  ;;  %v759_v7 = vld [vmem:[%s14527_s2 + $0x410] sm:$0xff] }
 0x195   :  { %v1012_v14 = vpop.f32.mrf.mxu0  ;;  %v1395_v16 = vpop.f32.mrf.mxu1  ;;  %2084 = vmatmul.mubr.f32.gmra.mxu1 %v7199_v4  ;;  %v9764_v4 = vld [vmem:[%s14528_s3] ss:$0 sm:$0xff]  ;;  %7696 = vmatprep.subr.mxu0 %v759_v7 }
 0x196   :  { %v9729_v21 = vadd.f32 %v1395_v16, %v1011_v11  ;;  %2088 = vmatprep.mubr.f32.mxu1 %v7264_v10  ;;  %7697 = vmatpush3.msra.mxu0 %v759_v7  ;;  %v7270_v7 = vld [vmem:[%s14525_s0 + $0x151] sm:$0xff] }
 0x197   :  { %v1015_v22 = vpop.f32.mrf.mxu0  ;;  %v1397_v23 = vpop.f32.mrf.mxu1  ;;  %1704 = vmatmul.mubr.f32.gmra.mxu0 %v7262_v35  ;;  %v7201_v35 = vld [vmem:[%s14525_s0 + $0x110] sm:$0xff] }
 0x198   :  { %v1016_v31 = vadd.f32 %v9275_v27, %v1015_v22  ;;  %1708 = vmatprep.mubr.f32.mxu0 %v7137_v17  ;;  %v7203_v17 = vld [vmem:[%s14525_s0 + $0x128] sm:$0xff]  ;;  %v7268_v23 = vld [vmem:[%s14525_s0 + $0x139] sm:$0xff] }
 0x199   :  { %v1017_v32 = vpop.f32.mrf.mxu0  ;;  %v1400_v34 = vpop.f32.mrf.mxu1  ;;  %2089 = vmatmul.mubr.f32.gmra.mxu1 %v7200_v19 }
 0x19a   :  { %v9741_v40 = vadd.f32 %v1400_v34, %v1016_v31  ;;  %2093 = vmatprep.mubr.f32.mxu1 %v7265_v24 }
 0x19b   :  { %v1020_v42 = vpop.f32.mrf.mxu0  ;;  %v1402_v45 = vpop.f32.mrf.mxu1  ;;  %1709 = vmatmul.mubr.f32.gmra.mxu0 %v7263_v54  ;;  %v7202_v54 = vld [vmem:[%s14525_s0 + $0x120] sm:$0xff] }
 0x19c   :  { %v1021_v52 = vadd.f32 %v9275_v27, %v1020_v42  ;;  %1713 = vmatprep.mubr.f32.mxu0 %v7138_v39  ;;  %v7267_v27 = vld [vmem:[%s14525_s0 + $0x129] sm:$0xff] }
 0x19d   :  { %v1022_v53 = vpop.f32.mrf.mxu0  ;;  %v1405_v56 = vpop.f32.mrf.mxu1  ;;  %2094 = vmatmul.mubr.f32.gmra.mxu1 %v7201_v35  ;;  %v7141_v39 = vld [vmem:[%s14525_s0 + $0x12a] sm:$0xff] }
 0x19e   :  { %v9753_v59 = vadd.f32 %v1405_v56, %v1021_v52  ;;  %2098 = vmatprep.mubr.f32.mxu1 %v7266_v51  ;;  %v7269_v52 = vld [vmem:[%s14525_s0 + $0x141] sm:$0xff] }
 0x19f   :  { %v1025_v62 = vpop.f32.mrf.mxu0  ;;  %v1407_v2 = vpop.f32.mrf.mxu1  ;;  %1714 = vmatmul.mubr.f32.gmra.mxu0 %v7264_v10  ;;  %v7140_v10 = vld [vmem:[%s14525_s0 + $0x122] sm:$0xff] }
 0x1a0   :  { %v1026_v6 = vadd.f32 %v9764_v4, %v1025_v62  ;;  %1718 = vmatprep.mubr.f32.mxu0 %v7139_v57 }
 0x1a1   :  { %v1027_v11 = vpop.f32.mrf.mxu0  ;;  %v1410_v14 = vpop.f32.mrf.mxu1  ;;  %2099 = vmatmul.mubr.f32.gmra.mxu1 %v7202_v54  ;;  %v7142_v54 = vld [vmem:[%s14525_s0 + $0x13a] sm:$0xff] }
 0x1a2   :  { %v9773_v16 = vadd.f32 %v1410_v14, %v1026_v6  ;;  %2103 = vmatprep.mubr.f32.mxu1 %v7267_v27 }
 0x1a3   :  { %v1030_v19 = vpop.f32.mrf.mxu0  ;;  %v1412_v22 = vpop.f32.mrf.mxu1  ;;  %1719 = vmatmul.mubr.f32.gmra.mxu0 %v7265_v24  ;;  %v7204_v24 = vld [vmem:[%s14525_s0 + $0x138] sm:$0xff] }
 0x1a4   :  { %v1031_v31 = vadd.f32 %v9764_v4, %v1030_v19  ;;  %1723 = vmatprep.mubr.f32.mxu0 %v7140_v10 }
 0x1a5   :  { %v1032_v32 = vpop.f32.mrf.mxu0  ;;  %v1415_v34 = vpop.f32.mrf.mxu1  ;;  %2104 = vmatmul.mubr.f32.gmra.mxu1 %v7203_v17  ;;  %v7143_v17 = vld [vmem:[%s14525_s0 + $0x142] sm:$0xff] }
 0x1a6   :  { %v9785_v35 = vadd.f32 %v1415_v34, %v1031_v31  ;;  %2108 = vmatprep.mubr.f32.mxu1 %v7268_v23  ;;  %v7271_v32 = vld [vmem:[%s14525_s0 + $0x159] sm:$0xff] }
 0x1a7   :  { %v1035_v42 = vpop.f32.mrf.mxu0  ;;  %v1417_v45 = vpop.f32.mrf.mxu1  ;;  %1724 = vmatmul.mubr.f32.gmra.mxu0 %v7266_v51  ;;  %v7205_v51 = vld [vmem:[%s14525_s0 + $0x140] sm:$0xff] }
 0x1a8   :  { %v1036_v53 = vadd.f32 %v9764_v4, %v1035_v42  ;;  %1728 = vmatprep.mubr.f32.mxu0 %v7141_v39  ;;  %v758_v39 = vld [vmem:[%s14527_s2 + $0x408] sm:$0xff]  ;;  %v7144_v45 = vld [vmem:[%s14525_s0 + $0x152] sm:$0xff] }
 0x1a9   :  { %v1037_v56 = vpop.f32.mrf.mxu0  ;;  %v1420_v57 = vpop.f32.mrf.mxu1  ;;  %2109 = vmatmul.mubr.f32.gmra.mxu1 %v7204_v24  ;;  %7698 = vmatprep.subr.mxu0 %v758_v39 }
 0x1aa   :  { %v9797_v62 = vadd.f32 %v1420_v57, %v1036_v53  ;;  %2113 = vmatprep.mubr.f32.mxu1 %v7269_v52  ;;  %v7207_v53 = vld [vmem:[%s14525_s0 + $0x158] sm:$0xff]  ;;  %7699 = vmatpush3.msra.mxu0 %v758_v39  ;;  %v7146_v39 = vld [vmem:[%s14525_s0 + $0x16a] sm:$0xff] }
 0x1ab   :  { %v1040_v2 = vpop.f32.mrf.mxu0  ;;  %v1422_v6 = vpop.f32.mrf.mxu1  ;;  %1729 = vmatmul.mubr.f32.gmra.mxu0 %v7267_v27  ;;  %v7206_v27 = vld [vmem:[%s14525_s0 + $0x150] sm:$0xff] }
 0x1ac   :  { %v1041_v11 = vadd.f32 %v9764_v4, %v1040_v2  ;;  %1733 = vmatprep.mubr.f32.mxu0 %v7142_v54  ;;  %v7272_v54 = vld [vmem:[%s14525_s0 + $0x169] sm:$0xff] }
 0x1ad   :  { %v1042_v14 = vpop.f32.mrf.mxu0  ;;  %v1425_v10 = vpop.f32.mrf.mxu1  ;;  %2114 = vmatmul.mubr.f32.gmra.mxu1 %v7205_v51 }
 0x1ae   :  { %v9809_v19 = vadd.f32 %v1425_v10, %v1041_v11  ;;  %2118 = vmatprep.mubr.f32.mxu1 %v7270_v7  ;;  %v7145_v11 = vld [vmem:[%s14525_s0 + $0x15a] sm:$0xff] }
 0x1af   :  { %v1045_v22 = vpop.f32.mrf.mxu0  ;;  %v1427_v31 = vpop.f32.mrf.mxu1  ;;  %1734 = vmatmul.mubr.f32.gmra.mxu0 %v7268_v23 }
 0x1b0   :  { %v1046_v34 = vadd.f32 %v9764_v4, %v1045_v22  ;;  %1738 = vmatprep.mubr.f32.mxu0 %v7143_v17 }
 0x1b1   :  { %v1047_v24 = vpop.f32.mrf.mxu0  ;;  %v1430_v42 = vpop.f32.mrf.mxu1  ;;  %2119 = vmatmul.mubr.f32.gmra.mxu1 %v7206_v27  ;;  %v7273_v27 = vld [vmem:[%s14525_s0 + $0x171] sm:$0xff] }
 0x1b2   :  { %v9824_v23 = vadd.f32 %v1430_v42, %v1046_v34  ;;  %2123 = vmatprep.mubr.f32.mxu1 %v7271_v32 }
 0x1b3   :  { %v1050_v56 = vpop.f32.mrf.mxu0  ;;  %v1432_v57 = vpop.f32.mrf.mxu1  ;;  %1739 = vmatmul.mubr.f32.gmra.mxu0 %v7269_v52  ;;  %v7208_v52 = vld [vmem:[%s14525_s0 + $0x168] sm:$0xff] }
 0x1b4   :  { %v1051_v51 = vadd.f32 %v9764_v4, %v1050_v56  ;;  %1743 = vmatprep.mubr.f32.mxu0 %v7144_v45 }
 0x1b5   :  { %v1052_v2 = vpop.f32.mrf.mxu0  ;;  %v1435_v6 = vpop.f32.mrf.mxu1  ;;  %2124 = vmatmul.mubr.f32.gmra.mxu1 %v7207_v53  ;;  %v7274_v53 = vld [vmem:[%s14525_s0 + $0x181] sm:$0xff] }
 0x1b6   :  { %v9836_v14 = vadd.f32 %v1435_v6, %v1051_v51  ;;  %2128 = vmatprep.mubr.f32.mxu1 %v7272_v54  ;;  %v7147_v2 = vld [vmem:[%s14525_s0 + $0x172] sm:$0xff] }
 0x1b7   :  { %v1055_v10 = vpop.f32.mrf.mxu0  ;;  %v1437_v17 = vpop.f32.mrf.mxu1  ;;  %1744 = vmatmul.mubr.f32.gmra.mxu0 %v7270_v7  ;;  %v7209_v7 = vld [vmem:[%s14525_s0 + $0x170] sm:$0xff] }
 0x1b8   :  { %v1056_v22 = vadd.f32 %v9764_v4, %v1055_v10  ;;  %1748 = vmatprep.mubr.f32.mxu0 %v7145_v11  ;;  %v7275_v10 = vld [vmem:[%s14525_s0 + $0x189] sm:$0xff] }
 0x1b9   :  { %v1057_v31 = vpop.f32.mrf.mxu0  ;;  %v1440_v34 = vpop.f32.mrf.mxu1  ;;  %2129 = vmatmul.mubr.f32.gmra.mxu1 %v7208_v52 }
 0x1ba   :  { %v9848_v24 = vadd.f32 %v1440_v34, %v1056_v22  ;;  %2133 = vmatprep.mubr.f32.mxu1 %v7273_v27  ;;  %v757_v22 = vld [vmem:[%s14527_s2 + $0x400] sm:$0xff] }
 0x1bb   :  { %v1060_v42 = vpop.f32.mrf.mxu0  ;;  %v1442_v45 = vpop.f32.mrf.mxu1  ;;  %1749 = vmatmul.mubr.f32.gmra.mxu0 %v7271_v32  ;;  %v7210_v32 = vld [vmem:[%s14525_s0 + $0x180] sm:$0xff]  ;;  %7700 = vmatprep.subr.mxu0 %v757_v22 }
 0x1bc   :  { %v1061_v56 = vadd.f32 %v9764_v4, %v1060_v42  ;;  %1753 = vmatprep.mubr.f32.mxu0 %v7146_v39  ;;  %v7148_v39 = vld [vmem:[%s14525_s0 + $0x182] sm:$0xff]  ;;  %7701 = vmatpush3.msra.mxu0 %v757_v22 }
 0x1bd   :  { %v1062_v57 = vpop.f32.mrf.mxu0  ;;  %v1445_v51 = vpop.f32.mrf.mxu1  ;;  %2134 = vmatmul.mubr.f32.gmra.mxu1 %v7209_v7  ;;  %v7211_v7 = vld [vmem:[%s14525_s0 + $0x188] sm:$0xff] }
 0x1be   :  { %v9860_v6 = vadd.f32 %v1445_v51, %v1061_v56  ;;  %2138 = vmatprep.mubr.f32.mxu1 %v7274_v53  ;;  %v7276_v56 = vld [vmem:[%s14525_s0 + $0x199] sm:$0xff]  ;;  %v9883_v57 = vld [vmem:[#allocation2 + $0x8] sm:$0xff] }
 0x1bf   :  { %v1065_v11 = vpop.f32.mrf.mxu0  ;;  %v1447_v52 = vpop.f32.mrf.mxu1  ;;  %1754 = vmatmul.mubr.f32.gmra.mxu0 %v7272_v54  ;;  %4604 = vmatprep.subr.mxu0 %v9883_v57 }
 0x1c0   :  { %v1066_v17 = vadd.f32 %v9764_v4, %v1065_v11  ;;  %1758 = vmatprep.mubr.f32.mxu0 %v7147_v2  ;;  %v7149_v11 = vld [vmem:[%s14525_s0 + $0x18a] sm:$0xff] }
 0x1c1   :  { %v1067_v31 = vpop.f32.mrf.mxu0  ;;  %v1450_v34 = vpop.f32.mrf.mxu1  ;;  %2139 = vmatmul.mubr.f32.gmra.mxu1 %v7210_v32 }
 0x1c2   :  { %v9875_v54 = vadd.f32 %v1450_v34, %v1066_v17  ;;  %2143 = vmatprep.mubr.f32.mxu1 %v7275_v10  ;;  %v7277_v31 = vld [vmem:[%s14525_s0 + $0x1a1] sm:$0xff] }
 0x1c3   :  { %v1070_v42 = vpop.f32.mrf.mxu0  ;;  %v1452_v45 = vpop.f32.mrf.mxu1  ;;  %1759 = vmatmul.mubr.f32.gmra.mxu0 %v7273_v27  ;;  %v7212_v27 = vld [vmem:[%s14525_s0 + $0x198] sm:$0xff] }
 0x1c4   :  { %14656 = vst [vmem:[#allocation9_spill] sm:$0xff] %v9875_v54  ;;  %v1071_v51 = vadd.f32 %v9764_v4, %v1070_v42  ;;  %1763 = vmatprep.mubr.f32.mxu0 %v7148_v39  ;;  %v7150_v42 = vld [vmem:[%s14525_s0 + $0x1ca] sm:$0xff] }
 0x1c5   :  { %v1072_v2 = vpop.f32.mrf.mxu0  ;;  %v1455_v32 = vpop.f32.mrf.mxu1  ;;  %2144 = vmatmul.mubr.f32.gmra.mxu1 %v7211_v7 }
 0x1c6   :  { %v9890_v52 = vadd.f32 %v1455_v32, %v1071_v51  ;;  %2148 = vmatprep.mubr.f32.mxu1 %v7276_v56  ;;  %v7278_v2 = vld [vmem:[%s14525_s0 + $0x1e1] sm:$0xff] }
 0x1c7   :  { %v1075_v17 = vpop.f32.mrf.mxu0  ;;  %v1457_v22 = vpop.f32.mrf.mxu1  ;;  %1764 = vmatmul.mubr.f32.gmra.mxu0 %v7274_v53  ;;  %v7213_v53 = vld [vmem:[%s14525_s0 + $0x1a0] sm:$0xff] }
 0x1c8   :  { %14657 = vst [vmem:[#allocation10_spill] sm:$0xff] %v9890_v52  ;;  %v1076_v34 = vadd.f32 %v9764_v4, %v1075_v17  ;;  %1768 = vmatprep.mubr.f32.mxu0 %v7149_v11  ;;  %v7086_v11 = vld [vmem:[%s14525_s0 + $0x1c9] sm:$0xff]  ;;  %v7151_v22 = vld [vmem:[%s14525_s0 + $0x1d2] sm:$0xff] }
 0x1c9   :  { %v1077_v39 = vpop.f32.mrf.mxu0  ;;  %v1460_v7 = vpop.f32.mrf.mxu1  ;;  %2149 = vmatmul.mubr.f32.gmra.mxu1 %v7212_v27 }
 0x1ca   :  { %v9902_v45 = vadd.f32 %v1460_v7, %v1076_v34  ;;  %2153 = vmatprep.mubr.f32.mxu1 %v7277_v31  ;;  %v7279_v7 = vld [vmem:[%s14525_s0 + $0x1e9] sm:$0xff] }
 0x1cb   :  { %v1080_v56 = vpop.f32.mrf.mxu0  ;;  %v1462_v51 = vpop.f32.mrf.mxu1  ;;  %1769 = vmatmul.mubr.f32.gmra.mxu0 %v7275_v10  ;;  %v7214_v10 = vld [vmem:[%s14525_s0 + $0x1e0] sm:$0xff] }
 0x1cc   :  { %14658 = vst [vmem:[#allocation11_spill] sm:$0xff] %v9902_v45  ;;  %v1081_v32 = vadd.f32 %v9764_v4, %v1080_v56  ;;  %1773 = vmatprep.mubr.f32.mxu0 %v7150_v42 }
 0x1cd   :  { %v1082_v27 = vpop.f32.mrf.mxu0  ;;  %v1465_v17 = vpop.f32.mrf.mxu1  ;;  %2154 = vmatmul.mubr.f32.gmra.mxu1 %v7213_v53  ;;  %v7087_v53 = vld [vmem:[%s14525_s0 + $0x1d1] sm:$0xff] }
 0x1ce   :  { %v9917_v31 = vadd.f32 %v1465_v17, %v1081_v32  ;;  %2158 = vmatprep.mubr.f32.mxu1 %v7278_v2  ;;  %v7152_v32 = vld [vmem:[%s14525_s0 + $0x1e2] sm:$0xff] }
 0x1cf   :  { %v1085_v34 = vpop.f32.mrf.mxu0  ;;  %v1467_v39 = vpop.f32.mrf.mxu1  ;;  %1774 = vmatmul.mubr.f32.gmra.mxu0 %v7086_v11  ;;  %v7215_v11 = vld [vmem:[%s14525_s0 + $0x1e8] sm:$0xff] }
 0x1d0   :  { %14659 = vst [vmem:[#allocation12_spill] sm:$0xff] %v9917_v31  ;;  %v1086_v42 = vadd.f32 %v9764_v4, %v1085_v34  ;;  %1778 = vmatprep.mubr.f32.mxu0 %v7151_v22  ;;  %v7280_v34 = vld [vmem:[%s14525_s0 + $0x1f9] sm:$0xff] }
 0x1d1   :  { %v1087_v56 = vpop.f32.mrf.mxu0  ;;  %v1470_v51 = vpop.f32.mrf.mxu1  ;;  %2159 = vmatmul.mubr.f32.gmra.mxu1 %v7214_v10 }
 0x1d2   :  { %v9932_v27 = vadd.f32 %v1470_v51, %v1086_v42  ;;  %2163 = vmatprep.mubr.f32.mxu1 %v7279_v7  ;;  %v7153_v42 = vld [vmem:[%s14525_s0 + $0x1ea] sm:$0xff] }
 0x1d3   :  { %v1090_v17 = vpop.f32.mrf.mxu0  ;;  %v1472_v22 = vpop.f32.mrf.mxu1  ;;  %1779 = vmatmul.mubr.f32.gmra.mxu0 %v7087_v53  ;;  %v7216_v53 = vld [vmem:[%s14525_s0 + $0x1f8] sm:$0xff] }
 0x1d4   :  { %14660 = vst [vmem:[#allocation13_spill] sm:$0xff] %v9932_v27  ;;  %v1091_v10 = vadd.f32 %v9764_v4, %v1090_v17  ;;  %1783 = vmatprep.mubr.f32.mxu0 %v7152_v32  ;;  %v7281_v32 = vld [vmem:[%s14525_s0 + $0x201] sm:$0xff] }
 0x1d5   :  { %v1092_v39 = vpop.f32.mrf.mxu0  ;;  %v1475_v56 = vpop.f32.mrf.mxu1  ;;  %2164 = vmatmul.mubr.f32.gmra.mxu1 %v7215_v11 }
 0x1d6   :  { %v9944_v51 = vadd.f32 %v1475_v56, %v1091_v10  ;;  %2168 = vmatprep.mubr.f32.mxu1 %v7280_v34  ;;  %v7154_v10 = vld [vmem:[%s14525_s0 + $0x1fa] sm:$0xff] }
 0x1d7   :  { %v1095_v22 = vpop.f32.mrf.mxu0  ;;  %v1477_v27 = vpop.f32.mrf.mxu1  ;;  %1784 = vmatmul.mubr.f32.gmra.mxu0 %v7278_v2  ;;  %v7217_v2 = vld [vmem:[%s14525_s0 + $0x200] sm:$0xff] }
 0x1d8   :  { %14661 = vst [vmem:[#allocation14_spill] sm:$0xff] %v9944_v51  ;;  %v1096_v11 = vadd.f32 %v9764_v4, %v1095_v22  ;;  %1788 = vmatprep.mubr.f32.mxu0 %v7153_v42  ;;  %v7282_v42 = vld [vmem:[%s14525_s0 + $0x211] sm:$0xff] }
 0x1d9   :  { %v1097_v17 = vpop.f32.mrf.mxu0  ;;  %v1480_v39 = vpop.f32.mrf.mxu1  ;;  %2169 = vmatmul.mubr.f32.gmra.mxu1 %v7216_v53 }
 0x1da   :  { %v9956_v56 = vadd.f32 %v1480_v39, %v1096_v11  ;;  %2173 = vmatprep.mubr.f32.mxu1 %v7281_v32  ;;  %v7155_v11 = vld [vmem:[%s14525_s0 + $0x202] sm:$0xff] }
 0x1db   :  { %v1100_v27 = vpop.f32.mrf.mxu0  ;;  %v1482_v51 = vpop.f32.mrf.mxu1  ;;  %1789 = vmatmul.mubr.f32.gmra.mxu0 %v7279_v7  ;;  %v7218_v7 = vld [vmem:[%s14525_s0 + $0x210] sm:$0xff] }
 0x1dc   :  { %14662 = vst [vmem:[#allocation15_spill] sm:$0xff] %v9956_v56  ;;  %v1101_v53 = vadd.f32 %v9764_v4, %v1100_v27  ;;  %1793 = vmatprep.mubr.f32.mxu0 %v7154_v10  ;;  %v7283_v10 = vld [vmem:[%s14525_s0 + $0x219] sm:$0xff] }
 0x1dd   :  { %v1102_v22 = vpop.f32.mrf.mxu0  ;;  %v1485_v17 = vpop.f32.mrf.mxu1  ;;  %2174 = vmatmul.mubr.f32.gmra.mxu1 %v7217_v2 }
 0x1de   :  { %v9968_v39 = vadd.f32 %v1485_v17, %v1101_v53  ;;  %2178 = vmatprep.mubr.f32.mxu1 %v7282_v42  ;;  %v7156_v53 = vld [vmem:[%s14525_s0 + $0x212] sm:$0xff] }
 0x1df   :  { %v1105_v51 = vpop.f32.mrf.mxu0  ;;  %v1487_v56 = vpop.f32.mrf.mxu1  ;;  %1794 = vmatmul.mubr.f32.gmra.mxu0 %v7280_v34  ;;  %v7219_v34 = vld [vmem:[%s14525_s0 + $0x218] sm:$0xff] }
 0x1e0   :  { %14663 = vst [vmem:[#allocation16_spill] sm:$0xff] %v9968_v39  ;;  %v1106_v2 = vadd.f32 %v9764_v4, %v1105_v51  ;;  %1798 = vmatprep.mubr.f32.mxu0 %v7155_v11  ;;  %v7284_v11 = vld [vmem:[%s14525_s0 + $0x229] sm:$0xff] }
 0x1e1   :  { %v1107_v27 = vpop.f32.mrf.mxu0  ;;  %v1490_v22 = vpop.f32.mrf.mxu1  ;;  %2179 = vmatmul.mubr.f32.gmra.mxu1 %v7218_v7 }
 0x1e2   :  { %v9980_v17 = vadd.f32 %v1490_v22, %v1106_v2  ;;  %2183 = vmatprep.mubr.f32.mxu1 %v7283_v10  ;;  %v7157_v2 = vld [vmem:[%s14525_s0 + $0x21a] sm:$0xff] }
 0x1e3   :  { %v1110_v56 = vpop.f32.mrf.mxu0  ;;  %v1492_v39 = vpop.f32.mrf.mxu1  ;;  %1799 = vmatmul.mubr.f32.gmra.mxu0 %v7281_v32  ;;  %v7220_v32 = vld [vmem:[%s14525_s0 + $0x228] sm:$0xff] }
 0x1e4   :  { %14664 = vst [vmem:[#allocation17_spill] sm:$0xff] %v9980_v17  ;;  %v1111_v7 = vadd.f32 %v9764_v4, %v1110_v56  ;;  %1803 = vmatprep.mubr.f32.mxu0 %v7156_v53  ;;  %v7285_v53 = vld [vmem:[%s14525_s0 + $0x231] sm:$0xff] }
 0x1e5   :  { %v1112_v51 = vpop.f32.mrf.mxu0  ;;  %v1495_v27 = vpop.f32.mrf.mxu1  ;;  %2184 = vmatmul.mubr.f32.gmra.mxu1 %v7219_v34 }
 0x1e6   :  { %v9992_v22 = vadd.f32 %v1495_v27, %v1111_v7  ;;  %2188 = vmatprep.mubr.f32.mxu1 %v7284_v11  ;;  %v7158_v7 = vld [vmem:[%s14525_s0 + $0x22a] sm:$0xff] }
 0x1e7   :  { %v1115_v39 = vpop.f32.mrf.mxu0  ;;  %v1497_v17 = vpop.f32.mrf.mxu1  ;;  %1804 = vmatmul.mubr.f32.gmra.mxu0 %v7282_v42  ;;  %v7221_v42 = vld [vmem:[%s14525_s0 + $0x230] sm:$0xff] }
 0x1e8   :  { %14665 = vst [vmem:[#allocation18_spill] sm:$0xff] %v9992_v22  ;;  %v1116_v34 = vadd.f32 %v9764_v4, %v1115_v39  ;;  %1808 = vmatprep.mubr.f32.mxu0 %v7157_v2  ;;  %v7286_v2 = vld [vmem:[%s14525_s0 + $0x241] sm:$0xff] }
 0x1e9   :  { %v1117_v56 = vpop.f32.mrf.mxu0  ;;  %v1500_v51 = vpop.f32.mrf.mxu1  ;;  %2189 = vmatmul.mubr.f32.gmra.mxu1 %v7220_v32 }
 0x1ea   :  { %v10004_v27 = vadd.f32 %v1500_v51, %v1116_v34  ;;  %2193 = vmatprep.mubr.f32.mxu1 %v7285_v53  ;;  %v7159_v34 = vld [vmem:[%s14525_s0 + $0x232] sm:$0xff] }
 0x1eb   :  { %v1120_v17 = vpop.f32.mrf.mxu0  ;;  %v1502_v22 = vpop.f32.mrf.mxu1  ;;  %1809 = vmatmul.mubr.f32.gmra.mxu0 %v7283_v10  ;;  %v7222_v10 = vld [vmem:[%s14525_s0 + $0x240] sm:$0xff] }
 0x1ec   :  { %14666 = vst [vmem:[#allocation19_spill] sm:$0xff] %v10004_v27  ;;  %v1121_v32 = vadd.f32 %v9764_v4, %v1120_v17  ;;  %1813 = vmatprep.mubr.f32.mxu0 %v7158_v7  ;;  %v7287_v7 = vld [vmem:[%s14525_s0 + $0x249] sm:$0xff] }
 0x1ed   :  { %v1122_v39 = vpop.f32.mrf.mxu0  ;;  %v1505_v56 = vpop.f32.mrf.mxu1  ;;  %2194 = vmatmul.mubr.f32.gmra.mxu1 %v7221_v42 }
 0x1ee   :  { %v10016_v51 = vadd.f32 %v1505_v56, %v1121_v32  ;;  %2198 = vmatprep.mubr.f32.mxu1 %v7286_v2  ;;  %v7160_v32 = vld [vmem:[%s14525_s0 + $0x242] sm:$0xff] }
 0x1ef   :  { %v1125_v22 = vpop.f32.mrf.mxu0  ;;  %v1507_v27 = vpop.f32.mrf.mxu1  ;;  %1814 = vmatmul.mubr.f32.gmra.mxu0 %v7284_v11  ;;  %v7223_v11 = vld [vmem:[%s14525_s0 + $0x248] sm:$0xff] }
 0x1f0   :  { %14667 = vst [vmem:[#allocation20_spill] sm:$0xff] %v10016_v51  ;;  %v1126_v42 = vadd.f32 %v9764_v4, %v1125_v22  ;;  %1818 = vmatprep.mubr.f32.mxu0 %v7159_v34  ;;  %v7288_v34 = vld [vmem:[%s14525_s0 + $0x259] sm:$0xff] }
 0x1f1   :  { %v1127_v17 = vpop.f32.mrf.mxu0  ;;  %v1510_v39 = vpop.f32.mrf.mxu1  ;;  %2199 = vmatmul.mubr.f32.gmra.mxu1 %v7222_v10 }
 0x1f2   :  { %v10028_v56 = vadd.f32 %v1510_v39, %v1126_v42  ;;  %2203 = vmatprep.mubr.f32.mxu1 %v7287_v7  ;;  %v7161_v42 = vld [vmem:[%s14525_s0 + $0x24a] sm:$0xff] }
 0x1f3   :  { %v1130_v27 = vpop.f32.mrf.mxu0  ;;  %v1512_v51 = vpop.f32.mrf.mxu1  ;;  %1819 = vmatmul.mubr.f32.gmra.mxu0 %v7285_v53  ;;  %v7224_v53 = vld [vmem:[%s14525_s0 + $0x258] sm:$0xff] }
 0x1f4   :  { %14668 = vst [vmem:[#allocation21_spill] sm:$0xff] %v10028_v56  ;;  %v1131_v10 = vadd.f32 %v9764_v4, %v1130_v27  ;;  %1823 = vmatprep.mubr.f32.mxu0 %v7160_v32  ;;  %v7289_v32 = vld [vmem:[%s14525_s0 + $0x261] sm:$0xff] }
 0x1f5   :  { %v1132_v22 = vpop.f32.mrf.mxu0  ;;  %v1515_v17 = vpop.f32.mrf.mxu1  ;;  %2204 = vmatmul.mubr.f32.gmra.mxu1 %v7223_v11 }
 0x1f6   :  { %v10040_v39 = vadd.f32 %v1515_v17, %v1131_v10  ;;  %2208 = vmatprep.mubr.f32.mxu1 %v7288_v34  ;;  %v10052_v10 = vld [vmem:[%s14525_s0 + $0x25a] sm:$0xff] }
 0x1f7   :  { %v1135_v51 = vpop.f32.mrf.mxu0  ;;  %v1517_v56 = vpop.f32.mrf.mxu1  ;;  %1824 = vmatmul.mubr.f32.gmra.mxu0 %v7286_v2  ;;  %v7225_v2 = vld [vmem:[%s14525_s0 + $0x260] sm:$0xff] }
 0x1f8   :  { %14669 = vst [vmem:[#allocation22_spill] sm:$0xff] %v10040_v39  ;;  %v1136_v11 = vadd.f32 %v9764_v4, %v1135_v51  ;;  %1828 = vmatprep.mubr.f32.mxu0 %v7161_v42  ;;  %v7290_v42 = vld [vmem:[%s14525_s0 + $0x271] sm:$0xff] }
 0x1f9   :  { %v1137_v27 = vpop.f32.mrf.mxu0  ;;  %v1520_v22 = vpop.f32.mrf.mxu1  ;;  %2209 = vmatmul.mubr.f32.gmra.mxu1 %v7224_v53 }
 0x1fa   :  { %v10054_v17 = vadd.f32 %v1520_v22, %v1136_v11  ;;  %2213 = vmatprep.mubr.f32.mxu1 %v7289_v32  ;;  %v10067_v11 = vld [vmem:[%s14525_s0 + $0x262] sm:$0xff] }
 0x1fb   :  { %v1140_v56 = vpop.f32.mrf.mxu0  ;;  %v1522_v39 = vpop.f32.mrf.mxu1  ;;  %1829 = vmatmul.mubr.f32.gmra.mxu0 %v7287_v7  ;;  %v7226_v7 = vld [vmem:[%s14525_s0 + $0x270] sm:$0xff] }
 0x1fc   :  { %14670 = vst [vmem:[#allocation23_spill] sm:$0xff] %v10054_v17  ;;  %v1141_v53 = vadd.f32 %v9764_v4, %v1140_v56  ;;  %1833 = vmatprep.mubr.f32.mxu0 %v10052_v10  ;;  %v7291_v56 = vld [vmem:[%s14525_s0 + $0x279] sm:$0xff] }
 0x1fd   :  { %v1142_v51 = vpop.f32.mrf.mxu0  ;;  %v1525_v27 = vpop.f32.mrf.mxu1  ;;  %2214 = vmatmul.mubr.f32.gmra.mxu1 %v7225_v2 }
 0x1fe   :  { %v10069_v22 = vadd.f32 %v1525_v27, %v1141_v53  ;;  %2218 = vmatprep.mubr.f32.mxu1 %v7290_v42  ;;  %v10082_v53 = vld [vmem:[%s14525_s0 + $0x272] sm:$0xff] }
 0x1ff   :  { %v1145_v39 = vpop.f32.mrf.mxu0  ;;  %v1527_v17 = vpop.f32.mrf.mxu1  ;;  %1834 = vmatmul.mubr.f32.gmra.mxu0 %v7288_v34  ;;  %v7227_v34 = vld [vmem:[%s14525_s0 + $0x278] sm:$0xff] }
 0x200   :  { %14671 = vst [vmem:[#allocation24_spill] sm:$0xff] %v10069_v22  ;;  %v1146_v2 = vadd.f32 %v9764_v4, %v1145_v39  ;;  %1838 = vmatprep.mubr.f32.mxu0 %v10067_v11  ;;  %v7292_v39 = vld [vmem:[%s14525_s0 + $0x289] sm:$0xff] }
 0x201   :  { %v1147_v51 = vpop.f32.mrf.mxu0  ;;  %v1530_v31 = vpop.f32.mrf.mxu1  ;;  %2219 = vmatmul.mubr.f32.gmra.mxu1 %v7226_v7 }
 0x202   :  { %v10084_v27 = vadd.f32 %v1530_v31, %v1146_v2  ;;  %2223 = vmatprep.mubr.f32.mxu1 %v7291_v56  ;;  %v10097_v31 = vld [vmem:[%s14525_s0 + $0x27a] sm:$0xff] }
 0x203   :  { %v1150_v17 = vpop.f32.mrf.mxu0  ;;  %v1532_v22 = vpop.f32.mrf.mxu1  ;;  %1839 = vmatmul.mubr.f32.gmra.mxu0 %v7289_v32  ;;  %v7228_v32 = vld [vmem:[%s14525_s0 + $0x288] sm:$0xff] }
 0x204   :  { %14672 = vst [vmem:[#allocation25_spill] sm:$0xff] %v10084_v27  ;;  %v1151_v7 = vadd.f32 %v9764_v4, %v1150_v17  ;;  %1843 = vmatprep.mubr.f32.mxu0 %v10082_v53  ;;  %v7293_v17 = vld [vmem:[%s14525_s0 + $0x291] sm:$0xff] }
 0x205   :  { %v1152_v51 = vpop.f32.mrf.mxu0  ;;  %v1535_v45 = vpop.f32.mrf.mxu1  ;;  %2224 = vmatmul.mubr.f32.gmra.mxu1 %v7227_v34 }
 0x206   :  { %v10099_v2 = vadd.f32 %v1535_v45, %v1151_v7  ;;  %2228 = vmatprep.mubr.f32.mxu1 %v7292_v39  ;;  %v10112_v45 = vld [vmem:[%s14525_s0 + $0x28a] sm:$0xff] }
 0x207   :  { %v1155_v22 = vpop.f32.mrf.mxu0  ;;  %v1537_v27 = vpop.f32.mrf.mxu1  ;;  %1844 = vmatmul.mubr.f32.gmra.mxu0 %v7290_v42  ;;  %v7229_v42 = vld [vmem:[%s14525_s0 + $0x290] sm:$0xff] }
 0x208   :  { %14673 = vst [vmem:[#allocation26_spill] sm:$0xff] %v10099_v2  ;;  %v1156_v34 = vadd.f32 %v9764_v4, %v1155_v22  ;;  %1848 = vmatprep.mubr.f32.mxu0 %v10097_v31  ;;  %v7294_v22 = vld [vmem:[%s14525_s0 + $0x2a1] sm:$0xff] }
 0x209   :  { %v1157_v51 = vpop.f32.mrf.mxu0  ;;  %v1540_v52 = vpop.f32.mrf.mxu1  ;;  %2229 = vmatmul.mubr.f32.gmra.mxu1 %v7228_v32 }
 0x20a   :  { %v10114_v7 = vadd.f32 %v1540_v52, %v1156_v34  ;;  %2233 = vmatprep.mubr.f32.mxu1 %v7293_v17  ;;  %v10127_v52 = vld [vmem:[%s14525_s0 + $0x292] sm:$0xff] }
 0x20b   :  { %v1160_v27 = vpop.f32.mrf.mxu0  ;;  %v1542_v2 = vpop.f32.mrf.mxu1  ;;  %1849 = vmatmul.mubr.f32.gmra.mxu0 %v7291_v56  ;;  %v7230_v56 = vld [vmem:[%s14525_s0 + $0x2a0] sm:$0xff] }
 0x20c   :  { %14674 = vst [vmem:[#allocation27_spill] sm:$0xff] %v10114_v7  ;;  %v1161_v32 = vadd.f32 %v9764_v4, %v1160_v27  ;;  %1853 = vmatprep.mubr.f32.mxu0 %v10112_v45  ;;  %v7295_v4 = vld [vmem:[%s14525_s0 + $0x2a9] sm:$0xff] }
 0x20d   :  { %v1162_v51 = vpop.f32.mrf.mxu0  ;;  %v1545_v54 = vpop.f32.mrf.mxu1  ;;  %2234 = vmatmul.mubr.f32.gmra.mxu1 %v7229_v42 }
 0x20e   :  { %v10129_v34 = vadd.f32 %v1545_v54, %v1161_v32  ;;  %2238 = vmatprep.mubr.f32.mxu1 %v7294_v22  ;;  %v10142_v54 = vld [vmem:[%s14525_s0 + $0x2a2] sm:$0xff] }
 0x20f   :  { %v1547_v2 = vpop.f32.mrf.mxu1  ;;  %v1615_v7 = vpop.f32.mrf.mxu0  ;;  %1854 = vmatmul.mubr.f32.gmra.mxu0 %v7292_v39  ;;  %v7231_v39 = vld [vmem:[%s14525_s0 + $0x2a8] sm:$0xff] }
 0x210   :  { %14675 = vst [vmem:[#allocation28_spill] sm:$0xff] %v10129_v34  ;;  %v1616_v42 = vadd.f32 %v1615_v7, %v9290_v0  ;;  %1858 = vmatprep.mubr.f32.mxu0 %v10127_v52  ;;  %v7296_v7 = vld [vmem:[%s14525_s0 + $0x2b9] sm:$0xff] }
 0x211   :  { %v1617_v27 = vpop.f32.mrf.mxu0  ;;  %v2000_v51 = vpop.f32.mrf.mxu1  ;;  %2239 = vmatmul.mubr.f32.gmra.mxu1 %v7230_v56 }
 0x212   :  { %v10144_v32 = vadd.f32 %v2000_v51, %v1616_v42  ;;  %2243 = vmatprep.mubr.f32.mxu1 %v7295_v4  ;;  %v10157_v42 = vld [vmem:[%s14525_s0 + $0x2aa] sm:$0xff] }
 0x213   :  { %v1620_v2 = vpop.f32.mrf.mxu0  ;;  %1859 = vmatmul.mubr.f32.gmra.mxu0 %v7293_v17  ;;  %v2002_v0 = vpop.f32.mrf.mxu1  ;;  %v7232_v17 = vld [vmem:[%s14525_s0 + $0x2b8] sm:$0xff] }
 0x214   :  { %14676 = vst [vmem:[#allocation29_spill] sm:$0xff] %v10144_v32  ;;  %v1621_v56 = vadd.f32 %v1620_v2, %v9302_v46  ;;  %1863 = vmatprep.mubr.f32.mxu0 %v10142_v54  ;;  %v7297_v2 = vld [vmem:[%s14525_s0 + $0x2c1] sm:$0xff] }
 0x215   :  { %v1622_v27 = vpop.f32.mrf.mxu0  ;;  %v2005_v34 = vpop.f32.mrf.mxu1  ;;  %2244 = vmatmul.mubr.f32.gmra.mxu1 %v7231_v39 }
 0x216   :  { %v10159_v51 = vadd.f32 %v2005_v34, %v1621_v56  ;;  %2248 = vmatprep.mubr.f32.mxu1 %v7296_v7  ;;  %v10172_v34 = vld [vmem:[%s14525_s0 + $0x2ba] sm:$0xff] }
 0x217   :  { %v1625_v0 = vpop.f32.mrf.mxu0  ;;  %1864 = vmatmul.mubr.f32.gmra.mxu0 %v7294_v22  ;;  %v2007_v46 = vpop.f32.mrf.mxu1  ;;  %v7233_v22 = vld [vmem:[%s14525_s0 + $0x2c0] sm:$0xff] }
 0x218   :  { %14677 = vst [vmem:[#allocation30_spill] sm:$0xff] %v10159_v51  ;;  %v1626_v39 = vadd.f32 %v1625_v0, %v9314_v55  ;;  %1868 = vmatprep.mubr.f32.mxu0 %v10157_v42  ;;  %v7298_v0 = vld [vmem:[%s14525_s0 + $0x2d1] sm:$0xff] }
 0x219   :  { %v1627_v27 = vpop.f32.mrf.mxu0  ;;  %v2010_v32 = vpop.f32.mrf.mxu1  ;;  %2249 = vmatmul.mubr.f32.gmra.mxu1 %v7232_v17 }
 0x21a   :  { %v10174_v56 = vadd.f32 %v2010_v32, %v1626_v39  ;;  %2253 = vmatprep.mubr.f32.mxu1 %v7297_v2  ;;  %v10187_v32 = vld [vmem:[%s14525_s0 + $0x2c2] sm:$0xff] }
 0x21b   :  { %v1630_v46 = vpop.f32.mrf.mxu0  ;;  %1869 = vmatmul.mubr.f32.gmra.mxu0 %v7295_v4  ;;  %v2012_v55 = vpop.f32.mrf.mxu1  ;;  %v7234_v4 = vld [vmem:[%s14525_s0 + $0x2d0] sm:$0xff] }
 0x21c   :  { %14678 = vst [vmem:[#allocation31_spill] sm:$0xff] %v10174_v56  ;;  %v1631_v17 = vadd.f32 %v1630_v46, %v9326_v63  ;;  %1873 = vmatprep.mubr.f32.mxu0 %v10172_v34  ;;  %v7299_v46 = vld [vmem:[%s14525_s0 + $0x2d9] sm:$0xff] }
 0x21d   :  { %v1632_v27 = vpop.f32.mrf.mxu0  ;;  %v2015_v51 = vpop.f32.mrf.mxu1  ;;  %2254 = vmatmul.mubr.f32.gmra.mxu1 %v7233_v22 }
 0x21e   :  { %v10189_v39 = vadd.f32 %v2015_v51, %v1631_v17  ;;  %2258 = vmatprep.mubr.f32.mxu1 %v7298_v0  ;;  %v10202_v51 = vld [vmem:[%s14525_s0 + $0x2d2] sm:$0xff] }
 0x21f   :  { %v1635_v55 = vpop.f32.mrf.mxu0  ;;  %1874 = vmatmul.mubr.f32.gmra.mxu0 %v7296_v7  ;;  %v2017_v63 = vpop.f32.mrf.mxu1  ;;  %v7235_v7 = vld [vmem:[%s14525_s0 + $0x2d8] sm:$0xff] }
 0x220   :  { %14679 = vst [vmem:[#allocation32_spill] sm:$0xff] %v10189_v39  ;;  %v1636_v22 = vadd.f32 %v1635_v55, %v9338_v9  ;;  %1878 = vmatprep.mubr.f32.mxu0 %v10187_v32  ;;  %v2923_v9 = vld [vmem:[%s14526_s1 + $0x78] sm:$0xff] }
 0x221   :  { %v1637_v27 = vpop.f32.mrf.mxu0  ;;  %v2020_v56 = vpop.f32.mrf.mxu1  ;;  %2259 = vmatmul.mubr.f32.gmra.mxu1 %v7234_v4  ;;  %v7300_v4 = vld [vmem:[%s14525_s0 + $0x2e9] sm:$0xff] }
 0x222   :  { %v10204_v17 = vadd.f32 %v2020_v56, %v1636_v22  ;;  %2263 = vmatprep.mubr.f32.mxu1 %v7299_v46  ;;  %7799 = vmatpush3.msra.mxu1 %v2923_v9  ;;  %v7236_v9 = vld [vmem:[%s14525_s0 + $0x2e8] sm:$0xff] }
 0x223   :  { %v1640_v55 = vpop.f32.mrf.mxu0  ;;  %1879 = vmatmul.mubr.f32.gmra.mxu0 %v7297_v2  ;;  %v2022_v63 = vpop.f32.mrf.mxu1  ;;  %7800 = vmatprep.subr.mxu1 %v9883_v57 }
 0x224   :  { %14680 = vst [vmem:[#allocation33_spill] sm:$0xff] %v10204_v17  ;;  %v1641_v56 = vadd.f32 %v1640_v55, %v9350_v18  ;;  %1883 = vmatprep.mubr.f32.mxu0 %v10202_v51  ;;  %v10221_v17 = vld [vmem:[%s14525_s0 + $0x2da] sm:$0xff]  ;;  %v7301_v63 = vld [vmem:[%s14525_s0 + $0x2f1] sm:$0xff] }
 0x225   :  { %v1642_v22 = vpop.f32.mrf.mxu0  ;;  %v2025_v27 = vpop.f32.mrf.mxu1  ;;  %2264 = vmatmul.mubr.f32.gmra.mxu1 %v7235_v7 }
 0x226   :  { %v10223_v2 = vadd.f32 %v2025_v27, %v1641_v56  ;;  %2268 = vmatprep.mubr.f32.mxu1 %v7300_v4  ;;  %v10236_v56 = vld [vmem:[%s14525_s0 + $0x2ea] sm:$0xff] }
 0x227   :  { %v1645_v18 = vpop.f32.mrf.mxu0  ;;  %1884 = vmatmul.mubr.f32.gmra.mxu0 %v7298_v0  ;;  %v2027_v55 = vpop.f32.mrf.mxu1  ;;  %v7237_v0 = vld [vmem:[%s14525_s0 + $0x2f0] sm:$0xff] }
 0x228   :  { %14681 = vst [vmem:[#allocation34_spill] sm:$0xff] %v10223_v2  ;;  %v1646_v7 = vadd.f32 %v1645_v18, %v9362_v28  ;;  %1888 = vmatprep.mubr.f32.mxu0 %v10221_v17  ;;  %v7302_v18 = vld [vmem:[%s14525_s0 + $0x301] sm:$0xff] }
 0x229   :  { %v1647_v22 = vpop.f32.mrf.mxu0  ;;  %v2030_v39 = vpop.f32.mrf.mxu1  ;;  %2269 = vmatmul.mubr.f32.gmra.mxu1 %v7236_v9 }
 0x22a   :  { %v10238_v27 = vadd.f32 %v2030_v39, %v1646_v7  ;;  %2273 = vmatprep.mubr.f32.mxu1 %v7301_v63  ;;  %v10251_v39 = vld [vmem:[%s14525_s0 + $0x2f2] sm:$0xff] }
 0x22b   :  { %v1650_v55 = vpop.f32.mrf.mxu0  ;;  %1889 = vmatmul.mubr.f32.gmra.mxu0 %v7299_v46  ;;  %v2032_v28 = vpop.f32.mrf.mxu1  ;;  %v7238_v46 = vld [vmem:[%s14525_s0 + $0x300] sm:$0xff] }
 0x22c   :  { %14682 = vst [vmem:[#allocation35_spill] sm:$0xff] %v10238_v27  ;;  %v1651_v9 = vadd.f32 %v1650_v55, %v9374_v38  ;;  %1893 = vmatprep.mubr.f32.mxu0 %v10236_v56  ;;  %v7303_v55 = vld [vmem:[%s14525_s0 + $0x309] sm:$0xff] }
 0x22d   :  { %v1652_v22 = vpop.f32.mrf.mxu0  ;;  %v2035_v2 = vpop.f32.mrf.mxu1  ;;  %2274 = vmatmul.mubr.f32.gmra.mxu1 %v7237_v0 }
 0x22e   :  { %v10253_v7 = vadd.f32 %v2035_v2, %v1651_v9  ;;  %2278 = vmatprep.mubr.f32.mxu1 %v7302_v18  ;;  %v10266_v2 = vld [vmem:[%s14525_s0 + $0x302] sm:$0xff] }
 0x22f   :  { %v1655_v28 = vpop.f32.mrf.mxu0  ;;  %1894 = vmatmul.mubr.f32.gmra.mxu0 %v7300_v4  ;;  %v2037_v38 = vpop.f32.mrf.mxu1  ;;  %v7239_v4 = vld [vmem:[%s14525_s0 + $0x308] sm:$0xff] }
 0x230   :  { %14683 = vst [vmem:[#allocation36_spill] sm:$0xff] %v10253_v7  ;;  %v1656_v0 = vadd.f32 %v1655_v28, %v9386_v49  ;;  %1898 = vmatprep.mubr.f32.mxu0 %v10251_v39  ;;  %v2922_v49 = vld [vmem:[%s14526_s1 + $0x70] sm:$0xff] }
 0x231   :  { %v1657_v22 = vpop.f32.mrf.mxu0  ;;  %v2040_v27 = vpop.f32.mrf.mxu1  ;;  %2279 = vmatmul.mubr.f32.gmra.mxu1 %v7238_v46  ;;  %v7304_v46 = vld [vmem:[%s14525_s0 + $0x319] sm:$0xff] }
 0x232   :  { %v10268_v9 = vadd.f32 %v2040_v27, %v1656_v0  ;;  %2283 = vmatprep.mubr.f32.mxu1 %v7303_v55  ;;  %7801 = vmatpush3.msra.mxu1 %v2922_v49  ;;  %v7240_v49 = vld [vmem:[%s14525_s0 + $0x318] sm:$0xff] }
 0x233   :  { %v1660_v28 = vpop.f32.mrf.mxu0  ;;  %1899 = vmatmul.mubr.f32.gmra.mxu0 %v7301_v63  ;;  %v2042_v38 = vpop.f32.mrf.mxu1  ;;  %7802 = vmatprep.subr.mxu1 %v9883_v57 }
 0x234   :  { %14684 = vst [vmem:[#allocation37_spill] sm:$0xff] %v10268_v9  ;;  %v1661_v27 = vadd.f32 %v1660_v28, %v9398_v58  ;;  %1903 = vmatprep.mubr.f32.mxu0 %v10266_v2  ;;  %v10285_v9 = vld [vmem:[%s14525_s0 + $0x30a] sm:$0xff]  ;;  %v7305_v38 = vld [vmem:[%s14525_s0 + $0x321] sm:$0xff] }
 0x235   :  { %v1662_v0 = vpop.f32.mrf.mxu0  ;;  %v2045_v22 = vpop.f32.mrf.mxu1  ;;  %2284 = vmatmul.mubr.f32.gmra.mxu1 %v7239_v4 }
 0x236   :  { %v10287_v63 = vadd.f32 %v2045_v22, %v1661_v27  ;;  %2288 = vmatprep.mubr.f32.mxu1 %v7304_v46  ;;  %v10300_v27 = vld [vmem:[%s14525_s0 + $0x31a] sm:$0xff] }
 0x237   :  { %v1665_v58 = vpop.f32.mrf.mxu0  ;;  %1904 = vmatmul.mubr.f32.gmra.mxu0 %v7302_v18  ;;  %v2047_v28 = vpop.f32.mrf.mxu1  ;;  %v7241_v18 = vld [vmem:[%s14525_s0 + $0x320] sm:$0xff] }
 0x238   :  { %14685 = vst [vmem:[#allocation38_spill] sm:$0xff] %v10287_v63  ;;  %v1666_v4 = vadd.f32 %v1665_v58, %v9410_v5  ;;  %1908 = vmatprep.mubr.f32.mxu0 %v10285_v9  ;;  %v7306_v58 = vld [vmem:[%s14525_s0 + $0x331] sm:$0xff] }
 0x239   :  { %v1667_v0 = vpop.f32.mrf.mxu0  ;;  %v2050_v7 = vpop.f32.mrf.mxu1  ;;  %2289 = vmatmul.mubr.f32.gmra.mxu1 %v7240_v49 }
 0x23a   :  { %v10302_v22 = vadd.f32 %v2050_v7, %v1666_v4  ;;  %2293 = vmatprep.mubr.f32.mxu1 %v7305_v38  ;;  %v10315_v7 = vld [vmem:[%s14525_s0 + $0x322] sm:$0xff] }
 0x23b   :  { %v1670_v28 = vpop.f32.mrf.mxu0  ;;  %1909 = vmatmul.mubr.f32.gmra.mxu0 %v7303_v55  ;;  %v2052_v5 = vpop.f32.mrf.mxu1  ;;  %v7242_v55 = vld [vmem:[%s14525_s0 + $0x330] sm:$0xff] }
 0x23c   :  { %14686 = vst [vmem:[#allocation39_spill] sm:$0xff] %v10302_v22  ;;  %v1671_v49 = vadd.f32 %v1670_v28, %v9422_v15  ;;  %1913 = vmatprep.mubr.f32.mxu0 %v10300_v27  ;;  %v7307_v28 = vld [vmem:[%s14525_s0 + $0x339] sm:$0xff] }
 0x23d   :  { %v1672_v0 = vpop.f32.mrf.mxu0  ;;  %v2055_v63 = vpop.f32.mrf.mxu1  ;;  %2294 = vmatmul.mubr.f32.gmra.mxu1 %v7241_v18 }
 0x23e   :  { %v10317_v4 = vadd.f32 %v2055_v63, %v1671_v49  ;;  %2298 = vmatprep.mubr.f32.mxu1 %v7306_v58  ;;  %v10330_v63 = vld [vmem:[%s14525_s0 + $0x332] sm:$0xff] }
 0x23f   :  { %v1675_v5 = vpop.f32.mrf.mxu0  ;;  %1914 = vmatmul.mubr.f32.gmra.mxu0 %v7304_v46  ;;  %v2057_v15 = vpop.f32.mrf.mxu1  ;;  %v7243_v46 = vld [vmem:[%s14525_s0 + $0x338] sm:$0xff] }
 0x240   :  { %14687 = vst [vmem:[#allocation40_spill] sm:$0xff] %v10317_v4  ;;  %v1676_v18 = vadd.f32 %v1675_v5, %v9434_v25  ;;  %1918 = vmatprep.mubr.f32.mxu0 %v10315_v7  ;;  %v2921_v25 = vld [vmem:[%s14526_s1 + $0x68] sm:$0xff] }
 0x241   :  { %v1677_v0 = vpop.f32.mrf.mxu0  ;;  %v2060_v22 = vpop.f32.mrf.mxu1  ;;  %2299 = vmatmul.mubr.f32.gmra.mxu1 %v7242_v55  ;;  %v7308_v55 = vld [vmem:[%s14525_s0 + $0x349] sm:$0xff] }
 0x242   :  { %v10332_v49 = vadd.f32 %v2060_v22, %v1676_v18  ;;  %2303 = vmatprep.mubr.f32.mxu1 %v7307_v28  ;;  %7803 = vmatpush3.msra.mxu1 %v2921_v25  ;;  %v7244_v25 = vld [vmem:[%s14525_s0 + $0x348] sm:$0xff] }
 0x243   :  { %v1680_v5 = vpop.f32.mrf.mxu0  ;;  %1919 = vmatmul.mubr.f32.gmra.mxu0 %v7305_v38  ;;  %v2062_v15 = vpop.f32.mrf.mxu1  ;;  %7804 = vmatprep.subr.mxu1 %v9883_v57 }
 0x244   :  { %14688 = vst [vmem:[#allocation41_spill] sm:$0xff] %v10332_v49  ;;  %v1681_v22 = vadd.f32 %v1680_v5, %v9446_v36  ;;  %1923 = vmatprep.mubr.f32.mxu0 %v10330_v63  ;;  %v10349_v49 = vld [vmem:[%s14525_s0 + $0x33a] sm:$0xff]  ;;  %v7309_v15 = vld [vmem:[%s14525_s0 + $0x351] sm:$0xff] }
 0x245   :  { %v1682_v18 = vpop.f32.mrf.mxu0  ;;  %v2065_v0 = vpop.f32.mrf.mxu1  ;;  %2304 = vmatmul.mubr.f32.gmra.mxu1 %v7243_v46 }
 0x246   :  { %v10351_v38 = vadd.f32 %v2065_v0, %v1681_v22  ;;  %2308 = vmatprep.mubr.f32.mxu1 %v7308_v55  ;;  %v7310_v55 = vld [vmem:[%s14525_s0 + $0x32] sm:$0xff] }
 0x247   :  { %v1685_v36 = vpop.f32.mrf.mxu0  ;;  %1924 = vmatmul.mubr.f32.gmra.mxu0 %v7306_v58  ;;  %v2067_v5 = vpop.f32.mrf.mxu1  ;;  %v7245_v58 = vld [vmem:[%s14525_s0 + $0x350] sm:$0xff] }
 0x248   :  { %v1686_v46 = vadd.f32 %v1685_v36, %v9458_v50  ;;  %1928 = vmatprep.mubr.f32.mxu0 %v10349_v49 }
 0x249   :  { %v1687_v18 = vpop.f32.mrf.mxu0  ;;  %v2070_v4 = vpop.f32.mrf.mxu1  ;;  %2309 = vmatmul.mubr.f32.gmra.mxu1 %v7244_v25  ;;  %v7311_v25 = vld [vmem:[%s14525_s0 + $0x3a] sm:$0xff] }
 0x24a   :  { %v10364_v22 = vadd.f32 %v2070_v4, %v1686_v46  ;;  %2313 = vmatprep.mubr.f32.mxu1 %v7309_v15  ;;  %v7312_v4 = vld [vmem:[%s14525_s0 + $0x4a] sm:$0xff] }
 0x24b   :  { %v1690_v0 = vpop.f32.mrf.mxu0  ;;  %1929 = vmatmul.mubr.f32.gmra.mxu0 %v7307_v28  ;;  %v2072_v5 = vpop.f32.mrf.mxu1 }
 0x24c   :  { %14689 = vst [vmem:[#allocation42_spill] sm:$0xff] %v10364_v22  ;;  %v1691_v50 = vadd.f32 %v1690_v0, %v9473_v61  ;;  %7702 = vmatprep.mubr.f32.mxu0 %v7310_v55  ;;  %v7313_v61 = vld [vmem:[%s14525_s0 + $0x52] sm:$0xff] }
 0x24d   :  { %v1692_v36 = vpop.f32.mrf.mxu0  ;;  %v2075_v18 = vpop.f32.mrf.mxu1  ;;  %2314 = vmatmul.mubr.f32.gmra.mxu1 %v7245_v58  ;;  %v7314_v58 = vld [vmem:[%s14525_s0 + $0x62] sm:$0xff] }
 0x24e   :  { %v10376_v15 = vadd.f32 %v2075_v18, %v1691_v50  ;;  %v7315_v36 = vld [vmem:[%s14525_s0 + $0x6a] sm:$0xff] }
 0x24f   :  { %v1695_v46 = vpop.f32.mrf.mxu0  ;;  %v2077_v22 = vpop.f32.mrf.mxu1  ;;  %7703 = vmatmul.mubr.f32.vlgmr.msra.gmra.mxu0 %v7311_v25 }
 0x250   :  { %v1696_v28 = vadd.f32 %v1695_v46, %v9495_v13  ;;  %7705 = vmatprep.mubr.f32.mxu0 %v7312_v4  ;;  %v2920_v22 = vld [vmem:[%s14526_s1 + $0x60] sm:$0xff] }
 0x251   :  { %v1697_v55 = vpop.f32.mrf.mxu0  ;;  %v2080_v0 = vpop.f32.mrf.mxu1  ;;  %7805 = vmatpush3.msra.mxu1 %v2920_v22  ;;  %v7316_v46 = vld [vmem:[%s14525_s0 + $0x7a] sm:$0xff]  ;;  %v7318_v22 = vld [vmem:[%s14525_s0 + $0x92] sm:$0xff] }
 0x252   :  { %v10385_v5 = vadd.f32 %v2080_v0, %v1696_v28  ;;  %7806 = vmatprep.subr.mxu1 %v9883_v57  ;;  %v7317_v0 = vld [vmem:[%s14525_s0 + $0x82] sm:$0xff] }
 0x253   :  { %v1700_v50 = vpop.f32.mrf.mxu0  ;;  %v2082_v25 = vpop.f32.mrf.mxu1  ;;  %7706 = vmatmul.mubr.f32.gmra.mxu0 %v7313_v61 }
 0x254   :  { %v1701_v13 = vadd.f32 %v1700_v50, %v9513_v26  ;;  %7708 = vmatprep.mubr.f32.mxu0 %v7314_v58 }
 0x255   :  { %v1702_v18 = vpop.f32.mrf.mxu0  ;;  %v2085_v4 = vpop.f32.mrf.mxu1 }
 0x256   :  { %v10398_v28 = vadd.f32 %v2085_v4, %v1701_v13 }
 0x257   :  { %v1705_v55 = vpop.f32.mrf.mxu0  ;;  %v2087_v61 = vpop.f32.mrf.mxu1  ;;  %7709 = vmatmul.mubr.f32.gmra.mxu0 %v7315_v36 }
 0x258   :  { %v1706_v26 = vadd.f32 %v1705_v55, %v9531_v43  ;;  %7711 = vmatprep.mubr.f32.mxu0 %v7316_v46  ;;  %v7319_v43 = vld [vmem:[%s14525_s0 + $0x9a] sm:$0xff]  ;;  %v7320_v46 = vld [vmem:[%s14525_s0 + $0xaa] sm:$0xff] }
 0x259   :  { %v1707_v58 = vpop.f32.mrf.mxu0  ;;  %v2090_v57 = vpop.f32.mrf.mxu1 }
 0x25a   :  { %v10407_v50 = vadd.f32 %v2090_v57, %v1706_v26 }
 0x25b   :  { %v1710_v25 = vpop.f32.mrf.mxu0  ;;  %v2092_v13 = vpop.f32.mrf.mxu1  ;;  %7712 = vmatmul.mubr.f32.gmra.mxu0 %v7317_v0 }
 0x25c   :  { %v1711_v36 = vadd.f32 %v1710_v25, %v9549_v37  ;;  %7714 = vmatprep.mubr.f32.mxu0 %v7318_v22  ;;  %v7321_v37 = vld [vmem:[%s14525_s0 + $0xb2] sm:$0xff]  ;;  %v7322_v22 = vld [vmem:[%s14525_s0 + $0xc2] sm:$0xff] }
 0x25d   :  { %v1712_v18 = vpop.f32.mrf.mxu0  ;;  %v2095_v4 = vpop.f32.mrf.mxu1  ;;  %v2919_v13 = vld [vmem:[%s14526_s1 + $0x58] sm:$0xff] }
 0x25e   :  { %v10416_v55 = vadd.f32 %v2095_v4, %v1711_v36  ;;  %7807 = vmatpush3.msra.mxu1 %v2919_v13  ;;  %v7323_v18 = vld [vmem:[%s14525_s0 + $0xca] sm:$0xff] }
 0x25f   :  { %v1715_v61 = vpop.f32.mrf.mxu0  ;;  %v2097_v26 = vpop.f32.mrf.mxu1  ;;  %7715 = vmatmul.mubr.f32.gmra.mxu0 %v7319_v43  ;;  %v10434_v4 = vld [vmem:[#allocation2 + $0x8] sm:$0xff] }
 0x260   :  { %v1716_v0 = vadd.f32 %v1715_v61, %v9564_v8  ;;  %7717 = vmatprep.mubr.f32.mxu0 %v7320_v46  ;;  %7808 = vmatprep.subr.mxu1 %v10434_v4  ;;  %v7324_v26 = vld [vmem:[%s14525_s0 + $0xda] sm:$0xff] }
 0x261   :  { %v1717_v58 = vpop.f32.mrf.mxu0  ;;  %v2100_v57 = vpop.f32.mrf.mxu1  ;;  %7830 = vmatprep.mubr.msk.f32.mxu1 %vm8154_vm0, %v10434_v4 }
 0x262   :  { %v10425_v25 = vadd.f32 %v2100_v57, %v1716_v0  ;;  %v7325_v57 = vld [vmem:[%s14525_s0 + $0xe2] sm:$0xff] }
 0x263   :  { %v1720_v36 = vpop.f32.mrf.mxu0  ;;  %v2102_v43 = vpop.f32.mrf.mxu1  ;;  %7718 = vmatmul.mubr.f32.gmra.mxu0 %v7321_v37 }
 0x264   :  { %v1721_v8 = vadd.f32 %v1720_v36, %v9576_v20  ;;  %7720 = vmatprep.mubr.f32.mxu0 %v7322_v22  ;;  %v7326_v36 = vld [vmem:[%s14525_s0 + $0xf2] sm:$0xff] }
 0x265   :  { %v1722_v46 = vpop.f32.mrf.mxu0  ;;  %v2105_v61 = vpop.f32.mrf.mxu1 }
 0x266   :  { %v10440_v0 = vadd.f32 %v2105_v61, %v1721_v8 }
 0x267   :  { %v1725_v37 = vpop.f32.mrf.mxu0  ;;  %v2107_v58 = vpop.f32.mrf.mxu1  ;;  %7721 = vmatmul.mubr.f32.gmra.mxu0 %v7323_v18 }
 0x268   :  { %v1726_v20 = vadd.f32 %v1725_v37, %v9588_v33  ;;  %7723 = vmatprep.mubr.f32.mxu0 %v7324_v26  ;;  %v7327_v33 = vld [vmem:[%s14525_s0 + $0xfa] sm:$0xff]  ;;  %v7328_v37 = vld [vmem:[%s14525_s0 + $0x10a] sm:$0xff] }
 0x269   :  { %v1727_v22 = vpop.f32.mrf.mxu0  ;;  %v2110_v13 = vpop.f32.mrf.mxu1 }
 0x26a   :  { %v10449_v43 = vadd.f32 %v2110_v13, %v1726_v20 }
 0x26b   :  { %v1730_v8 = vpop.f32.mrf.mxu0  ;;  %v2112_v46 = vpop.f32.mrf.mxu1  ;;  %7724 = vmatmul.mubr.f32.gmra.mxu0 %v7325_v57 }
 0x26c   :  { %v1731_v18 = vadd.f32 %v1730_v8, %v9600_v48  ;;  %7726 = vmatprep.mubr.f32.mxu0 %v7326_v36  ;;  %v7329_v48 = vld [vmem:[%s14525_s0 + $0x112] sm:$0xff]  ;;  %v7330_v8 = vld [vmem:[%s14525_s0 + $0x122] sm:$0xff] }
 0x26d   :  { %v1732_v61 = vpop.f32.mrf.mxu0  ;;  %v2115_v26 = vpop.f32.mrf.mxu1 }
 0x26e   :  { %v10458_v58 = vadd.f32 %v2115_v26, %v1731_v18  ;;  %v2918_v18 = vld [vmem:[%s14526_s1 + $0x50] sm:$0xff] }
 0x26f   :  { %v1735_v20 = vpop.f32.mrf.mxu0  ;;  %v2117_v22 = vpop.f32.mrf.mxu1  ;;  %7727 = vmatmul.mubr.f32.gmra.mxu0 %v7327_v33  ;;  %7809 = vmatpush3.msra.mxu1 %v2918_v18  ;;  %v7331_v26 = vld [vmem:[%s14525_s0 + $0x12a] sm:$0xff] }
 0x270   :  { %v1736_v57 = vadd.f32 %v1735_v20, %v9615_v1  ;;  %7729 = vmatprep.mubr.f32.mxu0 %v7328_v37  ;;  %7810 = vmatprep.subr.mxu1 %v10434_v4  ;;  %v7332_v22 = vld [vmem:[%s14525_s0 + $0x13a] sm:$0xff] }
 0x271   :  { %v1737_v13 = vpop.f32.mrf.mxu0  ;;  %v2120_v36 = vpop.f32.mrf.mxu1 }
 0x272   :  { %v10467_v46 = vadd.f32 %v2120_v36, %v1736_v57  ;;  %v7333_v36 = vld [vmem:[%s14525_s0 + $0x142] sm:$0xff] }
 0x273   :  { %v1740_v33 = vpop.f32.mrf.mxu0  ;;  %v2122_v61 = vpop.f32.mrf.mxu1  ;;  %7730 = vmatmul.mubr.f32.gmra.mxu0 %v7329_v48 }
 0x274   :  { %v1741_v1 = vadd.f32 %v1740_v33, %v9627_v41  ;;  %7732 = vmatprep.mubr.f32.mxu0 %v7330_v8  ;;  %v7334_v33 = vld [vmem:[%s14525_s0 + $0x152] sm:$0xff] }
 0x275   :  { %v1742_v37 = vpop.f32.mrf.mxu0  ;;  %v2125_v20 = vpop.f32.mrf.mxu1 }
 0x276   :  { %v10480_v57 = vadd.f32 %v2125_v20, %v1741_v1 }
 0x277   :  { %v1745_v13 = vpop.f32.mrf.mxu0  ;;  %v2127_v48 = vpop.f32.mrf.mxu1  ;;  %7733 = vmatmul.mubr.f32.gmra.mxu0 %v7331_v26 }
 0x278   :  { %v1746_v41 = vadd.f32 %v1745_v13, %v9639_v29  ;;  %7735 = vmatprep.mubr.f32.mxu0 %v7332_v22  ;;  %v7335_v29 = vld [vmem:[%s14525_s0 + $0x15a] sm:$0xff]  ;;  %v7336_v13 = vld [vmem:[%s14525_s0 + $0x16a] sm:$0xff] }
 0x279   :  { %v1747_v8 = vpop.f32.mrf.mxu0  ;;  %v2130_v18 = vpop.f32.mrf.mxu1 }
 0x27a   :  { %v10489_v61 = vadd.f32 %v2130_v18, %v1746_v41 }
 0x27b   :  { %v1750_v1 = vpop.f32.mrf.mxu0  ;;  %v2132_v37 = vpop.f32.mrf.mxu1  ;;  %7736 = vmatmul.mubr.f32.gmra.mxu0 %v7333_v36 }
 0x27c   :  { %v1751_v26 = vadd.f32 %v1750_v1, %v9651_v44  ;;  %7738 = vmatprep.mubr.f32.mxu0 %v7334_v33  ;;  %v7337_v44 = vld [vmem:[%s14525_s0 + $0x172] sm:$0xff]  ;;  %v7338_v1 = vld [vmem:[%s14525_s0 + $0x182] sm:$0xff] }
 0x27d   :  { %v1752_v20 = vpop.f32.mrf.mxu0  ;;  %v2135_v22 = vpop.f32.mrf.mxu1 }
 0x27e   :  { %v10498_v48 = vadd.f32 %v2135_v22, %v1751_v26  ;;  %v2917_v26 = vld [vmem:[%s14526_s1 + $0x48] sm:$0xff] }
 0x27f   :  { %v1755_v41 = vpop.f32.mrf.mxu0  ;;  %v2137_v8 = vpop.f32.mrf.mxu1  ;;  %7739 = vmatmul.mubr.f32.gmra.mxu0 %v7335_v29  ;;  %7811 = vmatpush3.msra.mxu1 %v2917_v26  ;;  %v7339_v22 = vld [vmem:[%s14525_s0 + $0x18a] sm:$0xff] }
 0x280   :  { %v1756_v36 = vadd.f32 %v1755_v41, %v9666_v60  ;;  %7741 = vmatprep.mubr.f32.mxu0 %v7336_v13  ;;  %7812 = vmatprep.subr.mxu1 %v10434_v4  ;;  %v7340_v8 = vld [vmem:[%s14525_s0 + $0x19a] sm:$0xff] }
 0x281   :  { %v1757_v18 = vpop.f32.mrf.mxu0  ;;  %v2140_v33 = vpop.f32.mrf.mxu1 }
 0x282   :  { %v10507_v37 = vadd.f32 %v2140_v33, %v1756_v36  ;;  %v7341_v33 = vld [vmem:[%s14525_s0 + $0x1a2] sm:$0xff] }
 0x283   :  { %v1760_v29 = vpop.f32.mrf.mxu0  ;;  %v2142_v20 = vpop.f32.mrf.mxu1  ;;  %7742 = vmatmul.mubr.f32.gmra.mxu0 %v7337_v44 }
 0x284   :  { %v1761_v60 = vadd.f32 %v1760_v29, %v9678_v12  ;;  %7744 = vmatprep.mubr.f32.mxu0 %v7338_v1  ;;  %v7342_v29 = vld [vmem:[%s14525_s0 + $0x1e2] sm:$0xff] }
 0x285   :  { %v1762_v13 = vpop.f32.mrf.mxu0  ;;  %v2145_v41 = vpop.f32.mrf.mxu1 }
 0x286   :  { %v10520_v36 = vadd.f32 %v2145_v41, %v1761_v60 }
 0x287   :  { %v1765_v18 = vpop.f32.mrf.mxu0  ;;  %v2147_v44 = vpop.f32.mrf.mxu1  ;;  %7745 = vmatmul.mubr.f32.gmra.mxu0 %v7339_v22 }
 0x288   :  { %v1766_v12 = vadd.f32 %v1765_v18, %v9690_v30  ;;  %7747 = vmatprep.mubr.f32.mxu0 %v7340_v8  ;;  %v7343_v30 = vld [vmem:[%s14525_s0 + $0x1ea] sm:$0xff]  ;;  %v7344_v18 = vld [vmem:[%s14525_s0 + $0x1fa] sm:$0xff] }
 0x289   :  { %v1767_v1 = vpop.f32.mrf.mxu0  ;;  %v2150_v26 = vpop.f32.mrf.mxu1 }
 0x28a   :  { %v10529_v20 = vadd.f32 %v2150_v26, %v1766_v12 }
 0x28b   :  { %v1770_v60 = vpop.f32.mrf.mxu0  ;;  %v2152_v13 = vpop.f32.mrf.mxu1  ;;  %7748 = vmatmul.mubr.f32.gmra.mxu0 %v7341_v33 }
 0x28c   :  { %v1771_v22 = vadd.f32 %v1770_v60, %v9702_v47  ;;  %7750 = vmatprep.mubr.f32.mxu0 %v7342_v29  ;;  %v7345_v47 = vld [vmem:[%s14525_s0 + $0x202] sm:$0xff]  ;;  %v7346_v60 = vld [vmem:[%s14525_s0 + $0x212] sm:$0xff] }
 0x28d   :  { %v1772_v41 = vpop.f32.mrf.mxu0  ;;  %v2155_v8 = vpop.f32.mrf.mxu1 }
 0x28e   :  { %v10538_v44 = vadd.f32 %v2155_v8, %v1771_v22 }
 0x28f   :  { %v1775_v12 = vpop.f32.mrf.mxu0  ;;  %v2157_v1 = vpop.f32.mrf.mxu1  ;;  %7751 = vmatmul.mubr.f32.gmra.mxu0 %v7343_v30 }
 0x290   :  { %v1776_v33 = vadd.f32 %v1775_v12, %v9717_v3  ;;  %7753 = vmatprep.mubr.f32.mxu0 %v7344_v18  ;;  %v7347_v3 = vld [vmem:[%s14525_s0 + $0x21a] sm:$0xff]  ;;  %v7348_v12 = vld [vmem:[%s14525_s0 + $0x22a] sm:$0xff] }
 0x291   :  { %v1777_v26 = vpop.f32.mrf.mxu0  ;;  %v2160_v29 = vpop.f32.mrf.mxu1 }
 0x292   :  { %v10547_v13 = vadd.f32 %v2160_v29, %v1776_v33  ;;  %v2916_v33 = vld [vmem:[%s14526_s1 + $0x40] sm:$0xff]  ;;  %v7349_v29 = vld [vmem:[%s14525_s0 + $0x232] sm:$0xff] }
 0x293   :  { %v1780_v22 = vpop.f32.mrf.mxu0  ;;  %v2162_v41 = vpop.f32.mrf.mxu1  ;;  %7754 = vmatmul.mubr.f32.gmra.mxu0 %v7345_v47  ;;  %7813 = vmatpush3.msra.mxu1 %v2916_v33 }
 0x294   :  { %v1781_v30 = vadd.f32 %v1780_v22, %v9729_v21  ;;  %7756 = vmatprep.mubr.f32.mxu0 %v7346_v60  ;;  %7814 = vmatprep.subr.mxu1 %v10434_v4  ;;  %v7350_v41 = vld [vmem:[%s14525_s0 + $0x242] sm:$0xff] }
 0x295   :  { %v1782_v8 = vpop.f32.mrf.mxu0  ;;  %v2165_v18 = vpop.f32.mrf.mxu1 }
 0x296   :  { %v10556_v1 = vadd.f32 %v2165_v18, %v1781_v30  ;;  %v7351_v18 = vld [vmem:[%s14525_s0 + $0x24a] sm:$0xff] }
 0x297   :  { %v1785_v47 = vpop.f32.mrf.mxu0  ;;  %v2167_v26 = vpop.f32.mrf.mxu1  ;;  %7757 = vmatmul.mubr.f32.gmra.mxu0 %v7347_v3 }
 0x298   :  { %v1786_v21 = vadd.f32 %v1785_v47, %v9741_v40  ;;  %7759 = vmatprep.mubr.f32.mxu0 %v7348_v12 }
 0x299   :  { %v1787_v60 = vpop.f32.mrf.mxu0  ;;  %v2170_v22 = vpop.f32.mrf.mxu1 }
 0x29a   :  { %v10569_v30 = vadd.f32 %v2170_v22, %v1786_v21 }
 0x29b   :  { %v1790_v8 = vpop.f32.mrf.mxu0  ;;  %v2172_v3 = vpop.f32.mrf.mxu1  ;;  %7760 = vmatmul.mubr.f32.gmra.mxu0 %v7349_v29 }
 0x29c   :  { %v1791_v40 = vadd.f32 %v1790_v8, %v9753_v59  ;;  %7762 = vmatprep.mubr.f32.mxu0 %v7350_v41 }
 0x29d   :  { %v1792_v12 = vpop.f32.mrf.mxu0  ;;  %v2175_v33 = vpop.f32.mrf.mxu1 }
 0x29e   :  { %v10575_v47 = vadd.f32 %v2175_v33, %v1791_v40 }
 0x29f   :  { %v1795_v26 = vpop.f32.mrf.mxu0  ;;  %v2177_v60 = vpop.f32.mrf.mxu1  ;;  %7763 = vmatmul.mubr.f32.gmra.mxu0 %v7351_v18 }
 0x2a0   :  { %v1796_v21 = vadd.f32 %v1795_v26, %v9773_v16  ;;  %7765 = vmatprep.mubr.f32.mxu0 %v10052_v10  ;;  %v2915_v16 = vld [vmem:[%s14526_s1 + $0x38] sm:$0xff] }
 0x2a1   :  { %v1797_v22 = vpop.f32.mrf.mxu0  ;;  %v2180_v29 = vpop.f32.mrf.mxu1  ;;  %7815 = vmatpush3.msra.mxu1 %v2915_v16 }
 0x2a2   :  { %v10579_v3 = vadd.f32 %v2180_v29, %v1796_v21  ;;  %7816 = vmatprep.subr.mxu1 %v10434_v4 }
 0x2a3   :  { %v1800_v59 = vpop.f32.mrf.mxu0  ;;  %v2182_v41 = vpop.f32.mrf.mxu1  ;;  %7766 = vmatmul.mubr.f32.gmra.mxu0 %v10067_v11 }
 0x2a4   :  { %v1801_v8 = vadd.f32 %v1800_v59, %v9785_v35  ;;  %7768 = vmatprep.mubr.f32.mxu0 %v10082_v53 }
 0x2a5   :  { %v1802_v40 = vpop.f32.mrf.mxu0  ;;  %v2185_v12 = vpop.f32.mrf.mxu1 }
 0x2a6   :  { %v10584_v33 = vadd.f32 %v2185_v12, %v1801_v8 }
 0x2a7   :  { %v1805_v10 = vpop.f32.mrf.mxu0  ;;  %v2187_v18 = vpop.f32.mrf.mxu1  ;;  %7769 = vmatmul.mubr.f32.gmra.mxu0 %v10097_v31 }
 0x2a8   :  { %v1806_v26 = vadd.f32 %v1805_v10, %v9797_v62  ;;  %7771 = vmatprep.mubr.f32.mxu0 %v10112_v45 }
 0x2a9   :  { %v1807_v35 = vpop.f32.mrf.mxu0  ;;  %v2190_v11 = vpop.f32.mrf.mxu1 }
 0x2aa   :  { %v10593_v53 = vadd.f32 %v2190_v11, %v1806_v26 }
 0x2ab   :  { %v1810_v60 = vpop.f32.mrf.mxu0  ;;  %v2192_v21 = vpop.f32.mrf.mxu1  ;;  %7772 = vmatmul.mubr.f32.gmra.mxu0 %v10127_v52 }
 0x2ac   :  { %v1811_v22 = vadd.f32 %v1810_v60, %v9809_v19  ;;  %7774 = vmatprep.mubr.f32.mxu0 %v10142_v54 }
 0x2ad   :  { %v1812_v31 = vpop.f32.mrf.mxu0  ;;  %v2195_v29 = vpop.f32.mrf.mxu1 }
 0x2ae   :  { %v10598_v59 = vadd.f32 %v2195_v29, %v1811_v22  ;;  %v14690_v31 = vld [vmem:[#allocation9_spill] sm:$0xff] }
 0x2af   :  { %v1815_v62 = vpop.f32.mrf.mxu0  ;;  %v2197_v45 = vpop.f32.mrf.mxu1  ;;  %7775 = vmatmul.mubr.f32.gmra.mxu0 %v10157_v42 }
 0x2b0   :  { %v1816_v41 = vadd.f32 %v1815_v62, %v9824_v23  ;;  %7777 = vmatprep.mubr.f32.mxu0 %v10172_v34  ;;  %v2914_v23 = vld [vmem:[%s14526_s1 + $0x30] sm:$0xff] }
 0x2b1   :  { %v1817_v8 = vpop.f32.mrf.mxu0  ;;  %v2200_v40 = vpop.f32.mrf.mxu1  ;;  %7817 = vmatpush3.msra.mxu1 %v2914_v23 }
 0x2b2   :  { %v10603_v12 = vadd.f32 %v2200_v40, %v1816_v41  ;;  %7818 = vmatprep.subr.mxu1 %v10434_v4 }
 0x2b3   :  { %v1820_v52 = vpop.f32.mrf.mxu0  ;;  %v2202_v19 = vpop.f32.mrf.mxu1  ;;  %7778 = vmatmul.mubr.f32.gmra.mxu0 %v10187_v32 }
 0x2b4   :  { %v1821_v54 = vadd.f32 %v1820_v52, %v9836_v14  ;;  %7780 = vmatprep.mubr.f32.mxu0 %v10202_v51 }
 0x2b5   :  { %v1822_v16 = vpop.f32.mrf.mxu0  ;;  %v2205_v10 = vpop.f32.mrf.mxu1 }
 0x2b6   :  { %v10608_v18 = vadd.f32 %v2205_v10, %v1821_v54  ;;  %v7373_v10 = vld [vmem:[%s14525_s0 + $0x352] sm:$0xff] }
 0x2b7   :  { %v1825_v42 = vpop.f32.mrf.mxu0  ;;  %v2207_v34 = vpop.f32.mrf.mxu1  ;;  %7781 = vmatmul.mubr.f32.gmra.mxu0 %v10221_v17 }
 0x2b8   :  { %v1826_v26 = vadd.f32 %v1825_v42, %v9848_v24  ;;  %7783 = vmatprep.mubr.f32.mxu0 %v10236_v56 }
 0x2b9   :  { %v1827_v14 = vpop.f32.mrf.mxu0  ;;  %v2210_v32 = vpop.f32.mrf.mxu1 }
 0x2ba   :  { %v10617_v51 = vadd.f32 %v2210_v32, %v1826_v26  ;;  %v14694_v32 = vld [vmem:[#allocation12_spill] sm:$0xff] }
 0x2bb   :  { %v1830_v35 = vpop.f32.mrf.mxu0  ;;  %v2212_v11 = vpop.f32.mrf.mxu1  ;;  %7784 = vmatmul.mubr.f32.gmra.mxu0 %v10251_v39 }
 0x2bc   :  { %v1831_v60 = vadd.f32 %v1830_v35, %v9860_v6  ;;  %7786 = vmatprep.mubr.f32.mxu0 %v10266_v2  ;;  %v14691_v2 = vld [vmem:[#allocation10_spill] sm:$0xff] }
 0x2bd   :  { %v1832_v17 = vpop.f32.mrf.mxu0  ;;  %v2215_v21 = vpop.f32.mrf.mxu1 }
 0x2be   :  { %v10622_v22 = vadd.f32 %v2215_v21, %v1831_v60 }
 0x2bf   :  { %v1835_v24 = vpop.f32.mrf.mxu0  ;;  %v2217_v56 = vpop.f32.mrf.mxu1  ;;  %7787 = vmatmul.mubr.f32.gmra.mxu0 %v10285_v9  ;;  %v7372_v9 = vld [vmem:[%s14525_s0 + $0x34a] sm:$0xff] }
 0x2c0   :  { %v1836_v29 = vadd.f32 %v1835_v24, %v14690_v31  ;;  %7789 = vmatprep.mubr.f32.mxu0 %v10300_v27  ;;  %v10640_v27 = vld [vmem:[%s14526_s1 + $0x28] sm:$0xff]  ;;  %v14695_v24 = vld [vmem:[#allocation13_spill] sm:$0xff] }
 0x2c1   :  { %v1837_v62 = vpop.f32.mrf.mxu0  ;;  %v2220_v45 = vpop.f32.mrf.mxu1  ;;  %14692 = vst [vmem:[#allocation9_spill] sm:$0xff] %v10640_v27  ;;  %7819 = vmatpush3.msra.mxu1 %v10640_v27 }
 0x2c2   :  { %v10627_v41 = vadd.f32 %v2220_v45, %v1836_v29  ;;  %7820 = vmatprep.subr.mxu1 %v10434_v4 }
 0x2c3   :  { %v1840_v39 = vpop.f32.mrf.mxu0  ;;  %v2222_v6 = vpop.f32.mrf.mxu1  ;;  %7790 = vmatmul.mubr.f32.gmra.mxu0 %v10315_v7  ;;  %v14693_v7 = vld [vmem:[#allocation11_spill] sm:$0xff] }
 0x2c4   :  { %v1841_v8 = vadd.f32 %v1840_v39, %v14691_v2  ;;  %7792 = vmatprep.mubr.f32.mxu0 %v10330_v63  ;;  %v14696_v6 = vld [vmem:[#allocation14_spill] sm:$0xff] }
 0x2c5   :  { %v1842_v40 = vpop.f32.mrf.mxu0  ;;  %v2225_v52 = vpop.f32.mrf.mxu1 }
 0x2c6   :  { %v10635_v19 = vadd.f32 %v2225_v52, %v1841_v8 }
 0x2c7   :  { %v1845_v54 = vpop.f32.mrf.mxu0  ;;  %v2227_v16 = vpop.f32.mrf.mxu1  ;;  %7793 = vmatmul.mubr.f32.gmra.mxu0 %v10349_v49 }
 0x2c8   :  { %v1846_v63 = vadd.f32 %v1845_v54, %v14693_v7  ;;  %7795 = vmatprep.mubr.f32.mxu0 %v7372_v9  ;;  %v10663_v9 = vld [vmem:[%s14526_s1 + $0x20] sm:$0xff]  ;;  %v14698_v7 = vld [vmem:[#allocation15_spill] sm:$0xff] }
 0x2c9   :  { %v1847_v23 = vpop.f32.mrf.mxu0  ;;  %v2230_v42 = vpop.f32.mrf.mxu1  ;;  %14697 = vst [vmem:[#allocation10_spill] sm:$0xff] %v10663_v9  ;;  %7821 = vmatpush3.msra.mxu1 %v10663_v9 }
 0x2ca   :  { %v10649_v34 = vadd.f32 %v2230_v42, %v1846_v63  ;;  %7822 = vmatprep.subr.mxu1 %v10434_v4 }
 0x2cb   :  { %v1850_v26 = vpop.f32.mrf.mxu0  ;;  %v2232_v14 = vpop.f32.mrf.mxu1  ;;  %7796 = vmatmul.mubr.f32.gmra.mxu0 %v7373_v10 }
 0x2cc   :  { %v1851_v49 = vadd.f32 %v1850_v26, %v14694_v32  ;;  %v14699_v32 = vld [vmem:[#allocation16_spill] sm:$0xff] }
 0x2cd   :  { %v1852_v35 = vpop.f32.mrf.mxu0  ;;  %v2235_v11 = vpop.f32.mrf.mxu1 }
 0x2ce   :  { %v10652_v60 = vadd.f32 %v2235_v11, %v1851_v49 }
 0x2cf   :  { %v1855_v17 = vpop.f32.mrf.mxu0  ;;  %v2237_v21 = vpop.f32.mrf.mxu1 }
 0x2d0   :  { %v1856_v56 = vadd.f32 %v1855_v17, %v14695_v24 }
 0x2d1   :  { %v1857_v31 = vpop.f32.mrf.mxu0  ;;  %v2240_v29 = vpop.f32.mrf.mxu1 }
 0x2d2   :  { %v10655_v62 = vadd.f32 %v2240_v29, %v1856_v56  ;;  %v14700_v56 = vld [vmem:[#allocation17_spill] sm:$0xff] }
 0x2d3   :  { %v1860_v45 = vpop.f32.mrf.mxu0  ;;  %v2242_v39 = vpop.f32.mrf.mxu1 }
 0x2d4   :  { %v1861_v2 = vadd.f32 %v1860_v45, %v14696_v6 }
 0x2d5   :  { %v1862_v8 = vpop.f32.mrf.mxu0  ;;  %v2245_v40 = vpop.f32.mrf.mxu1 }
 0x2d6   :  { %v10658_v52 = vadd.f32 %v2245_v40, %v1861_v2  ;;  %v14701_v8 = vld [vmem:[#allocation18_spill] sm:$0xff] }
 0x2d7   :  { %v1865_v54 = vpop.f32.mrf.mxu0  ;;  %v2247_v16 = vpop.f32.mrf.mxu1 }
 0x2d8   :  { %v1866_v63 = vadd.f32 %v1865_v54, %v14698_v7 }
 0x2d9   :  { %v1867_v10 = vpop.f32.mrf.mxu0  ;;  %v2250_v23 = vpop.f32.mrf.mxu1 }
 0x2da   :  { %v10668_v42 = vadd.f32 %v2250_v23, %v1866_v63  ;;  %v10682_v63 = vld [vmem:[%s14526_s1 + $0x18] sm:$0xff] }
 0x2db   :  { %v1870_v26 = vpop.f32.mrf.mxu0  ;;  %v2252_v14 = vpop.f32.mrf.mxu1  ;;  %14702 = vst [vmem:[#allocation11_spill] sm:$0xff] %v10682_v63  ;;  %7823 = vmatpush3.msra.mxu1 %v10682_v63 }
 0x2dc   :  { %v1871_v49 = vadd.f32 %v1870_v26, %v14699_v32  ;;  %v14703_v26 = vld [vmem:[#allocation19_spill] sm:$0xff]  ;;  %7824 = vmatprep.subr.mxu1 %v10434_v4 }
 0x2dd   :  { %v1872_v35 = vpop.f32.mrf.mxu0  ;;  %v2255_v11 = vpop.f32.mrf.mxu1 }
 0x2de   :  { %v10671_v17 = vadd.f32 %v2255_v11, %v1871_v49 }
 0x2df   :  { %v1875_v21 = vpop.f32.mrf.mxu0  ;;  %v2257_v24 = vpop.f32.mrf.mxu1 }
 0x2e0   :  { %v1876_v31 = vadd.f32 %v1875_v21, %v14700_v56  ;;  %v14704_v24 = vld [vmem:[#allocation20_spill] sm:$0xff] }
 0x2e1   :  { %v1877_v29 = vpop.f32.mrf.mxu0  ;;  %v2260_v45 = vpop.f32.mrf.mxu1 }
 0x2e2   :  { %v10674_v39 = vadd.f32 %v2260_v45, %v1876_v31 }
 0x2e3   :  { %v1880_v6 = vpop.f32.mrf.mxu0  ;;  %v2262_v2 = vpop.f32.mrf.mxu1 }
 0x2e4   :  { %v1881_v40 = vadd.f32 %v1880_v6, %v14701_v8  ;;  %v14705_v8 = vld [vmem:[#allocation21_spill] sm:$0xff] }
 0x2e5   :  { %v1882_v54 = vpop.f32.mrf.mxu0  ;;  %v2265_v16 = vpop.f32.mrf.mxu1 }
 0x2e6   :  { %v10677_v7 = vadd.f32 %v2265_v16, %v1881_v40 }
 0x2e7   :  { %v1885_v10 = vpop.f32.mrf.mxu0  ;;  %v2267_v23 = vpop.f32.mrf.mxu1 }
 0x2e8   :  { %v1886_v14 = vadd.f32 %v1885_v10, %v14703_v26 }
 0x2e9   :  { %v1887_v32 = vpop.f32.mrf.mxu0  ;;  %v2270_v49 = vpop.f32.mrf.mxu1 }
 0x2ea   :  { %v10687_v35 = vadd.f32 %v2270_v49, %v1886_v14  ;;  %v14706_v14 = vld [vmem:[#allocation22_spill] sm:$0xff] }
 0x2eb   :  { %v1890_v11 = vpop.f32.mrf.mxu0  ;;  %v2272_v21 = vpop.f32.mrf.mxu1 }
 0x2ec   :  { %v1891_v56 = vadd.f32 %v1890_v11, %v14704_v24  ;;  %v10701_v11 = vld [vmem:[%s14526_s1 + $0x10] sm:$0xff] }
 0x2ed   :  { %v1892_v31 = vpop.f32.mrf.mxu0  ;;  %v2275_v29 = vpop.f32.mrf.mxu1  ;;  %14708 = vst [vmem:[#allocation13_spill] sm:$0xff] %v10701_v11  ;;  %7825 = vmatpush3.msra.mxu1 %v10701_v11 }
 0x2ee   :  { %v10690_v45 = vadd.f32 %v2275_v29, %v1891_v56  ;;  %v14709_v31 = vld [vmem:[#allocation23_spill] sm:$0xff]  ;;  %7826 = vmatprep.subr.mxu1 %v10434_v4 }
 0x2ef   :  { %v1895_v6 = vpop.f32.mrf.mxu0  ;;  %v2277_v2 = vpop.f32.mrf.mxu1 }
 0x2f0   :  { %v1896_v40 = vadd.f32 %v1895_v6, %v14705_v8 }
 0x2f1   :  { %v1897_v54 = vpop.f32.mrf.mxu0  ;;  %v2280_v16 = vpop.f32.mrf.mxu1 }
 0x2f2   :  { %v10693_v10 = vadd.f32 %v2280_v16, %v1896_v40  ;;  %v14711_v16 = vld [vmem:[#allocation24_spill] sm:$0xff] }
 0x2f3   :  { %v1900_v23 = vpop.f32.mrf.mxu0  ;;  %v2282_v26 = vpop.f32.mrf.mxu1 }
 0x2f4   :  { %v1901_v32 = vadd.f32 %v1900_v23, %v14706_v14 }
 0x2f5   :  { %v1902_v49 = vpop.f32.mrf.mxu0  ;;  %v2285_v21 = vpop.f32.mrf.mxu1 }
 0x2f6   :  { %v10696_v63 = vadd.f32 %v2285_v21, %v1901_v32 }
 0x2f7   :  { %v1905_v24 = vpop.f32.mrf.mxu0  ;;  %v2287_v56 = vpop.f32.mrf.mxu1 }
 0x2f8   :  { %14707 = vst [vmem:[#allocation12_spill] sm:$0xff] %v10696_v63  ;;  %v1906_v29 = vadd.f32 %v1905_v24, %v14709_v31  ;;  %v14713_v56 = vld [vmem:[#allocation25_spill] sm:$0xff] }
 0x2f9   :  { %v1907_v6 = vpop.f32.mrf.mxu0  ;;  %v2290_v2 = vpop.f32.mrf.mxu1 }
 0x2fa   :  { %v10706_v8 = vadd.f32 %v2290_v2, %v1906_v29  ;;  %v14715_v29 = vld [vmem:[#allocation26_spill] sm:$0xff] }
 0x2fb   :  { %v1910_v40 = vpop.f32.mrf.mxu0  ;;  %v2292_v54 = vpop.f32.mrf.mxu1 }
 0x2fc   :  { %14710 = vst [vmem:[#allocation14_spill] sm:$0xff] %v10706_v8  ;;  %v1911_v23 = vadd.f32 %v1910_v40, %v14711_v16  ;;  %v10720_v40 = vld [vmem:[%s14526_s1 + $0x8] sm:$0xff] }
 0x2fd   :  { %v1912_v26 = vpop.f32.mrf.mxu0  ;;  %v2295_v14 = vpop.f32.mrf.mxu1  ;;  %14717 = vst [vmem:[#allocation18_spill] sm:$0xff] %v10720_v40  ;;  %7827 = vmatpush3.msra.mxu1 %v10720_v40  ;;  %v14722_v40 = vld [vmem:[#allocation30_spill] sm:$0xff] }
 0x2fe   :  { %v10709_v32 = vadd.f32 %v2295_v14, %v1911_v23  ;;  %7828 = vmatprep.subr.mxu1 %v10434_v4 }
 0x2ff   :  { %v1915_v49 = vpop.f32.mrf.mxu0  ;;  %v2297_v21 = vpop.f32.mrf.mxu1 }
 0x300   :  { %14712 = vst [vmem:[#allocation15_spill] sm:$0xff] %v10709_v32  ;;  %v1916_v11 = vadd.f32 %v1915_v49, %v14713_v56  ;;  %v14720_v21 = vld [vmem:[#allocation28_spill] sm:$0xff] }
 0x301   :  { %v1917_v9 = vpop.f32.mrf.mxu0  ;;  %v2300_v24 = vpop.f32.mrf.mxu1 }
 0x302   :  { %v10712_v31 = vadd.f32 %v2300_v24, %v1916_v11  ;;  %v14718_v9 = vld [vmem:[#allocation27_spill] sm:$0xff] }
 0x303   :  { %v1920_v6 = vpop.f32.mrf.mxu0  ;;  %v2302_v27 = vpop.f32.mrf.mxu1 }
 0x304   :  { %14714 = vst [vmem:[#allocation16_spill] sm:$0xff] %v10712_v31  ;;  %v1921_v2 = vadd.f32 %v1920_v6, %v14715_v29 }
 0x305   :  { %v1922_v8 = vpop.f32.mrf.mxu0  ;;  %v2305_v54 = vpop.f32.mrf.mxu1 }
 0x306   :  { %v10715_v63 = vadd.f32 %v2305_v54, %v1921_v2 }
 0x307   :  { %v1925_v16 = vpop.f32.mrf.mxu0  ;;  %v2307_v23 = vpop.f32.mrf.mxu1 }
 0x308   :  { %14716 = vst [vmem:[#allocation17_spill] sm:$0xff] %v10715_v63  ;;  %v1926_v11 = vadd.f32 %v1925_v16, %v14718_v9  ;;  %v14724_v16 = vld [vmem:[#allocation29_spill] sm:$0xff] }
 0x309   :  { %v1927_v27 = vpop.f32.mrf.mxu0  ;;  %v2310_v26 = vpop.f32.mrf.mxu1 }
 0x30a   :  { %v10725_v14 = vadd.f32 %v2310_v26, %v1926_v11  ;;  %v14726_v26 = vld [vmem:[#allocation32_spill] sm:$0xff] }
 0x30b   :  { %v1930_v8 = vpop.f32.mrf.mxu0  ;;  %v2312_v49 = vpop.f32.mrf.mxu1 }
 0x30c   :  { %14719 = vst [vmem:[#allocation19_spill] sm:$0xff] %v10725_v14  ;;  %v1931_v56 = vadd.f32 %v1930_v8, %v14720_v21  ;;  %v14730_v14 = vld [vmem:[#allocation34_spill] sm:$0xff] }
 0x30d   :  { %v1932_v24 = vpop.f32.mrf.mxu0  ;;  %v2315_v6 = vpop.f32.mrf.mxu1 }
 0x30e   :  { %v10728_v29 = vadd.f32 %v2315_v6, %v1931_v56  ;;  %v14728_v24 = vld [vmem:[#allocation31_spill] sm:$0xff] }
 0x30f   :  { %v7704_v2 = vpop.f32.mrf.mxu0  ;;  %v2317_v54 = vpop.f32.mrf.mxu1 }
 0x310   :  { %14721 = vst [vmem:[#allocation20_spill] sm:$0xff] %v10728_v29  ;;  %v10731_v63 = vadd.f32 %v7704_v2, %v14722_v40 }
 0x311   :  { %v2385_v23 = vpop.f32.mrf.mxu0 }
 0x312   :  { %14723 = vst [vmem:[#allocation21_spill] sm:$0xff] %v10731_v63  ;;  %v10734_v9 = vadd.f32 %v2385_v23, %v14724_v16  ;;  %v2776_v21 = vmul.f32 %v10731_v63, %v10731_v63 }
 0x313   :  { %v7707_v27 = vpop.f32.mrf.mxu0 }
 0x314   :  { %14725 = vst [vmem:[#allocation22_spill] sm:$0xff] %v10734_v9  ;;  %v2775_v11 = vmul.f32 %v10734_v9, %v10734_v9  ;;  %v10739_v49 = vadd.f32 %v7707_v27, %v14726_v26  ;;  %v2706_v56 = vadd.f32 %v10731_v63, %v10734_v9  ;;  %v14732_v63 = vld [vmem:[#allocation33_spill] sm:$0xff] }
 0x315   :  { %v2395_v8 = vpop.f32.mrf.mxu0 }
 0x316   :  { %14727 = vst [vmem:[#allocation23_spill] sm:$0xff] %v10739_v49  ;;  %v10746_v40 = vadd.f32 %v2395_v8, %v14728_v24  ;;  %v2839_v2 = vadd.f32 %v2776_v21, %v2775_v11  ;;  %v2778_v16 = vmul.f32 %v10739_v49, %v10739_v49 }
 0x317   :  { %v7710_v6 = vpop.f32.mrf.mxu0 }
 0x318   :  { %14729 = vst [vmem:[#allocation24_spill] sm:$0xff] %v10746_v40  ;;  %v2707_v54 = vadd.f32 %v2706_v56, %v10746_v40  ;;  %v2777_v23 = vmul.f32 %v10746_v40, %v10746_v40  ;;  %v10755_v31 = vadd.f32 %v7710_v6, %v14730_v14  ;;  %v14734_v40 = vld [vmem:[#allocation36_spill] sm:$0xff]  ;;  %v14735_v6 = vld [vmem:[#allocation35_spill] sm:$0xff] }
 0x319   :  { %v2405_v27 = vpop.f32.mrf.mxu0 }
 0x31a   :  { %v2708_v26 = vadd.f32 %v2707_v54, %v10739_v49  ;;  %v2840_v29 = vadd.f32 %v2839_v2, %v2777_v23  ;;  %14731 = vst [vmem:[#allocation25_spill] sm:$0xff] %v10755_v31  ;;  %v10758_v8 = vadd.f32 %v2405_v27, %v14732_v63  ;;  %v10769_v2 = vld [vmem:[%s14526_s1] sm:$0xff]  ;;  %v2780_v63 = vmul.f32 %v10755_v31, %v10755_v31 }
 0x31b   :  { %v7713_v24 = vpop.f32.mrf.mxu0  ;;  %7829 = vmatpush3.msra.mxu1 %v10769_v2 }
 0x31c   :  { %14733 = vst [vmem:[#allocation26_spill] sm:$0xff] %v10758_v8  ;;  %v2841_v11 = vadd.f32 %v2840_v29, %v2778_v16  ;;  %v2709_v21 = vadd.f32 %v2708_v26, %v10758_v8  ;;  %v2779_v56 = vmul.f32 %v10758_v8, %v10758_v8  ;;  %v10764_v9 = vadd.f32 %v7713_v24, %v14734_v40 }
 0x31d   :  { %v2415_v32 = vpop.f32.mrf.mxu0  ;;  %7833 = vmatprep.subr.mxu1 %v10434_v4 }
 0x31e   :  { %v2842_v14 = vadd.f32 %v2841_v11, %v2779_v56  ;;  %v10774_v29 = vadd.f32 %v2415_v32, %v14735_v6  ;;  %v2710_v54 = vadd.f32 %v2709_v21, %v10755_v31  ;;  %v2782_v32 = vmul.f32 %v10764_v9, %v10764_v9  ;;  %v14737_v11 = vld [vmem:[#allocation38_spill] sm:$0xff]  ;;  %v14738_v56 = vld [vmem:[#allocation37_spill] sm:$0xff] }
 0x31f   :  { %v7716_v23 = vpop.f32.mrf.mxu0 }
 0x320   :  { %14736 = vst [vmem:[#allocation27_spill] sm:$0xff] %v10774_v29  ;;  %v2711_v40 = vadd.f32 %v2710_v54, %v10774_v29  ;;  %v2781_v16 = vmul.f32 %v10774_v29, %v10774_v29  ;;  %v2843_v27 = vadd.f32 %v2842_v14, %v2780_v63  ;;  %v10787_v21 = vadd.f32 %v7716_v23, %v14737_v11  ;;  %v14740_v29 = vld [vmem:[#allocation40_spill] sm:$0xff] }
 0x321   :  { %v2425_v26 = vpop.f32.mrf.mxu0 }
 0x322   :  { %v2844_v24 = vadd.f32 %v2843_v27, %v2781_v16  ;;  %v10790_v6 = vadd.f32 %v2425_v26, %v14738_v56  ;;  %v2712_v54 = vadd.f32 %v2711_v40, %v10764_v9  ;;  %v2784_v23 = vmul.f32 %v10787_v21, %v10787_v21  ;;  %v14741_v27 = vld [vmem:[#allocation39_spill] sm:$0xff] }
 0x323   :  { %v7719_v31 = vpop.f32.mrf.mxu0 }
 0x324   :  { %14739 = vst [vmem:[#allocation28_spill] sm:$0xff] %v10790_v6  ;;  %v2713_v63 = vadd.f32 %v2712_v54, %v10790_v6  ;;  %v2783_v14 = vmul.f32 %v10790_v6, %v10790_v6  ;;  %v2845_v4 = vadd.f32 %v2844_v24, %v2782_v32  ;;  %v10797_v8 = vadd.f32 %v7719_v31, %v14740_v29 }
 0x325   :  { %v2435_v49 = vpop.f32.mrf.mxu0 }
 0x326   :  { %v2846_v16 = vadd.f32 %v2845_v4, %v2783_v14  ;;  %v10802_v26 = vadd.f32 %v2435_v49, %v14741_v27  ;;  %v2714_v40 = vadd.f32 %v2713_v63, %v10787_v21  ;;  %v2786_v31 = vmul.f32 %v10797_v8, %v10797_v8  ;;  %v14743_v14 = vld [vmem:[#allocation41_spill] sm:$0xff] }
 0x327   :  { %v7722_v11 = vpop.f32.mrf.mxu0 }
 0x328   :  { %14742 = vst [vmem:[#allocation30_spill] sm:$0xff] %v10802_v26  ;;  %v2715_v56 = vadd.f32 %v2714_v40, %v10802_v26  ;;  %v2785_v54 = vmul.f32 %v10802_v26, %v10802_v26  ;;  %v2847_v32 = vadd.f32 %v2846_v16, %v2784_v23  ;;  %v10811_v6 = vadd.f32 %v7722_v11, %v10351_v38 }
 0x329   :  { %v2445_v29 = vpop.f32.mrf.mxu0 }
 0x32a   :  { %v2848_v24 = vadd.f32 %v2847_v32, %v2785_v54  ;;  %v10814_v49 = vadd.f32 %v2445_v29, %v14743_v14  ;;  %v2716_v63 = vadd.f32 %v2715_v56, %v10797_v8  ;;  %v2788_v38 = vmul.f32 %v10811_v6, %v10811_v6  ;;  %v14745_v54 = vld [vmem:[#allocation42_spill] sm:$0xff] }
 0x32b   :  { %v7725_v4 = vpop.f32.mrf.mxu0 }
 0x32c   :  { %14744 = vst [vmem:[#allocation29_spill] sm:$0xff] %v10814_v49  ;;  %v2717_v27 = vadd.f32 %v2716_v63, %v10814_v49  ;;  %v2787_v40 = vmul.f32 %v10814_v49, %v10814_v49  ;;  %v2849_v23 = vadd.f32 %v2848_v24, %v2786_v31  ;;  %v10821_v16 = vadd.f32 %v7725_v4, %v10376_v15 }
 0x32d   :  { %v2455_v26 = vpop.f32.mrf.mxu0 }
 0x32e   :  { %v2850_v11 = vadd.f32 %v2849_v23, %v2787_v40  ;;  %v10826_v32 = vadd.f32 %v2455_v26, %v14745_v54  ;;  %v2718_v56 = vadd.f32 %v2717_v27, %v10811_v6  ;;  %v2790_v15 = vmul.f32 %v10821_v16, %v10821_v16 }
 0x32f   :  { %v7728_v29 = vpop.f32.mrf.mxu0 }
 0x330   :  { %14746 = vst [vmem:[#allocation32_spill] sm:$0xff] %v10826_v32  ;;  %v2719_v14 = vadd.f32 %v2718_v56, %v10826_v32  ;;  %v2789_v63 = vmul.f32 %v10826_v32, %v10826_v32  ;;  %v2851_v31 = vadd.f32 %v2850_v11, %v2788_v38  ;;  %v10835_v49 = vadd.f32 %v7728_v29, %v10398_v28  ;;  %v4138_v32 = vld [vmem:[#allocation3 + $0x228] sm:$0xff] }
 0x331   :  { %v2465_v24 = vpop.f32.mrf.mxu0 }
 0x332   :  { %v2852_v4 = vadd.f32 %v2851_v31, %v2789_v63  ;;  %v10838_v26 = vadd.f32 %v2465_v24, %v10385_v5  ;;  %v2720_v27 = vadd.f32 %v2719_v14, %v10821_v16  ;;  %v2792_v28 = vmul.f32 %v10835_v49, %v10835_v49 }
 0x333   :  { %v7731_v40 = vpop.f32.mrf.mxu0 }
 0x334   :  { %v2721_v23 = vadd.f32 %v2720_v27, %v10838_v26  ;;  %v2791_v54 = vmul.f32 %v10838_v26, %v10838_v26  ;;  %v2853_v38 = vadd.f32 %v2852_v4, %v2790_v15  ;;  %v10845_v11 = vadd.f32 %v7731_v40, %v10416_v55 }
 0x335   :  { %v2475_v56 = vpop.f32.mrf.mxu0 }
 0x336   :  { %v2854_v29 = vadd.f32 %v2853_v38, %v2791_v54  ;;  %v10850_v5 = vadd.f32 %v2475_v56, %v10407_v50  ;;  %v2722_v14 = vadd.f32 %v2721_v23, %v10835_v49  ;;  %v2794_v55 = vmul.f32 %v10845_v11, %v10845_v11 }
 0x337   :  { %v7734_v63 = vpop.f32.mrf.mxu0 }
 0x338   :  { %v2723_v31 = vadd.f32 %v2722_v14, %v10850_v5  ;;  %v2793_v24 = vmul.f32 %v10850_v5, %v10850_v5  ;;  %v2855_v15 = vadd.f32 %v2854_v29, %v2792_v28  ;;  %v10859_v40 = vadd.f32 %v7734_v63, %v10440_v0 }
 0x339   :  { %v2485_v4 = vpop.f32.mrf.mxu0 }
 0x33a   :  { %v2856_v27 = vadd.f32 %v2855_v15, %v2793_v24  ;;  %v10862_v50 = vadd.f32 %v2485_v4, %v10425_v25  ;;  %v2724_v23 = vadd.f32 %v2723_v31, %v10845_v11  ;;  %v2796_v0 = vmul.f32 %v10859_v40, %v10859_v40 }
 0x33b   :  { %v7737_v54 = vpop.f32.mrf.mxu0 }
 0x33c   :  { %v2725_v38 = vadd.f32 %v2724_v23, %v10862_v50  ;;  %v2795_v56 = vmul.f32 %v10862_v50, %v10862_v50  ;;  %v2857_v28 = vadd.f32 %v2856_v27, %v2794_v55  ;;  %v10869_v29 = vadd.f32 %v7737_v54, %v10458_v58 }
 0x33d   :  { %v2495_v14 = vpop.f32.mrf.mxu0 }
 0x33e   :  { %v2858_v63 = vadd.f32 %v2857_v28, %v2795_v56  ;;  %v10874_v25 = vadd.f32 %v2495_v14, %v10449_v43  ;;  %v2726_v31 = vadd.f32 %v2725_v38, %v10859_v40  ;;  %v2798_v58 = vmul.f32 %v10869_v29, %v10869_v29 }
 0x33f   :  { %v7740_v24 = vpop.f32.mrf.mxu0 }
 0x340   :  { %v2727_v15 = vadd.f32 %v2726_v31, %v10874_v25  ;;  %v2797_v4 = vmul.f32 %v10874_v25, %v10874_v25  ;;  %v2859_v55 = vadd.f32 %v2858_v63, %v2796_v0  ;;  %v10883_v54 = vadd.f32 %v7740_v24, %v10480_v57 }
 0x341   :  { %v2505_v27 = vpop.f32.mrf.mxu0 }
 0x342   :  { %v2860_v23 = vadd.f32 %v2859_v55, %v2797_v4  ;;  %v10886_v43 = vadd.f32 %v2505_v27, %v10467_v46  ;;  %v2728_v38 = vadd.f32 %v2727_v15, %v10869_v29  ;;  %v2800_v57 = vmul.f32 %v10883_v54, %v10883_v54 }
 0x343   :  { %v7743_v56 = vpop.f32.mrf.mxu0 }
 0x344   :  { %v2729_v28 = vadd.f32 %v2728_v38, %v10886_v43  ;;  %v2799_v14 = vmul.f32 %v10886_v43, %v10886_v43  ;;  %v2861_v0 = vadd.f32 %v2860_v23, %v2798_v58  ;;  %v10893_v63 = vadd.f32 %v7743_v56, %v10498_v48 }
 0x345   :  { %v2515_v31 = vpop.f32.mrf.mxu0 }
 0x346   :  { %v2862_v24 = vadd.f32 %v2861_v0, %v2799_v14  ;;  %v10898_v46 = vadd.f32 %v2515_v31, %v10489_v61  ;;  %v2730_v15 = vadd.f32 %v2729_v28, %v10883_v54  ;;  %v2802_v48 = vmul.f32 %v10893_v63, %v10893_v63 }
 0x347   :  { %v7746_v4 = vpop.f32.mrf.mxu0 }
 0x348   :  { %v2731_v55 = vadd.f32 %v2730_v15, %v10898_v46  ;;  %v2801_v27 = vmul.f32 %v10898_v46, %v10898_v46  ;;  %v2863_v58 = vadd.f32 %v2862_v24, %v2800_v57  ;;  %v10907_v56 = vadd.f32 %v7746_v4, %v10520_v36 }
 0x349   :  { %v2525_v23 = vpop.f32.mrf.mxu0 }
 0x34a   :  { %v2864_v38 = vadd.f32 %v2863_v58, %v2801_v27  ;;  %v10910_v61 = vadd.f32 %v2525_v23, %v10507_v37  ;;  %v2732_v28 = vadd.f32 %v2731_v55, %v10893_v63  ;;  %v2804_v36 = vmul.f32 %v10907_v56, %v10907_v56 }
 0x34b   :  { %v7749_v14 = vpop.f32.mrf.mxu0 }
 0x34c   :  { %v2733_v0 = vadd.f32 %v2732_v28, %v10910_v61  ;;  %v2803_v31 = vmul.f32 %v10910_v61, %v10910_v61  ;;  %v2865_v57 = vadd.f32 %v2864_v38, %v2802_v48  ;;  %v10917_v24 = vadd.f32 %v7749_v14, %v10538_v44 }
 0x34d   :  { %v2535_v15 = vpop.f32.mrf.mxu0 }
 0x34e   :  { %v2866_v4 = vadd.f32 %v2865_v57, %v2803_v31  ;;  %v10922_v37 = vadd.f32 %v2535_v15, %v10529_v20  ;;  %v2734_v55 = vadd.f32 %v2733_v0, %v10907_v56  ;;  %v2806_v44 = vmul.f32 %v10917_v24, %v10917_v24 }
 0x34f   :  { %v7752_v27 = vpop.f32.mrf.mxu0 }
 0x350   :  { %v2735_v58 = vadd.f32 %v2734_v55, %v10922_v37  ;;  %v2805_v23 = vmul.f32 %v10922_v37, %v10922_v37  ;;  %v2867_v48 = vadd.f32 %v2866_v4, %v2804_v36  ;;  %v10931_v14 = vadd.f32 %v7752_v27, %v10556_v1 }
 0x351   :  { %v2545_v38 = vpop.f32.mrf.mxu0 }
 0x352   :  { %v2868_v28 = vadd.f32 %v2867_v48, %v2805_v23  ;;  %v10934_v20 = vadd.f32 %v2545_v38, %v10547_v13  ;;  %v2736_v0 = vadd.f32 %v2735_v58, %v10917_v24  ;;  %v2808_v1 = vmul.f32 %v10931_v14, %v10931_v14 }
 0x353   :  { %v7755_v31 = vpop.f32.mrf.mxu0 }
 0x354   :  { %v2737_v57 = vadd.f32 %v2736_v0, %v10934_v20  ;;  %v2807_v15 = vmul.f32 %v10934_v20, %v10934_v20  ;;  %v2869_v36 = vadd.f32 %v2868_v28, %v2806_v44  ;;  %v10941_v4 = vadd.f32 %v7755_v31, %v10575_v47 }
 0x355   :  { %v2555_v55 = vpop.f32.mrf.mxu0 }
 0x356   :  { %v2870_v27 = vadd.f32 %v2869_v36, %v2807_v15  ;;  %v10946_v13 = vadd.f32 %v2555_v55, %v10569_v30  ;;  %v2738_v58 = vadd.f32 %v2737_v57, %v10931_v14  ;;  %v2810_v47 = vmul.f32 %v10941_v4, %v10941_v4 }
 0x357   :  { %v7758_v23 = vpop.f32.mrf.mxu0 }
 0x358   :  { %v2739_v48 = vadd.f32 %v2738_v58, %v10946_v13  ;;  %v2809_v38 = vmul.f32 %v10946_v13, %v10946_v13  ;;  %v2871_v44 = vadd.f32 %v2870_v27, %v2808_v1  ;;  %v10955_v31 = vadd.f32 %v7758_v23, %v10584_v33 }
 0x359   :  { %v2565_v28 = vpop.f32.mrf.mxu0 }
 0x35a   :  { %v2872_v0 = vadd.f32 %v2871_v44, %v2809_v38  ;;  %v10958_v30 = vadd.f32 %v2565_v28, %v10579_v3  ;;  %v2740_v57 = vadd.f32 %v2739_v48, %v10941_v4  ;;  %v2812_v33 = vmul.f32 %v10955_v31, %v10955_v31 }
 0x35b   :  { %v7761_v15 = vpop.f32.mrf.mxu0 }
 0x35c   :  { %v2741_v36 = vadd.f32 %v2740_v57, %v10958_v30  ;;  %v2811_v55 = vmul.f32 %v10958_v30, %v10958_v30  ;;  %v2873_v1 = vadd.f32 %v2872_v0, %v2810_v47  ;;  %v10965_v27 = vadd.f32 %v7761_v15, %v10598_v59 }
 0x35d   :  { %v2575_v58 = vpop.f32.mrf.mxu0 }
 0x35e   :  { %v2874_v23 = vadd.f32 %v2873_v1, %v2811_v55  ;;  %v10970_v3 = vadd.f32 %v2575_v58, %v10593_v53  ;;  %v2742_v48 = vadd.f32 %v2741_v36, %v10955_v31  ;;  %v2814_v59 = vmul.f32 %v10965_v27, %v10965_v27 }
 0x35f   :  { %v7764_v38 = vpop.f32.mrf.mxu0 }
 0x360   :  { %v2743_v44 = vadd.f32 %v2742_v48, %v10970_v3  ;;  %v2813_v28 = vmul.f32 %v10970_v3, %v10970_v3  ;;  %v2875_v47 = vadd.f32 %v2874_v23, %v2812_v33  ;;  %v10979_v15 = vadd.f32 %v7764_v38, %v10608_v18 }
 0x361   :  { %v2585_v0 = vpop.f32.mrf.mxu0 }
 0x362   :  { %v2876_v57 = vadd.f32 %v2875_v47, %v2813_v28  ;;  %14747 = vst [vmem:[#allocation31_spill] sm:$0xff] %v10979_v15  ;;  %v10982_v53 = vadd.f32 %v2585_v0, %v10603_v12  ;;  %v2744_v36 = vadd.f32 %v2743_v44, %v10965_v27  ;;  %v2816_v18 = vmul.f32 %v10979_v15, %v10979_v15 }
 0x363   :  { %v7767_v55 = vpop.f32.mrf.mxu0 }
 0x364   :  { %v2745_v1 = vadd.f32 %v2744_v36, %v10982_v53  ;;  %v2815_v58 = vmul.f32 %v10982_v53, %v10982_v53  ;;  %v2877_v33 = vadd.f32 %v2876_v57, %v2814_v59  ;;  %v10989_v23 = vadd.f32 %v7767_v55, %v10622_v22 }
 0x365   :  { %v2595_v48 = vpop.f32.mrf.mxu0 }
 0x366   :  { %v2878_v38 = vadd.f32 %v2877_v33, %v2815_v58  ;;  %v10994_v12 = vadd.f32 %v2595_v48, %v10617_v51  ;;  %v2746_v44 = vadd.f32 %v2745_v1, %v10979_v15  ;;  %v2818_v22 = vmul.f32 %v10989_v23, %v10989_v23 }
 0x367   :  { %v7770_v28 = vpop.f32.mrf.mxu0 }
 0x368   :  { %v2747_v47 = vadd.f32 %v2746_v44, %v10994_v12  ;;  %v2817_v0 = vmul.f32 %v10994_v12, %v10994_v12  ;;  %v2879_v59 = vadd.f32 %v2878_v38, %v2816_v18  ;;  %v11003_v55 = vadd.f32 %v7770_v28, %v10635_v19 }
 0x369   :  { %v2605_v57 = vpop.f32.mrf.mxu0 }
 0x36a   :  { %v2880_v36 = vadd.f32 %v2879_v59, %v2817_v0  ;;  %14748 = vst [vmem:[#allocation34_spill] sm:$0xff] %v11003_v55  ;;  %v11006_v51 = vadd.f32 %v2605_v57, %v10627_v41  ;;  %v2748_v1 = vadd.f32 %v2747_v47, %v10989_v23  ;;  %v2820_v19 = vmul.f32 %v11003_v55, %v11003_v55 }
 0x36b   :  { %v7773_v58 = vpop.f32.mrf.mxu0 }
 0x36c   :  { %14749 = vst [vmem:[#allocation33_spill] sm:$0xff] %v11006_v51  ;;  %v2749_v33 = vadd.f32 %v2748_v1, %v11006_v51  ;;  %v2819_v48 = vmul.f32 %v11006_v51, %v11006_v51  ;;  %v2881_v18 = vadd.f32 %v2880_v36, %v2818_v22  ;;  %v11013_v38 = vadd.f32 %v7773_v58, %v10652_v60 }
 0x36d   :  { %v2615_v44 = vpop.f32.mrf.mxu0 }
 0x36e   :  { %14750 = vst [vmem:[#allocation36_spill] sm:$0xff] %v11013_v38  ;;  %v2882_v28 = vadd.f32 %v2881_v18, %v2819_v48  ;;  %v11018_v41 = vadd.f32 %v2615_v44, %v10649_v34  ;;  %v2750_v47 = vadd.f32 %v2749_v33, %v11003_v55  ;;  %v2822_v60 = vmul.f32 %v11013_v38, %v11013_v38 }
 0x36f   :  { %v7776_v0 = vpop.f32.mrf.mxu0 }
 0x370   :  { %14751 = vst [vmem:[#allocation35_spill] sm:$0xff] %v11018_v41  ;;  %v2751_v59 = vadd.f32 %v2750_v47, %v11018_v41  ;;  %v2821_v57 = vmul.f32 %v11018_v41, %v11018_v41  ;;  %v2883_v22 = vadd.f32 %v2882_v28, %v2820_v19  ;;  %v11027_v58 = vadd.f32 %v7776_v0, %v10658_v52 }
 0x371   :  { %v2625_v36 = vpop.f32.mrf.mxu0 }
 0x372   :  { %v2884_v1 = vadd.f32 %v2883_v22, %v2821_v57  ;;  %14752 = vst [vmem:[#allocation38_spill] sm:$0xff] %v11027_v58  ;;  %v11030_v34 = vadd.f32 %v2625_v36, %v10655_v62  ;;  %v2752_v33 = vadd.f32 %v2751_v59, %v11013_v38  ;;  %v2824_v52 = vmul.f32 %v11027_v58, %v11027_v58 }
 0x373   :  { %v7779_v48 = vpop.f32.mrf.mxu0 }
 0x374   :  { %14753 = vst [vmem:[#allocation37_spill] sm:$0xff] %v11030_v34  ;;  %v2753_v18 = vadd.f32 %v2752_v33, %v11030_v34  ;;  %v2823_v44 = vmul.f32 %v11030_v34, %v11030_v34  ;;  %v2885_v19 = vadd.f32 %v2884_v1, %v2822_v60  ;;  %v11037_v28 = vadd.f32 %v7779_v48, %v10671_v17 }
 0x375   :  { %v2635_v47 = vpop.f32.mrf.mxu0 }
 0x376   :  { %14754 = vst [vmem:[#allocation40_spill] sm:$0xff] %v11037_v28  ;;  %v2886_v0 = vadd.f32 %v2885_v19, %v2823_v44  ;;  %v11042_v62 = vadd.f32 %v2635_v47, %v10668_v42  ;;  %v2754_v59 = vadd.f32 %v2753_v18, %v11027_v58  ;;  %v2826_v17 = vmul.f32 %v11037_v28, %v11037_v28 }
 0x377   :  { %v7782_v57 = vpop.f32.mrf.mxu0 }
 0x378   :  { %v2755_v22 = vadd.f32 %v2754_v59, %v11042_v62  ;;  %v2825_v36 = vmul.f32 %v11042_v62, %v11042_v62  ;;  %v2887_v60 = vadd.f32 %v2886_v0, %v2824_v52  ;;  %v11051_v48 = vadd.f32 %v7782_v57, %v10677_v7 }
 0x379   :  { %v2645_v1 = vpop.f32.mrf.mxu0 }
 0x37a   :  { %v2888_v33 = vadd.f32 %v2887_v60, %v2825_v36  ;;  %14755 = vst [vmem:[#allocation39_spill] sm:$0xff] %v11051_v48  ;;  %v11054_v42 = vadd.f32 %v2645_v1, %v10674_v39  ;;  %v2756_v18 = vadd.f32 %v2755_v22, %v11037_v28  ;;  %v2828_v59 = vmul.f32 %v11051_v48, %v11051_v48 }
 0x37b   :  { %v7785_v44 = vpop.f32.mrf.mxu0 }
 0x37c   :  { %14756 = vst [vmem:[#allocation41_spill] sm:$0xff] %v11054_v42  ;;  %v2757_v19 = vadd.f32 %v2756_v18, %v11054_v42  ;;  %v2827_v47 = vmul.f32 %v11054_v42, %v11054_v42  ;;  %v2889_v52 = vadd.f32 %v2888_v33, %v2826_v17  ;;  %v11067_v22 = vadd.f32 %v7785_v44, %v10690_v45 }
 0x37d   :  { %v2655_v0 = vpop.f32.mrf.mxu0 }
 0x37e   :  { %v2890_v36 = vadd.f32 %v2889_v52, %v2827_v47  ;;  %v11063_v7 = vadd.f32 %v2655_v0, %v10687_v35  ;;  %v2758_v39 = vadd.f32 %v2757_v19, %v11051_v48  ;;  %14758 = vst [vmem:[#allocation43_spill] sm:$0xff] %v11067_v22  ;;  %v2830_v19 = vmul.f32 %v11067_v22, %v11067_v22  ;;  %v14760_v52 = vld [vmem:[#allocation12_spill] sm:$0xff] }
 0x37f   :  { %v7788_v57 = vpop.f32.mrf.mxu0 }
 0x380   :  { %14757 = vst [vmem:[#allocation42_spill] sm:$0xff] %v11063_v7  ;;  %v2759_v60 = vadd.f32 %v2758_v39, %v11063_v7  ;;  %v2829_v1 = vmul.f32 %v11063_v7, %v11063_v7  ;;  %v2891_v17 = vadd.f32 %v2890_v36, %v2828_v59  ;;  %v11079_v45 = vadd.f32 %v7788_v57, %v14760_v52  ;;  %v14762_v39 = vld [vmem:[#allocation14_spill] sm:$0xff]  ;;  %v14765_v7 = vld [vmem:[#allocation16_spill] sm:$0xff] }
 0x381   :  { %v2665_v33 = vpop.f32.mrf.mxu0  ;;  %v14786_v41 = vld [vmem:[#allocation39_spill] sm:$0xff] }
 0x382   :  { %v2892_v18 = vadd.f32 %v2891_v17, %v2829_v1  ;;  %v11073_v42 = vadd.f32 %v2665_v33, %v10693_v10  ;;  %v2760_v35 = vadd.f32 %v2759_v60, %v11067_v22  ;;  %14761 = vst [vmem:[#allocation12_spill] sm:$0xff] %v11079_v45  ;;  %v14764_v17 = vld [vmem:[#allocation15_spill] sm:$0xff] }
 0x383   :  { %v7791_v47 = vpop.f32.mrf.mxu0 }
 0x384   :  { %14759 = vst [vmem:[#allocation44_spill] sm:$0xff] %v11073_v42  ;;  %v2761_v44 = vadd.f32 %v2760_v35, %v11073_v42  ;;  %v2831_v59 = vmul.f32 %v11073_v42, %v11073_v42  ;;  %v2893_v36 = vadd.f32 %v2892_v18, %v2830_v19  ;;  %v11089_v33 = vadd.f32 %v7791_v47, %v14764_v17  ;;  %v14766_v19 = vld [vmem:[#allocation17_spill] sm:$0xff] }
 0x385   :  { %v2675_v0 = vpop.f32.mrf.mxu0  ;;  %v2832_v18 = vmul.f32 %v11079_v45, %v11079_v45  ;;  %v14788_v34 = vld [vmem:[#allocation43_spill] sm:$0xff] }
 0x386   :  { %v11085_v1 = vadd.f32 %v2675_v0, %v14762_v39  ;;  %v2762_v10 = vadd.f32 %v2761_v44, %v11079_v45  ;;  %v2894_v52 = vadd.f32 %v2893_v36, %v2831_v59  ;;  %v14767_v59 = vld [vmem:[#allocation19_spill] sm:$0xff] }
 0x387   :  { %v7794_v60 = vpop.f32.mrf.mxu0  ;;  %v14787_v38 = vld [vmem:[#allocation42_spill] sm:$0xff] }
 0x388   :  { %14763 = vst [vmem:[#allocation14_spill] sm:$0xff] %v11085_v1  ;;  %v2763_v22 = vadd.f32 %v2762_v10, %v11085_v1  ;;  %v11099_v0 = vadd.f32 %v7794_v60, %v14766_v19  ;;  %v2833_v39 = vmul.f32 %v11085_v1, %v11085_v1  ;;  %v2895_v10 = vadd.f32 %v2894_v52, %v2832_v18 }
 0x389   :  { %v2685_v57 = vpop.f32.mrf.mxu0 }
 0x38a   :  { %v11093_v35 = vadd.f32 %v2685_v57, %v14765_v7  ;;  %v2764_v48 = vadd.f32 %v2763_v22, %v11089_v33  ;;  %v14768_v22 = vld [vmem:[#allocation20_spill] sm:$0xff]  ;;  %v2896_v45 = vadd.f32 %v2895_v10, %v2833_v39 }
 0x38b   :  { %v7797_v42 = vpop.f32.mrf.mxu0  ;;  %v14789_v58 = vld [vmem:[#allocation44_spill] sm:$0xff] }
 0x38c   :  { %v2765_v44 = vadd.f32 %v2764_v48, %v11093_v35  ;;  %v11109_v17 = vadd.f32 %v7797_v42, %v14768_v22  ;;  %v2834_v48 = vmul.f32 %v11089_v33, %v11089_v33  ;;  %v2835_v52 = vmul.f32 %v11093_v35, %v11093_v35 }
 0x38d   :  { %v2695_v47 = vpop.f32.mrf.mxu0  ;;  %v2836_v42 = vmul.f32 %v11099_v0, %v11099_v0 }
 0x38e   :  { %v11105_v36 = vadd.f32 %v2695_v47, %v14767_v59  ;;  %v2766_v7 = vadd.f32 %v2765_v44, %v11099_v0  ;;  %v2897_v18 = vadd.f32 %v2896_v45, %v2834_v48  ;;  %v11124_v45 = vld [vmem:[#allocation2 + $0x8] sm:$0xff]  ;;  %v8082_v48 = vld [vmem:[%s14526_s1 + $0x70] sm:$0xff] }
 0x38f   :  { %v14791_v55 = vld [vmem:[#allocation14_spill] sm:$0xff] }
 0x390   :  { %v2767_v57 = vadd.f32 %v2766_v7, %v11105_v36  ;;  %v2898_v1 = vadd.f32 %v2897_v18, %v2835_v52  ;;  %v2837_v39 = vmul.f32 %v11105_v36, %v11105_v36  ;;  %v8084_v18 = vld [vmem:[%s14526_s1 + $0x60] sm:$0xff] }
 0x392   :  { %v2768_v60 = vadd.f32 %v2767_v57, %v11109_v17  ;;  %v2899_v10 = vadd.f32 %v2898_v1, %v2836_v42  ;;  %v8080_v57 = vld [vmem:[%s14526_s1 + $0x78] sm:$0xff]  ;;  %v2838_v1 = vmul.f32 %v11109_v17, %v11109_v17  ;;  %v8087_v42 = vld [vmem:[%s14526_s1 + $0x48] sm:$0xff] }
 0x394   :  { %v2769_v19 = vrot.slane %v2768_v60, 4 }
 0x396   :  { %v2770_v47 = vadd.f32 %v2769_v19, %v2768_v60  ;;  %v2900_v60 = vadd.f32 %v2899_v10, %v2837_v39  ;;  %v8083_v19 = vld [vmem:[%s14526_s1 + $0x68] sm:$0xff]  ;;  %v8089_v39 = vld [vmem:[%s14526_s1 + $0x38] sm:$0xff] }
 0x398   :  { %v2771_v59 = vrot.slane %v2770_v47, 2  ;;  %v2901_v52 = vadd.f32 %v2900_v60, %v2838_v1  ;;  %v14769_v60 = vld [vmem:[#allocation9_spill] sm:$0xff]  ;;  %v14770_v1 = vld [vmem:[#allocation10_spill] sm:$0xff] }
 0x39a   :  { %v2772_v44 = vadd.f32 %v2771_v59, %v2770_v47  ;;  %v8085_v47 = vld [vmem:[%s14526_s1 + $0x58] sm:$0xff]  ;;  %v2902_v59 = vrot.slane %v2901_v52, 4 }
 0x39c   :  { %v2773_v22 = vrot.slane %v2772_v44, 1 }
 0x39e   :  { %v2774_v7 = vadd.f32 %v2773_v22, %v2772_v44  ;;  %v8086_v44 = vld [vmem:[%s14526_s1 + $0x50] sm:$0xff]  ;;  %v2903_v22 = vadd.f32 %v2902_v59, %v2901_v52 }
 0x3a0   :  { %7831 = vmatmul.mubr.f32.vlgmr.msra.gmra.mxu1 %v2774_v7  ;;  %v8088_v7 = vld [vmem:[%s14526_s1 + $0x40] sm:$0xff]  ;;  %v2904_v10 = vrot.slane %v2903_v22, 2 }
 0x3a1   :  { %7834 = vmatpush3.msra.mxu1 %v8080_v57  ;;  %7865 = vmatprep.mubr.msk.f32.mxu1 %vm8154_vm0, %v11124_v45  ;;  %v8090_v57 = vld [vmem:[%s14526_s1 + $0x30] sm:$0xff] }
 0x3a2   :  { %7835 = vmatprep.subr.mxu1 %v11124_v45 }
 0x3a3   :  { %7836 = vmatpush3.msra.mxu1 %v8082_v48  ;;  %v2905_v48 = vadd.f32 %v2904_v10, %v2903_v22  ;;  %v4082_v22 = vld [vmem:[#allocation3 + $0x68] sm:$0xff]  ;;  %v4116_v10 = vld [vmem:[#allocation3 + $0x178] sm:$0xff] }
 0x3a4   :  { %7837 = vmatprep.subr.mxu1 %v11124_v45  ;;  %4605 = vmatpush1.msra.mxu0 %v4116_v10  ;;  %v4108_v10 = vld [vmem:[#allocation3 + $0x138] sm:$0xff] }
 0x3a5   :  { %7838 = vmatpush3.msra.mxu1 %v8083_v19  ;;  %v14771_v19 = vld [vmem:[#allocation11_spill] sm:$0xff]  ;;  %v2906_v52 = vrot.slane %v2905_v48, 1  ;;  %4606 = vmatprep.subr.mxu0 %v11124_v45 }
 0x3a6   :  { %7839 = vmatprep.subr.mxu1 %v11124_v45 }
 0x3a7   :  { %7840 = vmatpush3.msra.mxu1 %v8084_v18  ;;  %v14772_v18 = vld [vmem:[#allocation13_spill] sm:$0xff]  ;;  %v2907_v59 = vadd.f32 %v2906_v52, %v2905_v48 }
 0x3a8   :  { %7841 = vmatprep.subr.mxu1 %v11124_v45  ;;  %v4077_v48 = vld [vmem:[#allocation3 + $0x40] sm:$0xff] }
 0x3a9   :  { %7842 = vmatpush3.msra.mxu1 %v8085_v47  ;;  %v14773_v47 = vld [vmem:[#allocation18_spill] sm:$0xff]  ;;  %v4113_v52 = vld [vmem:[#allocation3 + $0x160] sm:$0xff] }
 0x3aa   :  { %7843 = vmatprep.subr.mxu1 %v11124_v45 }
 0x3ab   :  { %7844 = vmatpush3.msra.mxu1 %v8086_v44  ;;  %v4084_v44 = vld [vmem:[#allocation3 + $0x78] sm:$0xff] }
 0x3ac   :  { %7845 = vmatprep.subr.mxu1 %v11124_v45 }
 0x3ad   :  { %7846 = vmatpush3.msra.mxu1 %v8087_v42  ;;  %v4083_v42 = vld [vmem:[#allocation3 + $0x70] sm:$0xff] }
 0x3ae   :  { %7847 = vmatprep.subr.mxu1 %v11124_v45 }
 0x3af   :  { %7848 = vmatpush3.msra.mxu1 %v8088_v7  ;;  %v4081_v7 = vld [vmem:[#allocation3 + $0x60] sm:$0xff] }
 0x3b0   :  { %7849 = vmatprep.subr.mxu1 %v11124_v45 }
 0x3b1   :  { %7850 = vmatpush3.msra.mxu1 %v8089_v39  ;;  %v4080_v39 = vld [vmem:[#allocation3 + $0x58] sm:$0xff] }
 0x3b2   :  { %7851 = vmatprep.subr.mxu1 %v11124_v45 }
 0x3b3   :  { %7852 = vmatpush3.msra.mxu1 %v8090_v57  ;;  %v4115_v57 = vld [vmem:[#allocation3 + $0x170] sm:$0xff] }
 0x3b4   :  { %7853 = vmatprep.subr.mxu1 %v11124_v45  ;;  %4607 = vmatpush1.msra.mxu0 %v4115_v57  ;;  %v4070_v57 = vld [vmem:[#allocation3 + $0x8] sm:$0xff] }
 0x3b5   :  { %7854 = vmatpush3.msra.mxu1 %v14769_v60  ;;  %v4078_v60 = vld [vmem:[#allocation3 + $0x48] sm:$0xff]  ;;  %4608 = vmatprep.subr.mxu0 %v11124_v45 }
 0x3b6   :  { %7855 = vmatprep.subr.mxu1 %v11124_v45 }
 0x3b7   :  { %7856 = vmatpush3.msra.mxu1 %v14770_v1  ;;  %v4114_v1 = vld [vmem:[#allocation3 + $0x168] sm:$0xff] }
 0x3b8   :  { %7857 = vmatprep.subr.mxu1 %v11124_v45  ;;  %4609 = vmatpush1.msra.mxu0 %v4114_v1  ;;  %v4106_v1 = vld [vmem:[#allocation3 + $0x128] sm:$0xff] }
 0x3b9   :  { %7858 = vmatpush3.msra.mxu1 %v14771_v19  ;;  %v4076_v19 = vld [vmem:[#allocation3 + $0x38] sm:$0xff]  ;;  %4610 = vmatprep.subr.mxu0 %v11124_v45 }
 0x3ba   :  { %7859 = vmatprep.subr.mxu1 %v11124_v45  ;;  %4611 = vmatpush1.msra.mxu0 %v4113_v52  ;;  %v4100_v52 = vld [vmem:[#allocation3 + $0xf8] sm:$0xff] }
 0x3bb   :  { %7860 = vmatpush3.msra.mxu1 %v14772_v18  ;;  %v4075_v18 = vld [vmem:[#allocation3 + $0x30] sm:$0xff]  ;;  %4612 = vmatprep.subr.mxu0 %v11124_v45 }
 0x3bc   :  { %7861 = vmatprep.subr.mxu1 %v11124_v45 }
 0x3bd   :  { %7862 = vmatpush3.msra.mxu1 %v14773_v47  ;;  %v4112_v47 = vld [vmem:[#allocation3 + $0x158] sm:$0xff] }
 0x3be   :  { %7863 = vmatprep.subr.mxu1 %v11124_v45  ;;  %4613 = vmatpush1.msra.mxu0 %v4112_v47  ;;  %v4098_v47 = vld [vmem:[#allocation3 + $0xe8] sm:$0xff] }
 0x3bf   :  { %7864 = vmatpush3.msra.mxu1 %v10769_v2  ;;  %v4079_v2 = vld [vmem:[#allocation3 + $0x50] sm:$0xff]  ;;  %4614 = vmatprep.subr.mxu0 %v11124_v45 }
 0x3c0   :  { %7866 = vmatmul.mubr.f32.vlgmr.msra.gmra.mxu1 %v2907_v59  ;;  %4219 = vmatprep.subr.mxu1 %v11124_v45  ;;  %v4074_v59 = vld [vmem:[#allocation3 + $0x28] sm:$0xff] }
 0x3c1   :  { %4220 = vmatpush1.msra.mxu1 %v4084_v44  ;;  %v4111_v44 = vld [vmem:[#allocation3 + $0x150] sm:$0xff] }
 0x3c2   :  { %4221 = vmatprep.subr.mxu1 %v11124_v45  ;;  %4615 = vmatpush1.msra.mxu0 %v4111_v44  ;;  %v4097_v44 = vld [vmem:[#allocation3 + $0xe0] sm:$0xff] }
 0x3c3   :  { %4222 = vmatpush1.msra.mxu1 %v4083_v42  ;;  %v4073_v42 = vld [vmem:[#allocation3 + $0x20] sm:$0xff]  ;;  %4616 = vmatprep.subr.mxu0 %v11124_v45 }
 0x3c4   :  { %4223 = vmatprep.subr.mxu1 %v11124_v45 }
 0x3c5   :  { %4224 = vmatpush1.msra.mxu1 %v4082_v22  ;;  %v4110_v22 = vld [vmem:[#allocation3 + $0x148] sm:$0xff] }
 0x3c6   :  { %4225 = vmatprep.subr.mxu1 %v11124_v45  ;;  %4617 = vmatpush1.msra.mxu0 %v4110_v22  ;;  %v4096_v22 = vld [vmem:[#allocation3 + $0xd8] sm:$0xff] }
 0x3c7   :  { %4226 = vmatpush1.msra.mxu1 %v4081_v7  ;;  %v4072_v7 = vld [vmem:[#allocation3 + $0x18] sm:$0xff]  ;;  %4618 = vmatprep.subr.mxu0 %v11124_v45 }
 0x3c8   :  { %4227 = vmatprep.subr.mxu1 %v11124_v45 }
 0x3c9   :  { %4228 = vmatpush1.msra.mxu1 %v4080_v39  ;;  %v4109_v39 = vld [vmem:[#allocation3 + $0x140] sm:$0xff] }
 0x3ca   :  { %4229 = vmatprep.subr.mxu1 %v11124_v45  ;;  %4619 = vmatpush1.msra.mxu0 %v4109_v39  ;;  %v4095_v39 = vld [vmem:[#allocation3 + $0xd0] sm:$0xff] }
 0x3cb   :  { %4230 = vmatpush1.msra.mxu1 %v4079_v2  ;;  %v4071_v2 = vld [vmem:[#allocation3 + $0x10] sm:$0xff]  ;;  %4620 = vmatprep.subr.mxu0 %v11124_v45 }
 0x3cc   :  { %4231 = vmatprep.subr.mxu1 %v11124_v45  ;;  %4621 = vmatpush1.msra.mxu0 %v4108_v10  ;;  %v4094_v10 = vld [vmem:[#allocation3 + $0xc8] sm:$0xff] }
 0x3cd   :  { %4232 = vmatpush1.msra.mxu1 %v4078_v60  ;;  %v4107_v60 = vld [vmem:[#allocation3 + $0x130] sm:$0xff]  ;;  %4622 = vmatprep.subr.mxu0 %v11124_v45 }
 0x3ce   :  { %4233 = vmatprep.subr.mxu1 %v11124_v45  ;;  %4623 = vmatpush1.msra.mxu0 %v4107_v60  ;;  %v4093_v60 = vld [vmem:[#allocation3 + $0xc0] sm:$0xff] }
 0x3cf   :  { %4234 = vmatpush1.msra.mxu1 %v4077_v48  ;;  %v4069_v48 = vld [vmem:[#allocation3] sm:$0xff]  ;;  %4624 = vmatprep.subr.mxu0 %v11124_v45 }
 0x3d0   :  { %4235 = vmatprep.subr.mxu1 %v11124_v45  ;;  %4625 = vmatpush1.msra.mxu0 %v4106_v1  ;;  %v4092_v1 = vld [vmem:[#allocation3 + $0xb8] sm:$0xff] }
 0x3d1   :  { %4236 = vmatpush1.msra.mxu1 %v4076_v19  ;;  %v4105_v19 = vld [vmem:[#allocation3 + $0x120] sm:$0xff]  ;;  %4626 = vmatprep.subr.mxu0 %v11124_v45 }
 0x3d2   :  { %4237 = vmatprep.subr.mxu1 %v11124_v45  ;;  %4627 = vmatpush1.msra.mxu0 %v4105_v19  ;;  %v4130_v19 = vld [vmem:[#allocation3 + $0x1e8] sm:$0xff] }
 0x3d3   :  { %4238 = vmatpush1.msra.mxu1 %v4075_v18  ;;  %4628 = vmatprep.subr.mxu0 %v11124_v45  ;;  %v4099_v18 = vld [vmem:[#allocation3 + $0xf0] sm:$0xff] }
 0x3d4   :  { %4239 = vmatprep.subr.mxu1 %v11124_v45 }
 0x3d5   :  { %4240 = vmatpush1.msra.mxu1 %v4074_v59  ;;  %v4104_v59 = vld [vmem:[#allocation3 + $0x118] sm:$0xff] }
 0x3d6   :  { %4241 = vmatprep.subr.mxu1 %v11124_v45  ;;  %4629 = vmatpush1.msra.mxu0 %v4104_v59  ;;  %v4128_v59 = vld [vmem:[#allocation3 + $0x1d8] sm:$0xff] }
 0x3d7   :  { %4242 = vmatpush1.msra.mxu1 %v4073_v42  ;;  %4630 = vmatprep.subr.mxu0 %v11124_v45  ;;  %v4103_v42 = vld [vmem:[#allocation3 + $0x110] sm:$0xff] }
 0x3d8   :  { %4243 = vmatprep.subr.mxu1 %v11124_v45  ;;  %4631 = vmatpush1.msra.mxu0 %v4103_v42  ;;  %v4127_v42 = vld [vmem:[#allocation3 + $0x1d0] sm:$0xff] }
 0x3d9   :  { %4244 = vmatpush1.msra.mxu1 %v4072_v7  ;;  %4632 = vmatprep.subr.mxu0 %v11124_v45  ;;  %v4102_v7 = vld [vmem:[#allocation3 + $0x108] sm:$0xff] }
 0x3da   :  { %4245 = vmatprep.subr.mxu1 %v11124_v45  ;;  %4633 = vmatpush1.msra.mxu0 %v4102_v7  ;;  %v4126_v7 = vld [vmem:[#allocation3 + $0x1c8] sm:$0xff] }
 0x3db   :  { %4246 = vmatpush1.msra.mxu1 %v4071_v2  ;;  %4634 = vmatprep.subr.mxu0 %v11124_v45  ;;  %v4101_v2 = vld [vmem:[#allocation3 + $0x100] sm:$0xff] }
 0x3dc   :  { %4247 = vmatprep.subr.mxu1 %v11124_v45  ;;  %4635 = vmatpush1.msra.mxu0 %v4101_v2  ;;  %v4125_v2 = vld [vmem:[#allocation3 + $0x1c0] sm:$0xff] }
 0x3dd   :  { %4248 = vmatpush1.msra.mxu1 %v4070_v57  ;;  %4636 = vmatprep.subr.mxu0 %v11124_v45  ;;  %v4132_v57 = vld [vmem:[#allocation3 + $0x1f8] sm:$0xff] }
 0x3de   :  { %4249 = vmatprep.subr.mxu1 %v11124_v45  ;;  %4637 = vmatpush2.msra.mxu0 %v4132_v57  ;;  %v4124_v57 = vld [vmem:[#allocation3 + $0x1b8] sm:$0xff] }
 0x3df   :  { %4250 = vmatpush1.msra.mxu1 %v4069_v48  ;;  %4638 = vmatprep.subr.mxu0 %v11124_v45  ;;  %v4131_v48 = vld [vmem:[#allocation3 + $0x1f0] sm:$0xff] }
 0x3e0   :  { %4251 = vmatprep.subr.mxu1 %v11124_v45  ;;  %4639 = vmatpush2.msra.mxu0 %v4131_v48  ;;  %v3556_v48 = vld [vmem:[#allocation2 + $0x1] sm:$0xff] }
 0x3e1   :  { %4252 = vmatpush2.msra.mxu1 %v4100_v52  ;;  %4640 = vmatprep.subr.mxu0 %v11124_v45  ;;  %v4091_v52 = vld [vmem:[#allocation3 + $0xb0] sm:$0xff] }
 0x3e2   :  { %4253 = vmatprep.subr.mxu1 %v11124_v45  ;;  %4641 = vmatpush2.msra.mxu0 %v4130_v19  ;;  %v4123_v19 = vld [vmem:[#allocation3 + $0x1b0] sm:$0xff] }
 0x3e3   :  { %4254 = vmatpush2.msra.mxu1 %v4099_v18  ;;  %4642 = vmatprep.subr.mxu0 %v11124_v45  ;;  %v4129_v18 = vld [vmem:[#allocation3 + $0x1e0] sm:$0xff] }
 0x3e4   :  { %4255 = vmatprep.subr.mxu1 %v11124_v45  ;;  %4643 = vmatpush2.msra.mxu0 %v4129_v18  ;;  %v3557_v18 = vld [vmem:[#allocation2 + $0x9] sm:$0xff] }
 0x3e5   :  { %4256 = vmatpush2.msra.mxu1 %v4098_v47  ;;  %v4090_v47 = vld [vmem:[#allocation3 + $0xa8] sm:$0xff]  ;;  %4644 = vmatprep.subr.mxu0 %v11124_v45 }
 0x3e6   :  { %4257 = vmatprep.subr.mxu1 %v11124_v45  ;;  %4645 = vmatpush2.msra.mxu0 %v4128_v59  ;;  %v4120_v59 = vld [vmem:[#allocation3 + $0x198] sm:$0xff] }
 0x3e7   :  { %4258 = vmatpush2.msra.mxu1 %v4097_v44  ;;  %v4089_v44 = vld [vmem:[#allocation3 + $0xa0] sm:$0xff]  ;;  %4646 = vmatprep.subr.mxu0 %v11124_v45 }
 0x3e8   :  { %4259 = vmatprep.subr.mxu1 %v11124_v45  ;;  %4647 = vmatpush2.msra.mxu0 %v4127_v42  ;;  %v4119_v42 = vld [vmem:[#allocation3 + $0x190] sm:$0xff] }
 0x3e9   :  { %4260 = vmatpush2.msra.mxu1 %v4096_v22  ;;  %v4088_v22 = vld [vmem:[#allocation3 + $0x98] sm:$0xff]  ;;  %4648 = vmatprep.subr.mxu0 %v11124_v45 }
 0x3ea   :  { %4261 = vmatprep.subr.mxu1 %v11124_v45  ;;  %4649 = vmatpush2.msra.mxu0 %v4126_v7  ;;  %v4118_v7 = vld [vmem:[#allocation3 + $0x188] sm:$0xff] }
 0x3eb   :  { %4262 = vmatpush2.msra.mxu1 %v4095_v39  ;;  %v4087_v39 = vld [vmem:[#allocation3 + $0x90] sm:$0xff]  ;;  %4650 = vmatprep.subr.mxu0 %v11124_v45 }
 0x3ec   :  { %4263 = vmatprep.subr.mxu1 %v11124_v45  ;;  %4651 = vmatpush2.msra.mxu0 %v4125_v2  ;;  %v4117_v2 = vld [vmem:[#allocation3 + $0x180] sm:$0xff] }
 0x3ed   :  { %4264 = vmatpush2.msra.mxu1 %v4094_v10  ;;  %v4086_v10 = vld [vmem:[#allocation3 + $0x88] sm:$0xff]  ;;  %4652 = vmatprep.subr.mxu0 %v11124_v45 }
 0x3ee   :  { %4265 = vmatprep.subr.mxu1 %v11124_v45  ;;  %4653 = vmatpush2.msra.mxu0 %v4124_v57  ;;  %v4144_v57 = vld [vmem:[#allocation3 + $0x258] sm:$0xff] }
 0x3ef   :  { %4266 = vmatpush2.msra.mxu1 %v4093_v60  ;;  %v4085_v60 = vld [vmem:[#allocation3 + $0x80] sm:$0xff]  ;;  %4654 = vmatprep.subr.mxu0 %v11124_v45 }
 0x3f0   :  { %4267 = vmatprep.subr.mxu1 %v11124_v45  ;;  %4283 = vmatprep.mubr.f32.mxu1 %v3556_v48 }
 0x3f1   :  { %4268 = vmatpush2.msra.mxu1 %v4092_v1  ;;  %v3492_v1 = vld [vmem:[#allocation2] sm:$0xff]  ;;  %4655 = vmatpush2.msra.mxu0 %v4123_v19  ;;  %v4142_v19 = vld [vmem:[#allocation3 + $0x248] sm:$0xff] }
 0x3f2   :  { %4269 = vmatprep.subr.mxu1 %v11124_v45  ;;  %4656 = vmatprep.subr.mxu0 %v11124_v45 }
 0x3f3   :  { %4270 = vmatpush2.msra.mxu1 %v4091_v52  ;;  %v4122_v52 = vld [vmem:[#allocation3 + $0x1a8] sm:$0xff] }
 0x3f4   :  { %4271 = vmatprep.subr.mxu1 %v11124_v45  ;;  %4657 = vmatpush2.msra.mxu0 %v4122_v52  ;;  %v4141_v52 = vld [vmem:[#allocation3 + $0x240] sm:$0xff] }
 0x3f5   :  { %4272 = vmatpush2.msra.mxu1 %v4090_v47  ;;  %4658 = vmatprep.subr.mxu0 %v11124_v45  ;;  %v4121_v47 = vld [vmem:[#allocation3 + $0x1a0] sm:$0xff] }
 0x3f6   :  { %4273 = vmatprep.subr.mxu1 %v11124_v45  ;;  %4659 = vmatpush2.msra.mxu0 %v4121_v47 }
 0x3f7   :  { %4274 = vmatpush2.msra.mxu1 %v4089_v44  ;;  %v4148_v44 = vld [vmem:[#allocation3 + $0x278] sm:$0xff]  ;;  %4660 = vmatprep.subr.mxu0 %v11124_v45 }
 0x3f8   :  { %4275 = vmatprep.subr.mxu1 %v11124_v45  ;;  %4661 = vmatpush2.msra.mxu0 %v4120_v59 }
 0x3f9   :  { %4276 = vmatpush2.msra.mxu1 %v4088_v22  ;;  %v4147_v22 = vld [vmem:[#allocation3 + $0x270] sm:$0xff]  ;;  %4662 = vmatprep.subr.mxu0 %v11124_v45 }
 0x3fa   :  { %4277 = vmatprep.subr.mxu1 %v11124_v45  ;;  %4663 = vmatpush2.msra.mxu0 %v4119_v42 }
 0x3fb   :  { %4278 = vmatpush2.msra.mxu1 %v4087_v39  ;;  %v4146_v39 = vld [vmem:[#allocation3 + $0x268] sm:$0xff]  ;;  %4664 = vmatprep.subr.mxu0 %v11124_v45 }
 0x3fc   :  { %4279 = vmatprep.subr.mxu1 %v11124_v45  ;;  %4665 = vmatpush2.msra.mxu0 %v4118_v7 }
 0x3fd   :  { %4280 = vmatpush2.msra.mxu1 %v4086_v10  ;;  %4666 = vmatprep.subr.mxu0 %v11124_v45  ;;  %v4145_v10 = vld [vmem:[#allocation3 + $0x260] sm:$0xff] }
 0x3fe   :  { %4281 = vmatprep.subr.mxu1 %v11124_v45  ;;  %4667 = vmatpush2.msra.mxu0 %v4117_v2 }
 0x3ff   :  { %4282 = vmatpush2.msra.mxu1 %v4085_v60  ;;  %5374 = vmatprep.subr.mxu0 %v11124_v45 }
 0x400   :  { %4284 = vmatmul.mubr.f32.vlgmr.msra.gmra.mxu1 %v3492_v1  ;;  %4989 = vmatprep.subr.mxu1 %v11124_v45  ;;  %v4143_v1 = vld [vmem:[#allocation3 + $0x250] sm:$0xff] }
 0x401   :  { %4288 = vmatprep.mubr.f32.mxu1 %v3557_v18  ;;  %4990 = vmatpush1.msra.mxu1 %v4148_v44  ;;  %v3071_v18 = vlaneseq  ;;  %v4140_v44 = vld [vmem:[#allocation3 + $0x238] sm:$0xff] }
 0x402   :  { %4991 = vmatprep.subr.mxu1 %v11124_v45 }
 0x403   :  { %4992 = vmatpush1.msra.mxu1 %v4147_v22  ;;  %v3072_v47 = vshrl.u32 %v3071_v18, 7  ;;  %v14782_v18 = vld [vmem:[#allocation28_spill] sm:$0xff] }
 0x404   :  { %4289 = vmatmul.mubr.f32.gmra.mxu1 %v11124_v45  ;;  %4993 = vmatprep.subr.mxu1 %v11124_v45 }
 0x405   :  { %4994 = vmatpush1.msra.mxu1 %v4146_v39  ;;  %v11253_v42 = vsub.s32 0, %v3072_v47  ;;  %v14777_v47 = vld [vmem:[#allocation24_spill] sm:$0xff] }
 0x406   :  { %4995 = vmatprep.subr.mxu1 %v11124_v45 }
 0x407   :  { %4996 = vmatpush1.msra.mxu1 %v4145_v10  ;;  %14774 = vst [vmem:[#allocation15_spill] sm:$0xff] %v11253_v42 }
 0x408   :  { %4997 = vmatprep.subr.mxu1 %v11124_v45 }
 0x409   :  { %4998 = vmatpush1.msra.mxu1 %v4144_v57 }
 0x40a   :  { %4999 = vmatprep.subr.mxu1 %v11124_v45 }
 0x40b   :  { %5000 = vmatpush1.msra.mxu1 %v4143_v1  ;;  %v4139_v1 = vld [vmem:[#allocation3 + $0x230] sm:$0xff] }
 0x40c   :  { %5001 = vmatprep.subr.mxu1 %v11124_v45 }
 0x40d   :  { %5002 = vmatpush1.msra.mxu1 %v4142_v19 }
 0x40e   :  { %5003 = vmatprep.subr.mxu1 %v11124_v45 }
 0x40f   :  { %5004 = vmatpush1.msra.mxu1 %v4141_v52  ;;  %v2704_v52 = vld [vmem:[%s14529_s4] sm:$0x1] }
 0x410   :  { %5005 = vmatprep.subr.mxu1 %v11124_v45 }
 0x411   :  { %5006 = vmatpush1.msra.mxu1 %v4140_v44 }
 0x412   :  { %5007 = vmatprep.subr.mxu1 %v11124_v45 }
 0x413   :  { %5008 = vmatpush1.msra.mxu1 %v4139_v1  ;;  %v14785_v1 = vld [vmem:[#allocation41_spill] sm:$0xff] }
 0x414   :  { %5009 = vmatprep.subr.mxu1 %v11124_v45 }
 0x415   :  { %5010 = vmatpush1.msra.mxu1 %v4138_v32  ;;  %v14790_v32 = vld [vmem:[#allocation12_spill] sm:$0xff] }
 0x416   :  { %5011 = vmatprep.subr.mxu1 %v11124_v45 }
 0x460   :  { %v2990_v60 = vpop.f32.mrf.mxu1 }
 0x461   :  { %v2994_v59 = vmul.f32 0.00012207031, %v2990_v60  ;;  %v14775_v60 = vld [vmem:[#allocation22_spill] sm:$0xff] }
 0x462   :  { %v7832_v48 = vpop.f32.mrf.mxu1 }
 0x463   :  { %v3066_v7 = vmul.f32 %v2994_v59, %v2994_v59  ;;  %v11256_v57 = vrot.slane %v2994_v59, %v11253_v42  ;;  %v14779_v59 = vld [vmem:[#allocation26_spill] sm:$0xff] }
 0x480   :  { %v3061_v22 = vpop.f32.mrf.mxu1 }
 0x481   :  { %v3065_v39 = vmul.f32 0.00012207031, %v3061_v22  ;;  %v14793_v22 = vld [vmem:[#allocation21_spill] sm:$0xff] }
 0x482   :  { %v7867_v2 = vpop.f32.mrf.mxu1  ;;  %v14794_v15 = vsub.f32 %v14793_v22, %v11256_v57 }
 0x483   :  { %v3067_v10 = vsub.f32 %v3065_v39, %v3066_v7  ;;  %v14783_v7 = vld [vmem:[#allocation30_spill] sm:$0xff]  ;;  %v4137_v2 = vld [vmem:[#allocation3 + $0x220] sm:$0xff] }
 0x484   :  { %5012 = vmatpush1.msra.mxu1 %v4137_v2  ;;  %v14796_v2 = vsub.f32 %v14777_v47, %v11256_v57 }
 0x485   :  { %v3068_v48 = vadd.f32 1e-05, %v3067_v10  ;;  %v14784_v10 = vld [vmem:[#allocation29_spill] sm:$0xff]  ;;  %5013 = vmatprep.subr.mxu1 %v11124_v45 }
 0x487   :  { %8072 = vrsqrt.f32 %v3068_v48  ;;  %v14781_v48 = vld [vmem:[#allocation27_spill] sm:$0xff] }
 0x494   :  { %v8073_v19 = vpop.eup %8072 }
 0x495   :  { %v3070_v51 = vmul.f32 %v8073_v19, %v2704_v52  ;;  %v14792_v52 = vsub.f32 %v14775_v60, %v11256_v57 }
 0x497   :  { %v11384_v44 = vrot.slane %v3070_v51, %v11253_v42  ;;  %v14797_v42 = vld [vmem:[#allocation23_spill] sm:$0xff] }
 0x498   :  { %v14798_v19 = vsub.f32 %v14797_v42, %v11256_v57 }
 0x499   :  { %v11399_v51 = vmul.f32 %v11384_v44, %v14792_v52  ;;  %v11405_v39 = vmul.f32 %v11384_v44, %v14794_v15  ;;  %v11411_v28 = vmul.f32 %v11384_v44, %v14796_v2  ;;  %v14799_v52 = vsub.f32 %v14779_v59, %v11256_v57  ;;  %v14800_v15 = vld [vmem:[#allocation25_spill] sm:$0xff] }
 0x49a   :  { %v11417_v60 = vmul.f32 %v11384_v44, %v14798_v19  ;;  %v14802_v2 = vsub.f32 %v14781_v48, %v11256_v57  ;;  %v14803_v19 = vsub.f32 %v10764_v9, %v11256_v57 }
 0x49b   :  { %14795 = vst [vmem:[#allocation16_spill] sm:$0xff] %v11405_v39  ;;  %v11423_v22 = vmul.f32 %v11384_v44, %v14799_v52  ;;  %v14801_v39 = vsub.f32 %v14800_v15, %v11256_v57  ;;  %v14804_v52 = vsub.f32 %v14782_v18, %v11256_v57 }
 0x49c   :  { %v11435_v42 = vmul.f32 %v11384_v44, %v14802_v2  ;;  %v11441_v59 = vmul.f32 %v11384_v44, %v14803_v19  ;;  %v14806_v2 = vsub.f32 %v14783_v7, %v11256_v57  ;;  %v14808_v19 = vsub.f32 %v10797_v8, %v11256_v57 }
 0x49d   :  { %v11429_v47 = vmul.f32 %v11384_v44, %v14801_v39  ;;  %v11447_v15 = vmul.f32 %v11384_v44, %v14804_v52  ;;  %v14805_v39 = vsub.f32 %v10787_v21, %v11256_v57  ;;  %v14809_v52 = vsub.f32 %v14784_v10, %v11256_v57 }
 0x49e   :  { %v11459_v9 = vmul.f32 %v11384_v44, %v14806_v2  ;;  %v11465_v18 = vmul.f32 %v11384_v44, %v14808_v19  ;;  %v14811_v2 = vld [vmem:[#allocation32_spill] sm:$0xff]  ;;  %v14813_v19 = vsub.f32 %v10821_v16, %v11256_v57 }
 0x49f   :  { %v11453_v48 = vmul.f32 %v11384_v44, %v14805_v39  ;;  %v11471_v21 = vmul.f32 %v11384_v44, %v14809_v52  ;;  %v14810_v39 = vsub.f32 %v10811_v6, %v11256_v57  ;;  %v14814_v52 = vsub.f32 %v10838_v26, %v11256_v57 }
 0x4a0   :  { %14807 = vst [vmem:[#allocation17_spill] sm:$0xff] %v11459_v9  ;;  %v14812_v9 = vsub.f32 %v14811_v2, %v11256_v57  ;;  %v11489_v10 = vmul.f32 %v11384_v44, %v14813_v19  ;;  %v14818_v19 = vsub.f32 %v10845_v11, %v11256_v57 }
 0x4a1   :  { %v11477_v7 = vmul.f32 %v11384_v44, %v14810_v39  ;;  %v11495_v6 = vmul.f32 %v11384_v44, %v14814_v52  ;;  %v14816_v39 = vsub.f32 %v10835_v49, %v11256_v57  ;;  %v4136_v52 = vld [vmem:[#allocation3 + $0x218] sm:$0xff] }
 0x4a2   :  { %v11483_v8 = vmul.f32 %v11384_v44, %v14812_v9  ;;  %v14817_v9 = vsub.f32 %v10850_v5, %v11256_v57  ;;  %v11513_v26 = vmul.f32 %v11384_v44, %v14818_v19  ;;  %v14822_v19 = vsub.f32 %v10869_v29, %v11256_v57  ;;  %5014 = vmatpush1.msra.mxu1 %v4136_v52 }
 0x4a3   :  { %14815 = vst [vmem:[#allocation19_spill] sm:$0xff] %v11495_v6  ;;  %v11501_v2 = vmul.f32 %v11384_v44, %v14816_v39  ;;  %v14819_v6 = vsub.f32 %v10862_v50, %v11256_v57  ;;  %v14820_v39 = vsub.f32 %v10859_v40, %v11256_v57  ;;  %v14826_v52 = vsub.f32 %v10893_v63, %v11256_v57 }
 0x4a4   :  { %v11507_v16 = vmul.f32 %v11384_v44, %v14817_v9  ;;  %v14821_v9 = vsub.f32 %v10874_v25, %v11256_v57  ;;  %v11537_v50 = vmul.f32 %v11384_v44, %v14822_v19  ;;  %5015 = vmatprep.subr.mxu1 %v11124_v45  ;;  %v14829_v63 = vsub.f32 %v10922_v37, %v11256_v57 }
 0x4a5   :  { %v11519_v49 = vmul.f32 %v11384_v44, %v14819_v6  ;;  %v11525_v5 = vmul.f32 %v11384_v44, %v14820_v39  ;;  %v14823_v6 = vsub.f32 %v10886_v43, %v11256_v57  ;;  %v14824_v39 = vsub.f32 %v10883_v54, %v11256_v57 }
 0x4a6   :  { %v11531_v11 = vmul.f32 %v11384_v44, %v14821_v9  ;;  %v14825_v9 = vsub.f32 %v10898_v46, %v11256_v57  ;;  %v11561_v43 = vmul.f32 %v11384_v44, %v14826_v52  ;;  %v14827_v54 = vsub.f32 %v10910_v61, %v11256_v57 }
 0x4a7   :  { %v11543_v40 = vmul.f32 %v11384_v44, %v14823_v6  ;;  %v11549_v25 = vmul.f32 %v11384_v44, %v14824_v39  ;;  %v14828_v46 = vsub.f32 %v10907_v56, %v11256_v57  ;;  %v11580_v39 = vmul.f32 %v11384_v44, %v14829_v63 }
 0x4a8   :  { %v11555_v29 = vmul.f32 %v11384_v44, %v14825_v9  ;;  %v11568_v19 = vmul.f32 %v11384_v44, %v14827_v54  ;;  %v14830_v9 = vsub.f32 %v10917_v24, %v11256_v57  ;;  %v14831_v52 = vsub.f32 %v10934_v20, %v11256_v57 }
 0x4a9   :  { %v11574_v6 = vmul.f32 %v11384_v44, %v14828_v46  ;;  %v14832_v54 = vsub.f32 %v10931_v14, %v11256_v57  ;;  %v14833_v46 = vsub.f32 %v10946_v13, %v11256_v57  ;;  %v14834_v63 = vsub.f32 %v10941_v4, %v11256_v57 }
 0x4aa   :  { %v11586_v61 = vmul.f32 %v11384_v44, %v14830_v9  ;;  %v11592_v56 = vmul.f32 %v11384_v44, %v14831_v52  ;;  %v14835_v9 = vsub.f32 %v10958_v30, %v11256_v57  ;;  %v14836_v52 = vsub.f32 %v10955_v31, %v11256_v57 }
 0x4ab   :  { %v11598_v37 = vmul.f32 %v11384_v44, %v14832_v54  ;;  %v11604_v24 = vmul.f32 %v11384_v44, %v14833_v46  ;;  %v11610_v20 = vmul.f32 %v11384_v44, %v14834_v63  ;;  %v14837_v54 = vsub.f32 %v10970_v3, %v11256_v57 }
 0x4ac   :  { %v11616_v14 = vmul.f32 %v11384_v44, %v14835_v9  ;;  %v11622_v13 = vmul.f32 %v11384_v44, %v14836_v52  ;;  %v14838_v46 = vsub.f32 %v10965_v27, %v11256_v57  ;;  %v14839_v63 = vsub.f32 %v10982_v53, %v11256_v57  ;;  %v14841_v9 = vld [vmem:[#allocation31_spill] sm:$0xff] }
 0x4ad   :  { %v11628_v4 = vmul.f32 %v11384_v44, %v14837_v54  ;;  %v14842_v52 = vsub.f32 %v14841_v9, %v11256_v57  ;;  %v14844_v54 = vsub.f32 %v10994_v12, %v11256_v57 }
 0x4ae   :  { %v11634_v30 = vmul.f32 %v11384_v44, %v14838_v46  ;;  %v11640_v31 = vmul.f32 %v11384_v44, %v14839_v63  ;;  %v14846_v46 = vsub.f32 %v10989_v23, %v11256_v57  ;;  %v14848_v63 = vld [vmem:[#allocation33_spill] sm:$0xff] }
 0x4af   :  { %v11646_v3 = vmul.f32 %v11384_v44, %v14842_v52  ;;  %v11652_v27 = vmul.f32 %v11384_v44, %v14844_v54  ;;  %v14851_v52 = vld [vmem:[#allocation34_spill] sm:$0xff]  ;;  %v14854_v54 = vld [vmem:[#allocation35_spill] sm:$0xff] }
 0x4b0   :  { %14840 = vst [vmem:[#allocation20_spill] sm:$0xff] %v11640_v31  ;;  %v11658_v53 = vmul.f32 %v11384_v44, %v14846_v46  ;;  %v14849_v31 = vsub.f32 %v14848_v63, %v11256_v57  ;;  %v14856_v46 = vld [vmem:[#allocation36_spill] sm:$0xff] }
 0x4b1   :  { %14843 = vst [vmem:[#allocation9_spill] sm:$0xff] %v11646_v3  ;;  %14845 = vst [vmem:[#allocation10_spill] sm:$0xff] %v11652_v27  ;;  %v14852_v3 = vsub.f32 %v14851_v52, %v11256_v57  ;;  %v14855_v27 = vsub.f32 %v14854_v54, %v11256_v57 }
 0x4b2   :  { %14847 = vst [vmem:[#allocation11_spill] sm:$0xff] %v11658_v53  ;;  %v11664_v9 = vmul.f32 %v11384_v44, %v14849_v31  ;;  %v14857_v53 = vsub.f32 %v14856_v46, %v11256_v57  ;;  %v14859_v31 = vld [vmem:[#allocation37_spill] sm:$0xff] }
 0x4b3   :  { %v11670_v12 = vmul.f32 %v11384_v44, %v14852_v3  ;;  %v11676_v23 = vmul.f32 %v11384_v44, %v14855_v27  ;;  %v14861_v3 = vld [vmem:[#allocation38_spill] sm:$0xff]  ;;  %v14863_v27 = vsub.f32 %v11042_v62, %v11256_v57 }
 0x4b4   :  { %14850 = vst [vmem:[#allocation13_spill] sm:$0xff] %v11664_v9  ;;  %v11682_v63 = vmul.f32 %v11384_v44, %v14857_v53  ;;  %v14860_v9 = vsub.f32 %v14859_v31, %v11256_v57  ;;  %v14865_v53 = vld [vmem:[#allocation40_spill] sm:$0xff] }
 0x4b5   :  { %14853 = vst [vmem:[#allocation18_spill] sm:$0xff] %v11670_v12  ;;  %v14862_v12 = vsub.f32 %v14861_v3, %v11256_v57  ;;  %v11700_v46 = vmul.f32 %v11384_v44, %v14863_v27  ;;  %v11711_v3 = vld [vmem:[%s14530_s5] ss:$0 sm:$0xff]  ;;  %v14869_v27 = vsub.f32 %v14786_v41, %v11256_v57 }
 0x4b6   :  { %14858 = vst [vmem:[#allocation22_spill] sm:$0xff] %v11682_v63  ;;  %v11688_v52 = vmul.f32 %v11384_v44, %v14860_v9  ;;  %v14866_v63 = vsub.f32 %v14865_v53, %v11256_v57  ;;  %v4135_v9 = vld [vmem:[#allocation3 + $0x210] sm:$0xff] }
 0x4b7   :  { %v11694_v54 = vmul.f32 %v11384_v44, %v14862_v12  ;;  %14864 = vst [vmem:[#allocation24_spill] sm:$0xff] %v11700_v46  ;;  %v14868_v12 = vsub.f32 %v14785_v1, %v11256_v57  ;;  %v11723_v53 = vmul.f32 %v11384_v44, %v14869_v27  ;;  %v14871_v46 = vsub.f32 %v14788_v34, %v11256_v57 }
 0x4b8   :  { %v11706_v31 = vmul.f32 %v11384_v44, %v14866_v63  ;;  %v14870_v63 = vsub.f32 %v14787_v38, %v11256_v57  ;;  %5016 = vmatpush1.msra.mxu1 %v4135_v9  ;;  %v14873_v27 = vsub.f32 %v14790_v32, %v11256_v57  ;;  %v14876_v32 = vsub.f32 %v11093_v35, %v11256_v57 }
 0x4b9   :  { %v11717_v62 = vmul.f32 %v11384_v44, %v14868_v12  ;;  %v11735_v1 = vmul.f32 %v11384_v44, %v14871_v46  ;;  %v14872_v12 = vsub.f32 %v14789_v58, %v11256_v57  ;;  %v14875_v46 = vsub.f32 %v11089_v33, %v11256_v57  ;;  %5017 = vmatprep.subr.mxu1 %v11124_v45 }
 0x4ba   :  { %14867 = vst [vmem:[#allocation26_spill] sm:$0xff] %v11706_v31  ;;  %v11729_v31 = vmul.f32 %v11384_v44, %v14870_v63  ;;  %v11747_v38 = vmul.f32 %v11384_v44, %v14873_v27  ;;  %v14874_v63 = vsub.f32 %v14791_v55, %v11256_v57  ;;  %v11766_v9 = vmul.f32 %v11384_v44, %v14876_v32 }
 0x4bb   :  { %v11741_v41 = vmul.f32 %v11384_v44, %v14872_v12  ;;  %v11759_v58 = vmul.f32 %v11384_v44, %v14875_v46  ;;  %v14877_v55 = vsub.f32 %v11099_v0, %v11256_v57  ;;  %v14878_v33 = vsub.f32 %v11105_v36, %v11256_v57  ;;  %v14880_v0 = vld [vmem:[#allocation16_spill] sm:$0xff] }
 0x4bc   :  { %v11753_v34 = vmul.f32 %v11384_v44, %v14874_v63  ;;  %v14879_v63 = vsub.f32 %v11109_v17, %v11256_v57  ;;  %v11788_v46 = vadd.f32 %v11711_v3, %v11399_v51  ;;  %v11792_v32 = vadd.f32 %v11711_v3, %v14880_v0  ;;  %v4134_v0 = vld [vmem:[#allocation3 + $0x208] sm:$0xff] }
 0x4bd   :  { %v11772_v12 = vmul.f32 %v11384_v44, %v14877_v55  ;;  %v11778_v27 = vmul.f32 %v11384_v44, %v14878_v33  ;;  %v11796_v36 = vadd.f32 %v11711_v3, %v11411_v28  ;;  %v11800_v55 = vadd.f32 %v11711_v3, %v11417_v60  ;;  %5018 = vmatpush1.msra.mxu1 %v4134_v0  ;;  %v14894_v0 = vld [vmem:[#allocation9_spill] sm:$0xff] }
 0x4be   :  { %v11784_v35 = vmul.f32 %v11384_v44, %v14879_v63  ;;  %v11804_v17 = vadd.f32 %v11711_v3, %v11423_v22  ;;  %v11808_v57 = vadd.f32 %v11711_v3, %v11429_v47  ;;  %v11812_v44 = vadd.f32 %v11711_v3, %v11435_v42  ;;  %v14881_v22 = vld [vmem:[#allocation17_spill] sm:$0xff]  ;;  %v14882_v63 = vld [vmem:[#allocation19_spill] sm:$0xff]  ;;  %5019 = vmatprep.subr.mxu1 %v11124_v45 }
 0x4bf   :  { %v11816_v28 = vadd.f32 %v11711_v3, %v11441_v59  ;;  %v11820_v51 = vadd.f32 %v11711_v3, %v11447_v15  ;;  %v11824_v60 = vadd.f32 %v11711_v3, %v11453_v48  ;;  %v11828_v47 = vadd.f32 %v11711_v3, %v14881_v22 }
 0x4c0   :  { %v11832_v42 = vadd.f32 %v11711_v3, %v11465_v18  ;;  %v11836_v59 = vadd.f32 %v11711_v3, %v11471_v21  ;;  %v11840_v15 = vadd.f32 %v11711_v3, %v11477_v7  ;;  %v11844_v48 = vadd.f32 %v11711_v3, %v11483_v8 }
 0x4c1   :  { %v11848_v33 = vadd.f32 %v11711_v3, %v11489_v10  ;;  %v11852_v18 = vadd.f32 %v11711_v3, %v14882_v63  ;;  %v11856_v21 = vadd.f32 %v11711_v3, %v11501_v2  ;;  %v11860_v7 = vadd.f32 %v11711_v3, %v11507_v16  ;;  %v14893_v63 = vld [vmem:[#allocation20_spill] sm:$0xff] }
 0x4c2   :  { %v11864_v8 = vadd.f32 %v11711_v3, %v11513_v26  ;;  %v11868_v10 = vadd.f32 %v11711_v3, %v11519_v49  ;;  %v11872_v22 = vadd.f32 %v11711_v3, %v11525_v5  ;;  %v11876_v2 = vadd.f32 %v11711_v3, %v11531_v11 }
 0x4c3   :  { %v11880_v16 = vadd.f32 %v11711_v3, %v11537_v50  ;;  %v11884_v26 = vadd.f32 %v11711_v3, %v11543_v40  ;;  %v11888_v49 = vadd.f32 %v11711_v3, %v11549_v25  ;;  %v11892_v5 = vadd.f32 %v11711_v3, %v11555_v29 }
 0x4c4   :  { %14883 = vst [vmem:[#allocation27_spill] sm:$0xff] %v11876_v2  ;;  %v11896_v11 = vadd.f32 %v11711_v3, %v11561_v43  ;;  %v11901_v50 = vadd.f32 %v11711_v3, %v11568_v19  ;;  %v11905_v40 = vadd.f32 %v11711_v3, %v11574_v6  ;;  %v11909_v25 = vadd.f32 %v11711_v3, %v11580_v39 }
 0x4c5   :  { %14884 = vst [vmem:[#allocation28_spill] sm:$0xff] %v11880_v16  ;;  %14885 = vst [vmem:[#allocation30_spill] sm:$0xff] %v11892_v5  ;;  %v11913_v29 = vadd.f32 %v11711_v3, %v11586_v61  ;;  %v11917_v43 = vadd.f32 %v11711_v3, %v11592_v56  ;;  %v11921_v19 = vadd.f32 %v11711_v3, %v11598_v37 }
 0x4c6   :  { %14886 = vst [vmem:[#allocation29_spill] sm:$0xff] %v11896_v11  ;;  %14887 = vst [vmem:[#allocation41_spill] sm:$0xff] %v11905_v40  ;;  %v11925_v6 = vadd.f32 %v11711_v3, %v11604_v24  ;;  %v11929_v39 = vadd.f32 %v11711_v3, %v11610_v20  ;;  %v11933_v61 = vadd.f32 %v11711_v3, %v11616_v14 }
 0x4c7   :  { %14888 = vst [vmem:[#allocation39_spill] sm:$0xff] %v11917_v43  ;;  %v11937_v56 = vadd.f32 %v11711_v3, %v11622_v13  ;;  %v11941_v37 = vadd.f32 %v11711_v3, %v11628_v4  ;;  %v11945_v24 = vadd.f32 %v11711_v3, %v11634_v30  ;;  %v11949_v20 = vadd.f32 %v11711_v3, %v14893_v63 }
 0x4c8   :  { %14889 = vst [vmem:[#allocation42_spill] sm:$0xff] %v11933_v61  ;;  %v11953_v14 = vadd.f32 %v11711_v3, %v14894_v0  ;;  %v14896_v61 = vld [vmem:[#allocation10_spill] sm:$0xff]  ;;  %v11973_v0 = vadd.f32 %v11711_v3, %v11676_v23 }
 0x4c9   :  { %14890 = vst [vmem:[#allocation43_spill] sm:$0xff] %v11937_v56  ;;  %14891 = vst [vmem:[#allocation44_spill] sm:$0xff] %v11941_v37  ;;  %v11957_v13 = vadd.f32 %v11711_v3, %v14896_v61  ;;  %v14897_v56 = vld [vmem:[#allocation11_spill] sm:$0xff]  ;;  %v14898_v37 = vld [vmem:[#allocation13_spill] sm:$0xff] }
 0x4ca   :  { %14892 = vst [vmem:[#allocation12_spill] sm:$0xff] %v11945_v24  ;;  %14895 = vst [vmem:[#allocation14_spill] sm:$0xff] %v11953_v14  ;;  %v11961_v4 = vadd.f32 %v11711_v3, %v14897_v56  ;;  %v11965_v30 = vadd.f32 %v11711_v3, %v14898_v37  ;;  %v14900_v24 = vld [vmem:[#allocation18_spill] sm:$0xff]  ;;  %v11981_v56 = vadd.f32 %v11711_v3, %v11688_v52 }
 0x4cb   :  { %v11969_v63 = vadd.f32 %v11711_v3, %v14900_v24  ;;  %14902 = vst [vmem:[#allocation25_spill] sm:$0xff] %v11973_v0  ;;  %v14903_v14 = vld [vmem:[#allocation22_spill] sm:$0xff]  ;;  %v11985_v37 = vadd.f32 %v11711_v3, %v11694_v54  ;;  %v4133_v0 = vld [vmem:[#allocation3 + $0x200] sm:$0xff]  ;;  %v12001_v52 = vadd.f32 %v11711_v3, %v11723_v53  ;;  %v12005_v54 = vadd.f32 %v11711_v3, %v11729_v31 }
 0x4cc   :  { %14899 = vst [vmem:[#allocation21_spill] sm:$0xff] %v11965_v30  ;;  %v11977_v61 = vadd.f32 %v11711_v3, %v14903_v14  ;;  %v14904_v30 = vld [vmem:[#allocation24_spill] sm:$0xff]  ;;  %v11997_v14 = vadd.f32 %v11711_v3, %v11717_v62  ;;  %5020 = vmatpush1.msra.mxu1 %v4133_v0  ;;  %v12017_v62 = vadd.f32 %v11711_v3, %v11747_v38  ;;  %v14589_v0 = vmax.f32 %v11796_v36, 0.0 }
 0x4cd   :  { %14901 = vst [vmem:[#allocation23_spill] sm:$0xff] %v11969_v63  ;;  %v11989_v24 = vadd.f32 %v11711_v3, %v14904_v30  ;;  %v14905_v63 = vld [vmem:[#allocation26_spill] sm:$0xff]  ;;  %v12009_v30 = vadd.f32 %v11711_v3, %v11735_v1  ;;  %v12021_v53 = vadd.f32 %v11711_v3, %v11753_v34  ;;  %v12025_v31 = vadd.f32 %v11711_v3, %v11759_v58 }
 0x4ce   :  { %v11993_v23 = vadd.f32 %v11711_v3, %v14905_v63  ;;  %v12013_v63 = vadd.f32 %v11711_v3, %v11741_v41  ;;  %5021 = vmatprep.subr.mxu1 %v11124_v45  ;;  %v12030_v1 = vadd.f32 %v11711_v3, %v11766_v9  ;;  %v12034_v41 = vadd.f32 %v11711_v3, %v11772_v12 }
 0x4cf   :  { %v12038_v38 = vadd.f32 %v11711_v3, %v11778_v27  ;;  %v12042_v34 = vadd.f32 %v11711_v3, %v11784_v35  ;;  %v3277_v58 = vmax.f32 %v11788_v46, 0.0  ;;  %v14590_v45 = vmax.f32 %v11792_v32, 0.0  ;;  %3429 = vst [vmem:[#allocation2 + $0x31] sm:$0xff] %v14589_v0 }
 0x4d0   :  { %14906 = vst [vmem:[#allocation32_spill] sm:$0xff] %v12030_v1  ;;  %14907 = vst [vmem:[#allocation31_spill] sm:$0xff] %v12034_v41  ;;  %v14588_v9 = vmax.f32 %v11800_v55, 0.0  ;;  %v14591_v1 = vmax.f32 %v11804_v17, 0.0  ;;  %v14592_v12 = vmax.f32 %v11808_v57, 0.0  ;;  %v14593_v41 = vmax.f32 %v11812_v44, 0.0 }
 0x4d1   :  { %14908 = vst [vmem:[#allocation33_spill] sm:$0xff] %v12038_v38  ;;  %v14594_v46 = vmax.f32 %v11832_v42, 0.0  ;;  %3427 = vst [vmem:[#allocation2 + $0x19] sm:$0xff] %v3277_v58  ;;  %4293 = vmatprep.mubr.f32.mxu1 %v3277_v58  ;;  %v14596_v27 = vmax.f32 %v11836_v59, 0.0  ;;  %v14595_v38 = vmax.f32 %v11840_v15, 0.0  ;;  %v14597_v58 = vmax.f32 %v11852_v18, 0.0 }
 0x4d2   :  { %3428 = vst [vmem:[#allocation2 + $0x21] sm:$0xff] %v14590_v45  ;;  %3430 = vst [vmem:[#allocation2 + $0x39] sm:$0xff] %v14588_v9  ;;  %v14909_v9 = vmax.f32 %v11816_v28, 0.0  ;;  %v14910_v3 = vmax.f32 %v11820_v51, 0.0  ;;  %v14598_v0 = vmax.f32 %v11872_v22, 0.0  ;;  %v3307_v45 = vmax.f32 %v11909_v25, 0.0 }
 0x4d3   :  { %3431 = vst [vmem:[#allocation2 + $0x49] sm:$0xff] %v14591_v1  ;;  %3432 = vst [vmem:[#allocation2 + $0x51] sm:$0xff] %v14592_v12  ;;  %v14911_v1 = vmax.f32 %v11824_v60, 0.0  ;;  %v14912_v12 = vmax.f32 %v11828_v47, 0.0  ;;  %v14923_v35 = vld [vmem:[#allocation43_spill] sm:$0xff]  ;;  %v14924_v25 = vld [vmem:[#allocation44_spill] sm:$0xff] }
 0x4d4   :  { %3433 = vst [vmem:[#allocation2 + $0x61] sm:$0xff] %v14593_v41  ;;  %3434 = vst [vmem:[#allocation2 + $0x69] sm:$0xff] %v14909_v9  ;;  %v4164_v9 = vld [vmem:[#allocation3 + $0x2f8] sm:$0xff]  ;;  %v14599_v41 = vmax.f32 %v11868_v10, 0.0 }
 0x4d5   :  { %3435 = vst [vmem:[#allocation2 + $0x79] sm:$0xff] %v14910_v3  ;;  %3436 = vst [vmem:[#allocation2 + $0x81] sm:$0xff] %v14911_v1  ;;  %v14913_v1 = vmax.f32 %v11844_v48, 0.0  ;;  %5022 = vmatpush2.msra.mxu1 %v4164_v9  ;;  %v14602_v3 = vmax.f32 %v11884_v26, 0.0  ;;  %v12110_v9 = vld [vmem:[#allocation2 + $0x8] sm:$0xff] }
 0x4d6   :  { %3437 = vst [vmem:[#allocation2 + $0x91] sm:$0xff] %v14912_v12  ;;  %3438 = vst [vmem:[#allocation2 + $0x99] sm:$0xff] %v14594_v46  ;;  %v14914_v12 = vmax.f32 %v11848_v33, 0.0  ;;  %v14603_v46 = vmax.f32 %v11888_v49, 0.0  ;;  %5023 = vmatprep.subr.mxu1 %v12110_v9 }
 0x4d7   :  { %3439 = vst [vmem:[#allocation2 + $0xa9] sm:$0xff] %v14596_v27  ;;  %3440 = vst [vmem:[#allocation2 + $0xb1] sm:$0xff] %v14595_v38  ;;  %v14915_v38 = vmax.f32 %v11856_v21, 0.0  ;;  %v3319_v27 = vmax.f32 %v11957_v13, 0.0 }
 0x4d8   :  { %3441 = vst [vmem:[#allocation2 + $0xc1] sm:$0xff] %v14913_v1  ;;  %3442 = vst [vmem:[#allocation2 + $0xc9] sm:$0xff] %v14914_v12  ;;  %v14916_v1 = vmax.f32 %v11860_v7, 0.0  ;;  %v14917_v12 = vmax.f32 %v11864_v8, 0.0 }
 0x4d9   :  { %3443 = vst [vmem:[#allocation2 + $0xd9] sm:$0xff] %v14597_v58  ;;  %3444 = vst [vmem:[#allocation2 + $0xe1] sm:$0xff] %v14915_v38  ;;  %v3308_v58 = vmax.f32 %v11913_v29, 0.0  ;;  %v14918_v38 = vmax.f32 %v11876_v2, 0.0  ;;  %v14925_v29 = vld [vmem:[#allocation12_spill] sm:$0xff] }
 0x4da   :  { %3445 = vst [vmem:[#allocation2 + $0xf1] sm:$0xff] %v14916_v1  ;;  %3446 = vst [vmem:[#allocation2 + $0xf9] sm:$0xff] %v14917_v12  ;;  %v14919_v1 = vmax.f32 %v11880_v16, 0.0  ;;  %v3315_v16 = vmax.f32 %v14924_v25, 0.0  ;;  %v3316_v2 = vmax.f32 %v14925_v29, 0.0  ;;  %v3320_v25 = vmax.f32 %v11961_v4, 0.0 }
 0x4db   :  { %3447 = vst [vmem:[#allocation2 + $0x109] sm:$0xff] %v14599_v41  ;;  %3448 = vst [vmem:[#allocation2 + $0x111] sm:$0xff] %v14598_v0  ;;  %v14920_v0 = vmax.f32 %v11892_v5, 0.0  ;;  %v14922_v41 = vld [vmem:[#allocation42_spill] sm:$0xff]  ;;  %v14929_v29 = vmax.f32 %v11917_v43, 0.0  ;;  %v3324_v43 = vmax.f32 %v11977_v61, 0.0 }
 0x4dc   :  { %3449 = vst [vmem:[#allocation2 + $0x121] sm:$0xff] %v14918_v38  ;;  %3450 = vst [vmem:[#allocation2 + $0x129] sm:$0xff] %v14919_v1  ;;  %v14921_v38 = vmax.f32 %v11896_v11, 0.0  ;;  %v3620_v1 = vld [vmem:[#allocation2 + $0x2] sm:$0xff]  ;;  %v4180_v11 = vld [vmem:[#allocation3 + $0x378] sm:$0xff]  ;;  %v3328_v61 = vmax.f32 %v11993_v23, 0.0 }
 0x4dd   :  { %3451 = vst [vmem:[#allocation2 + $0x139] sm:$0xff] %v14602_v3  ;;  %3452 = vst [vmem:[#allocation2 + $0x141] sm:$0xff] %v14603_v46  ;;  %v14926_v3 = vmax.f32 %v11901_v50, 0.0  ;;  %v14927_v46 = vmax.f32 %v11905_v40, 0.0  ;;  %v14928_v5 = vld [vmem:[#allocation14_spill] sm:$0xff]  ;;  %v14935_v40 = vld [vmem:[#allocation25_spill] sm:$0xff] }
 0x4de   :  { %3453 = vst [vmem:[#allocation2 + $0x151] sm:$0xff] %v14920_v0  ;;  %3454 = vst [vmem:[#allocation2 + $0x159] sm:$0xff] %v14921_v38  ;;  %v3684_v0 = vld [vmem:[#allocation2 + $0x18] sm:$0xff]  ;;  %v3317_v38 = vmax.f32 %v11949_v20, 0.0  ;;  %v3318_v12 = vmax.f32 %v14928_v5, 0.0  ;;  %v14933_v20 = vld [vmem:[#allocation21_spill] sm:$0xff] }
 0x4df   :  { %3455 = vst [vmem:[#allocation2 + $0x169] sm:$0xff] %v14926_v3  ;;  %3456 = vst [vmem:[#allocation2 + $0x171] sm:$0xff] %v14927_v46  ;;  %v14930_v3 = vmax.f32 %v11921_v19, 0.0  ;;  %v14931_v46 = vmax.f32 %v11925_v6, 0.0  ;;  %4668 = vmatprep.mubr.f32.mxu0 %v3684_v0  ;;  %4294 = vmatmul.mubr.f32.gmra.mxu1 %v3684_v0  ;;  %v3321_v5 = vmax.f32 %v14933_v20, 0.0  ;;  %v3323_v4 = vmax.f32 %v14935_v40, 0.0 }
 0x4e0   :  { %3457 = vst [vmem:[#allocation2 + $0x181] sm:$0xff] %v3307_v45  ;;  %3458 = vst [vmem:[#allocation2 + $0x189] sm:$0xff] %v3308_v58  ;;  %v14932_v45 = vmax.f32 %v11929_v39, 0.0  ;;  %v14934_v58 = vld [vmem:[#allocation23_spill] sm:$0xff]  ;;  %4669 = vmatmul.mubr.f32.vlgmr.msra.gmra.mxu0 %v3620_v1  ;;  %v3685_v0 = vld [vmem:[#allocation2 + $0x20] sm:$0xff]  ;;  %v3326_v20 = vmax.f32 %v11985_v37, 0.0 }
 0x4e1   :  { %3459 = vst [vmem:[#allocation2 + $0x1c9] sm:$0xff] %v14929_v29  ;;  %3460 = vst [vmem:[#allocation2 + $0x1d1] sm:$0xff] %v14930_v3  ;;  %v3322_v13 = vmax.f32 %v14934_v58, 0.0  ;;  %v14936_v29 = vmax.f32 %v14922_v41, 0.0  ;;  %v14937_v3 = vmax.f32 %v14923_v35, 0.0  ;;  %v3327_v40 = vmax.f32 %v11989_v24, 0.0  ;;  %4673 = vmatprep.mubr.f32.mxu0 %v3685_v0  ;;  %5375 = vmatpush1.msra.mxu0 %v4180_v11 }
 0x4e2   :  { %3461 = vst [vmem:[#allocation2 + $0x1e1] sm:$0xff] %v14931_v46  ;;  %3462 = vst [vmem:[#allocation2 + $0x1e9] sm:$0xff] %v14932_v45  ;;  %v14938_v46 = vmax.f32 %v11792_v32, 0.0  ;;  %v3325_v45 = vmax.f32 %v11981_v56, 0.0  ;;  %v3330_v32 = vmax.f32 %v12001_v52, 0.0  ;;  %v3331_v1 = vmax.f32 %v12005_v54, 0.0  ;;  %5376 = vmatprep.subr.mxu0 %v12110_v9 }
 0x4e3   :  { %3463 = vst [vmem:[#allocation2 + $0x1f9] sm:$0xff] %v14936_v29  ;;  %3464 = vst [vmem:[#allocation2 + $0x201] sm:$0xff] %v14937_v3  ;;  %v3332_v56 = vmax.f32 %v12009_v30, 0.0  ;;  %v3333_v37 = vmax.f32 %v12013_v63, 0.0  ;;  %v3334_v24 = vmax.f32 %v12017_v62, 0.0  ;;  %v3335_v11 = vmax.f32 %v12021_v53, 0.0 }
 0x4e4   :  { %3465 = vst [vmem:[#allocation2 + $0x211] sm:$0xff] %v3315_v16  ;;  %3466 = vst [vmem:[#allocation2 + $0x219] sm:$0xff] %v3316_v2  ;;  %4298 = vmatprep.mubr.f32.mxu1 %v14938_v46  ;;  %v3621_v16 = vld [vmem:[#allocation2 + $0xa] sm:$0xff]  ;;  %v3329_v2 = vmax.f32 %v11997_v14, 0.0  ;;  %v3336_v23 = vmax.f32 %v12025_v31, 0.0  ;;  %v14939_v14 = vld [vmem:[#allocation32_spill] sm:$0xff] }
 0x4e5   :  { %3467 = vst [vmem:[#allocation2 + $0x229] sm:$0xff] %v3317_v38  ;;  %3468 = vst [vmem:[#allocation2 + $0x231] sm:$0xff] %v3318_v12  ;;  %4299 = vmatmul.mubr.f32.gmra.mxu1 %v3685_v0  ;;  %v3337_v52 = vmax.f32 %v14939_v14, 0.0  ;;  %v14940_v54 = vld [vmem:[#allocation31_spill] sm:$0xff]  ;;  %v3340_v12 = vmax.f32 %v12042_v34, 0.0  ;;  %4674 = vmatmul.mubr.f32.gmra.mxu0 %v3621_v16  ;;  %v14942_v63 = vmax.f32 %v11796_v36, 0.0 }
 0x4e6   :  { %3469 = vst [vmem:[#allocation2 + $0x241] sm:$0xff] %v3319_v27  ;;  %3470 = vst [vmem:[#allocation2 + $0x249] sm:$0xff] %v3320_v25  ;;  %v3338_v30 = vmax.f32 %v14940_v54, 0.0  ;;  %v3686_v62 = vld [vmem:[#allocation2 + $0x30] sm:$0xff]  ;;  %v3622_v53 = vld [vmem:[#allocation2 + $0x1a] sm:$0xff]  ;;  %v14943_v31 = vmax.f32 %v11800_v55, 0.0 }
 0x4e7   :  { %3471 = vst [vmem:[#allocation2 + $0x259] sm:$0xff] %v3321_v5  ;;  %3472 = vst [vmem:[#allocation2 + $0x261] sm:$0xff] %v3322_v13  ;;  %4303 = vmatprep.mubr.f32.mxu1 %v14942_v63  ;;  %4678 = vmatprep.mubr.f32.mxu0 %v3686_v62  ;;  %v3687_v34 = vld [vmem:[#allocation2 + $0x38] sm:$0xff]  ;;  %v3623_v36 = vld [vmem:[#allocation2 + $0x22] sm:$0xff]  ;;  %v14944_v38 = vmax.f32 %v11804_v17, 0.0  ;;  %v14945_v58 = vmax.f32 %v11808_v57, 0.0 }
 0x4e8   :  { %3473 = vst [vmem:[#allocation2 + $0x271] sm:$0xff] %v3323_v4  ;;  %3474 = vst [vmem:[#allocation2 + $0x279] sm:$0xff] %v3324_v43  ;;  %v14941_v43 = vld [vmem:[#allocation33_spill] sm:$0xff]  ;;  %v3688_v25 = vld [vmem:[#allocation2 + $0x48] sm:$0xff]  ;;  %v14946_v4 = vmax.f32 %v11812_v44, 0.0  ;;  %v14947_v0 = vmax.f32 %v11816_v28, 0.0 }
 0x4e9   :  { %3475 = vst [vmem:[#allocation2 + $0x289] sm:$0xff] %v3325_v45  ;;  %3476 = vst [vmem:[#allocation2 + $0x291] sm:$0xff] %v3326_v20  ;;  %v3339_v27 = vmax.f32 %v14941_v43, 0.0  ;;  %4304 = vmatmul.mubr.f32.gmra.mxu1 %v3686_v62  ;;  %4679 = vmatmul.mubr.f32.gmra.mxu0 %v3622_v53  ;;  %v3624_v5 = vld [vmem:[#allocation2 + $0x32] sm:$0xff]  ;;  %v3625_v55 = vld [vmem:[#allocation2 + $0x3a] sm:$0xff]  ;;  %v14953_v63 = vmax.f32 %v11840_v15, 0.0 }
 0x4ea   :  { %3477 = vst [vmem:[#allocation2 + $0x2a1] sm:$0xff] %v3327_v40  ;;  %3478 = vst [vmem:[#allocation2 + $0x2a9] sm:$0xff] %v3328_v61  ;;  %4308 = vmatprep.mubr.f32.mxu1 %v14943_v31  ;;  %4683 = vmatprep.mubr.f32.mxu0 %v3687_v34  ;;  %v3689_v13 = vld [vmem:[#allocation2 + $0x50] sm:$0xff]  ;;  %v3690_v29 = vld [vmem:[#allocation2 + $0x60] sm:$0xff]  ;;  %v14948_v40 = vmax.f32 %v11820_v51, 0.0 }
 0x4eb   :  { %3479 = vst [vmem:[#allocation2 + $0x2b9] sm:$0xff] %v3329_v2  ;;  %3480 = vst [vmem:[#allocation2 + $0x2c1] sm:$0xff] %v3330_v32  ;;  %v4163_v17 = vld [vmem:[#allocation3 + $0x2f0] sm:$0xff]  ;;  %v3691_v57 = vld [vmem:[#allocation2 + $0x68] sm:$0xff]  ;;  %v14949_v32 = vmax.f32 %v11824_v60, 0.0 }
 0x4ec   :  { %3481 = vst [vmem:[#allocation2 + $0x2d1] sm:$0xff] %v3331_v1  ;;  %3482 = vst [vmem:[#allocation2 + $0x2d9] sm:$0xff] %v3332_v56  ;;  %v4179_v3 = vld [vmem:[#allocation3 + $0x370] sm:$0xff]  ;;  %v4178_v45 = vld [vmem:[#allocation3 + $0x368] sm:$0xff]  ;;  %5024 = vmatpush2.msra.mxu1 %v4163_v17 }
 0x4ed   :  { %3483 = vst [vmem:[#allocation2 + $0x2e9] sm:$0xff] %v3333_v37  ;;  %3484 = vst [vmem:[#allocation2 + $0x2f1] sm:$0xff] %v3334_v24  ;;  %4309 = vmatmul.mubr.f32.gmra.mxu1 %v3687_v34  ;;  %4684 = vmatmul.mubr.f32.gmra.mxu0 %v3623_v36  ;;  %v3626_v46 = vld [vmem:[#allocation2 + $0x4a] sm:$0xff]  ;;  %v3627_v44 = vld [vmem:[#allocation2 + $0x52] sm:$0xff]  ;;  %v14950_v24 = vmax.f32 %v11828_v47, 0.0  ;;  %v14954_v34 = vmax.f32 %v11844_v48, 0.0 }
 0x4ee   :  { %3485 = vst [vmem:[#allocation2 + $0x301] sm:$0xff] %v3335_v11  ;;  %3486 = vst [vmem:[#allocation2 + $0x309] sm:$0xff] %v3336_v23  ;;  %4313 = vmatprep.mubr.f32.mxu1 %v14944_v38  ;;  %4688 = vmatprep.mubr.f32.mxu0 %v3688_v25  ;;  %v4162_v20 = vld [vmem:[#allocation3 + $0x2e8] sm:$0xff]  ;;  %v3692_v61 = vld [vmem:[#allocation2 + $0x78] sm:$0xff]  ;;  %v14955_v38 = vmax.f32 %v11848_v33, 0.0  ;;  %v14956_v48 = vmax.f32 %v11852_v18, 0.0 }
 0x4ef   :  { %3487 = vst [vmem:[#allocation2 + $0x319] sm:$0xff] %v3337_v52  ;;  %3488 = vst [vmem:[#allocation2 + $0x321] sm:$0xff] %v3338_v30  ;;  %5377 = vmatpush1.msra.mxu0 %v4179_v3  ;;  %5025 = vmatprep.subr.mxu1 %v12110_v9  ;;  %v4177_v16 = vld [vmem:[#allocation3 + $0x360] sm:$0xff]  ;;  %v4176_v56 = vld [vmem:[#allocation3 + $0x358] sm:$0xff]  ;;  %v14951_v52 = vmax.f32 %v11832_v42, 0.0  ;;  %v12232_v3 = vpop.f32.mrf.mxu1 }
 0x4f0   :  { %3489 = vst [vmem:[#allocation2 + $0x331] sm:$0xff] %v3339_v27  ;;  %3490 = vst [vmem:[#allocation2 + $0x339] sm:$0xff] %v3340_v12  ;;  %5378 = vmatprep.subr.mxu0 %v12110_v9  ;;  %5026 = vmatpush2.msra.mxu1 %v4162_v20  ;;  %v4161_v28 = vld [vmem:[#allocation3 + $0x2e0] sm:$0xff]  ;;  %v4160_v51 = vld [vmem:[#allocation3 + $0x2d8] sm:$0xff]  ;;  %v14952_v27 = vmax.f32 %v11836_v59, 0.0 }
 0x4f1   :  { %4314 = vmatmul.mubr.f32.gmra.mxu1 %v3688_v25  ;;  %4689 = vmatmul.mubr.f32.gmra.mxu0 %v3624_v5  ;;  %v3628_v2 = vld [vmem:[#allocation2 + $0x62] sm:$0xff]  ;;  %v3629_v37 = vld [vmem:[#allocation2 + $0x6a] sm:$0xff]  ;;  %v3630_v14 = vld [vmem:[#allocation2 + $0x7a] sm:$0xff] }
 0x4f2   :  { %4318 = vmatprep.mubr.f32.mxu1 %v14945_v58  ;;  %4693 = vmatprep.mubr.f32.mxu0 %v3689_v13  ;;  %v3693_v1 = vld [vmem:[#allocation2 + $0x80] sm:$0xff]  ;;  %v3694_v11 = vld [vmem:[#allocation2 + $0x90] sm:$0xff]  ;;  %v3695_v54 = vld [vmem:[#allocation2 + $0x98] sm:$0xff] }
 0x4f3   :  { %5379 = vmatpush1.msra.mxu0 %v4178_v45  ;;  %5027 = vmatprep.subr.mxu1 %v12110_v9  ;;  %v4175_v23 = vld [vmem:[#allocation3 + $0x350] sm:$0xff]  ;;  %v4174_v47 = vld [vmem:[#allocation3 + $0x348] sm:$0xff]  ;;  %v4157_v53 = vld [vmem:[#allocation3 + $0x2c0] sm:$0xff]  ;;  %v4287_v45 = vpop.f32.mrf.mxu1 }
 0x4f4   :  { %5380 = vmatprep.subr.mxu0 %v12110_v9  ;;  %5028 = vmatpush2.msra.mxu1 %v4161_v28  ;;  %v4159_v60 = vld [vmem:[#allocation3 + $0x2d0] sm:$0xff]  ;;  %v4158_v30 = vld [vmem:[#allocation3 + $0x2c8] sm:$0xff]  ;;  %v4173_v31 = vld [vmem:[#allocation3 + $0x340] sm:$0xff] }
 0x4f5   :  { %4319 = vmatmul.mubr.f32.gmra.mxu1 %v3689_v13  ;;  %4694 = vmatmul.mubr.f32.gmra.mxu0 %v3625_v55  ;;  %v3631_v43 = vld [vmem:[#allocation2 + $0x82] sm:$0xff]  ;;  %v3632_v42 = vld [vmem:[#allocation2 + $0x92] sm:$0xff]  ;;  %v3633_v59 = vld [vmem:[#allocation2 + $0x9a] sm:$0xff] }
 0x4f6   :  { %4323 = vmatprep.mubr.f32.mxu1 %v14946_v4  ;;  %4698 = vmatprep.mubr.f32.mxu0 %v3690_v29  ;;  %v3696_v12 = vld [vmem:[#allocation2 + $0xa8] sm:$0xff]  ;;  %v3697_v62 = vld [vmem:[#allocation2 + $0xb0] sm:$0xff]  ;;  %v3698_v36 = vld [vmem:[#allocation2 + $0xc0] sm:$0xff]  ;;  %v14957_v4 = vmax.f32 %v11856_v21, 0.0  ;;  %v12237_v21 = vpop.f32.mrf.mxu1 }
 0x4f7   :  { %5381 = vmatpush1.msra.mxu0 %v4177_v16  ;;  %5029 = vmatprep.subr.mxu1 %v12110_v9  ;;  %v3634_v15 = vld [vmem:[#allocation2 + $0xaa] sm:$0xff]  ;;  %v4156_v5 = vld [vmem:[#allocation3 + $0x2b8] sm:$0xff]  ;;  %v3636_v33 = vld [vmem:[#allocation2 + $0xc2] sm:$0xff] }
 0x4f8   :  { %5382 = vmatprep.subr.mxu0 %v12110_v9  ;;  %5030 = vmatpush2.msra.mxu1 %v4160_v51  ;;  %v3699_v25 = vld [vmem:[#allocation2 + $0xc8] sm:$0xff]  ;;  %v4172_v58 = vld [vmem:[#allocation3 + $0x338] sm:$0xff]  ;;  %v4155_v17 = vld [vmem:[#allocation3 + $0x2b0] sm:$0xff] }
 0x4f9   :  { %4324 = vmatmul.mubr.f32.gmra.mxu1 %v3690_v29  ;;  %4699 = vmatmul.mubr.f32.gmra.mxu0 %v3626_v46  ;;  %v3635_v13 = vld [vmem:[#allocation2 + $0xb2] sm:$0xff]  ;;  %v3701_v29 = vld [vmem:[#allocation2 + $0xe0] sm:$0xff]  ;;  %v3637_v18 = vld [vmem:[#allocation2 + $0xca] sm:$0xff] }
 0x4fa   :  { %4328 = vmatprep.mubr.f32.mxu1 %v14947_v0  ;;  %4703 = vmatprep.mubr.f32.mxu0 %v3691_v57  ;;  %v3700_v55 = vld [vmem:[#allocation2 + $0xd8] sm:$0xff]  ;;  %v4171_v46 = vld [vmem:[#allocation3 + $0x330] sm:$0xff]  ;;  %v14958_v0 = vmax.f32 %v11860_v7, 0.0  ;;  %v4154_v7 = vld [vmem:[#allocation3 + $0x2a8] sm:$0xff] }
 0x4fb   :  { %5383 = vmatpush1.msra.mxu0 %v4176_v56  ;;  %5031 = vmatprep.subr.mxu1 %v12110_v9  ;;  %v3638_v20 = vld [vmem:[#allocation2 + $0xda] sm:$0xff]  ;;  %v4170_v16 = vld [vmem:[#allocation3 + $0x328] sm:$0xff]  ;;  %v3705_v56 = vld [vmem:[#allocation2 + $0x110] sm:$0xff] }
 0x4fc   :  { %5384 = vmatprep.subr.mxu0 %v12110_v9  ;;  %5032 = vmatpush2.msra.mxu1 %v4159_v60  ;;  %v3639_v28 = vld [vmem:[#allocation2 + $0xe2] sm:$0xff]  ;;  %v14964_v60 = vld [vmem:[#allocation28_spill] sm:$0xff] }
 0x4fd   :  { %4329 = vmatmul.mubr.f32.gmra.mxu1 %v3691_v57  ;;  %4704 = vmatmul.mubr.f32.gmra.mxu0 %v3627_v44  ;;  %v3702_v57 = vld [vmem:[#allocation2 + $0xf0] sm:$0xff]  ;;  %v14959_v44 = vmax.f32 %v11864_v8, 0.0  ;;  %v4153_v51 = vld [vmem:[#allocation3 + $0x2a0] sm:$0xff] }
 0x4fe   :  { %4333 = vmatprep.mubr.f32.mxu1 %v14948_v40  ;;  %4708 = vmatprep.mubr.f32.mxu0 %v3692_v61  ;;  %v3703_v40 = vld [vmem:[#allocation2 + $0xf8] sm:$0xff] }
 0x4ff   :  { %5385 = vmatpush1.msra.mxu0 %v4175_v23  ;;  %5033 = vmatprep.subr.mxu1 %v12110_v9  ;;  %v3640_v8 = vld [vmem:[#allocation2 + $0xf2] sm:$0xff]  ;;  %v3706_v23 = vld [vmem:[#allocation2 + $0x120] sm:$0xff] }
 0x500   :  { %5386 = vmatprep.subr.mxu0 %v12110_v9  ;;  %5034 = vmatpush2.msra.mxu1 %v4158_v30  ;;  %v4167_v30 = vld [vmem:[#allocation3 + $0x310] sm:$0xff] }
 0x501   :  { %4334 = vmatmul.mubr.f32.gmra.mxu1 %v3692_v61  ;;  %4709 = vmatmul.mubr.f32.gmra.mxu0 %v3628_v2  ;;  %v4292_v61 = vpop.f32.mrf.mxu1  ;;  %v14960_v2 = vmax.f32 %v11868_v10, 0.0  ;;  %v3641_v10 = vld [vmem:[#allocation2 + $0xfa] sm:$0xff] }
 0x502   :  { %4338 = vmatprep.mubr.f32.mxu1 %v14949_v32  ;;  %4713 = vmatprep.mubr.f32.mxu0 %v3693_v1  ;;  %v3704_v32 = vld [vmem:[#allocation2 + $0x108] sm:$0xff]  ;;  %v3649_v61 = vld [vmem:[#allocation2 + $0x15a] sm:$0xff] }
 0x503   :  { %5387 = vmatpush1.msra.mxu0 %v4174_v47  ;;  %5035 = vmatprep.subr.mxu1 %v12110_v9  ;;  %v4168_v47 = vld [vmem:[#allocation3 + $0x318] sm:$0xff] }
 0x504   :  { %5388 = vmatprep.subr.mxu0 %v12110_v9  ;;  %5036 = vmatpush2.msra.mxu1 %v4157_v53  ;;  %v14967_v53 = vmax.f32 %v11888_v49, 0.0  ;;  %v3646_v49 = vld [vmem:[#allocation2 + $0x13a] sm:$0xff] }
 0x505   :  { %4339 = vmatmul.mubr.f32.gmra.mxu1 %v3693_v1  ;;  %4714 = vmatmul.mubr.f32.gmra.mxu0 %v3629_v37  ;;  %v14961_v1 = vmax.f32 %v11872_v22, 0.0  ;;  %v4169_v37 = vld [vmem:[#allocation3 + $0x320] sm:$0xff]  ;;  %v3642_v22 = vld [vmem:[#allocation2 + $0x10a] sm:$0xff] }
 0x506   :  { %4343 = vmatprep.mubr.f32.mxu1 %v14950_v24  ;;  %4718 = vmatprep.mubr.f32.mxu0 %v3694_v11  ;;  %v14962_v24 = vld [vmem:[#allocation27_spill] sm:$0xff] }
 0x507   :  { %5389 = vmatpush1.msra.mxu0 %v4173_v31  ;;  %5037 = vmatprep.subr.mxu1 %v12110_v9  ;;  %v3709_v31 = vld [vmem:[#allocation2 + $0x140] sm:$0xff] }
 0x508   :  { %5390 = vmatprep.subr.mxu0 %v12110_v9  ;;  %5038 = vmatpush2.msra.mxu1 %v4156_v5  ;;  %v4194_v5 = vld [vmem:[#allocation3 + $0x3e8] sm:$0xff] }
 0x509   :  { %4344 = vmatmul.mubr.f32.gmra.mxu1 %v3694_v11  ;;  %4719 = vmatmul.mubr.f32.gmra.mxu0 %v3630_v14  ;;  %v14963_v11 = vmax.f32 %v14962_v24, 0.0  ;;  %v14965_v14 = vmax.f32 %v14964_v60, 0.0  ;;  %v4185_v60 = vld [vmem:[#allocation3 + $0x3a0] sm:$0xff] }
 0x50a   :  { %4348 = vmatprep.mubr.f32.mxu1 %v14951_v52  ;;  %4723 = vmatprep.mubr.f32.mxu0 %v3695_v54  ;;  %v3707_v52 = vld [vmem:[#allocation2 + $0x128] sm:$0xff] }
 0x50b   :  { %5391 = vmatpush1.msra.mxu0 %v4172_v58  ;;  %5039 = vmatprep.subr.mxu1 %v12110_v9  ;;  %v14970_v58 = vld [vmem:[#allocation29_spill] sm:$0xff] }
 0x50c   :  { %5392 = vmatprep.subr.mxu0 %v12110_v9  ;;  %5040 = vmatpush2.msra.mxu1 %v4155_v17  ;;  %v3712_v17 = vld [vmem:[#allocation2 + $0x168] sm:$0xff] }
 0x50d   :  { %4349 = vmatmul.mubr.f32.gmra.mxu1 %v3695_v54  ;;  %4724 = vmatmul.mubr.f32.gmra.mxu0 %v3631_v43  ;;  %v4152_v54 = vld [vmem:[#allocation3 + $0x298] sm:$0xff] }
 0x50e   :  { %4353 = vmatprep.mubr.f32.mxu1 %v14952_v27  ;;  %4728 = vmatprep.mubr.f32.mxu0 %v3696_v12  ;;  %v3643_v43 = vld [vmem:[#allocation2 + $0x112] sm:$0xff]  ;;  %v14966_v27 = vmax.f32 %v11884_v26, 0.0 }
 0x50f   :  { %5393 = vmatpush1.msra.mxu0 %v4171_v46  ;;  %5041 = vmatprep.subr.mxu1 %v12110_v9  ;;  %v4151_v26 = vld [vmem:[#allocation3 + $0x290] sm:$0xff]  ;;  %v4192_v46 = vld [vmem:[#allocation3 + $0x3d8] sm:$0xff] }
 0x510   :  { %5394 = vmatprep.subr.mxu0 %v12110_v9  ;;  %5042 = vmatpush2.msra.mxu1 %v4154_v7  ;;  %v3714_v7 = vld [vmem:[#allocation2 + $0x180] sm:$0xff] }
 0x511   :  { %4354 = vmatmul.mubr.f32.gmra.mxu1 %v3696_v12  ;;  %4729 = vmatmul.mubr.f32.gmra.mxu0 %v3632_v42  ;;  %v3708_v12 = vld [vmem:[#allocation2 + $0x138] sm:$0xff]  ;;  %v4166_v42 = vld [vmem:[#allocation3 + $0x308] sm:$0xff] }
 0x512   :  { %4358 = vmatprep.mubr.f32.mxu1 %v14953_v63  ;;  %4733 = vmatprep.mubr.f32.mxu0 %v3697_v62  ;;  %v3644_v63 = vld [vmem:[#allocation2 + $0x122] sm:$0xff] }
 0x513   :  { %5395 = vmatpush1.msra.mxu0 %v4170_v16  ;;  %5043 = vmatprep.subr.mxu1 %v12110_v9  ;;  %v3524_v16 = vld [vmem:[#allocation2 + $0x1b0] sm:$0xff] }
 0x514   :  { %5396 = vmatprep.subr.mxu0 %v12110_v9  ;;  %5044 = vmatpush2.msra.mxu1 %v4153_v51  ;;  %v4187_v51 = vld [vmem:[#allocation3 + $0x3b0] sm:$0xff] }
 0x515   :  { %4359 = vmatmul.mubr.f32.gmra.mxu1 %v3697_v62  ;;  %4734 = vmatmul.mubr.f32.gmra.mxu0 %v3633_v59  ;;  %v4165_v62 = vld [vmem:[#allocation3 + $0x300] sm:$0xff]  ;;  %v4196_v59 = vld [vmem:[#allocation3 + $0x3f8] sm:$0xff] }
 0x516   :  { %4363 = vmatprep.mubr.f32.mxu1 %v14954_v34  ;;  %4738 = vmatprep.mubr.f32.mxu0 %v3698_v36  ;;  %v3645_v34 = vld [vmem:[#allocation2 + $0x12a] sm:$0xff] }
 0x517   :  { %5397 = vmatpush1.msra.mxu0 %v4169_v37  ;;  %5045 = vmatprep.subr.mxu1 %v12110_v9  ;;  %v3651_v37 = vld [vmem:[#allocation2 + $0x172] sm:$0xff] }
 0x518   :  { %5398 = vmatprep.subr.mxu0 %v12110_v9  ;;  %5046 = vmatpush2.msra.mxu1 %v4152_v54  ;;  %v3653_v54 = vld [vmem:[#allocation2 + $0x1ba] sm:$0xff] }
 0x519   :  { %4364 = vmatmul.mubr.f32.gmra.mxu1 %v3698_v36  ;;  %4739 = vmatmul.mubr.f32.gmra.mxu0 %v3634_v15  ;;  %v14968_v36 = vld [vmem:[#allocation30_spill] sm:$0xff] }
 0x51a   :  { %4368 = vmatprep.mubr.f32.mxu1 %v14955_v38  ;;  %4743 = vmatprep.mubr.f32.mxu0 %v3699_v25  ;;  %v14969_v15 = vmax.f32 %v14968_v36, 0.0  ;;  %v3710_v38 = vld [vmem:[#allocation2 + $0x150] sm:$0xff] }
 0x51b   :  { %5399 = vmatpush1.msra.mxu0 %v4168_v47  ;;  %5047 = vmatprep.subr.mxu1 %v12110_v9  ;;  %v4184_v47 = vld [vmem:[#allocation3 + $0x398] sm:$0xff] }
 0x51c   :  { %5400 = vmatprep.subr.mxu0 %v12110_v9  ;;  %5048 = vmatpush2.msra.mxu1 %v4151_v26  ;;  %v14981_v26 = vmax.f32 %v14923_v35, 0.0  ;;  %v3596_v36 = vld [vmem:[#allocation2 + $0x211] sm:$0xff]  ;;  %v3598_v35 = vld [vmem:[#allocation2 + $0x229] sm:$0xff] }
 0x51d   :  { %4369 = vmatmul.mubr.f32.gmra.mxu1 %v3699_v25  ;;  %4744 = vmatmul.mubr.f32.gmra.mxu0 %v3635_v13  ;;  %v4195_v25 = vld [vmem:[#allocation3 + $0x3f0] sm:$0xff]  ;;  %v14971_v13 = vmax.f32 %v14970_v58, 0.0 }
 0x51e   :  { %4373 = vmatprep.mubr.f32.mxu1 %v14956_v48  ;;  %4748 = vmatprep.mubr.f32.mxu0 %v3700_v55  ;;  %v3711_v48 = vld [vmem:[#allocation2 + $0x158] sm:$0xff] }
 0x51f   :  { %5401 = vmatpush1.msra.mxu0 %v4167_v30  ;;  %5049 = vmatprep.subr.mxu1 %v12110_v9  ;;  %v14978_v30 = vmax.f32 %v11925_v6, 0.0  ;;  %v4181_v6 = vld [vmem:[#allocation3 + $0x380] sm:$0xff]  ;;  %v3599_v58 = vld [vmem:[#allocation2 + $0x231] sm:$0xff] }
 0x520   :  { %5402 = vmatprep.subr.mxu0 %v12110_v9 }
 0x521   :  { %4374 = vmatmul.mubr.f32.gmra.mxu1 %v3700_v55  ;;  %4749 = vmatmul.mubr.f32.gmra.mxu0 %v3636_v33  ;;  %v4150_v55 = vld [vmem:[#allocation3 + $0x288] sm:$0xff]  ;;  %v4193_v33 = vld [vmem:[#allocation3 + $0x3e0] sm:$0xff] }
 0x522   :  { %4378 = vmatprep.mubr.f32.mxu1 %v14957_v4  ;;  %4753 = vmatprep.mubr.f32.mxu0 %v3701_v29  ;;  %v3647_v4 = vld [vmem:[#allocation2 + $0x142] sm:$0xff] }
 0x523   :  { %5403 = vmatpush1.msra.mxu0 %v4166_v42  ;;  %5050 = vmatpush2.msra.mxu1 %v4150_v55  ;;  %v14979_v42 = vmax.f32 %v11929_v39, 0.0  ;;  %v3656_v39 = vld [vmem:[#allocation2 + $0x1e2] sm:$0xff] }
 0x524   :  { %5404 = vmatprep.subr.mxu0 %v12110_v9  ;;  %5051 = vmatprep.subr.mxu1 %v12110_v9  ;;  %v3600_v55 = vld [vmem:[#allocation2 + $0x241] sm:$0xff] }
 0x525   :  { %4379 = vmatmul.mubr.f32.gmra.mxu1 %v3701_v29  ;;  %4754 = vmatmul.mubr.f32.gmra.mxu0 %v3637_v18  ;;  %v14972_v29 = vmax.f32 %v11901_v50, 0.0  ;;  %v3648_v18 = vld [vmem:[#allocation2 + $0x152] sm:$0xff] }
 0x526   :  { %4383 = vmatprep.mubr.f32.mxu1 %v14958_v0  ;;  %4758 = vmatprep.mubr.f32.mxu0 %v3702_v57  ;;  %v4191_v0 = vld [vmem:[#allocation3 + $0x3d0] sm:$0xff] }
 0x527   :  { %5405 = vmatpush1.msra.mxu0 %v4165_v62  ;;  %v3588_v50 = vld [vmem:[#allocation2 + $0x1b1] sm:$0xff] }
 0x528   :  { %5406 = vmatprep.subr.mxu0 %v12110_v9  ;;  %v3655_v62 = vld [vmem:[#allocation2 + $0x1d2] sm:$0xff] }
 0x529   :  { %4384 = vmatmul.mubr.f32.gmra.mxu1 %v3702_v57  ;;  %4759 = vmatmul.mubr.f32.gmra.mxu0 %v3638_v20  ;;  %v14973_v57 = vld [vmem:[#allocation41_spill] sm:$0xff]  ;;  %v3713_v20 = vld [vmem:[#allocation2 + $0x170] sm:$0xff] }
 0x52a   :  { %4388 = vmatprep.mubr.f32.mxu1 %v14959_v44  ;;  %4763 = vmatprep.mubr.f32.mxu0 %v3703_v40  ;;  %v14974_v45 = vmax.f32 %v14973_v57, 0.0  ;;  %v4149_v44 = vld [vmem:[#allocation3 + $0x280] sm:$0xff] }
 0x52b   :  { %5407 = vmatpush2.msra.mxu0 %v4196_v59  ;;  %5052 = vmatpush2.msra.mxu1 %v4149_v44  ;;  %v3721_v59 = vld [vmem:[#allocation2 + $0x200] sm:$0xff]  ;;  %v3604_v44 = vld [vmem:[#allocation2 + $0x271] sm:$0xff] }
 0x52c   :  { %5408 = vmatprep.subr.mxu0 %v12110_v9  ;;  %v3664_v57 = vld [vmem:[#allocation2 + $0x242] sm:$0xff] }
 0x52d   :  { %4389 = vmatmul.mubr.f32.gmra.mxu1 %v3703_v40  ;;  %4764 = vmatmul.mubr.f32.gmra.mxu0 %v3639_v28  ;;  %v4190_v40 = vld [vmem:[#allocation3 + $0x3c8] sm:$0xff]  ;;  %v4189_v28 = vld [vmem:[#allocation3 + $0x3c0] sm:$0xff] }
 0x52e   :  { %4393 = vmatprep.mubr.f32.mxu1 %v14960_v2  ;;  %4768 = vmatprep.mubr.f32.mxu0 %v3704_v32  ;;  %v3589_v2 = vld [vmem:[#allocation2 + $0x1b9] sm:$0xff] }
 0x52f   :  { %5409 = vmatpush2.msra.mxu0 %v4195_v25  ;;  %v3659_v25 = vld [vmem:[#allocation2 + $0x202] sm:$0xff] }
 0x530   :  { %5410 = vmatprep.subr.mxu0 %v12110_v9 }
 0x531   :  { %4394 = vmatmul.mubr.f32.gmra.mxu1 %v3704_v32  ;;  %4769 = vmatmul.mubr.f32.gmra.mxu0 %v3640_v8  ;;  %v3650_v32 = vld [vmem:[#allocation2 + $0x16a] sm:$0xff]  ;;  %v4188_v8 = vld [vmem:[#allocation3 + $0x3b8] sm:$0xff] }
 0x532   :  { %4398 = vmatprep.mubr.f32.mxu1 %v14961_v1  ;;  %4773 = vmatprep.mubr.f32.mxu0 %v3705_v56  ;;  %v3715_v1 = vld [vmem:[#allocation2 + $0x188] sm:$0xff] }
 0x533   :  { %5411 = vmatpush2.msra.mxu0 %v4194_v5  ;;  %v3660_v5 = vld [vmem:[#allocation2 + $0x212] sm:$0xff] }
 0x534   :  { %5412 = vmatprep.subr.mxu0 %v12110_v9 }
 0x535   :  { %4399 = vmatmul.mubr.f32.gmra.mxu1 %v3705_v56  ;;  %4774 = vmatmul.mubr.f32.gmra.mxu0 %v3641_v10  ;;  %v12281_v56 = vld [vmem:[#allocation3 + $0x478] sm:$0xff]  ;;  %v14975_v10 = vld [vmem:[#allocation39_spill] sm:$0xff] }
 0x536   :  { %4403 = vmatprep.mubr.f32.mxu1 %v14963_v11  ;;  %4778 = vmatprep.mubr.f32.mxu0 %v3706_v23  ;;  %v14976_v24 = vmax.f32 %v14975_v10, 0.0  ;;  %v3716_v11 = vld [vmem:[#allocation2 + $0x1c8] sm:$0xff]  ;;  %v3607_v10 = vld [vmem:[#allocation2 + $0x291] sm:$0xff] }
 0x537   :  { %5413 = vmatpush2.msra.mxu0 %v4193_v33  ;;  %7868 = vmatprep.subr.mxu1 %v12281_v56  ;;  %v3726_v33 = vld [vmem:[#allocation2 + $0x240] sm:$0xff] }
 0x538   :  { %5414 = vmatprep.subr.mxu0 %v12110_v9 }
 0x539   :  { %4404 = vmatmul.mubr.f32.gmra.mxu1 %v3706_v23  ;;  %4779 = vmatmul.mubr.f32.gmra.mxu0 %v3642_v22  ;;  %v4186_v23 = vld [vmem:[#allocation3 + $0x3a8] sm:$0xff]  ;;  %v3652_v22 = vld [vmem:[#allocation2 + $0x1b2] sm:$0xff] }
 0x53a   :  { %4408 = vmatprep.mubr.f32.mxu1 %v14965_v14  ;;  %4783 = vmatprep.mubr.f32.mxu0 %v3707_v52  ;;  %v14977_v14 = vmax.f32 %v11921_v19, 0.0  ;;  %v3654_v19 = vld [vmem:[#allocation2 + $0x1ca] sm:$0xff] }
 0x53b   :  { %5415 = vmatpush2.msra.mxu0 %v4192_v46  ;;  %v3663_v46 = vld [vmem:[#allocation2 + $0x232] sm:$0xff] }
 0x53c   :  { %5416 = vmatprep.subr.mxu0 %v12110_v9 }
 0x53d   :  { %4409 = vmatmul.mubr.f32.gmra.mxu1 %v3707_v52  ;;  %4784 = vmatmul.mubr.f32.gmra.mxu0 %v3643_v43  ;;  %v3717_v52 = vld [vmem:[#allocation2 + $0x1d0] sm:$0xff]  ;;  %v3718_v43 = vld [vmem:[#allocation2 + $0x1e0] sm:$0xff] }
 0x53e   :  { %4413 = vmatprep.mubr.f32.mxu1 %v14966_v27  ;;  %4788 = vmatprep.mubr.f32.mxu0 %v3708_v12  ;;  %v4183_v27 = vld [vmem:[#allocation3 + $0x390] sm:$0xff] }
 0x53f   :  { %5417 = vmatpush2.msra.mxu0 %v4191_v0  ;;  %v3728_v0 = vld [vmem:[#allocation2 + $0x258] sm:$0xff] }
 0x540   :  { %5418 = vmatprep.subr.mxu0 %v12110_v9 }
 0x541   :  { %4414 = vmatmul.mubr.f32.gmra.mxu1 %v3708_v12  ;;  %4789 = vmatmul.mubr.f32.gmra.mxu0 %v3644_v63  ;;  %v4182_v12 = vld [vmem:[#allocation3 + $0x388] sm:$0xff] }
 0x542   :  { %4418 = vmatprep.mubr.f32.mxu1 %v14967_v53  ;;  %4793 = vmatprep.mubr.f32.mxu0 %v3709_v31  ;;  %v3719_v63 = vld [vmem:[#allocation2 + $0x1e8] sm:$0xff]  ;;  %v14980_v53 = vmax.f32 %v14922_v41, 0.0  ;;  %v3722_v41 = vld [vmem:[#allocation2 + $0x210] sm:$0xff] }
 0x543   :  { %5419 = vmatpush2.msra.mxu0 %v4190_v40  ;;  %v3730_v40 = vld [vmem:[#allocation2 + $0x270] sm:$0xff] }
 0x544   :  { %5420 = vmatprep.subr.mxu0 %v12110_v9 }
 0x545   :  { %4419 = vmatmul.mubr.f32.gmra.mxu1 %v3709_v31  ;;  %4794 = vmatmul.mubr.f32.gmra.mxu0 %v3645_v34  ;;  %v3720_v31 = vld [vmem:[#allocation2 + $0x1f8] sm:$0xff]  ;;  %v3657_v34 = vld [vmem:[#allocation2 + $0x1ea] sm:$0xff] }
 0x546   :  { %4423 = vmatprep.mubr.f32.mxu1 %v14969_v15  ;;  %4798 = vmatprep.mubr.f32.mxu0 %v3710_v38  ;;  %v3658_v15 = vld [vmem:[#allocation2 + $0x1fa] sm:$0xff] }
 0x547   :  { %5421 = vmatpush2.msra.mxu0 %v4189_v28  ;;  %v3667_v28 = vld [vmem:[#allocation2 + $0x262] sm:$0xff] }
 0x548   :  { %5422 = vmatprep.subr.mxu0 %v12110_v9 }
 0x549   :  { %4424 = vmatmul.mubr.f32.gmra.mxu1 %v3710_v38  ;;  %4799 = vmatmul.mubr.f32.gmra.mxu0 %v3646_v49  ;;  %v3597_v38 = vld [vmem:[#allocation2 + $0x219] sm:$0xff]  ;;  %v3724_v49 = vld [vmem:[#allocation2 + $0x228] sm:$0xff] }
 0x54a   :  { %4428 = vmatprep.mubr.f32.mxu1 %v14971_v13  ;;  %4803 = vmatprep.mubr.f32.mxu0 %v3711_v48  ;;  %v3725_v13 = vld [vmem:[#allocation2 + $0x230] sm:$0xff] }
 0x54b   :  { %5423 = vmatpush2.msra.mxu0 %v4188_v8  ;;  %v3732_v8 = vld [vmem:[#allocation2 + $0x288] sm:$0xff] }
 0x54c   :  { %5424 = vmatprep.subr.mxu0 %v12110_v9 }
 0x54d   :  { %4429 = vmatmul.mubr.f32.gmra.mxu1 %v3711_v48  ;;  %4804 = vmatmul.mubr.f32.gmra.mxu0 %v3647_v4  ;;  %v3661_v48 = vld [vmem:[#allocation2 + $0x21a] sm:$0xff]  ;;  %v3662_v4 = vld [vmem:[#allocation2 + $0x22a] sm:$0xff] }
 0x54e   :  { %4433 = vmatprep.mubr.f32.mxu1 %v14972_v29  ;;  %4808 = vmatprep.mubr.f32.mxu0 %v3712_v17  ;;  %v3601_v29 = vld [vmem:[#allocation2 + $0x249] sm:$0xff] }
 0x54f   :  { %5425 = vmatpush2.msra.mxu0 %v4187_v51 }
 0x550   :  { %5426 = vmatprep.subr.mxu0 %v12110_v9 }
 0x551   :  { %4434 = vmatmul.mubr.f32.gmra.mxu1 %v3712_v17  ;;  %4809 = vmatmul.mubr.f32.gmra.mxu0 %v3648_v18  ;;  %v3727_v17 = vld [vmem:[#allocation2 + $0x248] sm:$0xff]  ;;  %v3602_v18 = vld [vmem:[#allocation2 + $0x259] sm:$0xff] }
 0x552   :  { %4438 = vmatprep.mubr.f32.mxu1 %v14974_v45  ;;  %4813 = vmatprep.mubr.f32.mxu0 %v3713_v20  ;;  %v3603_v45 = vld [vmem:[#allocation2 + $0x261] sm:$0xff] }
 0x553   :  { %5427 = vmatpush2.msra.mxu0 %v4186_v23 }
 0x554   :  { %5428 = vmatprep.subr.mxu0 %v12110_v9 }
 0x555   :  { %4439 = vmatmul.mubr.f32.gmra.mxu1 %v3713_v20  ;;  %4814 = vmatmul.mubr.f32.gmra.mxu0 %v3649_v61  ;;  %v3729_v20 = vld [vmem:[#allocation2 + $0x260] sm:$0xff] }
 0x556   :  { %4443 = vmatprep.mubr.f32.mxu1 %v3588_v50  ;;  %4818 = vmatprep.mubr.f32.mxu0 %v3714_v7  ;;  %v3665_v50 = vld [vmem:[#allocation2 + $0x24a] sm:$0xff]  ;;  %v3666_v61 = vld [vmem:[#allocation2 + $0x25a] sm:$0xff] }
 0x557   :  { %5429 = vmatpush2.msra.mxu0 %v4185_v60  ;;  %v3605_v7 = vld [vmem:[#allocation2 + $0x279] sm:$0xff] }
 0x558   :  { %5430 = vmatprep.subr.mxu0 %v12110_v9 }
 0x559   :  { %4444 = vmatmul.mubr.f32.gmra.mxu1 %v3524_v16  ;;  %4819 = vmatmul.mubr.f32.gmra.mxu0 %v3650_v32  ;;  %v3731_v16 = vld [vmem:[#allocation2 + $0x278] sm:$0xff]  ;;  %v12308_v32 = vld [vmem:[%s14532_s7] ss:$0 sm:$0xff] }
 0x55a   :  { %4448 = vmatprep.mubr.f32.mxu1 %v3589_v2  ;;  %4823 = vmatprep.mubr.f32.mxu0 %v3715_v1  ;;  %v3606_v2 = vld [vmem:[#allocation2 + $0x289] sm:$0xff]  ;;  %v4286_v1 = vadd.f32 %v12308_v32, %v12232_v3  ;;  %v3608_v3 = vld [vmem:[#allocation2 + $0x2a1] sm:$0xff] }
 0x55b   :  { %5431 = vmatpush2.msra.mxu0 %v4184_v47 }
 0x55c   :  { %5432 = vmatprep.subr.mxu0 %v12110_v9 }
 0x55d   :  { %4449 = vmatmul.mubr.f32.gmra.mxu1 %v12110_v9  ;;  %4824 = vmatmul.mubr.f32.gmra.mxu0 %v3651_v37  ;;  %v3668_v37 = vld [vmem:[#allocation2 + $0x272] sm:$0xff] }
 0x55e   :  { %4453 = vmatprep.mubr.f32.mxu1 %v14976_v24  ;;  %4828 = vmatprep.mubr.f32.mxu0 %v3716_v11 }
 0x55f   :  { %5433 = vmatpush2.msra.mxu0 %v4183_v27 }
 0x560   :  { %5434 = vmatprep.subr.mxu0 %v12110_v9 }
 0x561   :  { %4454 = vmatmul.mubr.f32.gmra.mxu1 %v3716_v11  ;;  %4829 = vmatmul.mubr.f32.gmra.mxu0 %v3652_v22  ;;  %v3733_v11 = vld [vmem:[#allocation2 + $0x290] sm:$0xff] }
 0x562   :  { %4458 = vmatprep.mubr.f32.mxu1 %v14977_v14  ;;  %4833 = vmatprep.mubr.f32.mxu0 %v3717_v52  ;;  %v4291_v14 = vadd.f32 %v12308_v32, %v12237_v21 }
 0x563   :  { %5435 = vmatpush2.msra.mxu0 %v4182_v12 }
 0x564   :  { %5436 = vmatprep.subr.mxu0 %v12110_v9 }
 0x565   :  { %4459 = vmatmul.mubr.f32.gmra.mxu1 %v3717_v52  ;;  %4834 = vmatmul.mubr.f32.gmra.mxu0 %v3653_v54  ;;  %v3669_v54 = vld [vmem:[#allocation2 + $0x27a] sm:$0xff] }
 0x566   :  { %4463 = vmatprep.mubr.f32.mxu1 %v14978_v30  ;;  %4838 = vmatprep.mubr.f32.mxu0 %v3718_v43  ;;  %v3734_v30 = vld [vmem:[#allocation2 + $0x2a0] sm:$0xff] }
 0x567   :  { %5437 = vmatpush2.msra.mxu0 %v4181_v6  ;;  %v3609_v6 = vld [vmem:[#allocation2 + $0x2a9] sm:$0xff] }
 0x568   :  { %7996 = vmatprep.subr.mxu0 %v12110_v9  ;;  %v3723_v9 = vld [vmem:[#allocation2 + $0x218] sm:$0xff] }
 0x569   :  { %4464 = vmatmul.mubr.f32.gmra.mxu1 %v3718_v43  ;;  %4839 = vmatmul.mubr.f32.gmra.mxu0 %v3654_v19 }
 0x56a   :  { %4468 = vmatprep.mubr.f32.mxu1 %v14979_v42  ;;  %4843 = vmatprep.mubr.f32.mxu0 %v3719_v63 }
 0x56d   :  { %4469 = vmatmul.mubr.f32.gmra.mxu1 %v3719_v63  ;;  %4844 = vmatmul.mubr.f32.gmra.mxu0 %v3655_v62  ;;  %v3670_v63 = vld [vmem:[#allocation2 + $0x28a] sm:$0xff] }
 0x56e   :  { %4473 = vmatprep.mubr.f32.mxu1 %v14980_v53  ;;  %4848 = vmatprep.mubr.f32.mxu0 %v3720_v31  ;;  %v3735_v62 = vld [vmem:[#allocation2 + $0x2a8] sm:$0xff] }
 0x571   :  { %4474 = vmatmul.mubr.f32.gmra.mxu1 %v3720_v31  ;;  %4849 = vmatmul.mubr.f32.gmra.mxu0 %v3656_v39 }
 0x572   :  { %4478 = vmatprep.mubr.f32.mxu1 %v14981_v26  ;;  %4853 = vmatprep.mubr.f32.mxu0 %v3721_v59 }
 0x575   :  { %4479 = vmatmul.mubr.f32.gmra.mxu1 %v3721_v59  ;;  %4854 = vmatmul.mubr.f32.gmra.mxu0 %v3657_v34  ;;  %v3671_v34 = vld [vmem:[#allocation2 + $0x292] sm:$0xff] }
 0x576   :  { %4483 = vmatprep.mubr.f32.mxu1 %v3596_v36  ;;  %4858 = vmatprep.mubr.f32.mxu0 %v3722_v41  ;;  %v3610_v36 = vld [vmem:[#allocation2 + $0x2b9] sm:$0xff] }
 0x579   :  { %4484 = vmatmul.mubr.f32.gmra.mxu1 %v3722_v41  ;;  %4859 = vmatmul.mubr.f32.gmra.mxu0 %v3658_v15  ;;  %v3736_v15 = vld [vmem:[#allocation2 + $0x2b8] sm:$0xff] }
 0x57a   :  { %4488 = vmatprep.mubr.f32.mxu1 %v3597_v38  ;;  %4863 = vmatprep.mubr.f32.mxu0 %v3723_v9 }
 0x57d   :  { %4489 = vmatmul.mubr.f32.gmra.mxu1 %v3723_v9  ;;  %4864 = vmatmul.mubr.f32.gmra.mxu0 %v3659_v25 }
 0x57e   :  { %4493 = vmatprep.mubr.f32.mxu1 %v3598_v35  ;;  %4868 = vmatprep.mubr.f32.mxu0 %v3724_v49 }
 0x581   :  { %4494 = vmatmul.mubr.f32.gmra.mxu1 %v3724_v49  ;;  %4869 = vmatmul.mubr.f32.gmra.mxu0 %v3660_v5  ;;  %v3672_v5 = vld [vmem:[#allocation2 + $0x2a2] sm:$0xff] }
 0x582   :  { %4498 = vmatprep.mubr.f32.mxu1 %v3599_v58  ;;  %4873 = vmatprep.mubr.f32.mxu0 %v3725_v13  ;;  %v3611_v58 = vld [vmem:[#allocation2 + $0x2c1] sm:$0xff] }
 0x585   :  { %4499 = vmatmul.mubr.f32.gmra.mxu1 %v3725_v13  ;;  %4874 = vmatmul.mubr.f32.gmra.mxu0 %v3661_v48  ;;  %v3737_v48 = vld [vmem:[#allocation2 + $0x2c0] sm:$0xff] }
 0x586   :  { %4503 = vmatprep.mubr.f32.mxu1 %v3600_v55  ;;  %4878 = vmatprep.mubr.f32.mxu0 %v3726_v33 }
 0x589   :  { %4504 = vmatmul.mubr.f32.gmra.mxu1 %v3726_v33  ;;  %4879 = vmatmul.mubr.f32.gmra.mxu0 %v3662_v4 }
 0x58a   :  { %4508 = vmatprep.mubr.f32.mxu1 %v3601_v29  ;;  %4883 = vmatprep.mubr.f32.mxu0 %v3727_v17 }
 0x58d   :  { %4509 = vmatmul.mubr.f32.gmra.mxu1 %v3727_v17  ;;  %4884 = vmatmul.mubr.f32.gmra.mxu0 %v3663_v46  ;;  %v3673_v46 = vld [vmem:[#allocation2 + $0x2aa] sm:$0xff] }
 0x58e   :  { %4513 = vmatprep.mubr.f32.mxu1 %v3602_v18  ;;  %4888 = vmatprep.mubr.f32.mxu0 %v3728_v0  ;;  %v3612_v18 = vld [vmem:[#allocation2 + $0x2d1] sm:$0xff] }
 0x591   :  { %4514 = vmatmul.mubr.f32.gmra.mxu1 %v3728_v0  ;;  %4889 = vmatmul.mubr.f32.gmra.mxu0 %v3664_v57  ;;  %v3738_v57 = vld [vmem:[#allocation2 + $0x2d0] sm:$0xff] }
 0x592   :  { %4518 = vmatprep.mubr.f32.mxu1 %v3603_v45  ;;  %4893 = vmatprep.mubr.f32.mxu0 %v3729_v20 }
 0x595   :  { %4519 = vmatmul.mubr.f32.gmra.mxu1 %v3729_v20  ;;  %4894 = vmatmul.mubr.f32.gmra.mxu0 %v3665_v50 }
 0x596   :  { %4523 = vmatprep.mubr.f32.mxu1 %v3604_v44  ;;  %4898 = vmatprep.mubr.f32.mxu0 %v3730_v40 }
 0x599   :  { %4524 = vmatmul.mubr.f32.gmra.mxu1 %v3730_v40  ;;  %4899 = vmatmul.mubr.f32.gmra.mxu0 %v3666_v61  ;;  %v3674_v61 = vld [vmem:[#allocation2 + $0x2ba] sm:$0xff] }
 0x59a   :  { %4528 = vmatprep.mubr.f32.mxu1 %v3605_v7  ;;  %4903 = vmatprep.mubr.f32.mxu0 %v3731_v16  ;;  %v3613_v7 = vld [vmem:[#allocation2 + $0x2d9] sm:$0xff] }
 0x59d   :  { %4529 = vmatmul.mubr.f32.gmra.mxu1 %v3731_v16  ;;  %4904 = vmatmul.mubr.f32.gmra.mxu0 %v3667_v28  ;;  %v3739_v28 = vld [vmem:[#allocation2 + $0x2d8] sm:$0xff] }
 0x59e   :  { %4533 = vmatprep.mubr.f32.mxu1 %v3606_v2  ;;  %4908 = vmatprep.mubr.f32.mxu0 %v3732_v8 }
 0x59f   :  { %v4295_v51 = vpop.f32.mrf.mxu1 }
 0x5a0   :  { %v4670_v24 = vpop.f32.mrf.mxu0  ;;  %v4296_v12 = vadd.f32 %v12308_v32, %v4295_v51 }
 0x5a1   :  { %4534 = vmatmul.mubr.f32.gmra.mxu1 %v3732_v8  ;;  %4909 = vmatmul.mubr.f32.gmra.mxu0 %v3668_v37  ;;  %v12312_v23 = vadd.f32 %v4670_v24, %v4286_v1  ;;  %v4297_v22 = vpop.f32.mrf.mxu1  ;;  %v3614_v24 = vld [vmem:[#allocation2 + $0x2e9] sm:$0xff] }
 0x5a2   :  { %4538 = vmatprep.mubr.f32.mxu1 %v3607_v10  ;;  %4913 = vmatprep.mubr.f32.mxu0 %v3733_v11  ;;  %v4672_v60 = vpop.f32.mrf.mxu0  ;;  %v3675_v10 = vld [vmem:[#allocation2 + $0x2c2] sm:$0xff] }
 0x5a3   :  { %v3740_v22 = vld [vmem:[#allocation2 + $0x2e8] sm:$0xff] }
 0x5a5   :  { %v4300_v52 = vpop.f32.mrf.mxu1  ;;  %4539 = vmatmul.mubr.f32.gmra.mxu1 %v3733_v11  ;;  %v4675_v47 = vpop.f32.mrf.mxu0  ;;  %4914 = vmatmul.mubr.f32.gmra.mxu0 %v3669_v54 }
 0x5a6   :  { %4543 = vmatprep.mubr.f32.mxu1 %v3608_v3  ;;  %v12316_v43 = vadd.f32 %v4675_v47, %v4291_v14  ;;  %4918 = vmatprep.mubr.f32.mxu0 %v3734_v30  ;;  %v4301_v26 = vadd.f32 %v12308_v32, %v4300_v52  ;;  %v3676_v47 = vld [vmem:[#allocation2 + $0x2d2] sm:$0xff] }
 0x5a7   :  { %v4302_v27 = vpop.f32.mrf.mxu1  ;;  %v4677_v19 = vpop.f32.mrf.mxu0 }
 0x5a8   :  { %v3741_v19 = vld [vmem:[#allocation2 + $0x2f0] sm:$0xff] }
 0x5a9   :  { %v4305_v42 = vpop.f32.mrf.mxu1  ;;  %4544 = vmatmul.mubr.f32.gmra.mxu1 %v3734_v30  ;;  %v4680_v21 = vpop.f32.mrf.mxu0  ;;  %4919 = vmatmul.mubr.f32.gmra.mxu0 %v3670_v63  ;;  %v3615_v30 = vld [vmem:[#allocation2 + $0x2f1] sm:$0xff] }
 0x5aa   :  { %4548 = vmatprep.mubr.f32.mxu1 %v3609_v6  ;;  %v12319_v53 = vadd.f32 %v4680_v21, %v4296_v12  ;;  %4923 = vmatprep.mubr.f32.mxu0 %v3735_v62  ;;  %v4306_v35 = vadd.f32 %v12308_v32, %v4305_v42 }
 0x5ab   :  { %v4307_v31 = vpop.f32.mrf.mxu1  ;;  %v4682_v39 = vpop.f32.mrf.mxu0 }
 0x5ac   :  { %v3616_v31 = vld [vmem:[#allocation2 + $0x301] sm:$0xff] }
 0x5ad   :  { %v4310_v59 = vpop.f32.mrf.mxu1  ;;  %4549 = vmatmul.mubr.f32.gmra.mxu1 %v3735_v62  ;;  %v4685_v41 = vpop.f32.mrf.mxu0  ;;  %4924 = vmatmul.mubr.f32.gmra.mxu0 %v3671_v34  ;;  %v3677_v62 = vld [vmem:[#allocation2 + $0x2da] sm:$0xff] }
 0x5ae   :  { %4553 = vmatprep.mubr.f32.mxu1 %v3610_v36  ;;  %v12322_v38 = vadd.f32 %v4685_v41, %v4301_v26  ;;  %4928 = vmatprep.mubr.f32.mxu0 %v3736_v15  ;;  %v4311_v29 = vadd.f32 %v12308_v32, %v4310_v59  ;;  %v3742_v26 = vld [vmem:[#allocation2 + $0x300] sm:$0xff] }
 0x5af   :  { %v4312_v9 = vpop.f32.mrf.mxu1  ;;  %v4687_v25 = vpop.f32.mrf.mxu0 }
 0x5b0   :  { %v3678_v9 = vld [vmem:[#allocation2 + $0x2ea] sm:$0xff] }
 0x5b1   :  { %v4315_v49 = vpop.f32.mrf.mxu1  ;;  %4554 = vmatmul.mubr.f32.gmra.mxu1 %v3736_v15  ;;  %v4690_v13 = vpop.f32.mrf.mxu0  ;;  %4929 = vmatmul.mubr.f32.gmra.mxu0 %v3672_v5  ;;  %v3617_v25 = vld [vmem:[#allocation2 + $0x309] sm:$0xff] }
 0x5b2   :  { %4558 = vmatprep.mubr.f32.mxu1 %v3611_v58  ;;  %v12325_v55 = vadd.f32 %v4690_v13, %v4306_v35  ;;  %4933 = vmatprep.mubr.f32.mxu0 %v3737_v48  ;;  %v4316_v44 = vadd.f32 %v12308_v32, %v4315_v49  ;;  %v3743_v49 = vld [vmem:[#allocation2 + $0x308] sm:$0xff] }
 0x5b3   :  { %v4317_v33 = vpop.f32.mrf.mxu1  ;;  %v4692_v4 = vpop.f32.mrf.mxu0 }
 0x5b4   :  { %v3679_v4 = vld [vmem:[#allocation2 + $0x2f2] sm:$0xff] }
 0x5b5   :  { %v4320_v17 = vpop.f32.mrf.mxu1  ;;  %4559 = vmatmul.mubr.f32.gmra.mxu1 %v3737_v48  ;;  %v4695_v0 = vpop.f32.mrf.mxu0  ;;  %4934 = vmatmul.mubr.f32.gmra.mxu0 %v3673_v46  ;;  %v3744_v46 = vld [vmem:[#allocation2 + $0x318] sm:$0xff] }
 0x5b6   :  { %4563 = vmatprep.mubr.f32.mxu1 %v3612_v18  ;;  %v12328_v45 = vadd.f32 %v4695_v0, %v4311_v29  ;;  %4938 = vmatprep.mubr.f32.mxu0 %v3738_v57  ;;  %v4321_v51 = vadd.f32 %v12308_v32, %v4320_v17  ;;  %v3618_v29 = vld [vmem:[#allocation2 + $0x319] sm:$0xff] }
 0x5b7   :  { %v4322_v20 = vpop.f32.mrf.mxu1  ;;  %v4697_v50 = vpop.f32.mrf.mxu0 }
 0x5b9   :  { %v4325_v40 = vpop.f32.mrf.mxu1  ;;  %4564 = vmatmul.mubr.f32.gmra.mxu1 %v3738_v57  ;;  %v4700_v16 = vpop.f32.mrf.mxu0  ;;  %4939 = vmatmul.mubr.f32.gmra.mxu0 %v3674_v61 }
 0x5ba   :  { %4568 = vmatprep.mubr.f32.mxu1 %v3613_v7  ;;  %v12331_v2 = vadd.f32 %v4700_v16, %v4316_v44  ;;  %4943 = vmatprep.mubr.f32.mxu0 %v3739_v28  ;;  %v4326_v54 = vadd.f32 %v12308_v32, %v4325_v40  ;;  %v3680_v44 = vld [vmem:[#allocation2 + $0x302] sm:$0xff] }
 0x5bb   :  { %v4327_v8 = vpop.f32.mrf.mxu1  ;;  %v4702_v1 = vpop.f32.mrf.mxu0  ;;  %v3619_v40 = vld [vmem:[#allocation2 + $0x321] sm:$0xff] }
 0x5bc   :  { %v3745_v7 = vld [vmem:[#allocation2 + $0x320] sm:$0xff] }
 0x5bd   :  { %v4330_v37 = vpop.f32.mrf.mxu1  ;;  %4569 = vmatmul.mubr.f32.gmra.mxu1 %v3739_v28  ;;  %v4705_v11 = vpop.f32.mrf.mxu0  ;;  %4944 = vmatmul.mubr.f32.gmra.mxu0 %v3675_v10  ;;  %v3812_v10 = vld [vmem:[#allocation2 + $0x1a] sm:$0xff] }
 0x5be   :  { %4573 = vmatprep.mubr.f32.mxu1 %v3614_v24  ;;  %v12334_v60 = vadd.f32 %v4705_v11, %v4321_v51  ;;  %4948 = vmatprep.mubr.f32.mxu0 %v3740_v22  ;;  %v4331_v6 = vadd.f32 %v12308_v32, %v4330_v37  ;;  %v3681_v37 = vld [vmem:[#allocation2 + $0x30a] sm:$0xff] }
 0x5bf   :  { %v4332_v14 = vpop.f32.mrf.mxu1  ;;  %v4707_v52 = vpop.f32.mrf.mxu0  ;;  %v3746_v11 = vld [vmem:[#allocation2 + $0x330] sm:$0xff] }
 0x5c1   :  { %v4335_v3 = vpop.f32.mrf.mxu1  ;;  %4574 = vmatmul.mubr.f32.gmra.mxu1 %v3740_v22  ;;  %v4710_v27 = vpop.f32.mrf.mxu0  ;;  %4949 = vmatmul.mubr.f32.gmra.mxu0 %v3676_v47 }
 0x5c2   :  { %4578 = vmatprep.mubr.f32.mxu1 %v3615_v30  ;;  %v12337_v12 = vadd.f32 %v4710_v27, %v4326_v54  ;;  %4953 = vmatprep.mubr.f32.mxu0 %v3741_v19  ;;  %v4336_v41 = vadd.f32 %v12308_v32, %v4335_v3  ;;  %v3748_v54 = vld [vmem:[#allocation2 + $0x19] sm:$0xff]  ;;  %v3813_v27 = vld [vmem:[#allocation2 + $0x22] sm:$0xff] }
 0x5c3   :  { %v4337_v42 = vpop.f32.mrf.mxu1  ;;  %v4712_v63 = vpop.f32.mrf.mxu0  ;;  %v3682_v30 = vld [vmem:[#allocation2 + $0x31a] sm:$0xff] }
 0x5c4   :  { %v3747_v63 = vld [vmem:[#allocation2 + $0x338] sm:$0xff] }
 0x5c5   :  { %v4340_v21 = vpop.f32.mrf.mxu1  ;;  %4579 = vmatmul.mubr.f32.gmra.mxu1 %v3741_v19  ;;  %v4715_v39 = vpop.f32.mrf.mxu0  ;;  %4954 = vmatmul.mubr.f32.gmra.mxu0 %v3677_v62  ;;  %v4211_v19 = vld [vmem:[#allocation3 + $0x470] sm:$0xff] }
 0x5c6   :  { %4583 = vmatprep.mubr.f32.mxu1 %v3616_v31  ;;  %v12340_v59 = vadd.f32 %v4715_v39, %v4331_v6  ;;  %4958 = vmatprep.mubr.f32.mxu0 %v3742_v26  ;;  %v4341_v48 = vadd.f32 %v12308_v32, %v4340_v21  ;;  %v3749_v31 = vld [vmem:[#allocation2 + $0x21] sm:$0xff] }
 0x5c7   :  { %v4342_v34 = vpop.f32.mrf.mxu1  ;;  %v4717_v36 = vpop.f32.mrf.mxu0 }
 0x5c8   :  { %v3683_v34 = vld [vmem:[#allocation2 + $0x322] sm:$0xff]  ;;  %v3814_v36 = vld [vmem:[#allocation2 + $0x32] sm:$0xff] }
 0x5c9   :  { %v4345_v15 = vpop.f32.mrf.mxu1  ;;  %4584 = vmatmul.mubr.f32.gmra.mxu1 %v3742_v26  ;;  %v4720_v35 = vpop.f32.mrf.mxu0  ;;  %4959 = vmatmul.mubr.f32.gmra.mxu0 %v3678_v9  ;;  %v3941_v9 = vld [vmem:[#allocation2 + $0x31] sm:$0xff] }
 0x5ca   :  { %4588 = vmatprep.mubr.f32.mxu1 %v3617_v25  ;;  %v12343_v5 = vadd.f32 %v4720_v35, %v4336_v41  ;;  %4963 = vmatprep.mubr.f32.mxu0 %v3743_v49  ;;  %v4346_v20 = vadd.f32 %v12308_v32, %v4345_v15  ;;  %v4210_v41 = vld [vmem:[#allocation3 + $0x468] sm:$0xff] }
 0x5cb   :  { %v4347_v58 = vpop.f32.mrf.mxu1  ;;  %v4722_v13 = vpop.f32.mrf.mxu0 }
 0x5cc   :  { %v3877_v13 = vld [vmem:[#allocation2 + $0x30] sm:$0xff] }
 0x5cd   :  { %v4350_v33 = vpop.f32.mrf.mxu1  ;;  %4589 = vmatmul.mubr.f32.gmra.mxu1 %v3743_v49  ;;  %v4725_v17 = vpop.f32.mrf.mxu0  ;;  %4964 = vmatmul.mubr.f32.gmra.mxu0 %v3679_v4 }
 0x5ce   :  { %4593 = vmatprep.mubr.f32.mxu1 %v3618_v29  ;;  %v12346_v18 = vadd.f32 %v4725_v17, %v4341_v48  ;;  %4968 = vmatprep.mubr.f32.mxu0 %v3744_v46  ;;  %v4351_v1 = vadd.f32 %v12308_v32, %v4350_v33  ;;  %v3815_v48 = vld [vmem:[#allocation2 + $0x3a] sm:$0xff] }
 0x5cf   :  { %v4352_v0 = vpop.f32.mrf.mxu1  ;;  %v4727_v57 = vpop.f32.mrf.mxu0  ;;  %v4209_v33 = vld [vmem:[#allocation3 + $0x460] sm:$0xff] }
 0x5d0   :  { %v3942_v29 = vld [vmem:[#allocation2 + $0x39] sm:$0xff] }
 0x5d1   :  { %v4355_v50 = vpop.f32.mrf.mxu1  ;;  %4594 = vmatmul.mubr.f32.gmra.mxu1 %v3744_v46  ;;  %v4730_v61 = vpop.f32.mrf.mxu0  ;;  %4969 = vmatmul.mubr.f32.gmra.mxu0 %v3680_v44  ;;  %v3816_v44 = vld [vmem:[#allocation2 + $0x4a] sm:$0xff] }
 0x5d2   :  { %4598 = vmatprep.mubr.f32.mxu1 %v3619_v40  ;;  %v12349_v16 = vadd.f32 %v4730_v61, %v4346_v20  ;;  %4973 = vmatprep.mubr.f32.mxu0 %v3745_v7  ;;  %v4356_v3 = vadd.f32 %v12308_v32, %v4355_v50  ;;  %v3878_v50 = vld [vmem:[#allocation2 + $0x38] sm:$0xff] }
 0x5d3   :  { %v4357_v28 = vpop.f32.mrf.mxu1  ;;  %v4732_v8 = vpop.f32.mrf.mxu0  ;;  %v4208_v40 = vld [vmem:[#allocation3 + $0x458] sm:$0xff] }
 0x5d5   :  { %v4360_v51 = vpop.f32.mrf.mxu1  ;;  %4599 = vmatmul.mubr.f32.gmra.mxu1 %v3745_v7  ;;  %v4735_v24 = vpop.f32.mrf.mxu0  ;;  %4974 = vmatmul.mubr.f32.gmra.mxu0 %v3681_v37  ;;  %v3943_v7 = vld [vmem:[#allocation2 + $0x49] sm:$0xff] }
 0x5d6   :  { %5053 = vmatprep.mubr.f32.mxu1 %v3812_v10  ;;  %v12352_v22 = vadd.f32 %v4735_v24, %v4351_v1  ;;  %4978 = vmatprep.mubr.f32.mxu0 %v3746_v11  ;;  %v4361_v39 = vadd.f32 %v12308_v32, %v4360_v51  ;;  %v3879_v10 = vld [vmem:[#allocation2 + $0x48] sm:$0xff]  ;;  %v3817_v24 = vld [vmem:[#allocation2 + $0x52] sm:$0xff] }
 0x5d7   :  { %v4362_v14 = vpop.f32.mrf.mxu1  ;;  %v4737_v52 = vpop.f32.mrf.mxu0  ;;  %v4207_v11 = vld [vmem:[#allocation3 + $0x450] sm:$0xff] }
 0x5d8   :  { %v3944_v52 = vld [vmem:[#allocation2 + $0x51] sm:$0xff] }
 0x5d9   :  { %v4365_v47 = vpop.f32.mrf.mxu1  ;;  %5054 = vmatmul.mubr.f32.vlgmr.msra.gmra.mxu1 %v3748_v54  ;;  %v4740_v42 = vpop.f32.mrf.mxu0  ;;  %4979 = vmatmul.mubr.f32.gmra.mxu0 %v3682_v30 }
 0x5da   :  { %5058 = vmatprep.mubr.f32.mxu1 %v3813_v27  ;;  %v12355_v6 = vadd.f32 %v4740_v42, %v4356_v3  ;;  %4983 = vmatprep.mubr.f32.mxu0 %v3747_v63  ;;  %v4366_v49 = vadd.f32 %v12308_v32, %v4365_v47  ;;  %v3818_v42 = vld [vmem:[#allocation2 + $0x62] sm:$0xff] }
 0x5db   :  { %7869 = vmatpush3.msra.mxu1 %v12281_v56  ;;  %v4367_v21 = vpop.f32.mrf.mxu1  ;;  %v4742_v62 = vpop.f32.mrf.mxu0  ;;  %v4206_v63 = vld [vmem:[#allocation3 + $0x448] sm:$0xff] }
 0x5dc   :  { %7870 = vmatprep.subr.mxu1 %v4211_v19  ;;  %v3945_v62 = vld [vmem:[#allocation2 + $0x61] sm:$0xff] }
 0x5dd   :  { %v4370_v26 = vpop.f32.mrf.mxu1  ;;  %5059 = vmatmul.mubr.f32.gmra.mxu1 %v3749_v31  ;;  %v4745_v15 = vpop.f32.mrf.mxu0  ;;  %4984 = vmatmul.mubr.f32.gmra.mxu0 %v3683_v34 }
 0x5de   :  { %5063 = vmatprep.mubr.f32.mxu1 %v3814_v36  ;;  %v12359_v25 = vadd.f32 %v4745_v15, %v4361_v39  ;;  %5438 = vmatprep.mubr.f32.mxu0 %v3941_v9  ;;  %v4371_v57 = vadd.f32 %v12308_v32, %v4370_v26  ;;  %v3819_v15 = vld [vmem:[#allocation2 + $0x6a] sm:$0xff] }
 0x5df   :  { %v4372_v35 = vpop.f32.mrf.mxu1  ;;  %7871 = vmatpush3.msra.mxu1 %v4211_v19  ;;  %v4747_v56 = vpop.f32.mrf.mxu0  ;;  %v3880_v19 = vld [vmem:[#allocation2 + $0x50] sm:$0xff] }
 0x5e0   :  { %7872 = vmatprep.subr.mxu1 %v4210_v41  ;;  %v3946_v56 = vld [vmem:[#allocation2 + $0x69] sm:$0xff] }
 0x5e1   :  { %v4375_v58 = vpop.f32.mrf.mxu1  ;;  %5064 = vmatmul.mubr.f32.gmra.mxu1 %v3941_v9  ;;  %v4750_v4 = vpop.f32.mrf.mxu0  ;;  %5439 = vmatmul.mubr.f32.vlgmr.msra.gmra.mxu0 %v3877_v13  ;;  %v4205_v9 = vld [vmem:[#allocation3 + $0x440] sm:$0xff] }
 0x5e2   :  { %5068 = vmatprep.mubr.f32.mxu1 %v3815_v48  ;;  %v12362_v17 = vadd.f32 %v4750_v4, %v4366_v49  ;;  %5443 = vmatprep.mubr.f32.mxu0 %v3942_v29  ;;  %v4376_v51 = vadd.f32 %v12308_v32, %v4375_v58  ;;  %v3882_v4 = vld [vmem:[#allocation2 + $0x68] sm:$0xff] }
 0x5e3   :  { %v4377_v46 = vpop.f32.mrf.mxu1  ;;  %7873 = vmatpush3.msra.mxu1 %v4210_v41  ;;  %v4752_v0 = vpop.f32.mrf.mxu0  ;;  %v3881_v41 = vld [vmem:[#allocation2 + $0x60] sm:$0xff] }
 0x5e4   :  { %7874 = vmatprep.subr.mxu1 %v4209_v33  ;;  %v4204_v46 = vld [vmem:[#allocation3 + $0x438] sm:$0xff] }
 0x5e5   :  { %v4380_v20 = vpop.f32.mrf.mxu1  ;;  %5069 = vmatmul.mubr.f32.gmra.mxu1 %v3942_v29  ;;  %v4755_v61 = vpop.f32.mrf.mxu0  ;;  %5444 = vmatmul.mubr.f32.gmra.mxu0 %v3878_v50  ;;  %v3820_v29 = vld [vmem:[#allocation2 + $0x7a] sm:$0xff] }
 0x5e6   :  { %5073 = vmatprep.mubr.f32.mxu1 %v3816_v44  ;;  %v12365_v28 = vadd.f32 %v4755_v61, %v4371_v57  ;;  %5448 = vmatprep.mubr.f32.mxu0 %v3943_v7  ;;  %v4381_v30 = vadd.f32 %v12308_v32, %v4380_v20  ;;  %v3947_v57 = vld [vmem:[#allocation2 + $0x79] sm:$0xff] }
 0x5e7   :  { %v4382_v8 = vpop.f32.mrf.mxu1  ;;  %7875 = vmatpush3.msra.mxu1 %v4209_v33  ;;  %v4757_v1 = vpop.f32.mrf.mxu0 }
 0x5e8   :  { %7876 = vmatprep.subr.mxu1 %v4208_v40  ;;  %v3821_v8 = vld [vmem:[#allocation2 + $0x82] sm:$0xff]  ;;  %v4203_v1 = vld [vmem:[#allocation3 + $0x430] sm:$0xff] }
 0x5e9   :  { %v4385_v37 = vpop.f32.mrf.mxu1  ;;  %5074 = vmatmul.mubr.f32.gmra.mxu1 %v3943_v7  ;;  %v4760_v14 = vpop.f32.mrf.mxu0  ;;  %5449 = vmatmul.mubr.f32.gmra.mxu0 %v3879_v10  ;;  %v3883_v7 = vld [vmem:[#allocation2 + $0x78] sm:$0xff] }
 0x5ea   :  { %5078 = vmatprep.mubr.f32.mxu1 %v3817_v24  ;;  %v12368_v54 = vadd.f32 %v4760_v14, %v4376_v51  ;;  %5453 = vmatprep.mubr.f32.mxu0 %v3944_v52  ;;  %v4386_v34 = vadd.f32 %v12308_v32, %v4385_v37  ;;  %v3948_v37 = vld [vmem:[#allocation2 + $0x81] sm:$0xff] }
 0x5eb   :  { %v4387_v3 = vpop.f32.mrf.mxu1  ;;  %7877 = vmatpush3.msra.mxu1 %v4208_v40  ;;  %v4762_v47 = vpop.f32.mrf.mxu0 }
 0x5ec   :  { %7878 = vmatprep.subr.mxu1 %v4207_v11  ;;  %v3884_v3 = vld [vmem:[#allocation2 + $0x80] sm:$0xff]  ;;  %v3822_v47 = vld [vmem:[#allocation2 + $0x92] sm:$0xff] }
 0x5ed   :  { %v4390_v27 = vpop.f32.mrf.mxu1  ;;  %5079 = vmatmul.mubr.f32.gmra.mxu1 %v3944_v52  ;;  %v4765_v21 = vpop.f32.mrf.mxu0  ;;  %5454 = vmatmul.mubr.f32.gmra.mxu0 %v3880_v19  ;;  %v3949_v19 = vld [vmem:[#allocation2 + $0x91] sm:$0xff] }
 0x5ee   :  { %5083 = vmatprep.mubr.f32.mxu1 %v3818_v42  ;;  %v12371_v31 = vadd.f32 %v4765_v21, %v4381_v30  ;;  %5458 = vmatprep.mubr.f32.mxu0 %v3945_v62  ;;  %v4391_v48 = vadd.f32 %v12308_v32, %v4390_v27  ;;  %v4202_v30 = vld [vmem:[#allocation3 + $0x428] sm:$0xff] }
 0x5ef   :  { %v4392_v39 = vpop.f32.mrf.mxu1  ;;  %7879 = vmatpush3.msra.mxu1 %v4207_v11  ;;  %v4767_v26 = vpop.f32.mrf.mxu0 }
 0x5f0   :  { %7880 = vmatprep.subr.mxu1 %v4206_v63  ;;  %v3885_v26 = vld [vmem:[#allocation2 + $0x90] sm:$0xff] }
 0x5f1   :  { %v4395_v36 = vpop.f32.mrf.mxu1  ;;  %5084 = vmatmul.mubr.f32.gmra.mxu1 %v3945_v62  ;;  %v4770_v35 = vpop.f32.mrf.mxu0  ;;  %5459 = vmatmul.mubr.f32.gmra.mxu0 %v3881_v41  ;;  %v3950_v41 = vld [vmem:[#allocation2 + $0x99] sm:$0xff] }
 0x5f2   :  { %5088 = vmatprep.mubr.f32.mxu1 %v3819_v15  ;;  %v12374_v49 = vadd.f32 %v4770_v35, %v4386_v34  ;;  %5463 = vmatprep.mubr.f32.mxu0 %v3946_v56  ;;  %v4396_v40 = vadd.f32 %v12308_v32, %v4395_v36  ;;  %v3823_v34 = vld [vmem:[#allocation2 + $0x9a] sm:$0xff] }
 0x5f3   :  { %v4397_v58 = vpop.f32.mrf.mxu1  ;;  %7881 = vmatpush3.msra.mxu1 %v4206_v63  ;;  %v4772_v13 = vpop.f32.mrf.mxu0 }
 0x5f4   :  { %7882 = vmatprep.subr.mxu1 %v4205_v9  ;;  %v3886_v13 = vld [vmem:[#allocation2 + $0x98] sm:$0xff] }
 0x5f5   :  { %v4400_v33 = vpop.f32.mrf.mxu1  ;;  %5089 = vmatmul.mubr.f32.gmra.mxu1 %v3946_v56  ;;  %v4775_v0 = vpop.f32.mrf.mxu0  ;;  %5464 = vmatmul.mubr.f32.gmra.mxu0 %v3882_v4  ;;  %v3951_v4 = vld [vmem:[#allocation2 + $0xa9] sm:$0xff] }
 0x5f6   :  { %5093 = vmatprep.mubr.f32.mxu1 %v3820_v29  ;;  %v12377_v20 = vadd.f32 %v4775_v0, %v4391_v48  ;;  %5468 = vmatprep.mubr.f32.mxu0 %v3947_v57  ;;  %v4401_v14 = vadd.f32 %v12308_v32, %v4400_v33  ;;  %v3824_v48 = vld [vmem:[#allocation2 + $0xaa] sm:$0xff] }
 0x5f7   :  { %v4402_v50 = vpop.f32.mrf.mxu1  ;;  %7883 = vmatpush3.msra.mxu1 %v4205_v9  ;;  %v4777_v44 = vpop.f32.mrf.mxu0 }
 0x5f8   :  { %7884 = vmatprep.subr.mxu1 %v4204_v46  ;;  %v3887_v44 = vld [vmem:[#allocation2 + $0xa8] sm:$0xff] }
 0x5f9   :  { %v4405_v61 = vpop.f32.mrf.mxu1  ;;  %5094 = vmatmul.mubr.f32.gmra.mxu1 %v3947_v57  ;;  %v4780_v51 = vpop.f32.mrf.mxu0  ;;  %5469 = vmatmul.mubr.f32.gmra.mxu0 %v3883_v7  ;;  %v3952_v7 = vld [vmem:[#allocation2 + $0xb1] sm:$0xff] }
 0x5fa   :  { %5098 = vmatprep.mubr.f32.mxu1 %v3821_v8  ;;  %v12380_v10 = vadd.f32 %v4780_v51, %v4396_v40  ;;  %5473 = vmatprep.mubr.f32.mxu0 %v3948_v37  ;;  %v4406_v62 = vadd.f32 %v12308_v32, %v4405_v61  ;;  %v3825_v40 = vld [vmem:[#allocation2 + $0xb2] sm:$0xff]  ;;  %v4201_v51 = vld [vmem:[#allocation3 + $0x420] sm:$0xff] }
 0x5fb   :  { %v4407_v24 = vpop.f32.mrf.mxu1  ;;  %7885 = vmatpush3.msra.mxu1 %v4204_v46  ;;  %v4782_v11 = vpop.f32.mrf.mxu0 }
 0x5fc   :  { %7886 = vmatprep.subr.mxu1 %v4203_v1 }
 0x5fd   :  { %v4410_v52 = vpop.f32.mrf.mxu1  ;;  %5099 = vmatmul.mubr.f32.gmra.mxu1 %v3948_v37  ;;  %v4785_v27 = vpop.f32.mrf.mxu0  ;;  %5474 = vmatmul.mubr.f32.gmra.mxu0 %v3884_v3 }
 0x5fe   :  { %5103 = vmatprep.mubr.f32.mxu1 %v3822_v47  ;;  %v12383_v42 = vadd.f32 %v4785_v27, %v4401_v14  ;;  %5478 = vmatprep.mubr.f32.mxu0 %v3949_v19  ;;  %v4411_v56 = vadd.f32 %v12308_v32, %v4410_v52  ;;  %v3888_v14 = vld [vmem:[#allocation2 + $0xb0] sm:$0xff]  ;;  %v3826_v52 = vld [vmem:[#allocation2 + $0xc2] sm:$0xff] }
 0x5ff   :  { %v4412_v63 = vpop.f32.mrf.mxu1  ;;  %7887 = vmatpush3.msra.mxu1 %v4203_v1  ;;  %v4787_v21 = vpop.f32.mrf.mxu0  ;;  %v3953_v47 = vld [vmem:[#allocation2 + $0xc1] sm:$0xff] }
 0x600   :  { %7888 = vmatprep.subr.mxu1 %v4202_v30 }
 0x601   :  { %v4415_v39 = vpop.f32.mrf.mxu1  ;;  %5104 = vmatmul.mubr.f32.gmra.mxu1 %v3949_v19  ;;  %v4790_v36 = vpop.f32.mrf.mxu0  ;;  %5479 = vmatmul.mubr.f32.gmra.mxu0 %v3885_v26 }
 0x602   :  { %5108 = vmatprep.mubr.f32.mxu1 %v3823_v34  ;;  %v12386_v15 = vadd.f32 %v4790_v36, %v4406_v62  ;;  %5483 = vmatprep.mubr.f32.mxu0 %v3950_v41  ;;  %v4416_v57 = vadd.f32 %v12308_v32, %v4415_v39  ;;  %v3889_v62 = vld [vmem:[#allocation2 + $0xc0] sm:$0xff]  ;;  %v3827_v39 = vld [vmem:[#allocation2 + $0xca] sm:$0xff] }
 0x603   :  { %v4417_v9 = vpop.f32.mrf.mxu1  ;;  %7889 = vmatpush3.msra.mxu1 %v4202_v30  ;;  %v4792_v35 = vpop.f32.mrf.mxu0  ;;  %v3954_v34 = vld [vmem:[#allocation2 + $0xc9] sm:$0xff] }
 0x604   :  { %7890 = vmatprep.subr.mxu1 %v4201_v51 }
 0x605   :  { %v4420_v58 = vpop.f32.mrf.mxu1  ;;  %5109 = vmatmul.mubr.f32.gmra.mxu1 %v3950_v41  ;;  %v4795_v33 = vpop.f32.mrf.mxu0  ;;  %5484 = vmatmul.mubr.f32.gmra.mxu0 %v3886_v13  ;;  %v3828_v13 = vld [vmem:[#allocation2 + $0xda] sm:$0xff] }
 0x606   :  { %5113 = vmatprep.mubr.f32.mxu1 %v3824_v48  ;;  %v12389_v29 = vadd.f32 %v4795_v33, %v4411_v56  ;;  %5488 = vmatprep.mubr.f32.mxu0 %v3951_v4  ;;  %v4421_v24 = vadd.f32 %v12308_v32, %v4420_v58  ;;  %v3890_v58 = vld [vmem:[#allocation2 + $0xc8] sm:$0xff]  ;;  %v3955_v33 = vld [vmem:[#allocation2 + $0xd9] sm:$0xff] }
 0x607   :  { %v4422_v46 = vpop.f32.mrf.mxu1  ;;  %v4797_v0 = vpop.f32.mrf.mxu0  ;;  %7891 = vmatpush3.msra.mxu1 %v4201_v51 }
 0x609   :  { %v4425_v50 = vpop.f32.mrf.mxu1  ;;  %5114 = vmatmul.mubr.f32.gmra.mxu1 %v3951_v4  ;;  %v4800_v61 = vpop.f32.mrf.mxu0  ;;  %5489 = vmatmul.mubr.f32.gmra.mxu0 %v3887_v44  ;;  %v3891_v44 = vld [vmem:[#allocation2 + $0xd8] sm:$0xff] }
 0x60a   :  { %5118 = vmatprep.mubr.f32.mxu1 %v3825_v40  ;;  %v12392_v8 = vadd.f32 %v4800_v61, %v4416_v57  ;;  %5493 = vmatprep.mubr.f32.mxu0 %v3952_v7  ;;  %v4426_v63 = vadd.f32 %v12308_v32, %v4425_v50  ;;  %v3829_v40 = vld [vmem:[#allocation2 + $0xe2] sm:$0xff] }
 0x60b   :  { %v4427_v1 = vpop.f32.mrf.mxu1  ;;  %v4802_v37 = vpop.f32.mrf.mxu0 }
 0x60c   :  { %v4200_v37 = vld [vmem:[#allocation3 + $0x418] sm:$0xff] }
 0x60d   :  { %v4430_v11 = vpop.f32.mrf.mxu1  ;;  %5119 = vmatmul.mubr.f32.gmra.mxu1 %v3952_v7  ;;  %v4805_v3 = vpop.f32.mrf.mxu0  ;;  %5494 = vmatmul.mubr.f32.gmra.mxu0 %v3888_v14  ;;  %v3956_v7 = vld [vmem:[#allocation2 + $0xe1] sm:$0xff] }
 0x60e   :  { %5123 = vmatprep.mubr.f32.mxu1 %v3826_v52  ;;  %v12395_v30 = vadd.f32 %v4805_v3, %v4421_v24  ;;  %5498 = vmatprep.mubr.f32.mxu0 %v3953_v47  ;;  %v4431_v35 = vadd.f32 %v12308_v32, %v4430_v11  ;;  %v3892_v52 = vld [vmem:[#allocation2 + $0xe0] sm:$0xff]  ;;  %v3830_v3 = vld [vmem:[#allocation2 + $0xf2] sm:$0xff] }
 0x60f   :  { %v4432_v27 = vpop.f32.mrf.mxu1  ;;  %v4807_v19 = vpop.f32.mrf.mxu0  ;;  %7892 = vmatprep.subr.mxu1 %v4200_v37 }
 0x610   :  { %v3957_v27 = vld [vmem:[#allocation2 + $0xf1] sm:$0xff]  ;;  %7893 = vmatpush3.msra.mxu1 %v4200_v37 }
 0x611   :  { %v4435_v21 = vpop.f32.mrf.mxu1  ;;  %5124 = vmatmul.mubr.f32.gmra.mxu1 %v3953_v47  ;;  %v4810_v26 = vpop.f32.mrf.mxu0  ;;  %5499 = vmatmul.mubr.f32.gmra.mxu0 %v3889_v62  ;;  %v3833_v37 = vld [vmem:[#allocation2 + $0x112] sm:$0xff] }
 0x612   :  { %5128 = vmatprep.mubr.f32.mxu1 %v3827_v39  ;;  %v12398_v36 = vadd.f32 %v4810_v26, %v4426_v63  ;;  %5503 = vmatprep.mubr.f32.mxu0 %v3954_v34  ;;  %v4436_v57 = vadd.f32 %v12308_v32, %v4435_v21  ;;  %v3893_v26 = vld [vmem:[#allocation2 + $0xf0] sm:$0xff] }
 0x613   :  { %v4437_v41 = vpop.f32.mrf.mxu1  ;;  %v4812_v9 = vpop.f32.mrf.mxu0 }
 0x614   :  { %v3958_v9 = vld [vmem:[#allocation2 + $0xf9] sm:$0xff] }
 0x615   :  { %v4440_v56 = vpop.f32.mrf.mxu1  ;;  %5129 = vmatmul.mubr.f32.gmra.mxu1 %v3954_v34  ;;  %v4815_v48 = vpop.f32.mrf.mxu0  ;;  %5504 = vmatmul.mubr.f32.gmra.mxu0 %v3890_v58  ;;  %v3831_v34 = vld [vmem:[#allocation2 + $0xfa] sm:$0xff] }
 0x616   :  { %5133 = vmatprep.mubr.f32.mxu1 %v3828_v13  ;;  %v12401_v4 = vadd.f32 %v4815_v48, %v4431_v35  ;;  %5508 = vmatprep.mubr.f32.mxu0 %v3955_v33  ;;  %v4441_v11 = vadd.f32 %v12308_v32, %v4440_v56 }
 0x617   :  { %v4442_v46 = vpop.f32.mrf.mxu1  ;;  %v4817_v0 = vpop.f32.mrf.mxu0 }
 0x618   :  { %v3832_v46 = vld [vmem:[#allocation2 + $0x10a] sm:$0xff] }
 0x619   :  { %v4445_v50 = vpop.f32.mrf.mxu1  ;;  %5134 = vmatmul.mubr.f32.gmra.mxu1 %v3955_v33  ;;  %v4820_v61 = vpop.f32.mrf.mxu0  ;;  %5509 = vmatmul.mubr.f32.gmra.mxu0 %v3891_v44  ;;  %v3894_v33 = vld [vmem:[#allocation2 + $0xf8] sm:$0xff] }
 0x61a   :  { %5138 = vmatprep.mubr.f32.mxu1 %v3829_v40  ;;  %v12404_v1 = vadd.f32 %v4820_v61, %v4436_v57  ;;  %5513 = vmatprep.mubr.f32.mxu0 %v3956_v7  ;;  %v4446_v62 = vadd.f32 %v12308_v32, %v4445_v50  ;;  %v3959_v57 = vld [vmem:[#allocation2 + $0x109] sm:$0xff] }
 0x61b   :  { %v4447_v51 = vpop.f32.mrf.mxu1  ;;  %v4822_v24 = vpop.f32.mrf.mxu0 }
 0x61c   :  { %v3895_v51 = vld [vmem:[#allocation2 + $0x108] sm:$0xff] }
 0x61d   :  { %v4450_v14 = vpop.f32.mrf.mxu1  ;;  %5139 = vmatmul.mubr.f32.gmra.mxu1 %v3956_v7  ;;  %v4825_v47 = vpop.f32.mrf.mxu0  ;;  %5514 = vmatmul.mubr.f32.gmra.mxu0 %v3892_v52 }
 0x61e   :  { %5143 = vmatprep.mubr.f32.mxu1 %v3830_v3  ;;  %v12407_v19 = vadd.f32 %v4825_v47, %v4441_v11  ;;  %5518 = vmatprep.mubr.f32.mxu0 %v3957_v27  ;;  %v4451_v13 = vadd.f32 %v12308_v32, %v4450_v14  ;;  %v3960_v11 = vld [vmem:[#allocation2 + $0x111] sm:$0xff] }
 0x61f   :  { %v4452_v63 = vpop.f32.mrf.mxu1  ;;  %v4827_v21 = vpop.f32.mrf.mxu0  ;;  %v4199_v3 = vld [vmem:[#allocation3 + $0x410] sm:$0xff] }
 0x620   :  { %7894 = vmatprep.subr.mxu1 %v4199_v3  ;;  %v3896_v21 = vld [vmem:[#allocation2 + $0x110] sm:$0xff] }
 0x621   :  { %v4455_v39 = vpop.f32.mrf.mxu1  ;;  %5144 = vmatmul.mubr.f32.gmra.mxu1 %v3957_v27  ;;  %v4830_v41 = vpop.f32.mrf.mxu0  ;;  %5519 = vmatmul.mubr.f32.gmra.mxu0 %v3893_v26  ;;  %v3961_v26 = vld [vmem:[#allocation2 + $0x121] sm:$0xff] }
 0x622   :  { %5148 = vmatprep.mubr.f32.mxu1 %v3831_v34  ;;  %v12410_v35 = vadd.f32 %v4830_v41, %v4446_v62  ;;  %5523 = vmatprep.mubr.f32.mxu0 %v3958_v9  ;;  %v4456_v61 = vadd.f32 %v12308_v32, %v4455_v39  ;;  %v3834_v62 = vld [vmem:[#allocation2 + $0x122] sm:$0xff] }
 0x623   :  { %v4457_v56 = vpop.f32.mrf.mxu1  ;;  %v4832_v58 = vpop.f32.mrf.mxu0  ;;  %7895 = vmatpush3.msra.mxu1 %v4199_v3 }
 0x624   :  { %v12424_v56 = vld [vmem:[%s14532_s7] ss:$0 sm:$0xff] }
 0x625   :  { %v4460_v48 = vpop.f32.mrf.mxu1  ;;  %5149 = vmatmul.mubr.f32.gmra.mxu1 %v3958_v9  ;;  %v4835_v0 = vpop.f32.mrf.mxu0  ;;  %5524 = vmatmul.mubr.f32.gmra.mxu0 %v3894_v33 }
 0x626   :  { %5153 = vmatprep.mubr.f32.mxu1 %v3832_v46  ;;  %v12413_v50 = vadd.f32 %v4835_v0, %v4451_v13  ;;  %5528 = vmatprep.mubr.f32.mxu0 %v3959_v57  ;;  %v4461_v27 = vadd.f32 %v12308_v32, %v4460_v48  ;;  %v3897_v13 = vld [vmem:[#allocation2 + $0x120] sm:$0xff]  ;;  %v3835_v48 = vld [vmem:[#allocation2 + $0x12a] sm:$0xff] }
 0x627   :  { %v4462_v44 = vpop.f32.mrf.mxu1  ;;  %v4837_v40 = vpop.f32.mrf.mxu0  ;;  %v3962_v46 = vld [vmem:[#allocation2 + $0x129] sm:$0xff] }
 0x629   :  { %v4465_v7 = vpop.f32.mrf.mxu1  ;;  %5154 = vmatmul.mubr.f32.gmra.mxu1 %v3959_v57  ;;  %v4840_v24 = vpop.f32.mrf.mxu0  ;;  %5529 = vmatmul.mubr.f32.gmra.mxu0 %v3895_v51  ;;  %v3898_v51 = vld [vmem:[#allocation2 + $0x128] sm:$0xff] }
 0x62a   :  { %5158 = vmatprep.mubr.f32.mxu1 %v3833_v37  ;;  %v12416_v14 = vadd.f32 %v4840_v24, %v4456_v61  ;;  %5533 = vmatprep.mubr.f32.mxu0 %v3960_v11  ;;  %v4466_v32 = vadd.f32 %v12424_v56, %v4465_v7  ;;  %v3836_v37 = vld [vmem:[#allocation2 + $0x13a] sm:$0xff] }
 0x62b   :  { %v4467_v52 = vpop.f32.mrf.mxu1  ;;  %v4842_v47 = vpop.f32.mrf.mxu0  ;;  %v3963_v24 = vld [vmem:[#allocation2 + $0x139] sm:$0xff] }
 0x62d   :  { %v4470_v63 = vpop.f32.mrf.mxu1  ;;  %5159 = vmatmul.mubr.f32.gmra.mxu1 %v3960_v11  ;;  %v4845_v39 = vpop.f32.mrf.mxu0  ;;  %5534 = vmatmul.mubr.f32.gmra.mxu0 %v3896_v21  ;;  %v3899_v21 = vld [vmem:[#allocation2 + $0x138] sm:$0xff] }
 0x62e   :  { %5163 = vmatprep.mubr.f32.mxu1 %v3834_v62  ;;  %v12419_v34 = vadd.f32 %v4845_v39, %v4461_v27  ;;  %5538 = vmatprep.mubr.f32.mxu0 %v3961_v26  ;;  %v4471_v40 = vadd.f32 %v12424_v56, %v4470_v63  ;;  %v3837_v62 = vld [vmem:[#allocation2 + $0x142] sm:$0xff] }
 0x62f   :  { %v4472_v41 = vpop.f32.mrf.mxu1  ;;  %v4847_v9 = vpop.f32.mrf.mxu0  ;;  %v3964_v39 = vld [vmem:[#allocation2 + $0x141] sm:$0xff] }
 0x630   :  { %v4198_v9 = vld [vmem:[#allocation3 + $0x408] sm:$0xff] }
 0x631   :  { %v4475_v58 = vpop.f32.mrf.mxu1  ;;  %5164 = vmatmul.mubr.f32.gmra.mxu1 %v3961_v26  ;;  %v4850_v33 = vpop.f32.mrf.mxu0  ;;  %5539 = vmatmul.mubr.f32.gmra.mxu0 %v3897_v13 }
 0x632   :  { %5168 = vmatprep.mubr.f32.mxu1 %v3835_v48  ;;  %v12427_v0 = vadd.f32 %v4850_v33, %v4466_v32  ;;  %5543 = vmatprep.mubr.f32.mxu0 %v3962_v46  ;;  %v4476_v47 = vadd.f32 %v12424_v56, %v4475_v58  ;;  %v3900_v58 = vld [vmem:[#allocation2 + $0x140] sm:$0xff]  ;;  %v3838_v33 = vld [vmem:[#allocation2 + $0x152] sm:$0xff] }
 0x633   :  { %v4477_v57 = vpop.f32.mrf.mxu1  ;;  %v4852_v44 = vpop.f32.mrf.mxu0  ;;  %7896 = vmatprep.subr.mxu1 %v4198_v9 }
 0x634   :  { %v3965_v57 = vld [vmem:[#allocation2 + $0x151] sm:$0xff]  ;;  %7897 = vmatpush3.msra.mxu1 %v4198_v9 }
 0x635   :  { %v4480_v61 = vpop.f32.mrf.mxu1  ;;  %5169 = vmatmul.mubr.f32.gmra.mxu1 %v3962_v46  ;;  %v4855_v7 = vpop.f32.mrf.mxu0  ;;  %5544 = vmatmul.mubr.f32.gmra.mxu0 %v3898_v51  ;;  %v3840_v9 = vld [vmem:[#allocation2 + $0x16a] sm:$0xff] }
 0x636   :  { %5173 = vmatprep.mubr.f32.mxu1 %v3836_v37  ;;  %v12430_v11 = vadd.f32 %v4855_v7, %v4471_v40  ;;  %5548 = vmatprep.mubr.f32.mxu0 %v3963_v24  ;;  %v4481_v13 = vadd.f32 %v12424_v56, %v4480_v61  ;;  %v3839_v61 = vld [vmem:[#allocation2 + $0x15a] sm:$0xff] }
 0x637   :  { %v4482_v52 = vpop.f32.mrf.mxu1  ;;  %v4857_v3 = vpop.f32.mrf.mxu0 }
 0x638   :  { %v3966_v3 = vld [vmem:[#allocation2 + $0x159] sm:$0xff] }
 0x639   :  { %v4485_v27 = vpop.f32.mrf.mxu1  ;;  %5174 = vmatmul.mubr.f32.gmra.mxu1 %v3963_v24  ;;  %v4860_v63 = vpop.f32.mrf.mxu0  ;;  %5549 = vmatmul.mubr.f32.gmra.mxu0 %v3899_v21  ;;  %v3901_v24 = vld [vmem:[#allocation2 + $0x150] sm:$0xff] }
 0x63a   :  { %5178 = vmatprep.mubr.f32.mxu1 %v3837_v62  ;;  %v12433_v26 = vadd.f32 %v4860_v63, %v4476_v47  ;;  %5553 = vmatprep.mubr.f32.mxu0 %v3964_v39  ;;  %v4486_v37 = vadd.f32 %v12424_v56, %v4485_v27 }
 0x63b   :  { %v4487_v41 = vpop.f32.mrf.mxu1  ;;  %v4862_v32 = vpop.f32.mrf.mxu0 }
 0x63c   :  { %v3902_v41 = vld [vmem:[#allocation2 + $0x158] sm:$0xff]  ;;  %v3967_v32 = vld [vmem:[#allocation2 + $0x169] sm:$0xff] }
 0x63d   :  { %v4490_v48 = vpop.f32.mrf.mxu1  ;;  %5179 = vmatmul.mubr.f32.gmra.mxu1 %v3964_v39  ;;  %v4865_v46 = vpop.f32.mrf.mxu0  ;;  %5554 = vmatmul.mubr.f32.gmra.mxu0 %v3900_v58 }
 0x63e   :  { %5183 = vmatprep.mubr.f32.mxu1 %v3838_v33  ;;  %v12436_v44 = vadd.f32 %v4865_v46, %v4481_v13  ;;  %5558 = vmatprep.mubr.f32.mxu0 %v3965_v57  ;;  %v4491_v63 = vadd.f32 %v12424_v56, %v4490_v48 }
 0x63f   :  { %v4492_v40 = vpop.f32.mrf.mxu1  ;;  %v4867_v51 = vpop.f32.mrf.mxu0 }
 0x640   :  { %v3903_v40 = vld [vmem:[#allocation2 + $0x168] sm:$0xff]  ;;  %v3841_v51 = vld [vmem:[#allocation2 + $0x172] sm:$0xff] }
 0x641   :  { %v4495_v7 = vpop.f32.mrf.mxu1  ;;  %5184 = vmatmul.mubr.f32.gmra.mxu1 %v3965_v57  ;;  %v4870_v52 = vpop.f32.mrf.mxu0  ;;  %5559 = vmatmul.mubr.f32.gmra.mxu0 %v3901_v24 }
 0x642   :  { %5188 = vmatprep.mubr.f32.mxu1 %v3839_v61  ;;  %v12439_v47 = vadd.f32 %v4870_v52, %v4486_v37  ;;  %5563 = vmatprep.mubr.f32.mxu0 %v3966_v3  ;;  %v4496_v46 = vadd.f32 %v12424_v56, %v4495_v7  ;;  %v3968_v37 = vld [vmem:[#allocation2 + $0x171] sm:$0xff]  ;;  %v4197_v52 = vld [vmem:[#allocation3 + $0x400] sm:$0xff] }
 0x643   :  { %v4497_v21 = vpop.f32.mrf.mxu1  ;;  %v4872_v62 = vpop.f32.mrf.mxu0  ;;  %7898 = vmatprep.subr.mxu1 %v4197_v52  ;;  %v3904_v7 = vld [vmem:[#allocation2 + $0x170] sm:$0xff] }
 0x644   :  { %7899 = vmatpush3.msra.mxu1 %v4197_v52 }
 0x645   :  { %v4500_v39 = vpop.f32.mrf.mxu1  ;;  %5189 = vmatmul.mubr.f32.gmra.mxu1 %v3966_v3  ;;  %v4875_v27 = vpop.f32.mrf.mxu0  ;;  %5564 = vmatmul.mubr.f32.gmra.mxu0 %v3902_v41 }
 0x646   :  { %5193 = vmatprep.mubr.f32.mxu1 %v3840_v9  ;;  %v12442_v13 = vadd.f32 %v4875_v27, %v4491_v63  ;;  %5568 = vmatprep.mubr.f32.mxu0 %v3967_v32  ;;  %v4501_v21 = vadd.f32 %v12424_v56, %v4500_v39  ;;  %v3842_v63 = vld [vmem:[#allocation2 + $0x182] sm:$0xff]  ;;  %v3843_v39 = vld [vmem:[#allocation2 + $0x18a] sm:$0xff] }
 0x647   :  { %v4502_v58 = vpop.f32.mrf.mxu1  ;;  %v4877_v33 = vpop.f32.mrf.mxu0  ;;  %v3969_v9 = vld [vmem:[#allocation2 + $0x181] sm:$0xff] }
 0x648   :  { %14982 = vst [vmem:[#allocation34_spill] sm:$0xff] %v12442_v13 }
 0x649   :  { %v4505_v57 = vpop.f32.mrf.mxu1  ;;  %5194 = vmatmul.mubr.f32.gmra.mxu1 %v3967_v32  ;;  %v4880_v48 = vpop.f32.mrf.mxu0  ;;  %5569 = vmatmul.mubr.f32.gmra.mxu0 %v3903_v40  ;;  %v3905_v40 = vld [vmem:[#allocation2 + $0x180] sm:$0xff] }
 0x64a   :  { %5198 = vmatprep.mubr.f32.mxu1 %v3841_v51  ;;  %v12445_v24 = vadd.f32 %v4880_v48, %v4496_v46  ;;  %5573 = vmatprep.mubr.f32.mxu0 %v3968_v37  ;;  %v4506_v33 = vadd.f32 %v12424_v56, %v4505_v57  ;;  %v3970_v48 = vld [vmem:[#allocation2 + $0x189] sm:$0xff] }
 0x64b   :  { %v4507_v61 = vpop.f32.mrf.mxu1  ;;  %v4882_v3 = vpop.f32.mrf.mxu0  ;;  %v3844_v57 = vld [vmem:[#allocation2 + $0x1ca] sm:$0xff] }
 0x64c   :  { %14983 = vst [vmem:[#allocation35_spill] sm:$0xff] %v12445_v24 }
 0x64d   :  { %v4510_v62 = vpop.f32.mrf.mxu1  ;;  %5199 = vmatmul.mubr.f32.gmra.mxu1 %v3968_v37  ;;  %v4885_v41 = vpop.f32.mrf.mxu0  ;;  %5574 = vmatmul.mubr.f32.gmra.mxu0 %v3904_v7 }
 0x64e   :  { %5203 = vmatprep.mubr.f32.mxu1 %v3842_v63  ;;  %v12448_v27 = vadd.f32 %v4885_v41, %v4501_v21  ;;  %5578 = vmatprep.mubr.f32.mxu0 %v3969_v9  ;;  %v3971_v21 = vld [vmem:[#allocation2 + $0x199] sm:$0xff]  ;;  %v4511_v7 = vadd.f32 %v12424_v56, %v4510_v62  ;;  %v3906_v63 = vld [vmem:[#allocation2 + $0x188] sm:$0xff] }
 0x64f   :  { %v4512_v32 = vpop.f32.mrf.mxu1  ;;  %v4887_v58 = vpop.f32.mrf.mxu0  ;;  %v3845_v62 = vld [vmem:[#allocation2 + $0x1d2] sm:$0xff] }
 0x650   :  { %14984 = vst [vmem:[#allocation36_spill] sm:$0xff] %v12448_v27  ;;  %v3907_v58 = vld [vmem:[#allocation2 + $0x198] sm:$0xff] }
 0x651   :  { %v4515_v46 = vpop.f32.mrf.mxu1  ;;  %5204 = vmatmul.mubr.f32.gmra.mxu1 %v3969_v9  ;;  %v4890_v51 = vpop.f32.mrf.mxu0  ;;  %5579 = vmatmul.mubr.f32.gmra.mxu0 %v3905_v40  ;;  %v3780_v40 = vld [vmem:[#allocation2 + $0x1c9] sm:$0xff] }
 0x652   :  { %5208 = vmatprep.mubr.f32.mxu1 %v3843_v39  ;;  %v12451_v37 = vadd.f32 %v4890_v51, %v4506_v33  ;;  %5583 = vmatprep.mubr.f32.mxu0 %v3970_v48  ;;  %v3972_v39 = vld [vmem:[#allocation2 + $0x1a1] sm:$0xff]  ;;  %v4516_v51 = vadd.f32 %v12424_v56, %v4515_v46 }
 0x653   :  { %v4517_v61 = vpop.f32.mrf.mxu1  ;;  %v4892_v3 = vpop.f32.mrf.mxu0  ;;  %v3973_v46 = vld [vmem:[#allocation2 + $0x1e1] sm:$0xff] }
 0x654   :  { %14985 = vst [vmem:[#allocation37_spill] sm:$0xff] %v12451_v37 }
 0x655   :  { %v4520_v52 = vpop.f32.mrf.mxu1  ;;  %5209 = vmatmul.mubr.f32.gmra.mxu1 %v3970_v48  ;;  %v4895_v41 = vpop.f32.mrf.mxu0  ;;  %5584 = vmatmul.mubr.f32.gmra.mxu0 %v3906_v63 }
 0x656   :  { %5213 = vmatprep.mubr.f32.mxu1 %v3844_v57  ;;  %v12454_v9 = vadd.f32 %v4895_v41, %v4511_v7  ;;  %5588 = vmatprep.mubr.f32.mxu0 %v3971_v21  ;;  %v3781_v57 = vld [vmem:[#allocation2 + $0x1d1] sm:$0xff]  ;;  %v4521_v21 = vadd.f32 %v12424_v56, %v4520_v52  ;;  %v3909_v52 = vld [vmem:[#allocation2 + $0x1e0] sm:$0xff] }
 0x657   :  { %v4522_v32 = vpop.f32.mrf.mxu1  ;;  %v4897_v33 = vpop.f32.mrf.mxu0 }
 0x658   :  { %14986 = vst [vmem:[#allocation38_spill] sm:$0xff] %v12454_v9  ;;  %v3846_v32 = vld [vmem:[#allocation2 + $0x1e2] sm:$0xff] }
 0x659   :  { %v4525_v61 = vpop.f32.mrf.mxu1  ;;  %5214 = vmatmul.mubr.f32.gmra.mxu1 %v3780_v40  ;;  %v4900_v3 = vpop.f32.mrf.mxu0  ;;  %5589 = vmatmul.mubr.f32.gmra.mxu0 %v3907_v58  ;;  %v12460_v9 = vld [vmem:[#allocation2 + $0x8] sm:$0xff] }
 0x65a   :  { %5218 = vmatprep.mubr.f32.mxu1 %v3845_v62  ;;  %v12457_v48 = vadd.f32 %v4900_v3, %v4516_v51  ;;  %5593 = vmatprep.mubr.f32.mxu0 %v3972_v39  ;;  %v4526_v39 = vadd.f32 %v12424_v56, %v4525_v61  ;;  %v3847_v3 = vld [vmem:[#allocation2 + $0x1ea] sm:$0xff] }
 0x65b   :  { %v4527_v63 = vpop.f32.mrf.mxu1  ;;  %v4902_v7 = vpop.f32.mrf.mxu0 }
 0x65c   :  { %14987 = vst [vmem:[#allocation40_spill] sm:$0xff] %v12457_v48  ;;  %v3974_v7 = vld [vmem:[#allocation2 + $0x1e9] sm:$0xff] }
 0x65d   :  { %v4530_v41 = vpop.f32.mrf.mxu1  ;;  %5219 = vmatmul.mubr.f32.gmra.mxu1 %v3781_v57  ;;  %v4905_v33 = vpop.f32.mrf.mxu0  ;;  %5594 = vmatmul.mubr.f32.gmra.mxu0 %v12460_v9 }
 0x65e   :  { %5223 = vmatprep.mubr.f32.mxu1 %v3846_v32  ;;  %v12463_v58 = vadd.f32 %v4905_v33, %v4521_v21  ;;  %5598 = vmatprep.mubr.f32.mxu0 %v3973_v46  ;;  %v4531_v21 = vadd.f32 %v12424_v56, %v4530_v41 }
 0x65f   :  { %v4532_v40 = vpop.f32.mrf.mxu1  ;;  %v4907_v51 = vpop.f32.mrf.mxu0 }
 0x660   :  { %14988 = vst [vmem:[#allocation16_spill] sm:$0xff] %v12463_v58  ;;  %v3910_v40 = vld [vmem:[#allocation2 + $0x1e8] sm:$0xff]  ;;  %v3848_v51 = vld [vmem:[#allocation2 + $0x1fa] sm:$0xff] }
 0x661   :  { %v4535_v62 = vpop.f32.mrf.mxu1  ;;  %5224 = vmatmul.mubr.f32.gmra.mxu1 %v3973_v46  ;;  %v4910_v63 = vpop.f32.mrf.mxu0  ;;  %5599 = vmatmul.mubr.f32.gmra.mxu0 %v3909_v52  ;;  %v3975_v46 = vld [vmem:[#allocation2 + $0x1f9] sm:$0xff] }
 0x662   :  { %5228 = vmatprep.mubr.f32.mxu1 %v3847_v3  ;;  %v12466_v57 = vadd.f32 %v4910_v63, %v4526_v39  ;;  %5603 = vmatprep.mubr.f32.mxu0 %v3974_v7  ;;  %v4536_v39 = vadd.f32 %v12424_v56, %v4535_v62 }
 0x663   :  { %v4537_v32 = vpop.f32.mrf.mxu1  ;;  %v4912_v48 = vpop.f32.mrf.mxu0 }
 0x664   :  { %14989 = vst [vmem:[#allocation17_spill] sm:$0xff] %v12466_v57  ;;  %v3911_v48 = vld [vmem:[#allocation2 + $0x1f8] sm:$0xff]  ;;  %v3849_v32 = vld [vmem:[#allocation2 + $0x202] sm:$0xff] }
 0x665   :  { %v4540_v33 = vpop.f32.mrf.mxu1  ;;  %5229 = vmatmul.mubr.f32.gmra.mxu1 %v3974_v7  ;;  %v4915_v61 = vpop.f32.mrf.mxu0  ;;  %5604 = vmatmul.mubr.f32.gmra.mxu0 %v3910_v40  ;;  %v3976_v7 = vld [vmem:[#allocation2 + $0x201] sm:$0xff] }
 0x666   :  { %5233 = vmatprep.mubr.f32.mxu1 %v3848_v51  ;;  %v12469_v58 = vadd.f32 %v4915_v61, %v4531_v21  ;;  %5608 = vmatprep.mubr.f32.mxu0 %v3975_v46  ;;  %v4541_v21 = vadd.f32 %v12424_v56, %v4540_v33 }
 0x667   :  { %v4542_v52 = vpop.f32.mrf.mxu1  ;;  %v4917_v3 = vpop.f32.mrf.mxu0 }
 0x668   :  { %14990 = vst [vmem:[#allocation19_spill] sm:$0xff] %v12469_v58  ;;  %v3912_v52 = vld [vmem:[#allocation2 + $0x200] sm:$0xff]  ;;  %v3850_v3 = vld [vmem:[#allocation2 + $0x212] sm:$0xff] }
 0x669   :  { %v4545_v63 = vpop.f32.mrf.mxu1  ;;  %5234 = vmatmul.mubr.f32.gmra.mxu1 %v3975_v46  ;;  %v4920_v41 = vpop.f32.mrf.mxu0  ;;  %5609 = vmatmul.mubr.f32.gmra.mxu0 %v3911_v48  ;;  %v3977_v46 = vld [vmem:[#allocation2 + $0x211] sm:$0xff] }
 0x66a   :  { %5238 = vmatprep.mubr.f32.mxu1 %v3849_v32  ;;  %v12472_v57 = vadd.f32 %v4920_v41, %v4536_v39  ;;  %5613 = vmatprep.mubr.f32.mxu0 %v3976_v7  ;;  %v4546_v39 = vadd.f32 %v12424_v56, %v4545_v63 }
 0x66b   :  { %v4547_v40 = vpop.f32.mrf.mxu1  ;;  %v4922_v51 = vpop.f32.mrf.mxu0 }
 0x66c   :  { %14991 = vst [vmem:[#allocation20_spill] sm:$0xff] %v12472_v57  ;;  %v3913_v40 = vld [vmem:[#allocation2 + $0x210] sm:$0xff]  ;;  %v3851_v51 = vld [vmem:[#allocation2 + $0x21a] sm:$0xff] }
 0x66d   :  { %v4550_v61 = vpop.f32.mrf.mxu1  ;;  %5239 = vmatmul.mubr.f32.gmra.mxu1 %v3976_v7  ;;  %v4925_v62 = vpop.f32.mrf.mxu0  ;;  %5614 = vmatmul.mubr.f32.gmra.mxu0 %v3912_v52  ;;  %v3978_v7 = vld [vmem:[#allocation2 + $0x219] sm:$0xff] }
 0x66e   :  { %5243 = vmatprep.mubr.f32.mxu1 %v3850_v3  ;;  %v12475_v58 = vadd.f32 %v4925_v62, %v4541_v21  ;;  %5618 = vmatprep.mubr.f32.mxu0 %v3977_v46  ;;  %v4551_v21 = vadd.f32 %v12424_v56, %v4550_v61 }
 0x66f   :  { %v4552_v48 = vpop.f32.mrf.mxu1  ;;  %v4927_v32 = vpop.f32.mrf.mxu0 }
 0x670   :  { %14992 = vst [vmem:[#allocation9_spill] sm:$0xff] %v12475_v58  ;;  %v3914_v48 = vld [vmem:[#allocation2 + $0x218] sm:$0xff]  ;;  %v3852_v32 = vld [vmem:[#allocation2 + $0x22a] sm:$0xff] }
 0x671   :  { %v4555_v41 = vpop.f32.mrf.mxu1  ;;  %5244 = vmatmul.mubr.f32.gmra.mxu1 %v3977_v46  ;;  %v4930_v33 = vpop.f32.mrf.mxu0  ;;  %5619 = vmatmul.mubr.f32.gmra.mxu0 %v3913_v40  ;;  %v3979_v46 = vld [vmem:[#allocation2 + $0x229] sm:$0xff] }
 0x672   :  { %5248 = vmatprep.mubr.f32.mxu1 %v3851_v51  ;;  %v12478_v57 = vadd.f32 %v4930_v33, %v4546_v39  ;;  %5623 = vmatprep.mubr.f32.mxu0 %v3978_v7  ;;  %v4556_v39 = vadd.f32 %v12424_v56, %v4555_v41 }
 0x673   :  { %v4557_v52 = vpop.f32.mrf.mxu1  ;;  %v4932_v3 = vpop.f32.mrf.mxu0 }
 0x674   :  { %14993 = vst [vmem:[#allocation10_spill] sm:$0xff] %v12478_v57  ;;  %v3915_v52 = vld [vmem:[#allocation2 + $0x228] sm:$0xff]  ;;  %v3853_v3 = vld [vmem:[#allocation2 + $0x232] sm:$0xff] }
 0x675   :  { %v4560_v62 = vpop.f32.mrf.mxu1  ;;  %5249 = vmatmul.mubr.f32.gmra.mxu1 %v3978_v7  ;;  %v4935_v63 = vpop.f32.mrf.mxu0  ;;  %5624 = vmatmul.mubr.f32.gmra.mxu0 %v3914_v48  ;;  %v3980_v7 = vld [vmem:[#allocation2 + $0x231] sm:$0xff] }
 0x676   :  { %5253 = vmatprep.mubr.f32.mxu1 %v3852_v32  ;;  %v12481_v58 = vadd.f32 %v4935_v63, %v4551_v21  ;;  %5628 = vmatprep.mubr.f32.mxu0 %v3979_v46  ;;  %v4561_v21 = vadd.f32 %v12424_v56, %v4560_v62 }
 0x677   :  { %v4562_v40 = vpop.f32.mrf.mxu1  ;;  %v4937_v51 = vpop.f32.mrf.mxu0 }
 0x678   :  { %14994 = vst [vmem:[#allocation11_spill] sm:$0xff] %v12481_v58  ;;  %v3916_v40 = vld [vmem:[#allocation2 + $0x230] sm:$0xff]  ;;  %v3854_v51 = vld [vmem:[#allocation2 + $0x242] sm:$0xff] }
 0x679   :  { %v4565_v33 = vpop.f32.mrf.mxu1  ;;  %5254 = vmatmul.mubr.f32.gmra.mxu1 %v3979_v46  ;;  %v4940_v61 = vpop.f32.mrf.mxu0  ;;  %5629 = vmatmul.mubr.f32.gmra.mxu0 %v3915_v52  ;;  %v3981_v46 = vld [vmem:[#allocation2 + $0x241] sm:$0xff] }
 0x67a   :  { %5258 = vmatprep.mubr.f32.mxu1 %v3853_v3  ;;  %v12484_v57 = vadd.f32 %v4940_v61, %v4556_v39  ;;  %5633 = vmatprep.mubr.f32.mxu0 %v3980_v7  ;;  %v4566_v39 = vadd.f32 %v12424_v56, %v4565_v33 }
 0x67b   :  { %v4567_v48 = vpop.f32.mrf.mxu1  ;;  %v4942_v32 = vpop.f32.mrf.mxu0 }
 0x67c   :  { %14995 = vst [vmem:[#allocation13_spill] sm:$0xff] %v12484_v57  ;;  %v3917_v48 = vld [vmem:[#allocation2 + $0x240] sm:$0xff]  ;;  %v3855_v32 = vld [vmem:[#allocation2 + $0x24a] sm:$0xff] }
 0x67d   :  { %v4570_v63 = vpop.f32.mrf.mxu1  ;;  %5259 = vmatmul.mubr.f32.gmra.mxu1 %v3980_v7  ;;  %v4945_v41 = vpop.f32.mrf.mxu0  ;;  %5634 = vmatmul.mubr.f32.gmra.mxu0 %v3916_v40  ;;  %v3982_v7 = vld [vmem:[#allocation2 + $0x249] sm:$0xff] }
 0x67e   :  { %5263 = vmatprep.mubr.f32.mxu1 %v3854_v51  ;;  %v12487_v58 = vadd.f32 %v4945_v41, %v4561_v21  ;;  %5638 = vmatprep.mubr.f32.mxu0 %v3981_v46  ;;  %v4571_v21 = vadd.f32 %v12424_v56, %v4570_v63 }
 0x67f   :  { %v4572_v52 = vpop.f32.mrf.mxu1  ;;  %v4947_v3 = vpop.f32.mrf.mxu0 }
 0x680   :  { %14996 = vst [vmem:[#allocation18_spill] sm:$0xff] %v12487_v58  ;;  %v3918_v52 = vld [vmem:[#allocation2 + $0x248] sm:$0xff]  ;;  %v3856_v3 = vld [vmem:[#allocation2 + $0x25a] sm:$0xff] }
 0x681   :  { %v4575_v61 = vpop.f32.mrf.mxu1  ;;  %5264 = vmatmul.mubr.f32.gmra.mxu1 %v3981_v46  ;;  %v4950_v62 = vpop.f32.mrf.mxu0  ;;  %5639 = vmatmul.mubr.f32.gmra.mxu0 %v3917_v48  ;;  %v3983_v46 = vld [vmem:[#allocation2 + $0x259] sm:$0xff] }
 0x682   :  { %5268 = vmatprep.mubr.f32.mxu1 %v3855_v32  ;;  %v12490_v57 = vadd.f32 %v4950_v62, %v4566_v39  ;;  %5643 = vmatprep.mubr.f32.mxu0 %v3982_v7  ;;  %v4576_v39 = vadd.f32 %v12424_v56, %v4575_v61  ;;  %v3920_v61 = vld [vmem:[#allocation2 + $0x260] sm:$0xff] }
 0x683   :  { %v4577_v40 = vpop.f32.mrf.mxu1  ;;  %v4952_v51 = vpop.f32.mrf.mxu0 }
 0x684   :  { %14997 = vst [vmem:[#allocation22_spill] sm:$0xff] %v12490_v57  ;;  %v3919_v40 = vld [vmem:[#allocation2 + $0x258] sm:$0xff]  ;;  %v12496_v51 = vld [vmem:[#allocation2 + $0x262] sm:$0xff] }
 0x685   :  { %v4580_v41 = vpop.f32.mrf.mxu1  ;;  %5269 = vmatmul.mubr.f32.gmra.mxu1 %v3982_v7  ;;  %v4955_v33 = vpop.f32.mrf.mxu0  ;;  %5644 = vmatmul.mubr.f32.gmra.mxu0 %v3918_v52  ;;  %v3984_v7 = vld [vmem:[#allocation2 + $0x261] sm:$0xff] }
 0x686   :  { %5273 = vmatprep.mubr.f32.mxu1 %v3856_v3  ;;  %v12493_v58 = vadd.f32 %v4955_v33, %v4571_v21  ;;  %5648 = vmatprep.mubr.f32.mxu0 %v3983_v46  ;;  %v4581_v33 = vadd.f32 %v12424_v56, %v4580_v41  ;;  %v3921_v41 = vld [vmem:[#allocation2 + $0x270] sm:$0xff] }
 0x687   :  { %v4582_v48 = vpop.f32.mrf.mxu1  ;;  %v4957_v32 = vpop.f32.mrf.mxu0 }
 0x688   :  { %14998 = vst [vmem:[#allocation24_spill] sm:$0xff] %v12493_v58  ;;  %v12502_v32 = vld [vmem:[#allocation2 + $0x272] sm:$0xff] }
 0x689   :  { %v4585_v62 = vpop.f32.mrf.mxu1  ;;  %5274 = vmatmul.mubr.f32.gmra.mxu1 %v3983_v46  ;;  %v4960_v63 = vpop.f32.mrf.mxu0  ;;  %5649 = vmatmul.mubr.f32.gmra.mxu0 %v3919_v40  ;;  %v3985_v40 = vld [vmem:[#allocation2 + $0x271] sm:$0xff] }
 0x68a   :  { %5278 = vmatprep.mubr.f32.mxu1 %v12496_v51  ;;  %v12499_v52 = vadd.f32 %v4960_v63, %v4576_v39  ;;  %5653 = vmatprep.mubr.f32.mxu0 %v3984_v7 }
 0x68b   :  { %v4587_v21 = vpop.f32.mrf.mxu1  ;;  %v4962_v3 = vpop.f32.mrf.mxu0 }
 0x68c   :  { %14999 = vst [vmem:[#allocation26_spill] sm:$0xff] %v12499_v52  ;;  %v4586_v21 = vadd.f32 %v12424_v56, %v4585_v62  ;;  %v12508_v52 = vld [vmem:[#allocation2 + $0x27a] sm:$0xff] }
 0x68d   :  { %v4590_v48 = vpop.f32.mrf.mxu1  ;;  %5279 = vmatmul.mubr.f32.gmra.mxu1 %v3984_v7  ;;  %v4965_v46 = vpop.f32.mrf.mxu0  ;;  %5654 = vmatmul.mubr.f32.gmra.mxu0 %v3920_v61  ;;  %v3986_v61 = vld [vmem:[#allocation2 + $0x279] sm:$0xff] }
 0x68e   :  { %5283 = vmatprep.mubr.f32.mxu1 %v12502_v32  ;;  %v12505_v58 = vadd.f32 %v4965_v46, %v4581_v33  ;;  %5658 = vmatprep.mubr.f32.mxu0 %v3985_v40  ;;  %v3922_v62 = vld [vmem:[#allocation2 + $0x278] sm:$0xff] }
 0x68f   :  { %v4592_v39 = vpop.f32.mrf.mxu1  ;;  %v4967_v63 = vpop.f32.mrf.mxu0 }
 0x690   :  { %15000 = vst [vmem:[#allocation42_spill] sm:$0xff] %v12505_v58  ;;  %v4591_v39 = vadd.f32 %v12424_v56, %v4590_v48  ;;  %v12514_v58 = vld [vmem:[#allocation2 + $0x28a] sm:$0xff] }
 0x691   :  { %v4595_v3 = vpop.f32.mrf.mxu1  ;;  %5284 = vmatmul.mubr.f32.gmra.mxu1 %v3985_v40  ;;  %v4970_v7 = vpop.f32.mrf.mxu0  ;;  %5659 = vmatmul.mubr.f32.gmra.mxu0 %v3921_v41  ;;  %v3987_v41 = vld [vmem:[#allocation2 + $0x289] sm:$0xff] }
 0x692   :  { %5288 = vmatprep.mubr.f32.mxu1 %v12508_v52  ;;  %v12511_v57 = vadd.f32 %v4970_v7, %v4586_v21  ;;  %5663 = vmatprep.mubr.f32.mxu0 %v3986_v61  ;;  %v3923_v48 = vld [vmem:[#allocation2 + $0x288] sm:$0xff] }
 0x693   :  { %v4597_v33 = vpop.f32.mrf.mxu1  ;;  %v4972_v46 = vpop.f32.mrf.mxu0 }
 0x694   :  { %15001 = vst [vmem:[#allocation43_spill] sm:$0xff] %v12511_v57  ;;  %v4596_v33 = vadd.f32 %v12424_v56, %v4595_v3  ;;  %v12520_v57 = vld [vmem:[#allocation2 + $0x292] sm:$0xff] }
 0x695   :  { %v4600_v63 = vpop.f32.mrf.mxu1  ;;  %5289 = vmatmul.mubr.f32.gmra.mxu1 %v3986_v61  ;;  %v4975_v40 = vpop.f32.mrf.mxu0  ;;  %5664 = vmatmul.mubr.f32.gmra.mxu0 %v3922_v62  ;;  %v3988_v62 = vld [vmem:[#allocation2 + $0x291] sm:$0xff] }
 0x696   :  { %5293 = vmatprep.mubr.f32.mxu1 %v12514_v58  ;;  %v12517_v37 = vadd.f32 %v4975_v40, %v4591_v39  ;;  %5668 = vmatprep.mubr.f32.mxu0 %v3987_v41 }
 0x697   :  { %v4602_v21 = vpop.f32.mrf.mxu1  ;;  %v4977_v7 = vpop.f32.mrf.mxu0 }
 0x698   :  { %15002 = vst [vmem:[#allocation44_spill] sm:$0xff] %v12517_v37  ;;  %v4601_v21 = vadd.f32 %v12424_v56, %v4600_v63  ;;  %v12527_v7 = vld [vmem:[#allocation2 + $0x2a2] sm:$0xff]  ;;  %v12533_v63 = vld [vmem:[#allocation2 + $0x2aa] sm:$0xff] }
 0x699   :  { %v5055_v46 = vpop.f32.mrf.mxu1  ;;  %5294 = vmatmul.mubr.f32.gmra.mxu1 %v3987_v41  ;;  %v4980_v61 = vpop.f32.mrf.mxu0  ;;  %5669 = vmatmul.mubr.f32.gmra.mxu0 %v3923_v48  ;;  %v3924_v41 = vld [vmem:[#allocation2 + $0x290] sm:$0xff]  ;;  %v3925_v56 = vld [vmem:[#allocation2 + $0x2a0] sm:$0xff] }
 0x69a   :  { %v5056_v27 = vadd.f32 %v5055_v46, %v12312_v23  ;;  %5298 = vmatprep.mubr.f32.mxu1 %v12520_v57  ;;  %v12524_v24 = vadd.f32 %v4980_v61, %v4596_v33  ;;  %5673 = vmatprep.mubr.f32.mxu0 %v3988_v62  ;;  %v3989_v23 = vld [vmem:[#allocation2 + $0x2a1] sm:$0xff] }
 0x69b   :  { %v5057_v39 = vpop.f32.mrf.mxu1  ;;  %v4982_v40 = vpop.f32.mrf.mxu0 }
 0x69c   :  { %15003 = vst [vmem:[#allocation12_spill] sm:$0xff] %v12524_v24 }
 0x69d   :  { %v5060_v3 = vpop.f32.mrf.mxu1  ;;  %5299 = vmatmul.mubr.f32.gmra.mxu1 %v3988_v62  ;;  %v4985_v37 = vpop.f32.mrf.mxu0  ;;  %5674 = vmatmul.mubr.f32.gmra.mxu0 %v3924_v41  ;;  %v3926_v41 = vld [vmem:[#allocation2 + $0x2a8] sm:$0xff] }
 0x69e   :  { %v5061_v13 = vadd.f32 %v5060_v3, %v12316_v43  ;;  %5303 = vmatprep.mubr.f32.mxu1 %v12527_v7  ;;  %v12531_v46 = vadd.f32 %v4985_v37, %v4601_v21  ;;  %5678 = vmatprep.mubr.f32.mxu0 %v3989_v23  ;;  %v3990_v43 = vld [vmem:[#allocation2 + $0x2a9] sm:$0xff] }
 0x69f   :  { %v5062_v33 = vpop.f32.mrf.mxu1  ;;  %v4987_v48 = vpop.f32.mrf.mxu0 }
 0x6a0   :  { %15004 = vst [vmem:[#allocation14_spill] sm:$0xff] %v12531_v46  ;;  %v12539_v33 = vld [vmem:[#allocation2 + $0x2ba] sm:$0xff] }
 0x6a1   :  { %v5065_v61 = vpop.f32.mrf.mxu1  ;;  %5304 = vmatmul.mubr.f32.gmra.mxu1 %v3989_v23  ;;  %v5440_v39 = vpop.f32.mrf.mxu0  ;;  %5679 = vmatmul.mubr.f32.gmra.mxu0 %v3925_v56 }
 0x6a2   :  { %v5066_v62 = vadd.f32 %v5065_v61, %v12319_v53  ;;  %5308 = vmatprep.mubr.f32.mxu1 %v12533_v63  ;;  %v12537_v40 = vadd.f32 %v5440_v39, %v5056_v27  ;;  %5683 = vmatprep.mubr.f32.mxu0 %v3990_v43  ;;  %v3991_v53 = vld [vmem:[#allocation2 + $0x2b9] sm:$0xff] }
 0x6a3   :  { %v5067_v37 = vpop.f32.mrf.mxu1  ;;  %v5442_v21 = vpop.f32.mrf.mxu0 }
 0x6a4   :  { %15005 = vst [vmem:[#allocation21_spill] sm:$0xff] %v12537_v40  ;;  %v3927_v37 = vld [vmem:[#allocation2 + $0x2b8] sm:$0xff]  ;;  %v12545_v21 = vld [vmem:[#allocation2 + $0x2c2] sm:$0xff] }
 0x6a5   :  { %v5070_v3 = vpop.f32.mrf.mxu1  ;;  %5309 = vmatmul.mubr.f32.gmra.mxu1 %v3990_v43  ;;  %v5445_v48 = vpop.f32.mrf.mxu0  ;;  %5684 = vmatmul.mubr.f32.gmra.mxu0 %v3926_v41 }
 0x6a6   :  { %v5071_v23 = vadd.f32 %v5070_v3, %v12322_v38  ;;  %5313 = vmatprep.mubr.f32.mxu1 %v12539_v33  ;;  %v12543_v61 = vadd.f32 %v5445_v48, %v5061_v13  ;;  %5688 = vmatprep.mubr.f32.mxu0 %v3991_v53  ;;  %v3992_v38 = vld [vmem:[#allocation2 + $0x2c1] sm:$0xff]  ;;  %v6363_v48 = vld [vmem:[%s14526_s1 + $0x78] sm:$0xff] }
 0x6a7   :  { %v5072_v27 = vpop.f32.mrf.mxu1  ;;  %v5447_v56 = vpop.f32.mrf.mxu0  ;;  %7997 = vmatpush3.msra.mxu0 %v6363_v48 }
 0x6a8   :  { %15006 = vst [vmem:[#allocation23_spill] sm:$0xff] %v12543_v61  ;;  %v3928_v27 = vld [vmem:[#allocation2 + $0x2c0] sm:$0xff]  ;;  %v12554_v56 = vld [vmem:[#allocation2 + $0x2d2] sm:$0xff]  ;;  %7998 = vmatprep.subr.mxu0 %v12460_v9 }
 0x6a9   :  { %v5075_v39 = vpop.f32.mrf.mxu1  ;;  %5314 = vmatmul.mubr.f32.gmra.mxu1 %v3991_v53  ;;  %v5450_v40 = vpop.f32.mrf.mxu0  ;;  %5689 = vmatmul.mubr.f32.gmra.mxu0 %v3927_v37 }
 0x6aa   :  { %v5076_v43 = vadd.f32 %v5075_v39, %v12325_v55  ;;  %5318 = vmatprep.mubr.f32.mxu1 %v12545_v21  ;;  %v12549_v3 = vadd.f32 %v5450_v40, %v5066_v62  ;;  %5693 = vmatprep.mubr.f32.mxu0 %v3992_v38  ;;  %v3993_v62 = vld [vmem:[#allocation2 + $0x2d1] sm:$0xff] }
 0x6ab   :  { %v5077_v13 = vpop.f32.mrf.mxu1  ;;  %v5452_v41 = vpop.f32.mrf.mxu0 }
 0x6ac   :  { %15007 = vst [vmem:[#allocation25_spill] sm:$0xff] %v12549_v3  ;;  %v12561_v3 = vld [vmem:[#allocation2 + $0x2da] sm:$0xff] }
 0x6ad   :  { %v5080_v53 = vpop.f32.mrf.mxu1  ;;  %5319 = vmatmul.mubr.f32.gmra.mxu1 %v3992_v38  ;;  %v5455_v39 = vpop.f32.mrf.mxu0  ;;  %5694 = vmatmul.mubr.f32.gmra.mxu0 %v3928_v27  ;;  %v3929_v38 = vld [vmem:[#allocation2 + $0x2d0] sm:$0xff] }
 0x6ae   :  { %v5081_v55 = vadd.f32 %v5080_v53, %v12328_v45  ;;  %5323 = vmatprep.mubr.f32.mxu1 %v12554_v56  ;;  %v12558_v40 = vadd.f32 %v5455_v39, %v5071_v23  ;;  %5698 = vmatprep.mubr.f32.mxu0 %v3993_v62  ;;  %v3994_v53 = vld [vmem:[#allocation2 + $0x2d9] sm:$0xff] }
 0x6af   :  { %v5082_v37 = vpop.f32.mrf.mxu1  ;;  %v5457_v13 = vpop.f32.mrf.mxu0 }
 0x6b0   :  { %15008 = vst [vmem:[#allocation32_spill] sm:$0xff] %v12558_v40  ;;  %v3930_v13 = vld [vmem:[#allocation2 + $0x2d8] sm:$0xff]  ;;  %v12567_v40 = vld [vmem:[#allocation2 + $0x2ea] sm:$0xff] }
 0x6b1   :  { %v5085_v41 = vpop.f32.mrf.mxu1  ;;  %5324 = vmatmul.mubr.f32.gmra.mxu1 %v3993_v62  ;;  %v5460_v45 = vpop.f32.mrf.mxu0  ;;  %5699 = vmatmul.mubr.f32.gmra.mxu0 %v3929_v38 }
 0x6b2   :  { %v5086_v48 = vadd.f32 %v5085_v41, %v12331_v2  ;;  %5328 = vmatprep.mubr.f32.mxu1 %v12561_v3  ;;  %v12565_v27 = vadd.f32 %v5460_v45, %v5076_v43  ;;  %5703 = vmatprep.mubr.f32.mxu0 %v3994_v53  ;;  %v3995_v2 = vld [vmem:[#allocation2 + $0x2e9] sm:$0xff] }
 0x6b3   :  { %v5087_v23 = vpop.f32.mrf.mxu1  ;;  %v5462_v39 = vpop.f32.mrf.mxu0 }
 0x6b4   :  { %15009 = vst [vmem:[#allocation31_spill] sm:$0xff] %v12565_v27  ;;  %v3931_v23 = vld [vmem:[#allocation2 + $0x2e8] sm:$0xff]  ;;  %v12573_v39 = vld [vmem:[#allocation2 + $0x2f2] sm:$0xff] }
 0x6b5   :  { %v5090_v37 = vpop.f32.mrf.mxu1  ;;  %5329 = vmatmul.mubr.f32.gmra.mxu1 %v3994_v53  ;;  %v5465_v61 = vpop.f32.mrf.mxu0  ;;  %5704 = vmatmul.mubr.f32.gmra.mxu0 %v3930_v13  ;;  %v6362_v13 = vld [vmem:[%s14526_s1 + $0x70] sm:$0xff] }
 0x6b6   :  { %v5091_v62 = vadd.f32 %v5090_v37, %v12334_v60  ;;  %5333 = vmatprep.mubr.f32.mxu1 %v12567_v40  ;;  %v12571_v41 = vadd.f32 %v5465_v61, %v5081_v55  ;;  %5708 = vmatprep.mubr.f32.mxu0 %v3995_v2  ;;  %v3996_v60 = vld [vmem:[#allocation2 + $0x2f1] sm:$0xff] }
 0x6b7   :  { %v5092_v43 = vpop.f32.mrf.mxu1  ;;  %v5467_v38 = vpop.f32.mrf.mxu0  ;;  %7999 = vmatpush3.msra.mxu0 %v6362_v13 }
 0x6b8   :  { %15010 = vst [vmem:[#allocation33_spill] sm:$0xff] %v12571_v41  ;;  %v3932_v43 = vld [vmem:[#allocation2 + $0x2f0] sm:$0xff]  ;;  %v12582_v38 = vld [vmem:[#allocation2 + $0x302] sm:$0xff]  ;;  %8000 = vmatprep.subr.mxu0 %v12460_v9 }
 0x6b9   :  { %v5095_v45 = vpop.f32.mrf.mxu1  ;;  %5334 = vmatmul.mubr.f32.gmra.mxu1 %v3995_v2  ;;  %v5470_v27 = vpop.f32.mrf.mxu0  ;;  %5709 = vmatmul.mubr.f32.gmra.mxu0 %v3931_v23 }
 0x6ba   :  { %v5096_v53 = vadd.f32 %v5095_v45, %v12337_v12  ;;  %5338 = vmatprep.mubr.f32.mxu1 %v12573_v39  ;;  %v12577_v37 = vadd.f32 %v5470_v27, %v5086_v48  ;;  %5713 = vmatprep.mubr.f32.mxu0 %v3996_v60  ;;  %v3997_v48 = vld [vmem:[#allocation2 + $0x301] sm:$0xff] }
 0x6bb   :  { %v5097_v61 = vpop.f32.mrf.mxu1  ;;  %v5472_v55 = vpop.f32.mrf.mxu0 }
 0x6bc   :  { %15011 = vst [vmem:[#allocation27_spill] sm:$0xff] %v12577_v37  ;;  %v12589_v37 = vld [vmem:[#allocation2 + $0x30a] sm:$0xff] }
 0x6bd   :  { %v5100_v2 = vpop.f32.mrf.mxu1  ;;  %5339 = vmatmul.mubr.f32.gmra.mxu1 %v3996_v60  ;;  %v5475_v45 = vpop.f32.mrf.mxu0  ;;  %5714 = vmatmul.mubr.f32.gmra.mxu0 %v3932_v43  ;;  %v3933_v60 = vld [vmem:[#allocation2 + $0x300] sm:$0xff] }
 0x6be   :  { %v5101_v12 = vadd.f32 %v5100_v2, %v12340_v59  ;;  %5343 = vmatprep.mubr.f32.mxu1 %v12582_v38  ;;  %v12586_v27 = vadd.f32 %v5475_v45, %v5091_v62  ;;  %5718 = vmatprep.mubr.f32.mxu0 %v3997_v48  ;;  %v3998_v2 = vld [vmem:[#allocation2 + $0x309] sm:$0xff] }
 0x6bf   :  { %v5102_v23 = vpop.f32.mrf.mxu1  ;;  %v5477_v61 = vpop.f32.mrf.mxu0 }
 0x6c0   :  { %15012 = vst [vmem:[#allocation28_spill] sm:$0xff] %v12586_v27  ;;  %v3934_v61 = vld [vmem:[#allocation2 + $0x308] sm:$0xff]  ;;  %v12595_v27 = vld [vmem:[#allocation2 + $0x31a] sm:$0xff] }
 0x6c1   :  { %v5105_v55 = vpop.f32.mrf.mxu1  ;;  %5344 = vmatmul.mubr.f32.gmra.mxu1 %v3997_v48  ;;  %v5480_v59 = vpop.f32.mrf.mxu0  ;;  %5719 = vmatmul.mubr.f32.gmra.mxu0 %v3933_v60 }
 0x6c2   :  { %v5106_v13 = vadd.f32 %v5105_v55, %v12343_v5  ;;  %5348 = vmatprep.mubr.f32.mxu1 %v12589_v37  ;;  %v12593_v43 = vadd.f32 %v5480_v59, %v5096_v53  ;;  %5723 = vmatprep.mubr.f32.mxu0 %v3998_v2  ;;  %v3999_v5 = vld [vmem:[#allocation2 + $0x319] sm:$0xff] }
 0x6c3   :  { %v5107_v62 = vpop.f32.mrf.mxu1  ;;  %v5482_v45 = vpop.f32.mrf.mxu0 }
 0x6c4   :  { %15013 = vst [vmem:[#allocation30_spill] sm:$0xff] %v12593_v43  ;;  %v3935_v62 = vld [vmem:[#allocation2 + $0x318] sm:$0xff]  ;;  %v12601_v45 = vld [vmem:[#allocation2 + $0x322] sm:$0xff] }
 0x6c5   :  { %v5110_v23 = vpop.f32.mrf.mxu1  ;;  %5349 = vmatmul.mubr.f32.gmra.mxu1 %v3998_v2  ;;  %v5485_v41 = vpop.f32.mrf.mxu0  ;;  %5724 = vmatmul.mubr.f32.gmra.mxu0 %v3934_v61  ;;  %v6361_v61 = vld [vmem:[%s14526_s1 + $0x68] sm:$0xff] }
 0x6c6   :  { %v5111_v48 = vadd.f32 %v5110_v23, %v12346_v18  ;;  %5353 = vmatprep.mubr.f32.mxu1 %v12595_v27  ;;  %v12599_v55 = vadd.f32 %v5485_v41, %v5101_v12  ;;  %5728 = vmatprep.mubr.f32.mxu0 %v3999_v5  ;;  %v4000_v18 = vld [vmem:[#allocation2 + $0x321] sm:$0xff] }
 0x6c7   :  { %v5112_v53 = vpop.f32.mrf.mxu1  ;;  %v5487_v60 = vpop.f32.mrf.mxu0  ;;  %8001 = vmatpush3.msra.mxu0 %v6361_v61 }
 0x6c8   :  { %15014 = vst [vmem:[#allocation29_spill] sm:$0xff] %v12599_v55  ;;  %v3936_v53 = vld [vmem:[#allocation2 + $0x320] sm:$0xff]  ;;  %v12610_v60 = vld [vmem:[#allocation2 + $0x332] sm:$0xff]  ;;  %8002 = vmatprep.subr.mxu0 %v12460_v9 }
 0x6c9   :  { %v5115_v59 = vpop.f32.mrf.mxu1  ;;  %5354 = vmatmul.mubr.f32.gmra.mxu1 %v3999_v5  ;;  %v5490_v43 = vpop.f32.mrf.mxu0  ;;  %5729 = vmatmul.mubr.f32.gmra.mxu0 %v3935_v62 }
 0x6ca   :  { %v5116_v2 = vadd.f32 %v5115_v59, %v12349_v16  ;;  %5358 = vmatprep.mubr.f32.mxu1 %v12601_v45  ;;  %v12605_v23 = vadd.f32 %v5490_v43, %v5106_v13  ;;  %5733 = vmatprep.mubr.f32.mxu0 %v4000_v18  ;;  %v4001_v13 = vld [vmem:[#allocation2 + $0x331] sm:$0xff] }
 0x6cb   :  { %v5117_v41 = vpop.f32.mrf.mxu1  ;;  %v5492_v12 = vpop.f32.mrf.mxu0 }
 0x6cc   :  { %15015 = vst [vmem:[#allocation41_spill] sm:$0xff] %v12605_v23  ;;  %v12617_v23 = vld [vmem:[#allocation2 + $0x33a] sm:$0xff] }
 0x6cd   :  { %v5120_v5 = vpop.f32.mrf.mxu1  ;;  %5359 = vmatmul.mubr.f32.gmra.mxu1 %v4000_v18  ;;  %v5495_v59 = vpop.f32.mrf.mxu0  ;;  %5734 = vmatmul.mubr.f32.gmra.mxu0 %v3936_v53  ;;  %v3937_v18 = vld [vmem:[#allocation2 + $0x330] sm:$0xff] }
 0x6ce   :  { %v5121_v16 = vadd.f32 %v5120_v5, %v12352_v22  ;;  %5363 = vmatprep.mubr.f32.mxu1 %v12610_v60  ;;  %v12614_v43 = vadd.f32 %v5495_v59, %v5111_v48  ;;  %5738 = vmatprep.mubr.f32.mxu0 %v4001_v13  ;;  %v4002_v5 = vld [vmem:[#allocation2 + $0x339] sm:$0xff] }
 0x6cf   :  { %v5122_v62 = vpop.f32.mrf.mxu1  ;;  %v5497_v41 = vpop.f32.mrf.mxu0 }
 0x6d0   :  { %15016 = vst [vmem:[#allocation39_spill] sm:$0xff] %v12614_v43  ;;  %v4003_v62 = vld [vmem:[#allocation2 + $0x349] sm:$0xff]  ;;  %v3938_v41 = vld [vmem:[#allocation2 + $0x338] sm:$0xff] }
 0x6d1   :  { %v5125_v12 = vpop.f32.mrf.mxu1  ;;  %5364 = vmatmul.mubr.f32.gmra.mxu1 %v4001_v13  ;;  %v5500_v22 = vpop.f32.mrf.mxu0  ;;  %5739 = vmatmul.mubr.f32.gmra.mxu0 %v3937_v18  ;;  %v4005_v13 = vld [vmem:[#allocation2 + $0x32] sm:$0xff]  ;;  %v3939_v18 = vld [vmem:[#allocation2 + $0x348] sm:$0xff] }
 0x6d2   :  { %v5126_v61 = vadd.f32 %v5125_v12, %v12355_v6  ;;  %5368 = vmatprep.mubr.f32.mxu1 %v12617_v23  ;;  %v12621_v53 = vadd.f32 %v5500_v22, %v5116_v2  ;;  %5743 = vmatprep.mubr.f32.mxu0 %v4002_v5  ;;  %v4006_v22 = vld [vmem:[#allocation2 + $0x3a] sm:$0xff] }
 0x6d3   :  { %v5127_v48 = vpop.f32.mrf.mxu1  ;;  %v5502_v59 = vpop.f32.mrf.mxu0 }
 0x6d4   :  { %15017 = vst [vmem:[#allocation45_spill] sm:$0xff] %v12621_v53  ;;  %v4004_v53 = vld [vmem:[#allocation2 + $0x351] sm:$0xff] }
 0x6d5   :  { %v5130_v43 = vpop.f32.mrf.mxu1  ;;  %5369 = vmatmul.mubr.f32.gmra.mxu1 %v4002_v5  ;;  %v5505_v46 = vpop.f32.mrf.mxu0  ;;  %5744 = vmatmul.mubr.f32.gmra.mxu0 %v3938_v41  ;;  %v4007_v59 = vld [vmem:[#allocation2 + $0x4a] sm:$0xff] }
 0x6d6   :  { %v5131_v55 = vadd.f32 %v5130_v43, %v12359_v25  ;;  %7900 = vmatprep.mubr.f32.mxu1 %v4005_v13  ;;  %v12624_v6 = vadd.f32 %v5505_v46, %v5121_v16  ;;  %5748 = vmatprep.mubr.f32.mxu0 %v4003_v62  ;;  %v4008_v16 = vld [vmem:[#allocation2 + $0x52] sm:$0xff]  ;;  %v6360_v62 = vld [vmem:[%s14526_s1 + $0x60] sm:$0xff] }
 0x6d7   :  { %v5132_v12 = vpop.f32.mrf.mxu1  ;;  %v5507_v2 = vpop.f32.mrf.mxu0  ;;  %v4009_v13 = vld [vmem:[#allocation2 + $0x62] sm:$0xff]  ;;  %8003 = vmatpush3.msra.mxu0 %v6360_v62  ;;  %v4013_v62 = vld [vmem:[#allocation2 + $0x92] sm:$0xff] }
 0x6d8   :  { %8004 = vmatprep.subr.mxu0 %v12460_v9 }
 0x6d9   :  { %v5135_v48 = vpop.f32.mrf.mxu1  ;;  %7901 = vmatmul.mubr.f32.vlgmr.msra.gmra.mxu1 %v4006_v22  ;;  %v5510_v24 = vpop.f32.mrf.mxu0  ;;  %5749 = vmatmul.mubr.f32.gmra.mxu0 %v3939_v18  ;;  %v4010_v18 = vld [vmem:[#allocation2 + $0x6a] sm:$0xff]  ;;  %v4011_v22 = vld [vmem:[#allocation2 + $0x7a] sm:$0xff] }
 0x6da   :  { %v5136_v5 = vadd.f32 %v5135_v48, %v12362_v17  ;;  %7903 = vmatprep.mubr.f32.mxu1 %v4007_v59  ;;  %v12627_v25 = vadd.f32 %v5510_v24, %v5126_v61  ;;  %5753 = vmatprep.mubr.f32.mxu0 %v4004_v53 }
 0x6db   :  { %v5137_v43 = vpop.f32.mrf.mxu1  ;;  %v5512_v46 = vpop.f32.mrf.mxu0 }
 0x6dc   :  { %v4012_v46 = vld [vmem:[#allocation2 + $0x82] sm:$0xff] }
 0x6dd   :  { %v5140_v41 = vpop.f32.mrf.mxu1  ;;  %7904 = vmatmul.mubr.f32.gmra.mxu1 %v4008_v16  ;;  %v5515_v17 = vpop.f32.mrf.mxu0  ;;  %5754 = vmatmul.mubr.f32.gmra.mxu0 %v12460_v9 }
 0x6de   :  { %v5141_v12 = vadd.f32 %v5140_v41, %v12365_v28  ;;  %7906 = vmatprep.mubr.f32.mxu1 %v4009_v13  ;;  %v12634_v24 = vadd.f32 %v5515_v17, %v5131_v55  ;;  %8028 = vmatprep.mubr.msk.f32.mxu0 %vm8154_vm0, %v12460_v9 }
 0x6df   :  { %v5142_v61 = vpop.f32.mrf.mxu1  ;;  %v5517_v53 = vpop.f32.mrf.mxu0 }
 0x6e1   :  { %v5145_v2 = vpop.f32.mrf.mxu1  ;;  %7907 = vmatmul.mubr.f32.gmra.mxu1 %v4010_v18  ;;  %v5520_v28 = vpop.f32.mrf.mxu0  ;;  %v4014_v18 = vld [vmem:[#allocation2 + $0x9a] sm:$0xff] }
 0x6e2   :  { %v5146_v48 = vadd.f32 %v5145_v2, %v12368_v54  ;;  %7909 = vmatprep.mubr.f32.mxu1 %v4011_v22  ;;  %v12640_v59 = vadd.f32 %v5520_v28, %v5136_v5  ;;  %v4015_v2 = vld [vmem:[#allocation2 + $0xaa] sm:$0xff] }
 0x6e3   :  { %v5147_v43 = vpop.f32.mrf.mxu1  ;;  %v5522_v55 = vpop.f32.mrf.mxu0 }
 0x6e5   :  { %v5150_v16 = vpop.f32.mrf.mxu1  ;;  %7910 = vmatmul.mubr.f32.gmra.mxu1 %v4012_v46  ;;  %v5525_v13 = vpop.f32.mrf.mxu0  ;;  %v4016_v46 = vld [vmem:[#allocation2 + $0xb2] sm:$0xff] }
 0x6e6   :  { %v5151_v41 = vadd.f32 %v5150_v16, %v12371_v31  ;;  %7912 = vmatprep.mubr.f32.mxu1 %v4013_v62  ;;  %v12643_v17 = vadd.f32 %v5525_v13, %v5141_v12  ;;  %v6359_v31 = vld [vmem:[%s14526_s1 + $0x58] sm:$0xff]  ;;  %v4017_v16 = vld [vmem:[#allocation2 + $0xc2] sm:$0xff] }
 0x6e7   :  { %v5152_v61 = vpop.f32.mrf.mxu1  ;;  %v5527_v53 = vpop.f32.mrf.mxu0  ;;  %8005 = vmatpush3.msra.mxu0 %v6359_v31 }
 0x6e8   :  { %8006 = vmatprep.subr.mxu0 %v12460_v9  ;;  %v4018_v53 = vld [vmem:[#allocation2 + $0xca] sm:$0xff]  ;;  %v4021_v9 = vld [vmem:[#allocation2 + $0xf2] sm:$0xff] }
 0x6e9   :  { %v5155_v54 = vpop.f32.mrf.mxu1  ;;  %7913 = vmatmul.mubr.f32.gmra.mxu1 %v4014_v18  ;;  %v5530_v22 = vpop.f32.mrf.mxu0 }
 0x6ea   :  { %v5156_v5 = vadd.f32 %v5155_v54, %v12374_v49  ;;  %7915 = vmatprep.mubr.f32.mxu1 %v4015_v2  ;;  %v12646_v28 = vadd.f32 %v5530_v22, %v5146_v48  ;;  %v4019_v54 = vld [vmem:[#allocation2 + $0xda] sm:$0xff] }
 0x6eb   :  { %v5157_v43 = vpop.f32.mrf.mxu1  ;;  %v5532_v55 = vpop.f32.mrf.mxu0 }
 0x6ed   :  { %v5160_v12 = vpop.f32.mrf.mxu1  ;;  %7916 = vmatmul.mubr.f32.gmra.mxu1 %v4016_v46  ;;  %v5535_v13 = vpop.f32.mrf.mxu0  ;;  %v4020_v46 = vld [vmem:[#allocation2 + $0xe2] sm:$0xff] }
 0x6ee   :  { %v5161_v62 = vadd.f32 %v5160_v12, %v12377_v20  ;;  %7918 = vmatprep.mubr.f32.mxu1 %v4017_v16  ;;  %v12653_v49 = vadd.f32 %v5535_v13, %v5151_v41 }
 0x6ef   :  { %v5162_v48 = vpop.f32.mrf.mxu1  ;;  %v5537_v61 = vpop.f32.mrf.mxu0 }
 0x6f0   :  { %v4022_v61 = vld [vmem:[#allocation2 + $0xfa] sm:$0xff] }
 0x6f1   :  { %v5165_v18 = vpop.f32.mrf.mxu1  ;;  %7919 = vmatmul.mubr.f32.gmra.mxu1 %v4018_v53  ;;  %v5540_v22 = vpop.f32.mrf.mxu0  ;;  %v4023_v53 = vld [vmem:[#allocation2 + $0x10a] sm:$0xff] }
 0x6f2   :  { %v5166_v2 = vadd.f32 %v5165_v18, %v12380_v10  ;;  %7921 = vmatprep.mubr.f32.mxu1 %v4019_v54  ;;  %v12656_v43 = vadd.f32 %v5540_v22, %v5156_v5 }
 0x6f3   :  { %v5167_v55 = vpop.f32.mrf.mxu1  ;;  %v5542_v20 = vpop.f32.mrf.mxu0 }
 0x6f4   :  { %v4024_v20 = vld [vmem:[#allocation2 + $0x112] sm:$0xff] }
 0x6f5   :  { %v5170_v31 = vpop.f32.mrf.mxu1  ;;  %7922 = vmatmul.mubr.f32.gmra.mxu1 %v4020_v46  ;;  %v5545_v12 = vpop.f32.mrf.mxu0  ;;  %v4025_v46 = vld [vmem:[#allocation2 + $0x122] sm:$0xff] }
 0x6f6   :  { %v5171_v41 = vadd.f32 %v5170_v31, %v12383_v42  ;;  %7924 = vmatprep.mubr.f32.mxu1 %v4021_v9  ;;  %v12659_v16 = vadd.f32 %v5545_v12, %v5161_v62  ;;  %v6358_v42 = vld [vmem:[%s14526_s1 + $0x50] sm:$0xff] }
 0x6f7   :  { %v5172_v13 = vpop.f32.mrf.mxu1  ;;  %v5547_v48 = vpop.f32.mrf.mxu0  ;;  %8007 = vmatpush3.msra.mxu0 %v6358_v42 }
 0x6f8   :  { %v4026_v48 = vld [vmem:[#allocation2 + $0x12a] sm:$0xff] }
 0x6f9   :  { %v5175_v10 = vpop.f32.mrf.mxu1  ;;  %7925 = vmatmul.mubr.f32.gmra.mxu1 %v4022_v61  ;;  %v5550_v18 = vpop.f32.mrf.mxu0 }
 0x6fa   :  { %v5176_v5 = vadd.f32 %v5175_v10, %v12386_v15  ;;  %7927 = vmatprep.mubr.f32.mxu1 %v4023_v53  ;;  %v12662_v54 = vadd.f32 %v5550_v18, %v5166_v2  ;;  %v12668_v15 = vld [vmem:[#allocation2 + $0x8] sm:$0xff]  ;;  %v4027_v10 = vld [vmem:[#allocation2 + $0x13a] sm:$0xff] }
 0x6fb   :  { %v5177_v22 = vpop.f32.mrf.mxu1  ;;  %v5552_v55 = vpop.f32.mrf.mxu0  ;;  %8008 = vmatprep.subr.mxu0 %v12668_v15 }
 0x6fd   :  { %v5180_v62 = vpop.f32.mrf.mxu1  ;;  %7928 = vmatmul.mubr.f32.gmra.mxu1 %v4024_v20  ;;  %v5555_v9 = vpop.f32.mrf.mxu0  ;;  %v4028_v20 = vld [vmem:[#allocation2 + $0x142] sm:$0xff] }
 0x6fe   :  { %v5181_v31 = vadd.f32 %v5180_v62, %v12389_v29  ;;  %7930 = vmatprep.mubr.f32.mxu1 %v4025_v46  ;;  %v12671_v2 = vadd.f32 %v5555_v9, %v5171_v41  ;;  %v4029_v62 = vld [vmem:[#allocation2 + $0x152] sm:$0xff] }
 0x6ff   :  { %v5182_v12 = vpop.f32.mrf.mxu1  ;;  %v5557_v13 = vpop.f32.mrf.mxu0 }
 0x701   :  { %v5185_v61 = vpop.f32.mrf.mxu1  ;;  %7931 = vmatmul.mubr.f32.gmra.mxu1 %v4026_v48  ;;  %v5560_v18 = vpop.f32.mrf.mxu0  ;;  %v4030_v48 = vld [vmem:[#allocation2 + $0x15a] sm:$0xff] }
 0x702   :  { %v5186_v53 = vadd.f32 %v5185_v61, %v12392_v8  ;;  %7933 = vmatprep.mubr.f32.mxu1 %v4027_v10  ;;  %v12674_v22 = vadd.f32 %v5560_v18, %v5176_v5  ;;  %v4031_v61 = vld [vmem:[#allocation2 + $0x16a] sm:$0xff] }
 0x703   :  { %v5187_v29 = vpop.f32.mrf.mxu1  ;;  %v5562_v55 = vpop.f32.mrf.mxu0 }
 0x705   :  { %v5190_v42 = vpop.f32.mrf.mxu1  ;;  %7934 = vmatmul.mubr.f32.gmra.mxu1 %v4028_v20  ;;  %v5565_v46 = vpop.f32.mrf.mxu0  ;;  %v4032_v20 = vld [vmem:[#allocation2 + $0x172] sm:$0xff] }
 0x706   :  { %v5191_v41 = vadd.f32 %v5190_v42, %v12395_v30  ;;  %7936 = vmatprep.mubr.f32.mxu1 %v4029_v62  ;;  %v12677_v9 = vadd.f32 %v5565_v46, %v5181_v31  ;;  %v6357_v30 = vld [vmem:[%s14526_s1 + $0x48] sm:$0xff] }
 0x707   :  { %v5192_v12 = vpop.f32.mrf.mxu1  ;;  %v5567_v13 = vpop.f32.mrf.mxu0  ;;  %v4033_v42 = vld [vmem:[#allocation2 + $0x182] sm:$0xff]  ;;  %8009 = vmatpush3.msra.mxu0 %v6357_v30 }
 0x708   :  { %8010 = vmatprep.subr.mxu0 %v12668_v15  ;;  %v4035_v12 = vld [vmem:[#allocation2 + $0x19a] sm:$0xff] }
 0x709   :  { %v5195_v8 = vpop.f32.mrf.mxu1  ;;  %7937 = vmatmul.mubr.f32.gmra.mxu1 %v4030_v48  ;;  %v5570_v10 = vpop.f32.mrf.mxu0  ;;  %v4034_v48 = vld [vmem:[#allocation2 + $0x18a] sm:$0xff] }
 0x70a   :  { %v5196_v5 = vadd.f32 %v5195_v8, %v12398_v36  ;;  %7939 = vmatprep.mubr.f32.mxu1 %v4031_v61  ;;  %v12680_v18 = vadd.f32 %v5570_v10, %v5186_v53 }
 0x70b   :  { %v5197_v29 = vpop.f32.mrf.mxu1  ;;  %v5572_v55 = vpop.f32.mrf.mxu0 }
 0x70c   :  { %v4036_v29 = vld [vmem:[#allocation2 + $0x1a2] sm:$0xff] }
 0x70d   :  { %v5200_v31 = vpop.f32.mrf.mxu1  ;;  %7940 = vmatmul.mubr.f32.gmra.mxu1 %v4032_v20  ;;  %v5575_v46 = vpop.f32.mrf.mxu0 }
 0x70e   :  { %v5201_v62 = vadd.f32 %v5200_v31, %v12401_v4  ;;  %7942 = vmatprep.mubr.f32.mxu1 %v4033_v42  ;;  %v12687_v36 = vadd.f32 %v5575_v46, %v5191_v41  ;;  %v4037_v31 = vld [vmem:[#allocation2 + $0x1e2] sm:$0xff] }
 0x70f   :  { %v5202_v53 = vpop.f32.mrf.mxu1  ;;  %v5577_v13 = vpop.f32.mrf.mxu0 }
 0x711   :  { %v5205_v8 = vpop.f32.mrf.mxu1  ;;  %7943 = vmatmul.mubr.f32.gmra.mxu1 %v4034_v48  ;;  %v5580_v10 = vpop.f32.mrf.mxu0  ;;  %v4038_v48 = vld [vmem:[#allocation2 + $0x1ea] sm:$0xff] }
 0x712   :  { %v5206_v61 = vadd.f32 %v5205_v8, %v12404_v1  ;;  %7945 = vmatprep.mubr.f32.mxu1 %v4035_v12  ;;  %v12690_v55 = vadd.f32 %v5580_v10, %v5196_v5  ;;  %v4039_v12 = vld [vmem:[#allocation2 + $0x1fa] sm:$0xff] }
 0x713   :  { %v5207_v4 = vpop.f32.mrf.mxu1  ;;  %v5582_v20 = vpop.f32.mrf.mxu0 }
 0x714   :  { %v4040_v20 = vld [vmem:[#allocation2 + $0x202] sm:$0xff] }
 0x715   :  { %v5210_v30 = vpop.f32.mrf.mxu1  ;;  %7946 = vmatmul.mubr.f32.gmra.mxu1 %v4036_v29  ;;  %v5585_v42 = vpop.f32.mrf.mxu0 }
 0x716   :  { %v5211_v41 = vadd.f32 %v5210_v30, %v12407_v19  ;;  %7948 = vmatprep.mubr.f32.mxu1 %v4037_v31  ;;  %v12693_v46 = vadd.f32 %v5585_v42, %v5201_v62  ;;  %v4041_v30 = vld [vmem:[#allocation2 + $0x212] sm:$0xff] }
 0x717   :  { %v5212_v53 = vpop.f32.mrf.mxu1  ;;  %v5587_v13 = vpop.f32.mrf.mxu0 }
 0x719   :  { %v5215_v1 = vpop.f32.mrf.mxu1  ;;  %7949 = vmatmul.mubr.f32.gmra.mxu1 %v4038_v48  ;;  %v5590_v8 = vpop.f32.mrf.mxu0  ;;  %v4042_v48 = vld [vmem:[#allocation2 + $0x21a] sm:$0xff] }
 0x71a   :  { %v5216_v5 = vadd.f32 %v5215_v1, %v12410_v35  ;;  %7951 = vmatprep.mubr.f32.mxu1 %v4039_v12  ;;  %v12696_v10 = vadd.f32 %v5590_v8, %v5206_v61  ;;  %v6356_v35 = vld [vmem:[%s14526_s1 + $0x40] sm:$0xff]  ;;  %v4043_v1 = vld [vmem:[#allocation2 + $0x22a] sm:$0xff] }
 0x71b   :  { %v5217_v29 = vpop.f32.mrf.mxu1  ;;  %v5592_v4 = vpop.f32.mrf.mxu0  ;;  %8011 = vmatpush3.msra.mxu0 %v6356_v35 }
 0x71c   :  { %8012 = vmatprep.subr.mxu0 %v12668_v15  ;;  %v4044_v4 = vld [vmem:[#allocation2 + $0x232] sm:$0xff] }
 0x71d   :  { %v5220_v19 = vpop.f32.mrf.mxu1  ;;  %7952 = vmatmul.mubr.f32.gmra.mxu1 %v4040_v20  ;;  %v5595_v31 = vpop.f32.mrf.mxu0 }
 0x71e   :  { %v5221_v62 = vadd.f32 %v5220_v19, %v12413_v50  ;;  %7954 = vmatprep.mubr.f32.mxu1 %v4041_v30  ;;  %v12699_v42 = vadd.f32 %v5595_v31, %v5211_v41  ;;  %v4045_v19 = vld [vmem:[#allocation2 + $0x242] sm:$0xff] }
 0x71f   :  { %v5222_v53 = vpop.f32.mrf.mxu1  ;;  %v5597_v13 = vpop.f32.mrf.mxu0 }
 0x721   :  { %v5225_v61 = vpop.f32.mrf.mxu1  ;;  %7955 = vmatmul.mubr.f32.gmra.mxu1 %v4042_v48  ;;  %v5600_v8 = vpop.f32.mrf.mxu0  ;;  %v4046_v48 = vld [vmem:[#allocation2 + $0x24a] sm:$0xff] }
 0x722   :  { %v5226_v12 = vadd.f32 %v5225_v61, %v12416_v14  ;;  %7957 = vmatprep.mubr.f32.mxu1 %v4043_v1  ;;  %v12706_v50 = vadd.f32 %v5600_v8, %v5216_v5  ;;  %v4047_v61 = vld [vmem:[#allocation2 + $0x25a] sm:$0xff] }
 0x723   :  { %v5227_v41 = vpop.f32.mrf.mxu1  ;;  %v5602_v29 = vpop.f32.mrf.mxu0 }
 0x725   :  { %v5230_v20 = vpop.f32.mrf.mxu1  ;;  %7958 = vmatmul.mubr.f32.gmra.mxu1 %v4044_v4  ;;  %v5605_v31 = vpop.f32.mrf.mxu0 }
 0x726   :  { %v5231_v30 = vadd.f32 %v5230_v20, %v12419_v34  ;;  %7960 = vmatprep.mubr.f32.mxu1 %v4045_v19  ;;  %v12709_v53 = vadd.f32 %v5605_v31, %v5221_v62 }
 0x727   :  { %v5232_v13 = vpop.f32.mrf.mxu1  ;;  %v5607_v14 = vpop.f32.mrf.mxu0 }
 0x729   :  { %v5235_v35 = vpop.f32.mrf.mxu1  ;;  %7961 = vmatmul.mubr.f32.gmra.mxu1 %v4046_v48  ;;  %v5610_v1 = vpop.f32.mrf.mxu0 }
 0x72a   :  { %v5236_v5 = vadd.f32 %v5235_v35, %v12427_v0  ;;  %7963 = vmatprep.mubr.f32.mxu1 %v4047_v61  ;;  %v12712_v8 = vadd.f32 %v5610_v1, %v5226_v12  ;;  %v6355_v0 = vld [vmem:[%s14526_s1 + $0x38] sm:$0xff] }
 0x72b   :  { %v5237_v41 = vpop.f32.mrf.mxu1  ;;  %v5612_v29 = vpop.f32.mrf.mxu0  ;;  %8013 = vmatpush3.msra.mxu0 %v6355_v0 }
 0x72c   :  { %8014 = vmatprep.subr.mxu0 %v12668_v15 }
 0x72d   :  { %v5240_v4 = vpop.f32.mrf.mxu1  ;;  %7964 = vmatmul.mubr.f32.gmra.mxu1 %v12496_v51  ;;  %v5615_v62 = vpop.f32.mrf.mxu0 }
 0x72e   :  { %v5241_v34 = vadd.f32 %v5240_v4, %v12430_v11  ;;  %7966 = vmatprep.mubr.f32.mxu1 %v12502_v32  ;;  %v12717_v20 = vadd.f32 %v5615_v62, %v5231_v30 }
 0x72f   :  { %v5242_v19 = vpop.f32.mrf.mxu1  ;;  %v5617_v31 = vpop.f32.mrf.mxu0 }
 0x730   :  { %v15019_v31 = vld [vmem:[#allocation35_spill] sm:$0xff] }
 0x731   :  { %v5245_v12 = vpop.f32.mrf.mxu1  ;;  %7967 = vmatmul.mubr.f32.gmra.mxu1 %v12508_v52  ;;  %v5620_v51 = vpop.f32.mrf.mxu0 }
 0x732   :  { %v5246_v13 = vadd.f32 %v5245_v12, %v12433_v26  ;;  %7969 = vmatprep.mubr.f32.mxu1 %v12514_v58  ;;  %v12726_v11 = vadd.f32 %v5620_v51, %v5236_v5 }
 0x733   :  { %v5247_v32 = vpop.f32.mrf.mxu1  ;;  %v5622_v30 = vpop.f32.mrf.mxu0 }
 0x734   :  { %v15020_v32 = vld [vmem:[#allocation36_spill] sm:$0xff] }
 0x735   :  { %v5250_v14 = vpop.f32.mrf.mxu1  ;;  %7970 = vmatmul.mubr.f32.gmra.mxu1 %v12520_v57  ;;  %v5625_v35 = vpop.f32.mrf.mxu0 }
 0x736   :  { %v5251_v48 = vadd.f32 %v5250_v14, %v12436_v44  ;;  %7972 = vmatprep.mubr.f32.mxu1 %v12527_v7  ;;  %v12731_v52 = vadd.f32 %v5625_v35, %v5241_v34  ;;  %v15018_v7 = vld [vmem:[#allocation34_spill] sm:$0xff] }
 0x737   :  { %v5252_v26 = vpop.f32.mrf.mxu1  ;;  %v5627_v61 = vpop.f32.mrf.mxu0 }
 0x739   :  { %v5255_v1 = vpop.f32.mrf.mxu1  ;;  %7973 = vmatmul.mubr.f32.gmra.mxu1 %v12533_v63  ;;  %v5630_v5 = vpop.f32.mrf.mxu0 }
 0x73a   :  { %v5256_v58 = vadd.f32 %v5255_v1, %v12439_v47  ;;  %7975 = vmatprep.mubr.f32.mxu1 %v12539_v33  ;;  %v12736_v41 = vadd.f32 %v5630_v5, %v5246_v13  ;;  %v6354_v47 = vld [vmem:[%s14526_s1 + $0x30] sm:$0xff] }
 0x73b   :  { %v5257_v57 = vpop.f32.mrf.mxu1  ;;  %v5632_v29 = vpop.f32.mrf.mxu0  ;;  %8015 = vmatpush3.msra.mxu0 %v6354_v47 }
 0x73c   :  { %8016 = vmatprep.subr.mxu0 %v12668_v15 }
 0x73d   :  { %v5260_v44 = vpop.f32.mrf.mxu1  ;;  %7976 = vmatmul.mubr.f32.gmra.mxu1 %v12545_v21  ;;  %v5635_v34 = vpop.f32.mrf.mxu0 }
 0x73e   :  { %v5261_v4 = vadd.f32 %v5260_v44, %v15018_v7  ;;  %7978 = vmatprep.mubr.f32.mxu1 %v12554_v56  ;;  %v12741_v62 = vadd.f32 %v5635_v34, %v5251_v48 }
 0x73f   :  { %v5262_v63 = vpop.f32.mrf.mxu1  ;;  %v5637_v19 = vpop.f32.mrf.mxu0 }
 0x741   :  { %v5265_v33 = vpop.f32.mrf.mxu1  ;;  %7979 = vmatmul.mubr.f32.gmra.mxu1 %v12561_v3  ;;  %v5640_v21 = vpop.f32.mrf.mxu0 }
 0x742   :  { %v5266_v0 = vadd.f32 %v5265_v33, %v15019_v31  ;;  %7981 = vmatprep.mubr.f32.mxu1 %v12567_v40  ;;  %v12750_v56 = vadd.f32 %v5640_v21, %v5256_v58  ;;  %v15021_v40 = vld [vmem:[#allocation37_spill] sm:$0xff] }
 0x743   :  { %v5267_v12 = vpop.f32.mrf.mxu1  ;;  %v5642_v13 = vpop.f32.mrf.mxu0 }
 0x744   :  { %v15025_v12 = vld [vmem:[#allocation16_spill] sm:$0xff] }
 0x745   :  { %v5270_v51 = vpop.f32.mrf.mxu1  ;;  %7982 = vmatmul.mubr.f32.gmra.mxu1 %v12573_v39  ;;  %v5645_v14 = vpop.f32.mrf.mxu0 }
 0x746   :  { %v5271_v30 = vadd.f32 %v5270_v51, %v15020_v32  ;;  %7984 = vmatprep.mubr.f32.mxu1 %v12582_v38  ;;  %v12755_v3 = vadd.f32 %v5645_v14, %v5261_v4  ;;  %v15022_v38 = vld [vmem:[#allocation38_spill] sm:$0xff] }
 0x747   :  { %v5272_v48 = vpop.f32.mrf.mxu1  ;;  %v5647_v35 = vpop.f32.mrf.mxu0  ;;  %v4067_v4 = vld [vmem:[#allocation2 + $0x34a] sm:$0xff] }
 0x748   :  { %v15026_v48 = vld [vmem:[#allocation17_spill] sm:$0xff] }
 0x749   :  { %v5275_v26 = vpop.f32.mrf.mxu1  ;;  %7985 = vmatmul.mubr.f32.gmra.mxu1 %v12589_v37  ;;  %v5650_v1 = vpop.f32.mrf.mxu0 }
 0x74a   :  { %v5276_v61 = vadd.f32 %v5275_v26, %v15021_v40  ;;  %7987 = vmatprep.mubr.f32.mxu1 %v12595_v27  ;;  %v12760_v58 = vadd.f32 %v5650_v1, %v5266_v0  ;;  %v12770_v27 = vld [vmem:[%s14526_s1 + $0x28] sm:$0xff] }
 0x74b   :  { %v5277_v39 = vpop.f32.mrf.mxu1  ;;  %v5652_v5 = vpop.f32.mrf.mxu0  ;;  %15023 = vst [vmem:[#allocation34_spill] sm:$0xff] %v12770_v27  ;;  %8017 = vmatpush3.msra.mxu0 %v12770_v27 }
 0x74c   :  { %8018 = vmatprep.subr.mxu0 %v12668_v15  ;;  %v15027_v5 = vld [vmem:[#allocation19_spill] sm:$0xff] }
 0x74d   :  { %v5280_v57 = vpop.f32.mrf.mxu1  ;;  %7988 = vmatmul.mubr.f32.gmra.mxu1 %v12601_v45  ;;  %v5655_v44 = vpop.f32.mrf.mxu0  ;;  %v15024_v45 = vld [vmem:[#allocation40_spill] sm:$0xff] }
 0x74e   :  { %v5281_v29 = vadd.f32 %v5280_v57, %v15022_v38  ;;  %7990 = vmatprep.mubr.f32.mxu1 %v12610_v60  ;;  %v12765_v7 = vadd.f32 %v5655_v44, %v5271_v30  ;;  %v4068_v60 = vld [vmem:[#allocation2 + $0x352] sm:$0xff] }
 0x74f   :  { %v5282_v37 = vpop.f32.mrf.mxu1  ;;  %v5657_v34 = vpop.f32.mrf.mxu0 }
 0x751   :  { %v5285_v63 = vpop.f32.mrf.mxu1  ;;  %7991 = vmatmul.mubr.f32.gmra.mxu1 %v12617_v23  ;;  %v5660_v47 = vpop.f32.mrf.mxu0 }
 0x752   :  { %v5286_v19 = vadd.f32 %v5285_v63, %v15024_v45  ;;  %7993 = vmatprep.mubr.f32.mxu1 %v4067_v4  ;;  %v12776_v33 = vadd.f32 %v5660_v47, %v5276_v61  ;;  %v15029_v63 = vld [vmem:[#allocation20_spill] sm:$0xff] }
 0x753   :  { %v5287_v31 = vpop.f32.mrf.mxu1  ;;  %v5662_v0 = vpop.f32.mrf.mxu0 }
 0x755   :  { %v5290_v21 = vpop.f32.mrf.mxu1  ;;  %7994 = vmatmul.mubr.f32.gmra.mxu1 %v4068_v60  ;;  %v5665_v51 = vpop.f32.mrf.mxu0 }
 0x756   :  { %v5291_v13 = vadd.f32 %v5290_v21, %v15025_v12  ;;  %v12779_v32 = vadd.f32 %v5665_v51, %v5281_v29  ;;  %v12790_v29 = vld [vmem:[%s14526_s1 + $0x20] sm:$0xff] }
 0x757   :  { %v5292_v23 = vpop.f32.mrf.mxu1  ;;  %v5667_v30 = vpop.f32.mrf.mxu0  ;;  %15028 = vst [vmem:[#allocation35_spill] sm:$0xff] %v12790_v29  ;;  %8019 = vmatpush3.msra.mxu0 %v12790_v29  ;;  %v15030_v21 = vld [vmem:[#allocation9_spill] sm:$0xff]  ;;  %v15043_v29 = vld [vmem:[#allocation43_spill] sm:$0xff] }
 0x758   :  { %8020 = vmatprep.subr.mxu0 %v12668_v15 }
 0x759   :  { %v5295_v14 = vpop.f32.mrf.mxu1  ;;  %v5670_v26 = vpop.f32.mrf.mxu0 }
 0x75a   :  { %v5296_v35 = vadd.f32 %v5295_v14, %v15026_v48  ;;  %v12782_v40 = vadd.f32 %v5670_v26, %v5286_v19  ;;  %v15031_v48 = vld [vmem:[#allocation10_spill] sm:$0xff] }
 0x75b   :  { %v5297_v1 = vpop.f32.mrf.mxu1  ;;  %v5672_v61 = vpop.f32.mrf.mxu0 }
 0x75d   :  { %v5300_v39 = vpop.f32.mrf.mxu1  ;;  %v5675_v38 = vpop.f32.mrf.mxu0 }
 0x75e   :  { %v5301_v57 = vadd.f32 %v5300_v39, %v15027_v5  ;;  %v12785_v44 = vadd.f32 %v5675_v38, %v5291_v13  ;;  %v15032_v38 = vld [vmem:[#allocation11_spill] sm:$0xff] }
 0x75f   :  { %v5302_v37 = vpop.f32.mrf.mxu1  ;;  %v5677_v4 = vpop.f32.mrf.mxu0 }
 0x761   :  { %v5305_v34 = vpop.f32.mrf.mxu1  ;;  %v5680_v19 = vpop.f32.mrf.mxu0 }
 0x762   :  { %v5306_v45 = vadd.f32 %v5305_v34, %v15029_v63  ;;  %v12795_v47 = vadd.f32 %v5680_v19, %v5296_v35 }
 0x763   :  { %v5307_v60 = vpop.f32.mrf.mxu1  ;;  %v5682_v31 = vpop.f32.mrf.mxu0 }
 0x765   :  { %v5310_v0 = vpop.f32.mrf.mxu1  ;;  %v5685_v13 = vpop.f32.mrf.mxu0 }
 0x766   :  { %v5311_v12 = vadd.f32 %v5310_v0, %v15030_v21  ;;  %v12798_v51 = vadd.f32 %v5685_v13, %v5301_v57  ;;  %v12809_v57 = vld [vmem:[%s14526_s1 + $0x18] sm:$0xff] }
 0x767   :  { %v5312_v23 = vpop.f32.mrf.mxu1  ;;  %v5687_v30 = vpop.f32.mrf.mxu0  ;;  %15033 = vst [vmem:[#allocation36_spill] sm:$0xff] %v12809_v57  ;;  %8021 = vmatpush3.msra.mxu0 %v12809_v57 }
 0x768   :  { %8022 = vmatprep.subr.mxu0 %v12668_v15  ;;  %v15035_v30 = vld [vmem:[#allocation18_spill] sm:$0xff] }
 0x769   :  { %v5315_v14 = vpop.f32.mrf.mxu1  ;;  %v5690_v1 = vpop.f32.mrf.mxu0 }
 0x76a   :  { %v5316_v26 = vadd.f32 %v5315_v14, %v15031_v48  ;;  %v12801_v61 = vadd.f32 %v5690_v1, %v5306_v45  ;;  %v15034_v45 = vld [vmem:[#allocation13_spill] sm:$0xff] }
 0x76b   :  { %v5317_v39 = vpop.f32.mrf.mxu1  ;;  %v5692_v5 = vpop.f32.mrf.mxu0 }
 0x76d   :  { %v5320_v35 = vpop.f32.mrf.mxu1  ;;  %v5695_v4 = vpop.f32.mrf.mxu0 }
 0x76e   :  { %v5321_v37 = vadd.f32 %v5320_v35, %v15032_v38  ;;  %v12804_v34 = vadd.f32 %v5695_v4, %v5311_v12  ;;  %v15036_v38 = vld [vmem:[#allocation22_spill] sm:$0xff] }
 0x76f   :  { %v5322_v63 = vpop.f32.mrf.mxu1  ;;  %v5697_v19 = vpop.f32.mrf.mxu0 }
 0x771   :  { %v5325_v60 = vpop.f32.mrf.mxu1  ;;  %v5700_v0 = vpop.f32.mrf.mxu0 }
 0x772   :  { %v5326_v31 = vadd.f32 %v5325_v60, %v15034_v45  ;;  %v12814_v21 = vadd.f32 %v5700_v0, %v5316_v26  ;;  %v15037_v0 = vld [vmem:[#allocation24_spill] sm:$0xff] }
 0x773   :  { %v5327_v13 = vpop.f32.mrf.mxu1  ;;  %v5702_v12 = vpop.f32.mrf.mxu0 }
 0x775   :  { %v5330_v23 = vpop.f32.mrf.mxu1  ;;  %v5705_v48 = vpop.f32.mrf.mxu0 }
 0x776   :  { %v5331_v14 = vadd.f32 %v5330_v23, %v15035_v30  ;;  %v12817_v1 = vadd.f32 %v5705_v48, %v5321_v37  ;;  %v12828_v37 = vld [vmem:[%s14526_s1 + $0x10] sm:$0xff] }
 0x777   :  { %v5332_v39 = vpop.f32.mrf.mxu1  ;;  %v5707_v5 = vpop.f32.mrf.mxu0  ;;  %15039 = vst [vmem:[#allocation38_spill] sm:$0xff] %v12828_v37  ;;  %8023 = vmatpush3.msra.mxu0 %v12828_v37 }
 0x778   :  { %8024 = vmatprep.subr.mxu0 %v12668_v15 }
 0x779   :  { %v5335_v35 = vpop.f32.mrf.mxu1  ;;  %v5710_v63 = vpop.f32.mrf.mxu0 }
 0x77a   :  { %v5336_v4 = vadd.f32 %v5335_v35, %v15036_v38  ;;  %v12820_v19 = vadd.f32 %v5710_v63, %v5326_v31  ;;  %v15040_v31 = vld [vmem:[#allocation26_spill] sm:$0xff] }
 0x77b   :  { %v5337_v60 = vpop.f32.mrf.mxu1  ;;  %v5712_v45 = vpop.f32.mrf.mxu0 }
 0x77c   :  { %v15042_v60 = vld [vmem:[#allocation42_spill] sm:$0xff] }
 0x77d   :  { %v5340_v26 = vpop.f32.mrf.mxu1  ;;  %v5715_v12 = vpop.f32.mrf.mxu0 }
 0x77e   :  { %v5341_v13 = vadd.f32 %v5340_v26, %v15037_v0  ;;  %v12823_v57 = vadd.f32 %v5715_v12, %v5331_v14 }
 0x77f   :  { %v5342_v23 = vpop.f32.mrf.mxu1  ;;  %v5717_v30 = vpop.f32.mrf.mxu0 }
 0x780   :  { %15038 = vst [vmem:[#allocation37_spill] sm:$0xff] %v12823_v57 }
 0x781   :  { %v5345_v48 = vpop.f32.mrf.mxu1  ;;  %v5720_v5 = vpop.f32.mrf.mxu0 }
 0x782   :  { %v5346_v39 = vadd.f32 %v5345_v48, %v15040_v31  ;;  %v12833_v35 = vadd.f32 %v5720_v5, %v5336_v4  ;;  %v15045_v5 = vld [vmem:[#allocation44_spill] sm:$0xff] }
 0x783   :  { %v5347_v38 = vpop.f32.mrf.mxu1  ;;  %v5722_v14 = vpop.f32.mrf.mxu0 }
 0x784   :  { %15041 = vst [vmem:[#allocation40_spill] sm:$0xff] %v12833_v35 }
 0x785   :  { %v5350_v63 = vpop.f32.mrf.mxu1  ;;  %v5725_v26 = vpop.f32.mrf.mxu0 }
 0x786   :  { %v5351_v45 = vadd.f32 %v5350_v63, %v15042_v60  ;;  %v12836_v0 = vadd.f32 %v5725_v26, %v5341_v13  ;;  %v12847_v13 = vld [vmem:[%s14526_s1 + $0x8] sm:$0xff] }
 0x787   :  { %v5352_v12 = vpop.f32.mrf.mxu1  ;;  %v5727_v23 = vpop.f32.mrf.mxu0  ;;  %15047 = vst [vmem:[#allocation19_spill] sm:$0xff] %v12847_v13  ;;  %8025 = vmatpush3.msra.mxu0 %v12847_v13 }
 0x788   :  { %8026 = vmatprep.subr.mxu0 %v12668_v15 }
 0x789   :  { %v5355_v30 = vpop.f32.mrf.mxu1  ;;  %v5730_v27 = vpop.f32.mrf.mxu0 }
 0x78a   :  { %v5356_v37 = vadd.f32 %v5355_v30, %v15043_v29  ;;  %v12839_v48 = vadd.f32 %v5730_v27, %v5346_v39  ;;  %v15048_v27 = vld [vmem:[#allocation12_spill] sm:$0xff]  ;;  %v15050_v30 = vld [vmem:[#allocation14_spill] sm:$0xff] }
 0x78b   :  { %v5357_v31 = vpop.f32.mrf.mxu1  ;;  %v5732_v57 = vpop.f32.mrf.mxu0 }
 0x78c   :  { %15044 = vst [vmem:[#allocation16_spill] sm:$0xff] %v12839_v48 }
 0x78d   :  { %v5360_v4 = vpop.f32.mrf.mxu1  ;;  %v5735_v14 = vpop.f32.mrf.mxu0 }
 0x78e   :  { %v5361_v38 = vadd.f32 %v5360_v4, %v15045_v5  ;;  %v12842_v35 = vadd.f32 %v5735_v14, %v5351_v45 }
 0x78f   :  { %v5362_v63 = vpop.f32.mrf.mxu1  ;;  %v5737_v60 = vpop.f32.mrf.mxu0 }
 0x790   :  { %15046 = vst [vmem:[#allocation17_spill] sm:$0xff] %v12842_v35 }
 0x791   :  { %v5365_v26 = vpop.f32.mrf.mxu1  ;;  %v5740_v39 = vpop.f32.mrf.mxu0 }
 0x792   :  { %v5366_v29 = vadd.f32 %v5365_v26, %v15048_v27  ;;  %v12852_v57 = vadd.f32 %v5740_v39, %v5356_v37  ;;  %v15053_v27 = vld [vmem:[#allocation23_spill] sm:$0xff]  ;;  %v15055_v39 = vld [vmem:[#allocation21_spill] sm:$0xff] }
 0x793   :  { %v5367_v12 = vpop.f32.mrf.mxu1  ;;  %v5742_v45 = vpop.f32.mrf.mxu0 }
 0x794   :  { %15049 = vst [vmem:[#allocation20_spill] sm:$0xff] %v12852_v57 }
 0x795   :  { %v5370_v23 = vpop.f32.mrf.mxu1  ;;  %v5745_v4 = vpop.f32.mrf.mxu0 }
 0x796   :  { %v5371_v31 = vadd.f32 %v5370_v23, %v15050_v30  ;;  %v12855_v5 = vadd.f32 %v5745_v4, %v5361_v38  ;;  %v15058_v4 = vld [vmem:[#allocation32_spill] sm:$0xff] }
 0x797   :  { %v5372_v14 = vpop.f32.mrf.mxu1  ;;  %v5747_v63 = vpop.f32.mrf.mxu0 }
 0x798   :  { %15051 = vst [vmem:[#allocation9_spill] sm:$0xff] %v12855_v5  ;;  %v15062_v5 = vld [vmem:[#allocation33_spill] sm:$0xff] }
 0x799   :  { %v7902_v60 = vpop.f32.mrf.mxu1  ;;  %v5750_v35 = vpop.f32.mrf.mxu0 }
 0x79a   :  { %v12857_v13 = vadd.f32 %v5750_v35, %v5366_v29  ;;  %v12860_v48 = vadd.f32 %v7902_v60, %v15053_v27  ;;  %v15060_v60 = vld [vmem:[#allocation25_spill] sm:$0xff] }
 0x79b   :  { %v5825_v26 = vpop.f32.mrf.mxu1  ;;  %v5752_v37 = vpop.f32.mrf.mxu0 }
 0x79c   :  { %15052 = vst [vmem:[#allocation10_spill] sm:$0xff] %v12857_v13  ;;  %15054 = vst [vmem:[#allocation11_spill] sm:$0xff] %v12860_v48  ;;  %v12863_v12 = vadd.f32 %v5825_v26, %v15055_v39  ;;  %v6216_v29 = vmul.f32 %v12860_v48, %v12860_v48 }
 0x79d   :  { %v7905_v45 = vpop.f32.mrf.mxu1  ;;  %v5755_v38 = vpop.f32.mrf.mxu0 }
 0x79e   :  { %15056 = vst [vmem:[#allocation13_spill] sm:$0xff] %v12863_v12  ;;  %v6215_v23 = vmul.f32 %v12863_v12, %v12863_v12  ;;  %v12867_v30 = vadd.f32 %v5755_v38, %v5371_v31  ;;  %v12870_v14 = vadd.f32 %v7905_v45, %v15058_v4  ;;  %v6146_v63 = vadd.f32 %v12860_v48, %v12863_v12 }
 0x79f   :  { %v5835_v35 = vpop.f32.mrf.mxu1  ;;  %v5757_v27 = vpop.f32.mrf.mxu0 }
 0x7a0   :  { %15057 = vst [vmem:[#allocation18_spill] sm:$0xff] %v12867_v30  ;;  %15059 = vst [vmem:[#allocation22_spill] sm:$0xff] %v12870_v14  ;;  %v12877_v26 = vadd.f32 %v5835_v35, %v15060_v60  ;;  %v6279_v39 = vadd.f32 %v6216_v29, %v6215_v23  ;;  %v6218_v45 = vmul.f32 %v12870_v14, %v12870_v14  ;;  %v15064_v35 = vld [vmem:[#allocation31_spill] sm:$0xff] }
 0x7a1   :  { %v7908_v37 = vpop.f32.mrf.mxu1 }
 0x7a2   :  { %15061 = vst [vmem:[#allocation24_spill] sm:$0xff] %v12877_v26  ;;  %v6147_v13 = vadd.f32 %v6146_v63, %v12877_v26  ;;  %v6217_v31 = vmul.f32 %v12877_v26, %v12877_v26  ;;  %v12886_v48 = vadd.f32 %v7908_v37, %v15062_v5  ;;  %v15066_v26 = vld [vmem:[#allocation28_spill] sm:$0xff]  ;;  %v15067_v5 = vld [vmem:[#allocation27_spill] sm:$0xff] }
 0x7a3   :  { %v5845_v38 = vpop.f32.mrf.mxu1 }
 0x7a4   :  { %v6148_v4 = vadd.f32 %v6147_v13, %v12870_v14  ;;  %v6280_v30 = vadd.f32 %v6279_v39, %v6217_v31  ;;  %15063 = vst [vmem:[#allocation26_spill] sm:$0xff] %v12886_v48  ;;  %v12889_v60 = vadd.f32 %v5845_v38, %v15064_v35  ;;  %v6220_v13 = vmul.f32 %v12886_v48, %v12886_v48 }
 0x7a5   :  { %v7911_v27 = vpop.f32.mrf.mxu1 }
 0x7a6   :  { %15065 = vst [vmem:[#allocation42_spill] sm:$0xff] %v12889_v60  ;;  %v6281_v23 = vadd.f32 %v6280_v30, %v6218_v45  ;;  %v6149_v29 = vadd.f32 %v6148_v4, %v12889_v60  ;;  %v6219_v63 = vmul.f32 %v12889_v60, %v12889_v60  ;;  %v12895_v12 = vadd.f32 %v7911_v27, %v15066_v26  ;;  %v12906_v30 = vld [vmem:[%s14526_s1] sm:$0xff] }
 0x7a7   :  { %v5855_v57 = vpop.f32.mrf.mxu1  ;;  %8027 = vmatpush3.msra.mxu0 %v12906_v30 }
 0x7a8   :  { %v6282_v39 = vadd.f32 %v6281_v23, %v6219_v63  ;;  %v12900_v37 = vadd.f32 %v5855_v57, %v15067_v5  ;;  %v6150_v31 = vadd.f32 %v6149_v29, %v12886_v48  ;;  %8031 = vmatprep.subr.mxu0 %v12668_v15  ;;  %v6222_v57 = vmul.f32 %v12895_v12, %v12895_v12  ;;  %v15069_v23 = vld [vmem:[#allocation29_spill] sm:$0xff]  ;;  %v15070_v63 = vld [vmem:[#allocation30_spill] sm:$0xff] }
 0x7a9   :  { %v7914_v45 = vpop.f32.mrf.mxu1 }
 0x7aa   :  { %15068 = vst [vmem:[#allocation43_spill] sm:$0xff] %v12900_v37  ;;  %v6151_v26 = vadd.f32 %v6150_v31, %v12900_v37  ;;  %v6221_v38 = vmul.f32 %v12900_v37, %v12900_v37  ;;  %v6283_v4 = vadd.f32 %v6282_v39, %v6220_v13  ;;  %v12916_v29 = vadd.f32 %v7914_v45, %v15069_v23  ;;  %v15072_v39 = vld [vmem:[#allocation39_spill] sm:$0xff] }
 0x7ab   :  { %v5865_v35 = vpop.f32.mrf.mxu1 }
 0x7ac   :  { %v6284_v27 = vadd.f32 %v6283_v4, %v6221_v38  ;;  %v12919_v5 = vadd.f32 %v5865_v35, %v15070_v63  ;;  %v6152_v48 = vadd.f32 %v6151_v26, %v12895_v12  ;;  %v6224_v45 = vmul.f32 %v12916_v29, %v12916_v29  ;;  %v15073_v4 = vld [vmem:[#allocation41_spill] sm:$0xff] }
 0x7ad   :  { %v7917_v31 = vpop.f32.mrf.mxu1 }
 0x7ae   :  { %15071 = vst [vmem:[#allocation44_spill] sm:$0xff] %v12919_v5  ;;  %v6153_v60 = vadd.f32 %v6152_v48, %v12919_v5  ;;  %v6223_v13 = vmul.f32 %v12919_v5, %v12919_v5  ;;  %v6285_v15 = vadd.f32 %v6284_v27, %v6222_v57  ;;  %v12926_v37 = vadd.f32 %v7917_v31, %v15072_v39 }
 0x7af   :  { %v5875_v14 = vpop.f32.mrf.mxu1 }
 0x7b0   :  { %v6286_v38 = vadd.f32 %v6285_v15, %v6223_v13  ;;  %v12931_v35 = vadd.f32 %v5875_v14, %v15073_v4  ;;  %v6154_v26 = vadd.f32 %v6153_v60, %v12916_v29  ;;  %v6226_v27 = vmul.f32 %v12926_v37, %v12926_v37  ;;  %v15075_v13 = vld [vmem:[#allocation45_spill] sm:$0xff] }
 0x7b1   :  { %v7920_v23 = vpop.f32.mrf.mxu1 }
 0x7b2   :  { %15074 = vst [vmem:[#allocation12_spill] sm:$0xff] %v12931_v35  ;;  %v6155_v48 = vadd.f32 %v6154_v26, %v12931_v35  ;;  %v6225_v63 = vmul.f32 %v12931_v35, %v12931_v35  ;;  %v6287_v57 = vadd.f32 %v6286_v38, %v6224_v45  ;;  %v12940_v5 = vadd.f32 %v7920_v23, %v12624_v6 }
 0x7b3   :  { %v5885_v31 = vpop.f32.mrf.mxu1 }
 0x7b4   :  { %v6288_v39 = vadd.f32 %v6287_v57, %v6225_v63  ;;  %v12943_v14 = vadd.f32 %v5885_v31, %v15075_v13  ;;  %v6156_v60 = vadd.f32 %v6155_v48, %v12926_v37  ;;  %v6228_v6 = vmul.f32 %v12940_v5, %v12940_v5 }
 0x7b5   :  { %v7923_v15 = vpop.f32.mrf.mxu1 }
 0x7b6   :  { %v6157_v4 = vadd.f32 %v6156_v60, %v12943_v14  ;;  %v6227_v26 = vmul.f32 %v12943_v14, %v12943_v14  ;;  %v6289_v45 = vadd.f32 %v6288_v39, %v6226_v27  ;;  %v12950_v38 = vadd.f32 %v7923_v15, %v12634_v24 }
 0x7b7   :  { %v5895_v35 = vpop.f32.mrf.mxu1 }
 0x7b8   :  { %v6290_v23 = vadd.f32 %v6289_v45, %v6227_v26  ;;  %v12955_v63 = vadd.f32 %v5895_v35, %v12627_v25  ;;  %v6158_v48 = vadd.f32 %v6157_v4, %v12940_v5  ;;  %v6230_v24 = vmul.f32 %v12950_v38, %v12950_v38 }
 0x7b9   :  { %v7926_v57 = vpop.f32.mrf.mxu1 }
 0x7ba   :  { %v6159_v31 = vadd.f32 %v6158_v48, %v12955_v63  ;;  %v6229_v13 = vmul.f32 %v12955_v63, %v12955_v63  ;;  %v6291_v27 = vadd.f32 %v6290_v23, %v6228_v6  ;;  %v12964_v15 = vadd.f32 %v7926_v57, %v12643_v17 }
 0x7bb   :  { %v5905_v39 = vpop.f32.mrf.mxu1 }
 0x7bc   :  { %v6292_v60 = vadd.f32 %v6291_v27, %v6229_v13  ;;  %v12967_v25 = vadd.f32 %v5905_v39, %v12640_v59  ;;  %v6160_v35 = vadd.f32 %v6159_v31, %v12950_v38  ;;  %v6232_v17 = vmul.f32 %v12964_v15, %v12964_v15 }
 0x7bd   :  { %v7929_v4 = vpop.f32.mrf.mxu1 }
 0x7be   :  { %v6161_v26 = vadd.f32 %v6160_v35, %v12967_v25  ;;  %v6231_v45 = vmul.f32 %v12967_v25, %v12967_v25  ;;  %v6293_v6 = vadd.f32 %v6292_v60, %v6230_v24  ;;  %v12974_v23 = vadd.f32 %v7929_v4, %v12653_v49 }
 0x7bf   :  { %v5915_v48 = vpop.f32.mrf.mxu1 }
 0x7c0   :  { %v6294_v57 = vadd.f32 %v6293_v6, %v6231_v45  ;;  %v12979_v59 = vadd.f32 %v5915_v48, %v12646_v28  ;;  %v6162_v31 = vadd.f32 %v6161_v26, %v12964_v15  ;;  %v6234_v49 = vmul.f32 %v12974_v23, %v12974_v23 }
 0x7c1   :  { %v7932_v13 = vpop.f32.mrf.mxu1 }
 0x7c2   :  { %v6163_v27 = vadd.f32 %v6162_v31, %v12979_v59  ;;  %v6233_v39 = vmul.f32 %v12979_v59, %v12979_v59  ;;  %v6295_v24 = vadd.f32 %v6294_v57, %v6232_v17  ;;  %v12988_v4 = vadd.f32 %v7932_v13, %v12659_v16 }
 0x7c3   :  { %v5925_v60 = vpop.f32.mrf.mxu1 }
 0x7c4   :  { %v6296_v35 = vadd.f32 %v6295_v24, %v6233_v39  ;;  %v12991_v28 = vadd.f32 %v5925_v60, %v12656_v43  ;;  %v6164_v26 = vadd.f32 %v6163_v27, %v12974_v23  ;;  %v6236_v16 = vmul.f32 %v12988_v4, %v12988_v4 }
 0x7c5   :  { %v7935_v45 = vpop.f32.mrf.mxu1 }
 0x7c6   :  { %v6165_v6 = vadd.f32 %v6164_v26, %v12991_v28  ;;  %v6235_v48 = vmul.f32 %v12991_v28, %v12991_v28  ;;  %v6297_v17 = vadd.f32 %v6296_v35, %v6234_v49  ;;  %v12998_v57 = vadd.f32 %v7935_v45, %v12671_v2 }
 0x7c7   :  { %v5935_v31 = vpop.f32.mrf.mxu1 }
 0x7c8   :  { %v6298_v13 = vadd.f32 %v6297_v17, %v6235_v48  ;;  %v13003_v43 = vadd.f32 %v5935_v31, %v12662_v54  ;;  %v6166_v27 = vadd.f32 %v6165_v6, %v12988_v4  ;;  %v6238_v2 = vmul.f32 %v12998_v57, %v12998_v57 }
 0x7c9   :  { %v7938_v39 = vpop.f32.mrf.mxu1 }
 0x7ca   :  { %v6167_v24 = vadd.f32 %v6166_v27, %v13003_v43  ;;  %v6237_v60 = vmul.f32 %v13003_v43, %v13003_v43  ;;  %v6299_v49 = vadd.f32 %v6298_v13, %v6236_v16  ;;  %v13012_v45 = vadd.f32 %v7938_v39, %v12677_v9 }
 0x7cb   :  { %v5945_v35 = vpop.f32.mrf.mxu1 }
 0x7cc   :  { %v6300_v26 = vadd.f32 %v6299_v49, %v6237_v60  ;;  %v13015_v54 = vadd.f32 %v5945_v35, %v12674_v22  ;;  %v6168_v6 = vadd.f32 %v6167_v24, %v12998_v57  ;;  %v6240_v9 = vmul.f32 %v13012_v45, %v13012_v45 }
 0x7cd   :  { %v7941_v48 = vpop.f32.mrf.mxu1 }
 0x7ce   :  { %v6169_v17 = vadd.f32 %v6168_v6, %v13015_v54  ;;  %v6239_v31 = vmul.f32 %v13015_v54, %v13015_v54  ;;  %v6301_v16 = vadd.f32 %v6300_v26, %v6238_v2  ;;  %v13022_v13 = vadd.f32 %v7941_v48, %v12687_v36 }
 0x7cf   :  { %v5955_v27 = vpop.f32.mrf.mxu1 }
 0x7d0   :  { %v6302_v39 = vadd.f32 %v6301_v16, %v6239_v31  ;;  %v13027_v22 = vadd.f32 %v5955_v27, %v12680_v18  ;;  %v6170_v24 = vadd.f32 %v6169_v17, %v13012_v45  ;;  %v6242_v36 = vmul.f32 %v13022_v13, %v13022_v13 }
 0x7d1   :  { %v7944_v60 = vpop.f32.mrf.mxu1 }
 0x7d2   :  { %v6171_v49 = vadd.f32 %v6170_v24, %v13027_v22  ;;  %v6241_v35 = vmul.f32 %v13027_v22, %v13027_v22  ;;  %v6303_v2 = vadd.f32 %v6302_v39, %v6240_v9  ;;  %v13036_v48 = vadd.f32 %v7944_v60, %v12693_v46 }
 0x7d3   :  { %v5965_v26 = vpop.f32.mrf.mxu1 }
 0x7d4   :  { %v6304_v6 = vadd.f32 %v6303_v2, %v6241_v35  ;;  %v13039_v18 = vadd.f32 %v5965_v26, %v12690_v55  ;;  %v6172_v17 = vadd.f32 %v6171_v49, %v13022_v13  ;;  %v6244_v46 = vmul.f32 %v13036_v48, %v13036_v48 }
 0x7d5   :  { %v7947_v31 = vpop.f32.mrf.mxu1 }
 0x7d6   :  { %v6173_v16 = vadd.f32 %v6172_v17, %v13039_v18  ;;  %v6243_v27 = vmul.f32 %v13039_v18, %v13039_v18  ;;  %v6305_v9 = vadd.f32 %v6304_v6, %v6242_v36  ;;  %v13046_v39 = vadd.f32 %v7947_v31, %v12699_v42 }
 0x7d7   :  { %v5975_v24 = vpop.f32.mrf.mxu1 }
 0x7d8   :  { %v6306_v60 = vadd.f32 %v6305_v9, %v6243_v27  ;;  %v13051_v55 = vadd.f32 %v5975_v24, %v12696_v10  ;;  %v6174_v49 = vadd.f32 %v6173_v16, %v13036_v48  ;;  %v6246_v42 = vmul.f32 %v13046_v39, %v13046_v39 }
 0x7d9   :  { %v7950_v35 = vpop.f32.mrf.mxu1 }
 0x7da   :  { %v6175_v2 = vadd.f32 %v6174_v49, %v13051_v55  ;;  %v6245_v26 = vmul.f32 %v13051_v55, %v13051_v55  ;;  %v6307_v36 = vadd.f32 %v6306_v60, %v6244_v46  ;;  %v13060_v31 = vadd.f32 %v7950_v35, %v12709_v53 }
 0x7db   :  { %v5985_v6 = vpop.f32.mrf.mxu1 }
 0x7dc   :  { %v6308_v17 = vadd.f32 %v6307_v36, %v6245_v26  ;;  %v13063_v10 = vadd.f32 %v5985_v6, %v12706_v50  ;;  %v6176_v16 = vadd.f32 %v6175_v2, %v13046_v39  ;;  %v6248_v53 = vmul.f32 %v13060_v31, %v13060_v31 }
 0x7dd   :  { %v7953_v27 = vpop.f32.mrf.mxu1 }
 0x7de   :  { %v6177_v9 = vadd.f32 %v6176_v16, %v13063_v10  ;;  %v6247_v24 = vmul.f32 %v13063_v10, %v13063_v10  ;;  %v6309_v46 = vadd.f32 %v6308_v17, %v6246_v42  ;;  %v13070_v60 = vadd.f32 %v7953_v27, %v12717_v20 }
 0x7df   :  { %v5995_v49 = vpop.f32.mrf.mxu1 }
 0x7e0   :  { %v6310_v35 = vadd.f32 %v6309_v46, %v6247_v24  ;;  %v13075_v50 = vadd.f32 %v5995_v49, %v12712_v8  ;;  %v6178_v2 = vadd.f32 %v6177_v9, %v13060_v31  ;;  %v6250_v20 = vmul.f32 %v13070_v60, %v13070_v60 }
 0x7e1   :  { %v7956_v26 = vpop.f32.mrf.mxu1 }
 0x7e2   :  { %v6179_v36 = vadd.f32 %v6178_v2, %v13075_v50  ;;  %v6249_v6 = vmul.f32 %v13075_v50, %v13075_v50  ;;  %v6311_v42 = vadd.f32 %v6310_v35, %v6248_v53  ;;  %v13084_v27 = vadd.f32 %v7956_v26, %v12731_v52 }
 0x7e3   :  { %v6005_v17 = vpop.f32.mrf.mxu1 }
 0x7e4   :  { %v6312_v16 = vadd.f32 %v6311_v42, %v6249_v6  ;;  %v13087_v8 = vadd.f32 %v6005_v17, %v12726_v11  ;;  %v6180_v9 = vadd.f32 %v6179_v36, %v13070_v60  ;;  %v6252_v52 = vmul.f32 %v13084_v27, %v13084_v27 }
 0x7e5   :  { %v7959_v24 = vpop.f32.mrf.mxu1 }
 0x7e6   :  { %v6181_v46 = vadd.f32 %v6180_v9, %v13087_v8  ;;  %v6251_v49 = vmul.f32 %v13087_v8, %v13087_v8  ;;  %v6313_v53 = vadd.f32 %v6312_v16, %v6250_v20  ;;  %v13094_v35 = vadd.f32 %v7959_v24, %v12741_v62 }
 0x7e7   :  { %v6015_v2 = vpop.f32.mrf.mxu1 }
 0x7e8   :  { %v6314_v26 = vadd.f32 %v6313_v53, %v6251_v49  ;;  %v13099_v11 = vadd.f32 %v6015_v2, %v12736_v41  ;;  %v6182_v36 = vadd.f32 %v6181_v46, %v13084_v27  ;;  %v6254_v62 = vmul.f32 %v13094_v35, %v13094_v35 }
 0x7e9   :  { %v7962_v6 = vpop.f32.mrf.mxu1 }
 0x7ea   :  { %v6183_v42 = vadd.f32 %v6182_v36, %v13099_v11  ;;  %v6253_v17 = vmul.f32 %v13099_v11, %v13099_v11  ;;  %v6315_v20 = vadd.f32 %v6314_v26, %v6252_v52  ;;  %v13108_v24 = vadd.f32 %v7962_v6, %v12755_v3 }
 0x7eb   :  { %v6025_v16 = vpop.f32.mrf.mxu1 }
 0x7ec   :  { %v6316_v9 = vadd.f32 %v6315_v20, %v6253_v17  ;;  %15076 = vst [vmem:[#allocation14_spill] sm:$0xff] %v13108_v24  ;;  %v13111_v41 = vadd.f32 %v6025_v16, %v12750_v56  ;;  %v6184_v46 = vadd.f32 %v6183_v42, %v13094_v35  ;;  %v6256_v3 = vmul.f32 %v13108_v24, %v13108_v24 }
 0x7ed   :  { %v7965_v49 = vpop.f32.mrf.mxu1 }
 0x7ee   :  { %15077 = vst [vmem:[#allocation23_spill] sm:$0xff] %v13111_v41  ;;  %v6185_v53 = vadd.f32 %v6184_v46, %v13111_v41  ;;  %v6255_v2 = vmul.f32 %v13111_v41, %v13111_v41  ;;  %v6317_v52 = vadd.f32 %v6316_v9, %v6254_v62  ;;  %v13118_v26 = vadd.f32 %v7965_v49, %v12765_v7 }
 0x7ef   :  { %v6035_v36 = vpop.f32.mrf.mxu1 }
 0x7f0   :  { %15078 = vst [vmem:[#allocation21_spill] sm:$0xff] %v13118_v26  ;;  %v6318_v6 = vadd.f32 %v6317_v52, %v6255_v2  ;;  %v13123_v56 = vadd.f32 %v6035_v36, %v12760_v58  ;;  %v6186_v42 = vadd.f32 %v6185_v53, %v13108_v24  ;;  %v6258_v7 = vmul.f32 %v13118_v26, %v13118_v26 }
 0x7f1   :  { %v7968_v17 = vpop.f32.mrf.mxu1 }
 0x7f2   :  { %15079 = vst [vmem:[#allocation32_spill] sm:$0xff] %v13123_v56  ;;  %v6187_v20 = vadd.f32 %v6186_v42, %v13123_v56  ;;  %v6257_v16 = vmul.f32 %v13123_v56, %v13123_v56  ;;  %v6319_v62 = vadd.f32 %v6318_v6, %v6256_v3  ;;  %v13132_v49 = vadd.f32 %v7968_v17, %v12779_v32 }
 0x7f3   :  { %v6045_v9 = vpop.f32.mrf.mxu1 }
 0x7f4   :  { %v6320_v46 = vadd.f32 %v6319_v62, %v6257_v16  ;;  %15080 = vst [vmem:[#allocation25_spill] sm:$0xff] %v13132_v49  ;;  %v13135_v58 = vadd.f32 %v6045_v9, %v12776_v33  ;;  %v6188_v53 = vadd.f32 %v6187_v20, %v13118_v26  ;;  %v6260_v32 = vmul.f32 %v13132_v49, %v13132_v49 }
 0x7f5   :  { %v7971_v2 = vpop.f32.mrf.mxu1 }
 0x7f6   :  { %15081 = vst [vmem:[#allocation33_spill] sm:$0xff] %v13135_v58  ;;  %v6189_v52 = vadd.f32 %v6188_v53, %v13135_v58  ;;  %v6259_v36 = vmul.f32 %v13135_v58, %v13135_v58  ;;  %v6321_v3 = vadd.f32 %v6320_v46, %v6258_v7  ;;  %v13142_v6 = vadd.f32 %v7971_v2, %v12785_v44 }
 0x7f7   :  { %v6055_v42 = vpop.f32.mrf.mxu1 }
 0x7f8   :  { %15082 = vst [vmem:[#allocation31_spill] sm:$0xff] %v13142_v6  ;;  %v6322_v17 = vadd.f32 %v6321_v3, %v6259_v36  ;;  %v13147_v33 = vadd.f32 %v6055_v42, %v12782_v40  ;;  %v6190_v20 = vadd.f32 %v6189_v52, %v13132_v49  ;;  %v6262_v44 = vmul.f32 %v13142_v6, %v13142_v6 }
 0x7f9   :  { %v7974_v16 = vpop.f32.mrf.mxu1 }
 0x7fa   :  { %v6191_v62 = vadd.f32 %v6190_v20, %v13147_v33  ;;  %v6261_v9 = vmul.f32 %v13147_v33, %v13147_v33  ;;  %v6323_v7 = vadd.f32 %v6322_v17, %v6260_v32  ;;  %v13156_v2 = vadd.f32 %v7974_v16, %v12798_v51 }
 0x7fb   :  { %v6065_v46 = vpop.f32.mrf.mxu1 }
 0x7fc   :  { %v6324_v53 = vadd.f32 %v6323_v7, %v6261_v9  ;;  %15083 = vst [vmem:[#allocation28_spill] sm:$0xff] %v13156_v2  ;;  %v13159_v40 = vadd.f32 %v6065_v46, %v12795_v47  ;;  %v6192_v52 = vadd.f32 %v6191_v62, %v13142_v6  ;;  %v6264_v51 = vmul.f32 %v13156_v2, %v13156_v2  ;;  %v15127_v6 = vld [vmem:[#allocation22_spill] sm:$0xff] }
 0x7fd   :  { %v7977_v36 = vpop.f32.mrf.mxu1 }
 0x7fe   :  { %15084 = vst [vmem:[#allocation27_spill] sm:$0xff] %v13159_v40  ;;  %v6193_v3 = vadd.f32 %v6192_v52, %v13159_v40  ;;  %v6263_v42 = vmul.f32 %v13159_v40, %v13159_v40  ;;  %v6325_v32 = vadd.f32 %v6324_v53, %v6262_v44  ;;  %v13166_v17 = vadd.f32 %v7977_v36, %v12804_v34 }
 0x7ff   :  { %v6075_v20 = vpop.f32.mrf.mxu1 }
 0x800   :  { %15085 = vst [vmem:[#allocation29_spill] sm:$0xff] %v13166_v17  ;;  %v6326_v16 = vadd.f32 %v6325_v32, %v6263_v42  ;;  %v13171_v47 = vadd.f32 %v6075_v20, %v12801_v61  ;;  %v6194_v62 = vadd.f32 %v6193_v3, %v13156_v2  ;;  %v6266_v34 = vmul.f32 %v13166_v17, %v13166_v17 }
 0x801   :  { %v7980_v9 = vpop.f32.mrf.mxu1 }
 0x802   :  { %15086 = vst [vmem:[#allocation30_spill] sm:$0xff] %v13171_v47  ;;  %v6195_v7 = vadd.f32 %v6194_v62, %v13171_v47  ;;  %v6265_v46 = vmul.f32 %v13171_v47, %v13171_v47  ;;  %v6327_v44 = vadd.f32 %v6326_v16, %v6264_v51  ;;  %v13180_v36 = vadd.f32 %v7980_v9, %v12817_v1 }
 0x803   :  { %v6085_v53 = vpop.f32.mrf.mxu1 }
 0x804   :  { %v6328_v52 = vadd.f32 %v6327_v44, %v6265_v46  ;;  %v13183_v61 = vadd.f32 %v6085_v53, %v12814_v21  ;;  %v6196_v3 = vadd.f32 %v6195_v7, %v13166_v17  ;;  %v6268_v62 = vmul.f32 %v13180_v36, %v13180_v36  ;;  %v15089_v44 = vld [vmem:[#allocation37_spill] sm:$0xff]  ;;  %v15091_v17 = vld [vmem:[#allocation40_spill] sm:$0xff] }
 0x805   :  { %v7983_v42 = vpop.f32.mrf.mxu1 }
 0x806   :  { %15087 = vst [vmem:[#allocation39_spill] sm:$0xff] %v13183_v61  ;;  %v6197_v32 = vadd.f32 %v6196_v3, %v13183_v61  ;;  %v6267_v20 = vmul.f32 %v13183_v61, %v13183_v61  ;;  %v6329_v51 = vadd.f32 %v6328_v52, %v6266_v34  ;;  %v13196_v7 = vadd.f32 %v7983_v42, %v15089_v44 }
 0x807   :  { %v6095_v16 = vpop.f32.mrf.mxu1 }
 0x808   :  { %v6330_v46 = vadd.f32 %v6329_v51, %v6267_v20  ;;  %v13192_v1 = vadd.f32 %v6095_v16, %v12820_v19  ;;  %v6198_v21 = vadd.f32 %v6197_v32, %v13180_v36  ;;  %15090 = vst [vmem:[#allocation45_spill] sm:$0xff] %v13196_v7  ;;  %v6270_v32 = vmul.f32 %v13196_v7, %v13196_v7 }
 0x809   :  { %v7986_v9 = vpop.f32.mrf.mxu1 }
 0x80a   :  { %15088 = vst [vmem:[#allocation41_spill] sm:$0xff] %v13192_v1  ;;  %v6199_v53 = vadd.f32 %v6198_v21, %v13192_v1  ;;  %v6269_v3 = vmul.f32 %v13192_v1, %v13192_v1  ;;  %v6331_v34 = vadd.f32 %v6330_v46, %v6268_v62  ;;  %v13208_v42 = vadd.f32 %v7986_v9, %v12836_v0  ;;  %v15094_v21 = vld [vmem:[#allocation16_spill] sm:$0xff] }
 0x80b   :  { %v6105_v52 = vpop.f32.mrf.mxu1 }
 0x80c   :  { %v6332_v61 = vadd.f32 %v6331_v34, %v6269_v3  ;;  %v13202_v47 = vadd.f32 %v6105_v52, %v15091_v17  ;;  %v6200_v19 = vadd.f32 %v6199_v53, %v13196_v7  ;;  %15093 = vst [vmem:[#allocation40_spill] sm:$0xff] %v13208_v42  ;;  %v15096_v3 = vld [vmem:[#allocation17_spill] sm:$0xff]  ;;  %v15097_v7 = vld [vmem:[#allocation20_spill] sm:$0xff] }
 0x80d   :  { %v7989_v20 = vpop.f32.mrf.mxu1 }
 0x80e   :  { %15092 = vst [vmem:[#allocation37_spill] sm:$0xff] %v13202_v47  ;;  %v6201_v51 = vadd.f32 %v6200_v19, %v13202_v47  ;;  %v6271_v62 = vmul.f32 %v13202_v47, %v13202_v47  ;;  %v6333_v46 = vadd.f32 %v6332_v61, %v6270_v32  ;;  %v13218_v34 = vadd.f32 %v7989_v20, %v15096_v3  ;;  %v15098_v32 = vld [vmem:[#allocation9_spill] sm:$0xff]  ;;  %v15100_v3 = vld [vmem:[#allocation18_spill] sm:$0xff] }
 0x80f   :  { %v6115_v16 = vpop.f32.mrf.mxu1  ;;  %v6272_v61 = vmul.f32 %v13208_v42, %v13208_v42  ;;  %v15120_v41 = vld [vmem:[#allocation45_spill] sm:$0xff] }
 0x810   :  { %v13214_v44 = vadd.f32 %v6115_v16, %v15094_v21  ;;  %v6202_v17 = vadd.f32 %v6201_v51, %v13208_v42  ;;  %v6334_v9 = vadd.f32 %v6333_v46, %v6271_v62  ;;  %v15099_v62 = vld [vmem:[#allocation10_spill] sm:$0xff] }
 0x811   :  { %v7992_v53 = vpop.f32.mrf.mxu1  ;;  %v15119_v24 = vld [vmem:[#allocation41_spill] sm:$0xff] }
 0x812   :  { %15095 = vst [vmem:[#allocation16_spill] sm:$0xff] %v13214_v44  ;;  %v6203_v52 = vadd.f32 %v6202_v17, %v13214_v44  ;;  %v13228_v16 = vadd.f32 %v7992_v53, %v15098_v32  ;;  %v6273_v21 = vmul.f32 %v13214_v44, %v13214_v44  ;;  %v6335_v17 = vadd.f32 %v6334_v9, %v6272_v61 }
 0x813   :  { %v6125_v0 = vpop.f32.mrf.mxu1  ;;  %v15122_v26 = vld [vmem:[#allocation40_spill] sm:$0xff] }
 0x814   :  { %v13222_v19 = vadd.f32 %v6125_v0, %v15097_v7  ;;  %v6204_v1 = vadd.f32 %v6203_v52, %v13218_v34  ;;  %v6336_v42 = vadd.f32 %v6335_v17, %v6273_v21 }
 0x815   :  { %v7995_v47 = vpop.f32.mrf.mxu1 }
 0x816   :  { %v6205_v51 = vadd.f32 %v6204_v1, %v13222_v19  ;;  %v13238_v52 = vadd.f32 %v7995_v47, %v15100_v3  ;;  %v6274_v1 = vmul.f32 %v13218_v34, %v13218_v34  ;;  %v6275_v9 = vmul.f32 %v13222_v19, %v13222_v19 }
 0x817   :  { %v6135_v20 = vpop.f32.mrf.mxu1  ;;  %v6276_v47 = vmul.f32 %v13228_v16, %v13228_v16 }
 0x818   :  { %v13234_v46 = vadd.f32 %v6135_v20, %v15099_v62  ;;  %v6206_v7 = vadd.f32 %v6205_v51, %v13228_v16  ;;  %v6337_v61 = vadd.f32 %v6336_v42, %v6274_v1  ;;  %v8096_v42 = vld [vmem:[#allocation2 + $0x8] sm:$0xff]  ;;  %v8097_v1 = vld [vmem:[%s14526_s1 + $0x70] sm:$0xff] }
 0x819   :  { %v15123_v58 = vld [vmem:[#allocation16_spill] sm:$0xff] }
 0x81a   :  { %v6207_v0 = vadd.f32 %v6206_v7, %v13234_v46  ;;  %v6338_v44 = vadd.f32 %v6337_v61, %v6275_v9  ;;  %v6277_v21 = vmul.f32 %v13234_v46, %v13234_v46  ;;  %v8099_v61 = vld [vmem:[%s14526_s1 + $0x60] sm:$0xff] }
 0x81c   :  { %v6208_v53 = vadd.f32 %v6207_v0, %v13238_v52  ;;  %v6339_v17 = vadd.f32 %v6338_v44, %v6276_v47  ;;  %v8095_v0 = vld [vmem:[%s14526_s1 + $0x78] sm:$0xff]  ;;  %v8098_v44 = vld [vmem:[%s14526_s1 + $0x68] sm:$0xff] }
 0x81d   :  { %v8102_v47 = vld [vmem:[%s14526_s1 + $0x48] sm:$0xff] }
 0x81e   :  { %v6209_v32 = vrot.slane %v6208_v53, 4 }
 0x820   :  { %v6210_v20 = vadd.f32 %v6209_v32, %v6208_v53  ;;  %v6340_v53 = vadd.f32 %v6339_v17, %v6277_v21  ;;  %v6278_v32 = vmul.f32 %v13238_v52, %v13238_v52  ;;  %v8104_v21 = vld [vmem:[%s14526_s1 + $0x38] sm:$0xff] }
 0x822   :  { %v6211_v62 = vrot.slane %v6210_v20, 2  ;;  %v6341_v9 = vadd.f32 %v6340_v53, %v6278_v32  ;;  %v15101_v53 = vld [vmem:[#allocation34_spill] sm:$0xff]  ;;  %v15102_v32 = vld [vmem:[#allocation35_spill] sm:$0xff] }
 0x824   :  { %v6212_v51 = vadd.f32 %v6211_v62, %v6210_v20  ;;  %v8100_v20 = vld [vmem:[%s14526_s1 + $0x58] sm:$0xff]  ;;  %v6342_v62 = vrot.slane %v6341_v9, 4 }
 0x826   :  { %v6213_v3 = vrot.slane %v6212_v51, 1 }
 0x828   :  { %v6214_v7 = vadd.f32 %v6213_v3, %v6212_v51  ;;  %v8101_v51 = vld [vmem:[%s14526_s1 + $0x50] sm:$0xff]  ;;  %v6343_v3 = vadd.f32 %v6342_v62, %v6341_v9 }
 0x82a   :  { %8029 = vmatmul.mubr.f32.vlgmr.msra.gmra.mxu0 %v6214_v7  ;;  %v8103_v7 = vld [vmem:[%s14526_s1 + $0x40] sm:$0xff]  ;;  %v6344_v17 = vrot.slane %v6343_v3, 2 }
 0x82b   :  { %8032 = vmatpush3.msra.mxu0 %v8095_v0  ;;  %8063 = vmatprep.mubr.msk.f32.mxu0 %vm8154_vm0, %v8096_v42  ;;  %v8105_v0 = vld [vmem:[%s14526_s1 + $0x30] sm:$0xff] }
 0x82c   :  { %8033 = vmatprep.subr.mxu0 %v8096_v42 }
 0x82d   :  { %8034 = vmatpush3.msra.mxu0 %v8097_v1  ;;  %v6345_v1 = vadd.f32 %v6344_v17, %v6343_v3 }
 0x82e   :  { %8035 = vmatprep.subr.mxu0 %v8096_v42 }
 0x82f   :  { %8036 = vmatpush3.msra.mxu0 %v8098_v44  ;;  %v15103_v44 = vld [vmem:[#allocation36_spill] sm:$0xff]  ;;  %v6346_v9 = vrot.slane %v6345_v1, 1 }
 0x830   :  { %8037 = vmatprep.subr.mxu0 %v8096_v42 }
 0x831   :  { %8038 = vmatpush3.msra.mxu0 %v8099_v61  ;;  %v15104_v61 = vld [vmem:[#allocation38_spill] sm:$0xff]  ;;  %v6347_v62 = vadd.f32 %v6346_v9, %v6345_v1  ;;  %v15108_v1 = vld [vmem:[#allocation11_spill] sm:$0xff]  ;;  %v15109_v9 = vld [vmem:[#allocation24_spill] sm:$0xff] }
 0x832   :  { %8039 = vmatprep.subr.mxu0 %v8096_v42 }
 0x833   :  { %8040 = vmatpush3.msra.mxu0 %v8100_v20  ;;  %v15105_v20 = vld [vmem:[#allocation19_spill] sm:$0xff] }
 0x834   :  { %8041 = vmatprep.subr.mxu0 %v8096_v42 }
 0x835   :  { %8042 = vmatpush3.msra.mxu0 %v8101_v51 }
 0x836   :  { %8043 = vmatprep.subr.mxu0 %v8096_v42 }
 0x837   :  { %8044 = vmatpush3.msra.mxu0 %v8102_v47 }
 0x838   :  { %8045 = vmatprep.subr.mxu0 %v8096_v42 }
 0x839   :  { %8046 = vmatpush3.msra.mxu0 %v8103_v7 }
 0x83a   :  { %8047 = vmatprep.subr.mxu0 %v8096_v42 }
 0x83b   :  { %8048 = vmatpush3.msra.mxu0 %v8104_v21 }
 0x83c   :  { %8049 = vmatprep.subr.mxu0 %v8096_v42 }
 0x83d   :  { %8050 = vmatpush3.msra.mxu0 %v8105_v0 }
 0x83e   :  { %8051 = vmatprep.subr.mxu0 %v8096_v42 }
 0x83f   :  { %8052 = vmatpush3.msra.mxu0 %v15101_v53 }
 0x840   :  { %8053 = vmatprep.subr.mxu0 %v8096_v42 }
 0x841   :  { %8054 = vmatpush3.msra.mxu0 %v15102_v32  ;;  %v15106_v32 = vld [vmem:[#allocation15_spill] sm:$0xff] }
 0x842   :  { %8055 = vmatprep.subr.mxu0 %v8096_v42 }
 0x843   :  { %8056 = vmatpush3.msra.mxu0 %v15103_v44 }
 0x844   :  { %8057 = vmatprep.subr.mxu0 %v8096_v42 }
 0x845   :  { %8058 = vmatpush3.msra.mxu0 %v15104_v61 }
 0x846   :  { %8059 = vmatprep.subr.mxu0 %v8096_v42 }
 0x847   :  { %8060 = vmatpush3.msra.mxu0 %v15105_v20  ;;  %v15107_v20 = vld [vmem:[#allocation13_spill] sm:$0xff] }
 0x848   :  { %8061 = vmatprep.subr.mxu0 %v8096_v42  ;;  %v15121_v42 = vld [vmem:[#allocation37_spill] sm:$0xff] }
 0x849   :  { %8062 = vmatpush3.msra.mxu0 %v12906_v30  ;;  %v15114_v30 = vld [vmem:[#allocation44_spill] sm:$0xff] }
 0x84a   :  { %8064 = vmatmul.mubr.f32.vlgmr.msra.gmra.mxu0 %v6347_v62 }
 0x8ea   :  { %v6430_v51 = vpop.f32.mrf.mxu0 }
 0x8eb   :  { %v6434_v3 = vmul.f32 0.00012207031, %v6430_v51 }
 0x8ec   :  { %v8030_v47 = vpop.f32.mrf.mxu0 }
 0x8ed   :  { %v6506_v21 = vmul.f32 %v6434_v3, %v6434_v3  ;;  %v13290_v44 = vrot.slane %v6434_v3, %v15106_v32  ;;  %v15112_v3 = vld [vmem:[#allocation26_spill] sm:$0xff]  ;;  %v15115_v47 = vld [vmem:[#allocation12_spill] sm:$0xff] }
 0x8ef   :  { %v15124_v51 = vsub.f32 %v15107_v20, %v13290_v44  ;;  %v15126_v40 = vsub.f32 %v15109_v9, %v13290_v44  ;;  %v15128_v62 = vsub.f32 %v15127_v6, %v13290_v44 }
 0x90a   :  { %v6501_v7 = vpop.f32.mrf.mxu0 }
 0x90b   :  { %v6505_v17 = vmul.f32 0.00012207031, %v6501_v7  ;;  %v15111_v7 = vld [vmem:[#allocation42_spill] sm:$0xff] }
 0x90c   :  { %v8065_v0 = vpop.f32.mrf.mxu0 }
 0x90d   :  { %v6507_v53 = vsub.f32 %v6505_v17, %v6506_v21  ;;  %v15113_v0 = vld [vmem:[#allocation43_spill] sm:$0xff] }
 0x90e   :  { %v15118_v21 = vld [vmem:[#allocation39_spill] sm:$0xff] }
 0x90f   :  { %v6508_v61 = vadd.f32 1e-05, %v6507_v53 }
 0x911   :  { %8074 = vrsqrt.f32 %v6508_v61  ;;  %v6144_v61 = vld [vmem:[%s14533_s8] sm:$0x1] }
 0x91e   :  { %v8075_v17 = vpop.eup %8074 }
 0x91f   :  { %v6510_v56 = vmul.f32 %v8075_v17, %v6144_v61 }
 0x921   :  { %v13416_v61 = vrot.slane %v6510_v56, %v15106_v32  ;;  %v15125_v56 = vsub.f32 %v15108_v1, %v13290_v44 }
 0x923   :  { %v13430_v17 = vmul.f32 %v13416_v61, %v15124_v51  ;;  %v13436_v32 = vmul.f32 %v13416_v61, %v15125_v56  ;;  %v13442_v2 = vmul.f32 %v13416_v61, %v15126_v40  ;;  %v13448_v20 = vmul.f32 %v13416_v61, %v15128_v62 }
 0x924   :  { %v15129_v51 = vsub.f32 %v15111_v7, %v13290_v44  ;;  %v15130_v56 = vsub.f32 %v15112_v3, %v13290_v44  ;;  %v15131_v40 = vsub.f32 %v15113_v0, %v13290_v44  ;;  %v15132_v62 = vsub.f32 %v12895_v12, %v13290_v44 }
 0x926   :  { %v13454_v1 = vmul.f32 %v13416_v61, %v15129_v51  ;;  %v13460_v9 = vmul.f32 %v13416_v61, %v15130_v56  ;;  %v13466_v6 = vmul.f32 %v13416_v61, %v15131_v40  ;;  %v13472_v7 = vmul.f32 %v13416_v61, %v15132_v62 }
 0x927   :  { %v15133_v51 = vsub.f32 %v15114_v30, %v13290_v44  ;;  %v15134_v56 = vsub.f32 %v12916_v29, %v13290_v44  ;;  %v15135_v40 = vsub.f32 %v15115_v47, %v13290_v44  ;;  %v15136_v62 = vsub.f32 %v12926_v37, %v13290_v44 }
 0x929   :  { %v13478_v3 = vmul.f32 %v13416_v61, %v15133_v51  ;;  %v13484_v0 = vmul.f32 %v13416_v61, %v15134_v56  ;;  %v13490_v12 = vmul.f32 %v13416_v61, %v15135_v40  ;;  %v13496_v30 = vmul.f32 %v13416_v61, %v15136_v62 }
 0x92a   :  { %v15137_v51 = vsub.f32 %v12943_v14, %v13290_v44  ;;  %v15138_v56 = vsub.f32 %v12940_v5, %v13290_v44  ;;  %v15139_v40 = vsub.f32 %v12955_v63, %v13290_v44  ;;  %v15140_v62 = vsub.f32 %v12950_v38, %v13290_v44 }
 0x92c   :  { %v13502_v29 = vmul.f32 %v13416_v61, %v15137_v51  ;;  %v13508_v47 = vmul.f32 %v13416_v61, %v15138_v56  ;;  %v13514_v37 = vmul.f32 %v13416_v61, %v15139_v40  ;;  %v13520_v14 = vmul.f32 %v13416_v61, %v15140_v62 }
 0x92d   :  { %v15141_v51 = vsub.f32 %v12967_v25, %v13290_v44  ;;  %v15142_v56 = vsub.f32 %v12964_v15, %v13290_v44  ;;  %v15143_v40 = vsub.f32 %v12979_v59, %v13290_v44  ;;  %v15144_v62 = vsub.f32 %v12974_v23, %v13290_v44 }
 0x92f   :  { %v13526_v5 = vmul.f32 %v13416_v61, %v15141_v51  ;;  %v13532_v63 = vmul.f32 %v13416_v61, %v15142_v56  ;;  %v13538_v38 = vmul.f32 %v13416_v61, %v15143_v40  ;;  %v13544_v25 = vmul.f32 %v13416_v61, %v15144_v62 }
 0x930   :  { %v15145_v51 = vsub.f32 %v12991_v28, %v13290_v44  ;;  %v15146_v56 = vsub.f32 %v12988_v4, %v13290_v44  ;;  %v15147_v40 = vsub.f32 %v13003_v43, %v13290_v44  ;;  %v15148_v62 = vsub.f32 %v12998_v57, %v13290_v44 }
 0x932   :  { %v13550_v15 = vmul.f32 %v13416_v61, %v15145_v51  ;;  %v13556_v59 = vmul.f32 %v13416_v61, %v15146_v56  ;;  %v13562_v23 = vmul.f32 %v13416_v61, %v15147_v40  ;;  %v13568_v28 = vmul.f32 %v13416_v61, %v15148_v62 }
 0x933   :  { %v15149_v51 = vsub.f32 %v13015_v54, %v13290_v44  ;;  %v15150_v56 = vsub.f32 %v13012_v45, %v13290_v44  ;;  %v15151_v40 = vsub.f32 %v13027_v22, %v13290_v44  ;;  %v15152_v62 = vsub.f32 %v13022_v13, %v13290_v44 }
 0x935   :  { %v13574_v4 = vmul.f32 %v13416_v61, %v15149_v51  ;;  %v13580_v43 = vmul.f32 %v13416_v61, %v15150_v56  ;;  %v13586_v57 = vmul.f32 %v13416_v61, %v15151_v40  ;;  %v13592_v54 = vmul.f32 %v13416_v61, %v15152_v62 }
 0x936   :  { %v15153_v51 = vsub.f32 %v13039_v18, %v13290_v44  ;;  %v15154_v56 = vsub.f32 %v13036_v48, %v13290_v44  ;;  %v15155_v40 = vsub.f32 %v13051_v55, %v13290_v44  ;;  %v15156_v62 = vsub.f32 %v13046_v39, %v13290_v44 }
 0x938   :  { %v13598_v45 = vmul.f32 %v13416_v61, %v15153_v51  ;;  %v13604_v22 = vmul.f32 %v13416_v61, %v15154_v56  ;;  %v13610_v13 = vmul.f32 %v13416_v61, %v15155_v40  ;;  %v13616_v18 = vmul.f32 %v13416_v61, %v15156_v62 }
 0x939   :  { %v15157_v51 = vsub.f32 %v13063_v10, %v13290_v44  ;;  %v15158_v56 = vsub.f32 %v13060_v31, %v13290_v44  ;;  %v15159_v40 = vsub.f32 %v13075_v50, %v13290_v44  ;;  %v15160_v62 = vsub.f32 %v13070_v60, %v13290_v44 }
 0x93b   :  { %v13622_v48 = vmul.f32 %v13416_v61, %v15157_v51  ;;  %v13628_v55 = vmul.f32 %v13416_v61, %v15158_v56  ;;  %v13634_v39 = vmul.f32 %v13416_v61, %v15159_v40  ;;  %v13640_v10 = vmul.f32 %v13416_v61, %v15160_v62 }
 0x93c   :  { %v15161_v51 = vsub.f32 %v13087_v8, %v13290_v44  ;;  %v15162_v56 = vsub.f32 %v13084_v27, %v13290_v44  ;;  %v15163_v40 = vsub.f32 %v13099_v11, %v13290_v44  ;;  %v15165_v62 = vsub.f32 %v13094_v35, %v13290_v44 }
 0x93e   :  { %v13646_v31 = vmul.f32 %v13416_v61, %v15161_v51  ;;  %v13652_v50 = vmul.f32 %v13416_v61, %v15162_v56  ;;  %v13658_v60 = vmul.f32 %v13416_v61, %v15163_v40  ;;  %v13664_v8 = vmul.f32 %v13416_v61, %v15165_v62  ;;  %v15167_v51 = vld [vmem:[#allocation23_spill] sm:$0xff]  ;;  %v15170_v56 = vld [vmem:[#allocation14_spill] sm:$0xff]  ;;  %v15173_v40 = vld [vmem:[#allocation32_spill] sm:$0xff] }
 0x93f   :  { %v15168_v53 = vsub.f32 %v15167_v51, %v13290_v44  ;;  %v15171_v49 = vsub.f32 %v15170_v56, %v13290_v44  ;;  %v15175_v62 = vld [vmem:[#allocation21_spill] sm:$0xff] }
 0x940   :  { %15164 = vst [vmem:[#allocation17_spill] sm:$0xff] %v13658_v60  ;;  %15166 = vst [vmem:[#allocation20_spill] sm:$0xff] %v13664_v8  ;;  %v15174_v60 = vsub.f32 %v15173_v40, %v13290_v44  ;;  %v15176_v8 = vsub.f32 %v15175_v62, %v13290_v44 }
 0x941   :  { %v13670_v27 = vmul.f32 %v13416_v61, %v15168_v53  ;;  %v13676_v11 = vmul.f32 %v13416_v61, %v15171_v49  ;;  %v15178_v53 = vld [vmem:[#allocation33_spill] sm:$0xff] }
 0x942   :  { %v13682_v35 = vmul.f32 %v13416_v61, %v15174_v60  ;;  %v13688_v51 = vmul.f32 %v13416_v61, %v15176_v8  ;;  %v15181_v49 = vld [vmem:[#allocation25_spill] sm:$0xff]  ;;  %v15184_v60 = vsub.f32 %v13147_v33, %v13290_v44  ;;  %v15186_v8 = vld [vmem:[#allocation31_spill] sm:$0xff] }
 0x943   :  { %15169 = vst [vmem:[#allocation9_spill] sm:$0xff] %v13670_v27  ;;  %15172 = vst [vmem:[#allocation10_spill] sm:$0xff] %v13676_v11  ;;  %v15179_v27 = vsub.f32 %v15178_v53, %v13290_v44  ;;  %v15182_v11 = vsub.f32 %v15181_v49, %v13290_v44 }
 0x944   :  { %15177 = vst [vmem:[#allocation18_spill] sm:$0xff] %v13688_v51  ;;  %v13706_v62 = vmul.f32 %v13416_v61, %v15184_v60  ;;  %v15187_v51 = vsub.f32 %v15186_v8, %v13290_v44  ;;  %v15193_v60 = vld [vmem:[#allocation30_spill] sm:$0xff] }
 0x945   :  { %v13694_v56 = vmul.f32 %v13416_v61, %v15179_v27  ;;  %v13700_v40 = vmul.f32 %v13416_v61, %v15182_v11  ;;  %v15189_v27 = vld [vmem:[#allocation27_spill] sm:$0xff]  ;;  %v15191_v11 = vld [vmem:[#allocation28_spill] sm:$0xff] }
 0x946   :  { %15185 = vst [vmem:[#allocation36_spill] sm:$0xff] %v13706_v62  ;;  %v13712_v53 = vmul.f32 %v13416_v61, %v15187_v51  ;;  %v15194_v62 = vsub.f32 %v15193_v60, %v13290_v44  ;;  %v15195_v51 = vld [vmem:[#allocation29_spill] sm:$0xff] }
 0x947   :  { %15180 = vst [vmem:[#allocation34_spill] sm:$0xff] %v13694_v56  ;;  %15183 = vst [vmem:[#allocation35_spill] sm:$0xff] %v13700_v40  ;;  %v15190_v56 = vsub.f32 %v15189_v27, %v13290_v44  ;;  %v15192_v40 = vsub.f32 %v15191_v11, %v13290_v44 }
 0x948   :  { %15188 = vst [vmem:[#allocation38_spill] sm:$0xff] %v13712_v53  ;;  %v13730_v8 = vmul.f32 %v13416_v61, %v15194_v62  ;;  %v15196_v53 = vsub.f32 %v15195_v51, %v13290_v44  ;;  %v15199_v62 = vsub.f32 %v13180_v36, %v13290_v44 }
 0x949   :  { %v13718_v49 = vmul.f32 %v13416_v61, %v15190_v56  ;;  %v13724_v33 = vmul.f32 %v13416_v61, %v15192_v40  ;;  %v13741_v56 = vld [vmem:[%s14534_s9] ss:$0 sm:$0xff]  ;;  %v15198_v40 = vsub.f32 %v15118_v21, %v13290_v44 }
 0x94a   :  { %v13736_v27 = vmul.f32 %v13416_v61, %v15196_v53  ;;  %v13753_v60 = vmul.f32 %v13416_v61, %v15199_v62  ;;  %v15200_v53 = vsub.f32 %v15119_v24, %v13290_v44  ;;  %v15203_v62 = vsub.f32 %v15122_v26, %v13290_v44 }
 0x94b   :  { %v13747_v11 = vmul.f32 %v13416_v61, %v15198_v40  ;;  %v15202_v40 = vsub.f32 %v15121_v42, %v13290_v44 }
 0x94c   :  { %15197 = vst [vmem:[#allocation19_spill] sm:$0xff] %v13736_v27  ;;  %v13759_v51 = vmul.f32 %v13416_v61, %v15200_v53  ;;  %v15201_v27 = vsub.f32 %v15120_v41, %v13290_v44  ;;  %v13777_v24 = vmul.f32 %v13416_v61, %v15203_v62  ;;  %v15204_v53 = vsub.f32 %v15123_v58, %v13290_v44 }
 0x94d   :  { %v13771_v36 = vmul.f32 %v13416_v61, %v15202_v40  ;;  %v15206_v40 = vsub.f32 %v13222_v19, %v13290_v44  ;;  %v15207_v62 = vsub.f32 %v13228_v16, %v13290_v44  ;;  %v13821_v16 = vadd.f32 %v13741_v56, %v13436_v32 }
 0x94e   :  { %v13765_v21 = vmul.f32 %v13416_v61, %v15201_v27  ;;  %v13783_v41 = vmul.f32 %v13416_v61, %v15204_v53  ;;  %v15205_v27 = vsub.f32 %v13218_v34, %v13290_v44  ;;  %v15208_v53 = vsub.f32 %v13234_v46, %v13290_v44 }
 0x94f   :  { %v13795_v26 = vmul.f32 %v13416_v61, %v15206_v40  ;;  %v13801_v58 = vmul.f32 %v13416_v61, %v15207_v62  ;;  %v13817_v40 = vadd.f32 %v13741_v56, %v13430_v17  ;;  %v13825_v46 = vadd.f32 %v13741_v56, %v13442_v2 }
 0x950   :  { %v13789_v42 = vmul.f32 %v13416_v61, %v15205_v27  ;;  %v13807_v34 = vmul.f32 %v13416_v61, %v15208_v53  ;;  %v15209_v27 = vsub.f32 %v13238_v52, %v13290_v44  ;;  %v13829_v62 = vadd.f32 %v13741_v56, %v13448_v20  ;;  %v15218_v53 = vld [vmem:[#allocation9_spill] sm:$0xff] }
 0x951   :  { %v13833_v52 = vadd.f32 %v13741_v56, %v13454_v1  ;;  %v13837_v44 = vadd.f32 %v13741_v56, %v13460_v9  ;;  %v13841_v17 = vadd.f32 %v13741_v56, %v13466_v6  ;;  %v13845_v2 = vadd.f32 %v13741_v56, %v13472_v7 }
 0x952   :  { %v13813_v19 = vmul.f32 %v13416_v61, %v15209_v27  ;;  %v13849_v61 = vadd.f32 %v13741_v56, %v13478_v3  ;;  %v13853_v32 = vadd.f32 %v13741_v56, %v13484_v0  ;;  %v13857_v20 = vadd.f32 %v13741_v56, %v13490_v12  ;;  %v15220_v27 = vld [vmem:[#allocation10_spill] sm:$0xff] }
 0x953   :  { %v13861_v1 = vadd.f32 %v13741_v56, %v13496_v30  ;;  %v13865_v9 = vadd.f32 %v13741_v56, %v13502_v29  ;;  %v13869_v6 = vadd.f32 %v13741_v56, %v13508_v47  ;;  %v13873_v7 = vadd.f32 %v13741_v56, %v13514_v37 }
 0x954   :  { %v13877_v3 = vadd.f32 %v13741_v56, %v13520_v14  ;;  %v13881_v0 = vadd.f32 %v13741_v56, %v13526_v5  ;;  %v13885_v12 = vadd.f32 %v13741_v56, %v13532_v63  ;;  %v13889_v30 = vadd.f32 %v13741_v56, %v13538_v38 }
 0x955   :  { %v13893_v29 = vadd.f32 %v13741_v56, %v13544_v25  ;;  %v13897_v47 = vadd.f32 %v13741_v56, %v13550_v15  ;;  %v13901_v37 = vadd.f32 %v13741_v56, %v13556_v59  ;;  %v13905_v14 = vadd.f32 %v13741_v56, %v13562_v23 }
 0x956   :  { %v13909_v5 = vadd.f32 %v13741_v56, %v13568_v28  ;;  %v13913_v63 = vadd.f32 %v13741_v56, %v13574_v4  ;;  %v13917_v38 = vadd.f32 %v13741_v56, %v13580_v43  ;;  %v13921_v25 = vadd.f32 %v13741_v56, %v13586_v57 }
 0x957   :  { %v13925_v15 = vadd.f32 %v13741_v56, %v13592_v54  ;;  %v13929_v59 = vadd.f32 %v13741_v56, %v13598_v45  ;;  %v13933_v23 = vadd.f32 %v13741_v56, %v13604_v22  ;;  %v13937_v28 = vadd.f32 %v13741_v56, %v13610_v13 }
 0x958   :  { %v13941_v4 = vadd.f32 %v13741_v56, %v13616_v18  ;;  %v13945_v43 = vadd.f32 %v13741_v56, %v13622_v48  ;;  %v13949_v57 = vadd.f32 %v13741_v56, %v13628_v55  ;;  %v13953_v54 = vadd.f32 %v13741_v56, %v13634_v39  ;;  %v15214_v18 = vld [vmem:[#allocation17_spill] sm:$0xff]  ;;  %v15216_v55 = vld [vmem:[#allocation20_spill] sm:$0xff] }
 0x959   :  { %v13957_v45 = vadd.f32 %v13741_v56, %v13640_v10  ;;  %v13961_v22 = vadd.f32 %v13741_v56, %v13646_v31  ;;  %v13965_v13 = vadd.f32 %v13741_v56, %v13652_v50  ;;  %v13969_v48 = vadd.f32 %v13741_v56, %v15214_v18 }
 0x95a   :  { %15210 = vst [vmem:[#allocation15_spill] sm:$0xff] %v13953_v54  ;;  %v13973_v39 = vadd.f32 %v13741_v56, %v15216_v55  ;;  %v13977_v10 = vadd.f32 %v13741_v56, %v15218_v53  ;;  %v13981_v31 = vadd.f32 %v13741_v56, %v15220_v27  ;;  %v13985_v50 = vadd.f32 %v13741_v56, %v13682_v35  ;;  %v7379_v55 = vld [vmem:[%s14525_s0 + $0x21] sm:$0xff]  ;;  %v7378_v53 = vld [vmem:[%s14525_s0 + $0x19] sm:$0xff]  ;;  %v7380_v35 = vld [vmem:[%s14525_s0 + $0x31] sm:$0xff] }
 0x95b   :  { %15211 = vst [vmem:[#allocation13_spill] sm:$0xff] %v13957_v45  ;;  %15212 = vst [vmem:[#allocation11_spill] sm:$0xff] %v13961_v22  ;;  %v7381_v27 = vld [vmem:[%s14525_s0 + $0x39] sm:$0xff]  ;;  %v7383_v45 = vld [vmem:[%s14525_s0 + $0x51] sm:$0xff] }
 0x95c   :  { %15213 = vst [vmem:[#allocation24_spill] sm:$0xff] %v13965_v13  ;;  %15215 = vst [vmem:[#allocation42_spill] sm:$0xff] %v13969_v48  ;;  %v15223_v13 = vld [vmem:[#allocation18_spill] sm:$0xff] }
 0x95d   :  { %15217 = vst [vmem:[#allocation26_spill] sm:$0xff] %v13973_v39  ;;  %15219 = vst [vmem:[#allocation43_spill] sm:$0xff] %v13977_v10  ;;  %v13989_v18 = vadd.f32 %v13741_v56, %v15223_v13  ;;  %v15229_v10 = vld [vmem:[#allocation36_spill] sm:$0xff]  ;;  %v15231_v48 = vld [vmem:[#allocation38_spill] sm:$0xff] }
 0x95e   :  { %15221 = vst [vmem:[#allocation44_spill] sm:$0xff] %v13981_v31  ;;  %15222 = vst [vmem:[#allocation12_spill] sm:$0xff] %v13985_v50  ;;  %v15225_v50 = vld [vmem:[#allocation34_spill] sm:$0xff]  ;;  %v14013_v39 = vadd.f32 %v13741_v56, %v15229_v10  ;;  %v14017_v22 = vadd.f32 %v13741_v56, %v15231_v48  ;;  %v14033_v48 = vadd.f32 %v13741_v56, %v13718_v49  ;;  %v7386_v49 = vld [vmem:[%s14525_s0 + $0x79] sm:$0xff] }
 0x95f   :  { %15224 = vst [vmem:[#allocation39_spill] sm:$0xff] %v13989_v18  ;;  %v14005_v13 = vadd.f32 %v13741_v56, %v15225_v50  ;;  %v15227_v18 = vld [vmem:[#allocation35_spill] sm:$0xff]  ;;  %v7384_v10 = vld [vmem:[%s14525_s0 + $0x61] sm:$0xff] }
 0x960   :  { %v14009_v31 = vadd.f32 %v13741_v56, %v15227_v18  ;;  %15230 = vst [vmem:[#allocation37_spill] sm:$0xff] %v14013_v39  ;;  %15232 = vst [vmem:[#allocation40_spill] sm:$0xff] %v14017_v22  ;;  %v7382_v50 = vld [vmem:[%s14525_s0 + $0x49] sm:$0xff]  ;;  %v14037_v22 = vadd.f32 %v13741_v56, %v13724_v33  ;;  %v14041_v39 = vadd.f32 %v13741_v56, %v13730_v8  ;;  %v7387_v54 = vld [vmem:[%s14525_s0 + $0x81] sm:$0xff] }
 0x961   :  { %15226 = vst [vmem:[#allocation41_spill] sm:$0xff] %v14005_v13  ;;  %v7385_v18 = vld [vmem:[%s14525_s0 + $0x69] sm:$0xff]  ;;  %15233 = vst [vmem:[#allocation16_spill] sm:$0xff] %v14033_v48  ;;  %v7389_v33 = vld [vmem:[%s14525_s0 + $0x99] sm:$0xff] }
 0x962   :  { %15228 = vst [vmem:[#allocation45_spill] sm:$0xff] %v14009_v31  ;;  %15234 = vst [vmem:[#allocation22_spill] sm:$0xff] %v14037_v22  ;;  %v15236_v31 = vld [vmem:[#allocation19_spill] sm:$0xff]  ;;  %v14073_v22 = vadd.f32 %v13741_v56, %v13765_v21  ;;  %v14089_v21 = vadd.f32 %v13741_v56, %v13771_v36  ;;  %v7394_v36 = vld [vmem:[%s14525_s0 + $0xd9] sm:$0xff] }
 0x963   :  { %15235 = vst [vmem:[#allocation23_spill] sm:$0xff] %v14041_v39  ;;  %v14045_v13 = vadd.f32 %v13741_v56, %v15236_v31  ;;  %v7388_v8 = vld [vmem:[%s14525_s0 + $0x91] sm:$0xff]  ;;  %v14061_v31 = vadd.f32 %v13741_v56, %v13747_v11  ;;  %v14069_v39 = vadd.f32 %v13741_v56, %v13759_v51  ;;  %v7390_v11 = vld [vmem:[%s14525_s0 + $0xa9] sm:$0xff]  ;;  %v7392_v51 = vld [vmem:[%s14525_s0 + $0xc1] sm:$0xff] }
 0x964   :  { %15241 = vst [vmem:[#allocation25_spill] sm:$0xff] %v14073_v22  ;;  %v7391_v48 = vld [vmem:[%s14525_s0 + $0xb1] sm:$0xff]  ;;  %15242 = vst [vmem:[#allocation31_spill] sm:$0xff] %v14089_v21  ;;  %v14093_v22 = vadd.f32 %v13741_v56, %v13777_v24  ;;  %v7397_v24 = vld [vmem:[%s14525_s0 + $0xf9] sm:$0xff] }
 0x965   :  { %15237 = vst [vmem:[#allocation14_spill] sm:$0xff] %v14045_v13  ;;  %15238 = vst [vmem:[#allocation32_spill] sm:$0xff] %v14061_v31  ;;  %v14065_v13 = vadd.f32 %v13741_v56, %v13753_v60  ;;  %v7393_v60 = vld [vmem:[%s14525_s0 + $0xc9] sm:$0xff]  ;;  %v7395_v31 = vld [vmem:[%s14525_s0 + $0xe1] sm:$0xff] }
 0x966   :  { %15240 = vst [vmem:[#allocation33_spill] sm:$0xff] %v14069_v39  ;;  %15243 = vst [vmem:[#allocation27_spill] sm:$0xff] %v14093_v22  ;;  %v14097_v39 = vadd.f32 %v13741_v56, %v13783_v41  ;;  %v7396_v41 = vld [vmem:[%s14525_s0 + $0xf1] sm:$0xff]  ;;  %v14129_v22 = vadd.f32 %v13741_v56, %v13813_v19  ;;  %v14150_v19 = vadd.f32 %v7380_v35, %v13825_v46  ;;  %v7406_v35 = vld [vmem:[%s14525_s0 + $0x169] sm:$0xff] }
 0x967   :  { %15239 = vst [vmem:[#allocation21_spill] sm:$0xff] %v14065_v13  ;;  %v14101_v13 = vadd.f32 %v13741_v56, %v13789_v42  ;;  %v14117_v42 = vadd.f32 %v13741_v56, %v13795_v26  ;;  %v7399_v21 = vld [vmem:[%s14525_s0 + $0x111] sm:$0xff]  ;;  %v7398_v26 = vld [vmem:[%s14525_s0 + $0x109] sm:$0xff]  ;;  %v14168_v46 = vadd.f32 %v7382_v50, %v13833_v52  ;;  %v14201_v50 = vadd.f32 %v7389_v33, %v13861_v1  ;;  %v7415_v33 = vld [vmem:[%s14525_s0 + $0x201] sm:$0xff] }
 0x968   :  { %15244 = vst [vmem:[#allocation28_spill] sm:$0xff] %v14097_v39  ;;  %v14125_v39 = vadd.f32 %v13741_v56, %v13807_v34  ;;  %15249 = vst [vmem:[#allocation9_spill] sm:$0xff] %v14129_v22  ;;  %v7400_v34 = vld [vmem:[%s14525_s0 + $0x121] sm:$0xff]  ;;  %v14153_v22 = vadd.f32 %v7381_v27, %v13829_v62  ;;  %v14171_v62 = vadd.f32 %v7383_v45, %v13837_v44  ;;  %v7407_v27 = vld [vmem:[%s14525_s0 + $0x171] sm:$0xff] }
 0x969   :  { %15245 = vst [vmem:[#allocation30_spill] sm:$0xff] %v14101_v13  ;;  %15246 = vst [vmem:[#allocation29_spill] sm:$0xff] %v14117_v42  ;;  %v14121_v13 = vadd.f32 %v13741_v56, %v13801_v58  ;;  %v7401_v58 = vld [vmem:[%s14525_s0 + $0x129] sm:$0xff]  ;;  %v14147_v56 = vadd.f32 %v7379_v55, %v13821_v16  ;;  %v7402_v42 = vld [vmem:[%s14525_s0 + $0x139] sm:$0xff]  ;;  %v14174_v55 = vadd.f32 %v7384_v10, %v13841_v17 }
 0x96a   :  { %15248 = vst [vmem:[#allocation20_spill] sm:$0xff] %v14125_v39  ;;  %v14144_v39 = vadd.f32 %v7378_v53, %v13817_v40  ;;  %v7405_v40 = vld [vmem:[%s14525_s0 + $0x159] sm:$0xff]  ;;  %v7404_v16 = vld [vmem:[%s14525_s0 + $0x151] sm:$0xff]  ;;  %v14177_v53 = vadd.f32 %v7385_v18, %v13845_v2  ;;  %v7409_v52 = vld [vmem:[%s14525_s0 + $0x189] sm:$0xff]  ;;  %v14192_v17 = vadd.f32 %v7386_v49, %v13849_v61  ;;  %v14195_v2 = vadd.f32 %v7387_v54, %v13853_v32 }
 0x96b   :  { %15247 = vst [vmem:[#allocation17_spill] sm:$0xff] %v14121_v13  ;;  %v7403_v13 = vld [vmem:[%s14525_s0 + $0x141] sm:$0xff]  ;;  %v14198_v45 = vadd.f32 %v7388_v8, %v13857_v20  ;;  %v7411_v18 = vld [vmem:[%s14525_s0 + $0x1d1] sm:$0xff]  ;;  %v7410_v10 = vld [vmem:[%s14525_s0 + $0x1c9] sm:$0xff]  ;;  %v14216_v20 = vadd.f32 %v7390_v11, %v13865_v9  ;;  %v14219_v1 = vadd.f32 %v7391_v48, %v13869_v6  ;;  %v14222_v54 = vadd.f32 %v7392_v51, %v13873_v7 }
 0x96c   :  { %v7408_v44 = vld [vmem:[%s14525_s0 + $0x181] sm:$0xff]  ;;  %v7413_v61 = vld [vmem:[%s14525_s0 + $0x1e9] sm:$0xff]  ;;  %v14225_v49 = vadd.f32 %v7393_v60, %v13877_v3  ;;  %v7414_v8 = vld [vmem:[%s14525_s0 + $0x1f9] sm:$0xff]  ;;  %v14240_v7 = vadd.f32 %v7394_v36, %v13881_v0  ;;  %v14243_v3 = vadd.f32 %v7395_v31, %v13885_v12  ;;  %v14246_v48 = vadd.f32 %v7396_v41, %v13889_v30 }
 0x96d   :  { %v7412_v32 = vld [vmem:[%s14525_s0 + $0x1e1] sm:$0xff]  ;;  %v7417_v9 = vld [vmem:[%s14525_s0 + $0x219] sm:$0xff]  ;;  %v7416_v6 = vld [vmem:[%s14525_s0 + $0x211] sm:$0xff]  ;;  %v14249_v11 = vadd.f32 %v7397_v24, %v13893_v29  ;;  %v14261_v12 = vadd.f32 %v7398_v26, %v13897_v47  ;;  %v14264_v30 = vadd.f32 %v7399_v21, %v13901_v37  ;;  %v14267_v29 = vadd.f32 %v7400_v34, %v13905_v14 }
 0x96e   :  { %v7419_v60 = vld [vmem:[%s14525_s0 + $0x231] sm:$0xff]  ;;  %v7418_v51 = vld [vmem:[%s14525_s0 + $0x229] sm:$0xff]  ;;  %v14270_v31 = vadd.f32 %v7401_v58, %v13909_v5  ;;  %v7420_v36 = vld [vmem:[%s14525_s0 + $0x241] sm:$0xff]  ;;  %v14282_v37 = vadd.f32 %v7402_v42, %v13913_v63  ;;  %v14285_v14 = vadd.f32 %v7403_v13, %v13917_v38  ;;  %v14288_v5 = vadd.f32 %v7404_v16, %v13921_v25 }
 0x96f   :  { %v7421_v0 = vld [vmem:[%s14525_s0 + $0x249] sm:$0xff]  ;;  %v7423_v24 = vld [vmem:[%s14525_s0 + $0x261] sm:$0xff]  ;;  %v7422_v47 = vld [vmem:[%s14525_s0 + $0x259] sm:$0xff]  ;;  %v14291_v21 = vadd.f32 %v7405_v40, %v13925_v15  ;;  %v14303_v38 = vadd.f32 %v7406_v35, %v13929_v59  ;;  %v14306_v25 = vadd.f32 %v7407_v27, %v13933_v23  ;;  %v14309_v15 = vadd.f32 %v7408_v44, %v13937_v28 }
 0x970   :  { %v7425_v41 = vld [vmem:[%s14525_s0 + $0x279] sm:$0xff]  ;;  %v7424_v26 = vld [vmem:[%s14525_s0 + $0x271] sm:$0xff]  ;;  %v14312_v13 = vadd.f32 %v7409_v52, %v13941_v4  ;;  %v7426_v42 = vld [vmem:[%s14525_s0 + $0x289] sm:$0xff]  ;;  %v14324_v23 = vadd.f32 %v7410_v10, %v13945_v43  ;;  %v14327_v28 = vadd.f32 %v7411_v18, %v13949_v57 }
 0x971   :  { %v7427_v63 = vld [vmem:[%s14525_s0 + $0x291] sm:$0xff]  ;;  %v7429_v58 = vld [vmem:[%s14525_s0 + $0x2a9] sm:$0xff]  ;;  %v7428_v59 = vld [vmem:[%s14525_s0 + $0x2a1] sm:$0xff] }
 0x972   :  { %v15250_v4 = vld [vmem:[#allocation15_spill] sm:$0xff]  ;;  %v15252_v40 = vld [vmem:[#allocation13_spill] sm:$0xff]  ;;  %v15256_v44 = vld [vmem:[#allocation24_spill] sm:$0xff] }
 0x973   :  { %v14330_v34 = vadd.f32 %v7412_v32, %v15250_v4  ;;  %v14333_v16 = vadd.f32 %v7413_v61, %v15252_v40  ;;  %v7431_v27 = vld [vmem:[%s14525_s0 + $0x2c1] sm:$0xff]  ;;  %v7430_v35 = vld [vmem:[%s14525_s0 + $0x2b9] sm:$0xff]  ;;  %v15254_v57 = vld [vmem:[#allocation11_spill] sm:$0xff]  ;;  %v14348_v18 = vadd.f32 %v7415_v33, %v15256_v44 }
 0x974   :  { %v7433_v43 = vld [vmem:[%s14525_s0 + $0x2d9] sm:$0xff]  ;;  %v14345_v52 = vadd.f32 %v7414_v8, %v15254_v57  ;;  %v15258_v10 = vld [vmem:[#allocation42_spill] sm:$0xff]  ;;  %v7432_v40 = vld [vmem:[%s14525_s0 + $0x2d1] sm:$0xff] }
 0x975   :  { %15251 = vst [vmem:[#allocation10_spill] sm:$0xff] %v14330_v34  ;;  %15253 = vst [vmem:[#allocation18_spill] sm:$0xff] %v14333_v16  ;;  %v14351_v61 = vadd.f32 %v7416_v6, %v15258_v10  ;;  %v15260_v32 = vld [vmem:[#allocation26_spill] sm:$0xff]  ;;  %v7435_v16 = vld [vmem:[%s14525_s0 + $0x2f1] sm:$0xff] }
 0x976   :  { %15255 = vst [vmem:[#allocation34_spill] sm:$0xff] %v14345_v52  ;;  %15257 = vst [vmem:[#allocation35_spill] sm:$0xff] %v14348_v18  ;;  %v14354_v4 = vadd.f32 %v7417_v9, %v15260_v32  ;;  %v7434_v8 = vld [vmem:[%s14525_s0 + $0x2e9] sm:$0xff]  ;;  %v15264_v6 = vld [vmem:[#allocation44_spill] sm:$0xff] }
 0x977   :  { %15259 = vst [vmem:[#allocation36_spill] sm:$0xff] %v14351_v61  ;;  %v15262_v33 = vld [vmem:[#allocation43_spill] sm:$0xff]  ;;  %v14369_v44 = vadd.f32 %v7419_v60, %v15264_v6  ;;  %v15266_v9 = vld [vmem:[#allocation12_spill] sm:$0xff]  ;;  %v7436_v18 = vld [vmem:[%s14525_s0 + $0x301] sm:$0xff] }
 0x978   :  { %15261 = vst [vmem:[#allocation38_spill] sm:$0xff] %v14354_v4  ;;  %v14366_v57 = vadd.f32 %v7418_v51, %v15262_v33  ;;  %v14372_v10 = vadd.f32 %v7420_v36, %v15266_v9  ;;  %v15268_v32 = vld [vmem:[#allocation39_spill] sm:$0xff]  ;;  %v7439_v51 = vld [vmem:[%s14525_s0 + $0x321] sm:$0xff] }
 0x979   :  { %15265 = vst [vmem:[#allocation15_spill] sm:$0xff] %v14369_v44  ;;  %v14375_v4 = vadd.f32 %v7421_v0, %v15268_v32  ;;  %v7437_v61 = vld [vmem:[%s14525_s0 + $0x309] sm:$0xff]  ;;  %v15270_v60 = vld [vmem:[#allocation41_spill] sm:$0xff]  ;;  %v15276_v32 = vld [vmem:[#allocation40_spill] sm:$0xff] }
 0x97a   :  { %15263 = vst [vmem:[#allocation19_spill] sm:$0xff] %v14366_v57  ;;  %15267 = vst [vmem:[#allocation13_spill] sm:$0xff] %v14372_v10  ;;  %v14387_v33 = vadd.f32 %v7422_v47, %v15270_v60  ;;  %v15272_v36 = vld [vmem:[#allocation45_spill] sm:$0xff]  ;;  %v7440_v47 = vld [vmem:[%s14525_s0 + $0x331] sm:$0xff] }
 0x97b   :  { %15269 = vst [vmem:[#allocation11_spill] sm:$0xff] %v14375_v4  ;;  %v14390_v6 = vadd.f32 %v7423_v24, %v15272_v36  ;;  %v15274_v0 = vld [vmem:[#allocation37_spill] sm:$0xff]  ;;  %v14396_v4 = vadd.f32 %v7425_v41, %v15276_v32  ;;  %v15278_v24 = vld [vmem:[#allocation16_spill] sm:$0xff]  ;;  %v15280_v41 = vld [vmem:[#allocation23_spill] sm:$0xff] }
 0x97c   :  { %15271 = vst [vmem:[#allocation24_spill] sm:$0xff] %v14387_v33  ;;  %v14393_v9 = vadd.f32 %v7424_v26, %v15274_v0  ;;  %v7438_v10 = vld [vmem:[%s14525_s0 + $0x319] sm:$0xff]  ;;  %v14408_v60 = vadd.f32 %v7426_v42, %v15278_v24  ;;  %v15279_v26 = vld [vmem:[#allocation22_spill] sm:$0xff]  ;;  %v14414_v0 = vadd.f32 %v7428_v59, %v15280_v41  ;;  %v15287_v59 = vld [vmem:[#allocation27_spill] sm:$0xff] }
 0x97d   :  { %15273 = vst [vmem:[#allocation42_spill] sm:$0xff] %v14390_v6  ;;  %15277 = vst [vmem:[#allocation43_spill] sm:$0xff] %v14396_v4  ;;  %v7441_v44 = vld [vmem:[%s14525_s0 + $0x339] sm:$0xff]  ;;  %v14411_v36 = vadd.f32 %v7427_v63, %v15279_v26  ;;  %v15281_v32 = vld [vmem:[#allocation14_spill] sm:$0xff]  ;;  %v14435_v41 = vadd.f32 %v7435_v16, %v15287_v59  ;;  %v6845_v16 = vmax.f32 %v14144_v39, 0.0  ;;  %v6847_v59 = vmax.f32 %v14150_v19, 0.0 }
 0x97e   :  { %15275 = vst [vmem:[#allocation26_spill] sm:$0xff] %v14393_v9  ;;  %v14417_v4 = vadd.f32 %v7429_v58, %v15281_v32  ;;  %v15282_v9 = vld [vmem:[#allocation32_spill] sm:$0xff]  ;;  %v15283_v33 = vld [vmem:[#allocation21_spill] sm:$0xff]  ;;  %v15286_v63 = vld [vmem:[#allocation31_spill] sm:$0xff]  ;;  %v6855_v39 = vmax.f32 %v14198_v45, 0.0  ;;  %v6858_v19 = vmax.f32 %v14219_v1, 0.0 }
 0x97f   :  { %v14420_v6 = vadd.f32 %v7430_v35, %v15282_v9  ;;  %v14423_v57 = vadd.f32 %v7431_v27, %v15283_v33  ;;  %v15284_v52 = vld [vmem:[#allocation33_spill] sm:$0xff]  ;;  %v14432_v26 = vadd.f32 %v7434_v8, %v15286_v63  ;;  %v15288_v58 = vld [vmem:[#allocation28_spill] sm:$0xff]  ;;  %v15289_v35 = vld [vmem:[#allocation30_spill] sm:$0xff]  ;;  %6909 = vst [vmem:[#allocation6] sm:$0xff] %v6845_v16  ;;  %v6865_v45 = vmax.f32 %v14261_v12, 0.0  ;;  %s8155_s0 = smov [#allocation6]  }
 0x980   :  { %v14426_v34 = vadd.f32 %v7432_v40, %v15284_v52  ;;  %v15285_v42 = vld [vmem:[#allocation25_spill] sm:$0xff]  ;;  %v14438_v32 = vadd.f32 %v7436_v18, %v15288_v58  ;;  %v14441_v9 = vadd.f32 %v7437_v61, %v15289_v35  ;;  %v6846_v18 = vmax.f32 %v14147_v56, 0.0  ;;  %6911 = vst [vmem:[#allocation6 + $0x10] sm:$0xff] %v6847_v59  ;;  %6919 = vst [vmem:[#allocation6 + $0x50] sm:$0xff] %v6855_v39  ;;  %v15301_v16 = vld [vmem:[#allocation15_spill] sm:$0xff]  ;;  %s6978_s26 = sshll.u32 %s8155_s0, 4  ;;  %s6979_s26 = int_to_ptr.vmem [resolvable:$true] %s6978_s26 }
 0x981   :  { %v14429_v24 = vadd.f32 %v7433_v43, %v15285_v42  ;;  %v15290_v27 = vld [vmem:[#allocation29_spill] sm:$0xff]  ;;  %v15292_v43 = vld [vmem:[#allocation20_spill] sm:$0xff]  ;;  %v6848_v61 = vmax.f32 %v14153_v22, 0.0  ;;  %v6850_v58 = vmax.f32 %v14171_v62, 0.0  ;;  %v6853_v35 = vmax.f32 %v14192_v17, 0.0  ;;  %6922 = vst [vmem:[#allocation6 + $0x68] sm:$0xff] %v6858_v19  ;;  %p8131_p6 = scmp.lt.s32.totalorder %s6979_s26, %s6979_s26 }
 0x982   :  { %v14444_v33 = vadd.f32 %v7438_v10, %v15290_v27  ;;  %v15291_v52 = vld [vmem:[#allocation17_spill] sm:$0xff]  ;;  %v14450_v42 = vadd.f32 %v7440_v47, %v15292_v43  ;;  %v6849_v10 = vmax.f32 %v14168_v46, 0.0  ;;  %v6852_v47 = vmax.f32 %v14177_v53, 0.0  ;;  %6910 = vst [vmem:[#allocation6 + $0x8] sm:$0xff] %v6846_v18  ;;  %6929 = vst [vmem:[#allocation6 + $0xa0] sm:$0xff] %v6865_v45  ;;  %v15298_v27 = vld [vmem:[#allocation36_spill] sm:$0xff] }
 0x983   :  { %v14447_v40 = vadd.f32 %v7439_v51, %v15291_v52  ;;  %v15293_v8 = vld [vmem:[#allocation9_spill] sm:$0xff]  ;;  %v6851_v51 = vmax.f32 %v14174_v55, 0.0  ;;  %v6856_v56 = vmax.f32 %v14201_v50, 0.0  ;;  %6912 = vst [vmem:[#allocation6 + $0x18] sm:$0xff] %v6848_v61  ;;  %v6857_v22 = vmax.f32 %v14216_v20, 0.0  ;;  %6914 = vst [vmem:[#allocation6 + $0x28] sm:$0xff] %v6850_v58 }
 0x984   :  { %v14453_v63 = vadd.f32 %v7441_v44, %v15293_v8  ;;  %v6854_v44 = vmax.f32 %v14195_v2, 0.0  ;;  %v6859_v46 = vmax.f32 %v14222_v54, 0.0  ;;  %v6860_v62 = vmax.f32 %v14225_v49, 0.0  ;;  %6913 = vst [vmem:[#allocation6 + $0x20] sm:$0xff] %v6849_v10  ;;  %6916 = vst [vmem:[#allocation6 + $0x38] sm:$0xff] %v6852_v47  ;;  %v15299_v43 = vld [vmem:[#allocation38_spill] sm:$0xff] }
 0x985   :  { %6915 = vst [vmem:[#allocation6 + $0x30] sm:$0xff] %v6851_v51  ;;  %v6861_v55 = vmax.f32 %v14240_v7, 0.0  ;;  %v6862_v53 = vmax.f32 %v14243_v3, 0.0  ;;  %v6863_v17 = vmax.f32 %v14246_v48, 0.0  ;;  %v6864_v2 = vmax.f32 %v14249_v11, 0.0  ;;  %6917 = vst [vmem:[#allocation6 + $0x40] sm:$0xff] %v6853_v35 }
 0x986   :  { %6918 = vst [vmem:[#allocation6 + $0x48] sm:$0xff] %v6854_v44  ;;  %6920 = vst [vmem:[#allocation6 + $0x58] sm:$0xff] %v6856_v56  ;;  %v6866_v50 = vmax.f32 %v14264_v30, 0.0  ;;  %v6867_v20 = vmax.f32 %v14267_v29, 0.0  ;;  %v6868_v1 = vmax.f32 %v14270_v31, 0.0  ;;  %v6869_v54 = vmax.f32 %v14282_v37, 0.0 }
 0x987   :  { %6921 = vst [vmem:[#allocation6 + $0x60] sm:$0xff] %v6857_v22  ;;  %6923 = vst [vmem:[#allocation6 + $0x70] sm:$0xff] %v6859_v46  ;;  %v6870_v49 = vmax.f32 %v14285_v14, 0.0  ;;  %v6871_v7 = vmax.f32 %v14288_v5, 0.0  ;;  %v6872_v3 = vmax.f32 %v14291_v21, 0.0  ;;  %v6873_v48 = vmax.f32 %v14303_v38, 0.0 }
 0x988   :  { %6924 = vst [vmem:[#allocation6 + $0x78] sm:$0xff] %v6860_v62  ;;  %6925 = vst [vmem:[#allocation6 + $0x80] sm:$0xff] %v6861_v55  ;;  %v6874_v11 = vmax.f32 %v14306_v25, 0.0  ;;  %v6875_v12 = vmax.f32 %v14309_v15, 0.0  ;;  %v6876_v30 = vmax.f32 %v14312_v13, 0.0  ;;  %v6877_v29 = vmax.f32 %v14324_v23, 0.0 }
 0x989   :  { %6926 = vst [vmem:[#allocation6 + $0x88] sm:$0xff] %v6862_v53  ;;  %6927 = vst [vmem:[#allocation6 + $0x90] sm:$0xff] %v6863_v17  ;;  %v6878_v31 = vmax.f32 %v14327_v28, 0.0  ;;  %v15294_v37 = vld [vmem:[#allocation10_spill] sm:$0xff]  ;;  %v15297_v15 = vld [vmem:[#allocation35_spill] sm:$0xff]  ;;  %v6883_v52 = vmax.f32 %v15298_v27, 0.0 }
 0x98a   :  { %6928 = vst [vmem:[#allocation6 + $0x98] sm:$0xff] %v6864_v2  ;;  %6930 = vst [vmem:[#allocation6 + $0xa8] sm:$0xff] %v6866_v50  ;;  %v6879_v14 = vmax.f32 %v15294_v37, 0.0  ;;  %v15295_v5 = vld [vmem:[#allocation18_spill] sm:$0xff]  ;;  %v6882_v13 = vmax.f32 %v15297_v15, 0.0  ;;  %v6884_v8 = vmax.f32 %v15299_v43, 0.0 }
 0x98b   :  { %6931 = vst [vmem:[#allocation6 + $0xb0] sm:$0xff] %v6867_v20  ;;  %6932 = vst [vmem:[#allocation6 + $0xb8] sm:$0xff] %v6868_v1  ;;  %v6880_v21 = vmax.f32 %v15295_v5, 0.0  ;;  %v15296_v38 = vld [vmem:[#allocation34_spill] sm:$0xff]  ;;  %v15300_v23 = vld [vmem:[#allocation19_spill] sm:$0xff]  ;;  %v6886_v18 = vmax.f32 %v15301_v16, 0.0 }
 0x98c   :  { %6933 = vst [vmem:[#allocation6 + $0xc0] sm:$0xff] %v6869_v54  ;;  %6934 = vst [vmem:[#allocation6 + $0xc8] sm:$0xff] %v6870_v49  ;;  %v6881_v25 = vmax.f32 %v15296_v38, 0.0  ;;  %v6885_v28 = vmax.f32 %v15300_v23, 0.0  ;;  %v15302_v59 = vld [vmem:[#allocation13_spill] sm:$0xff]  ;;  %v15303_v10 = vld [vmem:[#allocation11_spill] sm:$0xff] }
 0x98d   :  { %6935 = vst [vmem:[#allocation6 + $0xd0] sm:$0xff] %v6871_v7  ;;  %6936 = vst [vmem:[#allocation6 + $0xd8] sm:$0xff] %v6872_v3  ;;  %v6887_v61 = vmax.f32 %v15302_v59, 0.0  ;;  %v6888_v58 = vmax.f32 %v15303_v10, 0.0  ;;  %v15304_v51 = vld [vmem:[#allocation24_spill] sm:$0xff]  ;;  %v15305_v35 = vld [vmem:[#allocation42_spill] sm:$0xff] }
 0x98e   :  { %6937 = vst [vmem:[#allocation6 + $0xe0] sm:$0xff] %v6873_v48  ;;  %6938 = vst [vmem:[#allocation6 + $0xe8] sm:$0xff] %v6874_v11  ;;  %v6889_v47 = vmax.f32 %v15304_v51, 0.0  ;;  %v6890_v44 = vmax.f32 %v15305_v35, 0.0  ;;  %v15306_v39 = vld [vmem:[#allocation26_spill] sm:$0xff]  ;;  %v15307_v22 = vld [vmem:[#allocation43_spill] sm:$0xff] }
 0x98f   :  { %6939 = vst [vmem:[#allocation6 + $0xf0] sm:$0xff] %v6875_v12  ;;  %6940 = vst [vmem:[#allocation6 + $0xf8] sm:$0xff] %v6876_v30  ;;  %v6891_v56 = vmax.f32 %v15306_v39, 0.0  ;;  %v6892_v19 = vmax.f32 %v15307_v22, 0.0  ;;  %v6893_v46 = vmax.f32 %v14408_v60, 0.0  ;;  %v6894_v62 = vmax.f32 %v14411_v36, 0.0 }
 0x990   :  { %6941 = vst [vmem:[#allocation6 + $0x100] sm:$0xff] %v6877_v29  ;;  %6942 = vst [vmem:[#allocation6 + $0x108] sm:$0xff] %v6878_v31  ;;  %v6895_v55 = vmax.f32 %v14414_v0, 0.0  ;;  %v6896_v53 = vmax.f32 %v14417_v4, 0.0  ;;  %v6897_v17 = vmax.f32 %v14420_v6, 0.0  ;;  %v6898_v2 = vmax.f32 %v14423_v57, 0.0 }
 0x991   :  { %6943 = vst [vmem:[#allocation6 + $0x110] sm:$0xff] %v6879_v14  ;;  %6944 = vst [vmem:[#allocation6 + $0x118] sm:$0xff] %v6880_v21  ;;  %v6899_v45 = vmax.f32 %v14426_v34, 0.0  ;;  %v6900_v60 = vmax.f32 %v14429_v24, 0.0  ;;  %v6901_v4 = vmax.f32 %v14432_v26, 0.0  ;;  %v6902_v36 = vmax.f32 %v14435_v41, 0.0 }
 0x992   :  { %6945 = vst [vmem:[#allocation6 + $0x120] sm:$0xff] %v6881_v25  ;;  %6946 = vst [vmem:[#allocation6 + $0x128] sm:$0xff] %v6882_v13  ;;  %v6903_v0 = vmax.f32 %v14438_v32, 0.0  ;;  %v6904_v50 = vmax.f32 %v14441_v9, 0.0  ;;  %v6905_v34 = vmax.f32 %v14444_v33, 0.0  ;;  %v6906_v57 = vmax.f32 %v14447_v40, 0.0 }
 0x993   :  { %6947 = vst [vmem:[#allocation6 + $0x130] sm:$0xff] %v6883_v52  ;;  %6948 = vst [vmem:[#allocation6 + $0x138] sm:$0xff] %v6884_v8  ;;  %v6907_v6 = vmax.f32 %v14450_v42, 0.0  ;;  %v6908_v24 = vmax.f32 %v14453_v63, 0.0  ;;  %s8126_s27 = scalar_lea.vmem %s6979_s26, 8192 }
 0x994   :  { %6949 = vst [vmem:[#allocation6 + $0x140] sm:$0xff] %v6885_v28  ;;  %6950 = vst [vmem:[#allocation6 + $0x148] sm:$0xff] %v6886_v18  ;;  %p8127_p5 = scmp.ne.s32.totalorder %s6979_s26, %s8126_s27  ;;  %p8132_p7 = scmp.lt.s32.totalorder %s8126_s27, %s8126_s27 }
 0x995   :  { %6951 = vst [vmem:[#allocation6 + $0x150] sm:$0xff] %v6887_v61  ;;  %6952 = vst [vmem:[#allocation6 + $0x158] sm:$0xff] %v6888_v58 }
 0x996   :  { %6953 = vst [vmem:[#allocation6 + $0x160] sm:$0xff] %v6889_v47  ;;  %6954 = vst [vmem:[#allocation6 + $0x168] sm:$0xff] %v6890_v44  ;;  %p8133_p8 = por %p8132_p7, %p8131_p6 }
 0x997   :  { %6955 = vst [vmem:[#allocation6 + $0x170] sm:$0xff] %v6891_v56  ;;  %6956 = vst [vmem:[#allocation6 + $0x178] sm:$0xff] %v6892_v19 }
 0x998   :  { %6957 = vst [vmem:[#allocation6 + $0x180] sm:$0xff] %v6893_v46  ;;  %6958 = vst [vmem:[#allocation6 + $0x188] sm:$0xff] %v6894_v62  ;;  %p8134_p9 = pnand %p8133_p8, %p8127_p5 }
 0x999   :  { %6959 = vst [vmem:[#allocation6 + $0x190] sm:$0xff] %v6895_v55  ;;  %6960 = vst [vmem:[#allocation6 + $0x198] sm:$0xff] %v6896_v53 }
 0x99a   :  { %6961 = vst [vmem:[#allocation6 + $0x1a0] sm:$0xff] %v6897_v17  ;;  %6962 = vst [vmem:[#allocation6 + $0x1a8] sm:$0xff] %v6898_v2 }
 0x99b   :  { %6963 = vst [vmem:[#allocation6 + $0x1b0] sm:$0xff] %v6899_v45  ;;  %6964 = vst [vmem:[#allocation6 + $0x1b8] sm:$0xff] %v6900_v60 }
 0x99c   :  { %6965 = vst [vmem:[#allocation6 + $0x1c0] sm:$0xff] %v6901_v4  ;;  %6966 = vst [vmem:[#allocation6 + $0x1c8] sm:$0xff] %v6902_v36 }
 0x99d   :  { %6967 = vst [vmem:[#allocation6 + $0x1d0] sm:$0xff] %v6903_v0  ;;  %6968 = vst [vmem:[#allocation6 + $0x1d8] sm:$0xff] %v6904_v50 }
 0x99e   :  { %6969 = vst [vmem:[#allocation6 + $0x1e0] sm:$0xff] %v6905_v34  ;;  %6970 = vst [vmem:[#allocation6 + $0x1e8] sm:$0xff] %v6906_v57 }
 0x99f   :  { %6971 = vst [vmem:[#allocation6 + $0x1f0] sm:$0xff] %v6907_v6  ;;  %6972 = vst [vmem:[#allocation6 + $0x1f8] sm:$0xff] %v6908_v24 }
 0x9a0   :  { %8137 = shalt.err (!%p8134_p9)
}
 0x9a1   :  { %6984 = dma.vmem_to_hbm [thread:$0]  %s6979_s26, 8192, %s14535_s10, [#allocation5], %s8151_s16, %s8151_s16, %s8152_s17  }
 0x9a2   :  { %8148 = dma.done.wait [#allocation5], 8192  }
 0x9a3   :  { %8149 = vsyncadd [#allocation5], 4294959104 }
 0x9a4   :  { %6988 = vsyncpa [#allocation4], 1 }
 0x9a5   :  { %6989 = vsyncpa [#allocation5], 1 }

</bundles_post_ra>
